<compile_context>
chip_gen: v7x
topology: tpu7x:2x2x1
jax: 0.10.0
libtpu: 0.0.40
codegen_flags: <defaults>
</compile_context>

<pallas_src>
import jax
import jax.numpy as jnp
from jax.experimental import pallas as pl
from jax.experimental.pallas import tpu as pltpu


# ----------------------------------------------------------------------- exact GELU
_ERF_P = 0.3275911
_ERF_A = (0.254829592, -0.284496736, 1.421413741, -1.453152027, 1.061405429)


def _erf_approx(x):
    # Abramowitz & Stegun 7.1.26 (abs err <= 1.5e-7); only exp -> lowers on Mosaic.
    sign = jnp.where(x >= 0.0, 1.0, -1.0)
    ax = jnp.abs(x)
    t = 1.0 / (1.0 + _ERF_P * ax)
    a1, a2, a3, a4, a5 = _ERF_A
    poly = ((((a5 * t + a4) * t + a3) * t + a2) * t + a1) * t
    return sign * (1.0 - poly * jnp.exp(-ax * ax))


def _gelu_exact(x):
    # nn.GELU() default (approximate='none'): 0.5*x*(1+erf(x/sqrt(2)))
    return 0.5 * x * (1.0 + _erf_approx(x * 0.7071067811865476))


# ----------------------------------------------------------------------- fused kernel
def _repconv_kernel(x9_ref, xc_ref, w3_ref, w1_ref, gb_ref, o_ref):
    # x9 : (M, 9*C1)  im2col patches (tap-major, channel-minor columns)
    # xc : (M, C1)    flat NHWC activation (input of the 1x1 branch)
    # w3 : (9*C1, tc) 3x3 weights for this channel tile
    # w1 : (C1, tc)   1x1 weights for this channel tile
    # gb : (4, tc)    rows = [bn1_gamma, bn1_beta, bn2_gamma, bn2_beta]
    y1 = jnp.dot(x9_ref[...], w3_ref[...], preferred_element_type=jnp.float32)
    y2 = jnp.dot(xc_ref[...], w1_ref[...], preferred_element_type=jnp.float32)

    def stats(y):
        mu = jnp.mean(y, axis=0, keepdims=True)
        yc = y - mu
        var = jnp.mean(yc * yc, axis=0, keepdims=True)   # biased var (torch training)
        return yc, var

    yc1, v1 = stats(y1)
    yc2, v2 = stats(y2)
    s1 = jax.lax.rsqrt(v1 + 1e-5) * gb_ref[0:1, :]       # (1, tc) per-channel scale
    s2 = jax.lax.rsqrt(v2 + 1e-5) * gb_ref[2:3, :]
    bias = gb_ref[1:2, :] + gb_ref[3:4, :]                # (1, tc) combined shift

    z = yc1 * s1 + yc2 * s2 + bias
    o_ref[...] = _gelu_exact(z).astype(o_ref.dtype)


# ----------------------------------------------------------------------- forward
def repconv_forward(x, params, tc=128):
    """RepConv.forward (k=3, s=1, p=1, g=1, bn=False). x: (B, C1, H, W) NCHW."""
    B, C1, H, W = x.shape
    w3 = params["w3"]                      # (C2, C1, 3, 3) torch OIHW
    w1 = params["w1"]                      # (C2, C1, 1, 1)
    C2 = w3.shape[0]
    M = B * H * W

    # ---- layout glue (runs once under jit): NHWC + im2col for the 3x3 branch ----
    xt = jnp.transpose(x, (0, 2, 3, 1))                              # (B, H, W, C1)
    xp = jnp.pad(xt, ((0, 0), (1, 1), (1, 1), (0, 0)))
    taps = [xp[:, dy:dy + H, dx:dx + W, :] for dy in range(3) for dx in range(3)]
    x9 = jnp.stack(taps, axis=3).reshape(M, 9 * C1)                  # (M, 9*C1)
    xc = xt.reshape(M, C1)                                           # (M, C1)

    # weights -> (K, C2), K rows ordered (dy, dx, ci) to match x9 columns
    w3m = jnp.transpose(w3, (2, 3, 1, 0)).reshape(9 * C1, C2)
    w1m = jnp.transpose(w1.reshape(C2, C1), (1, 0))                  # (C1, C2)

    gb = jnp.stack([params["bn1_g"], params["bn1_b"],
                    params["bn2_g"], params["bn2_b"]], axis=0)       # (4, C2)

    tc = min(tc, C2)
    out_flat = pl.pallas_call(
        _repconv_kernel,
        out_shape=jax.ShapeDtypeStruct((M, C2), x.dtype),
        grid=(pl.cdiv(C2, tc),),
        in_specs=[
            pl.BlockSpec((M, 9 * C1), lambda i: (0, 0)),
            pl.BlockSpec((M, C1), lambda i: (0, 0)),
            pl.BlockSpec((9 * C1, tc), lambda i: (0, i)),
            pl.BlockSpec((C1, tc), lambda i: (0, i)),
            pl.BlockSpec((4, tc), lambda i: (0, i)),
        ],
        out_specs=pl.BlockSpec((M, tc), lambda i: (0, i)),
        compiler_params=pltpu.CompilerParams(
            dimension_semantics=("parallel",),
            vmem_limit_bytes=96 * 1024 * 1024,
        ),
    )(x9, xc, w3m, w1m, gb)

    return jnp.transpose(out_flat.reshape(B, H, W, C2), (0, 3, 1, 2))  # NCHW


# ----------------------------------------------------------------------- pure-JAX reference
def ref_repconv(x, params):
    w3, w1 = params["w3"], params["w1"]
    y1 = jax.lax.conv_general_dilated(
        x, w3, (1, 1), ((1, 1), (1, 1)),
        dimension_numbers=("NCHW", "OIHW", "NCHW"),
        precision=jax.lax.Precision.HIGHEST)
    y2 = jax.lax.conv_general_dilated(
        x, w1, (1, 1), ((0, 0), (0, 0)),
        dimension_numbers=("NCHW", "OIHW", "NCHW"),
        precision=jax.lax.Precision.HIGHEST)

    def bn(y, g, b):
        mu = jnp.mean(y, axis=(0, 2, 3), keepdims=True)
        var = jnp.mean((y - mu) ** 2, axis=(0, 2, 3), keepdims=True)
        return ((y - mu) * jax.lax.rsqrt(var + 1e-5)
                * g.reshape(1, -1, 1, 1) + b.reshape(1, -1, 1, 1))

    z = bn(y1, params["bn1_g"], params["bn1_b"]) + bn(y2, params["bn2_g"], params["bn2_b"])
    return 0.5 * z * (1.0 + jax.scipy.special.erf(z * 0.7071067811865476))


# ----------------------------------------------------------------------- main
if __name__ == "__main__":
    B, C1, C2, H, W = 2, 64, 256, 16, 16   # RepConv(c1=64, c2=256), 16x16 spatial

    key = jax.random.PRNGKey(0)
    k = jax.random.split(key, 7)
    params = dict(
        w3=0.1 * jax.random.normal(k[0], (C2, C1, 3, 3), jnp.float32),
        w1=0.1 * jax.random.normal(k[1], (C2, C1, 1, 1), jnp.float32),
        bn1_g=1.0 + 0.1 * jax.random.normal(k[2], (C2,), jnp.float32),
        bn1_b=0.05 * jax.random.normal(k[3], (C2,), jnp.float32),
        bn2_g=1.0 + 0.1 * jax.random.normal(k[4], (C2,), jnp.float32),
        bn2_b=0.05 * jax.random.normal(k[5], (C2,), jnp.float32),
    )
    x = jax.random.normal(k[6], (B, C1, H, W), jnp.float32)

    fwd = jax.jit(repconv_forward)
    out = jax.block_until_ready(fwd(x, params))

    ref = ref_repconv(x, params)
    err = float(jnp.max(jnp.abs(out - ref)))
    assert out.shape == (B, C2, H, W), out.shape
    assert err < 1e-2, f"mismatch vs reference: {err}"
    print("KERNEL_OK")
</pallas_src>

<mosaic_0001>
module attributes {stable_mosaic.version = 11 : i64} {
  func.func @_repconv_kernel(%arg0: i32, %arg1: memref<512x576xf32, #tpu.memory_space<vmem>>, %arg2: memref<512x64xf32, #tpu.memory_space<vmem>>, %arg3: memref<576x128xf32, #tpu.memory_space<vmem>>, %arg4: memref<64x128xf32, #tpu.memory_space<vmem>>, %arg5: memref<4x128xf32, #tpu.memory_space<vmem>>, %arg6: memref<512x128xf32, #tpu.memory_space<vmem>>) attributes {dimension_semantics = [#tpu.dimension_semantics<parallel>], iteration_bounds = array<i64: 2>, scalar_prefetch = 0 : i64, scratch_operands = 0 : i64, tpu.core_type = #tpu.core_type<tc>, window_params = [{pipeline_mode = #tpu.pipeline_mode<synchronous>, transform_indices = @transform_0, window_bounds = array<i64: 512, 576>}, {pipeline_mode = #tpu.pipeline_mode<synchronous>, transform_indices = @transform_1, window_bounds = array<i64: 512, 64>}, {transform_indices = @transform_2, window_bounds = array<i64: 576, 128>}, {transform_indices = @transform_3, window_bounds = array<i64: 64, 128>}, {transform_indices = @transform_4, window_bounds = array<i64: 4, 128>}, {transform_indices = @transform_5, window_bounds = array<i64: 512, 128>}]} {
    %c0 = arith.constant 0 : index
    %c0_0 = arith.constant 0 : index
    %0 = vector.load %arg1[%c0, %c0_0] : memref<512x576xf32, #tpu.memory_space<vmem>>, vector<512x576xf32>
    %c0_1 = arith.constant 0 : index
    %c0_2 = arith.constant 0 : index
    %1 = vector.load %arg3[%c0_1, %c0_2] : memref<576x128xf32, #tpu.memory_space<vmem>>, vector<576x128xf32>
    %cst = arith.constant dense<0.000000e+00> : vector<512x128xf32>
    %2 = tpu.matmul %0, %1, %cst {dimension_numbers = #tpu.dot_dimension_numbers<[1], [0], [0], [1], [0, 0, 1, 1], [], []>} : vector<512x576xf32>, vector<576x128xf32>, vector<512x128xf32> -> vector<512x128xf32>
    %c0_3 = arith.constant 0 : index
    %c0_4 = arith.constant 0 : index
    %3 = vector.load %arg2[%c0_3, %c0_4] : memref<512x64xf32, #tpu.memory_space<vmem>>, vector<512x64xf32>
    %c0_5 = arith.constant 0 : index
    %c0_6 = arith.constant 0 : index
    %4 = vector.load %arg4[%c0_5, %c0_6] : memref<64x128xf32, #tpu.memory_space<vmem>>, vector<64x128xf32>
    %cst_7 = arith.constant dense<0.000000e+00> : vector<512x128xf32>
    %5 = tpu.matmul %3, %4, %cst_7 {dimension_numbers = #tpu.dot_dimension_numbers<[1], [0], [0], [1], [0, 0, 1, 1], [], []>} : vector<512x64xf32>, vector<64x128xf32>, vector<512x128xf32> -> vector<512x128xf32>
    %cst_8 = arith.constant dense<0.000000e+00> : vector<128xf32>
    %6 = vector.multi_reduction <add>, %2, %cst_8 [0] : vector<512x128xf32> to vector<128xf32>
    %7 = vector.shape_cast %6 : vector<128xf32> to vector<1x128xf32>
    %cst_9 = arith.constant 5.120000e+02 : f32
    %8 = vector.broadcast %cst_9 : f32 to vector<1x128xf32>
    %9 = arith.divf %7, %8 : vector<1x128xf32>
    %10 = vector.broadcast %9 : vector<1x128xf32> to vector<512x128xf32>
    %11 = arith.subf %2, %10 : vector<512x128xf32>
    %12 = arith.mulf %11, %11 : vector<512x128xf32>
    %cst_10 = arith.constant dense<0.000000e+00> : vector<128xf32>
    %13 = vector.multi_reduction <add>, %12, %cst_10 [0] : vector<512x128xf32> to vector<128xf32>
    %14 = vector.shape_cast %13 : vector<128xf32> to vector<1x128xf32>
    %cst_11 = arith.constant 5.120000e+02 : f32
    %15 = vector.broadcast %cst_11 : f32 to vector<1x128xf32>
    %16 = arith.divf %14, %15 : vector<1x128xf32>
    %cst_12 = arith.constant dense<0.000000e+00> : vector<128xf32>
    %17 = vector.multi_reduction <add>, %5, %cst_12 [0] : vector<512x128xf32> to vector<128xf32>
    %18 = vector.shape_cast %17 : vector<128xf32> to vector<1x128xf32>
    %cst_13 = arith.constant 5.120000e+02 : f32
    %19 = vector.broadcast %cst_13 : f32 to vector<1x128xf32>
    %20 = arith.divf %18, %19 : vector<1x128xf32>
    %21 = vector.broadcast %20 : vector<1x128xf32> to vector<512x128xf32>
    %22 = arith.subf %5, %21 : vector<512x128xf32>
    %23 = arith.mulf %22, %22 : vector<512x128xf32>
    %cst_14 = arith.constant dense<0.000000e+00> : vector<128xf32>
    %24 = vector.multi_reduction <add>, %23, %cst_14 [0] : vector<512x128xf32> to vector<128xf32>
    %25 = vector.shape_cast %24 : vector<128xf32> to vector<1x128xf32>
    %cst_15 = arith.constant 5.120000e+02 : f32
    %26 = vector.broadcast %cst_15 : f32 to vector<1x128xf32>
    %27 = arith.divf %25, %26 : vector<1x128xf32>
    %cst_16 = arith.constant 9.99999974E-6 : f32
    %28 = vector.broadcast %cst_16 : f32 to vector<1x128xf32>
    %29 = arith.addf %16, %28 : vector<1x128xf32>
    %30 = math.rsqrt %29 : vector<1x128xf32>
    %c0_17 = arith.constant 0 : index
    %c0_18 = arith.constant 0 : index
    %31 = vector.load %arg5[%c0_17, %c0_18] : memref<4x128xf32, #tpu.memory_space<vmem>>, vector<1x128xf32>
    %32 = arith.mulf %30, %31 : vector<1x128xf32>
    %cst_19 = arith.constant 9.99999974E-6 : f32
    %33 = vector.broadcast %cst_19 : f32 to vector<1x128xf32>
    %34 = arith.addf %27, %33 : vector<1x128xf32>
    %35 = math.rsqrt %34 : vector<1x128xf32>
    %c2 = arith.constant 2 : index
    %c0_20 = arith.constant 0 : index
    %36 = vector.load %arg5[%c2, %c0_20] : memref<4x128xf32, #tpu.memory_space<vmem>>, vector<1x128xf32>
    %37 = arith.mulf %35, %36 : vector<1x128xf32>
    %c1 = arith.constant 1 : index
    %c0_21 = arith.constant 0 : index
    %38 = vector.load %arg5[%c1, %c0_21] : memref<4x128xf32, #tpu.memory_space<vmem>>, vector<1x128xf32>
    %c3 = arith.constant 3 : index
    %c0_22 = arith.constant 0 : index
    %39 = vector.load %arg5[%c3, %c0_22] : memref<4x128xf32, #tpu.memory_space<vmem>>, vector<1x128xf32>
    %40 = arith.addf %38, %39 : vector<1x128xf32>
    %41 = vector.broadcast %32 : vector<1x128xf32> to vector<512x128xf32>
    %42 = arith.mulf %11, %41 : vector<512x128xf32>
    %43 = vector.broadcast %37 : vector<1x128xf32> to vector<512x128xf32>
    %44 = arith.mulf %22, %43 : vector<512x128xf32>
    %45 = arith.addf %42, %44 : vector<512x128xf32>
    %46 = vector.broadcast %40 : vector<1x128xf32> to vector<512x128xf32>
    %47 = arith.addf %45, %46 : vector<512x128xf32>
    %cst_23 = arith.constant 5.000000e-01 : f32
    %48 = vector.broadcast %cst_23 : f32 to vector<512x128xf32>
    %49 = arith.mulf %48, %47 : vector<512x128xf32>
    %cst_24 = arith.constant 0.707106769 : f32
    %50 = vector.broadcast %cst_24 : f32 to vector<512x128xf32>
    %51 = arith.mulf %47, %50 : vector<512x128xf32>
    %cst_25 = arith.constant 0.000000e+00 : f32
    %52 = vector.broadcast %cst_25 : f32 to vector<512x128xf32>
    %53 = arith.cmpf oge, %51, %52 : vector<512x128xf32>
    %cst_26 = arith.constant 1.000000e+00 : f32
    %cst_27 = arith.constant -1.000000e+00 : f32
    %54 = vector.broadcast %cst_26 : f32 to vector<512x128xf32>
    %55 = vector.broadcast %cst_27 : f32 to vector<512x128xf32>
    %56 = arith.select %53, %54, %55 : vector<512x128xi1>, vector<512x128xf32>
    %57 = math.absf %51 : vector<512x128xf32>
    %cst_28 = arith.constant 0.327591091 : f32
    %58 = vector.broadcast %cst_28 : f32 to vector<512x128xf32>
    %59 = arith.mulf %58, %57 : vector<512x128xf32>
    %cst_29 = arith.constant 1.000000e+00 : f32
    %60 = vector.broadcast %cst_29 : f32 to vector<512x128xf32>
    %61 = arith.addf %60, %59 : vector<512x128xf32>
    %cst_30 = arith.constant 1.000000e+00 : f32
    %62 = vector.broadcast %cst_30 : f32 to vector<512x128xf32>
    %63 = arith.divf %62, %61 : vector<512x128xf32>
    %cst_31 = arith.constant 1.06140542 : f32
    %64 = vector.broadcast %cst_31 : f32 to vector<512x128xf32>
    %65 = arith.mulf %64, %63 : vector<512x128xf32>
    %cst_32 = arith.constant -1.45315206 : f32
    %66 = vector.broadcast %cst_32 : f32 to vector<512x128xf32>
    %67 = arith.addf %65, %66 : vector<512x128xf32>
    %68 = arith.mulf %67, %63 : vector<512x128xf32>
    %cst_33 = arith.constant 1.42141378 : f32
    %69 = vector.broadcast %cst_33 : f32 to vector<512x128xf32>
    %70 = arith.addf %68, %69 : vector<512x128xf32>
    %71 = arith.mulf %70, %63 : vector<512x128xf32>
    %cst_34 = arith.constant -0.284496725 : f32
    %72 = vector.broadcast %cst_34 : f32 to vector<512x128xf32>
    %73 = arith.addf %71, %72 : vector<512x128xf32>
    %74 = arith.mulf %73, %63 : vector<512x128xf32>
    %cst_35 = arith.constant 0.254829586 : f32
    %75 = vector.broadcast %cst_35 : f32 to vector<512x128xf32>
    %76 = arith.addf %74, %75 : vector<512x128xf32>
    %77 = arith.mulf %76, %63 : vector<512x128xf32>
    %cst_36 = arith.constant 0.000000e+00 : f32
    %78 = vector.broadcast %cst_36 : f32 to vector<512x128xf32>
    %79 = arith.subf %78, %57 : vector<512x128xf32>
    %80 = arith.mulf %79, %57 : vector<512x128xf32>
    %81 = math.exp %80 : vector<512x128xf32>
    %82 = arith.mulf %77, %81 : vector<512x128xf32>
    %cst_37 = arith.constant 1.000000e+00 : f32
    %83 = vector.broadcast %cst_37 : f32 to vector<512x128xf32>
    %84 = arith.subf %83, %82 : vector<512x128xf32>
    %85 = arith.mulf %56, %84 : vector<512x128xf32>
    %cst_38 = arith.constant 1.000000e+00 : f32
    %86 = vector.broadcast %cst_38 : f32 to vector<512x128xf32>
    %87 = arith.addf %86, %85 : vector<512x128xf32>
    %88 = arith.mulf %49, %87 : vector<512x128xf32>
    %c0_39 = arith.constant 0 : index
    %c0_40 = arith.constant 0 : index
    %89 = vector.load %arg6[%c0_39, %c0_40] : memref<512x128xf32, #tpu.memory_space<vmem>>, vector<512x128xf32>
    tpu.vector_store %arg6[%c0_39, %c0_40], %88 {strides = array<i32>} : memref<512x128xf32, #tpu.memory_space<vmem>>, vector<512x128xf32>,
    return
  }
  func.func @transform_0(%arg0: i32) -> (i32, i32) {
    %c0_i32 = arith.constant 0 : i32
    %c0_i32_0 = arith.constant 0 : i32
    %c0_i32_1 = arith.constant 0 : i32
    return %c0_i32, %c0_i32_0 : i32, i32
  }
  func.func @transform_1(%arg0: i32) -> (i32, i32) {
    %c0_i32 = arith.constant 0 : i32
    %c0_i32_0 = arith.constant 0 : i32
    %c0_i32_1 = arith.constant 0 : i32
    return %c0_i32, %c0_i32_0 : i32, i32
  }
  func.func @transform_2(%arg0: i32) -> (i32, i32) {
    %c0_i32 = arith.constant 0 : i32
    %c0_i32_0 = arith.constant 0 : i32
    return %c0_i32, %arg0 : i32, i32
  }
  func.func @transform_3(%arg0: i32) -> (i32, i32) {
    %c0_i32 = arith.constant 0 : i32
    %c0_i32_0 = arith.constant 0 : i32
    return %c0_i32, %arg0 : i32, i32
  }
  func.func @transform_4(%arg0: i32) -> (i32, i32) {
    %c0_i32 = arith.constant 0 : i32
    %c0_i32_0 = arith.constant 0 : i32
    return %c0_i32, %arg0 : i32, i32
  }
  func.func @transform_5(%arg0: i32) -> (i32, i32) {
    %c0_i32 = arith.constant 0 : i32
    %c0_i32_0 = arith.constant 0 : i32
    return %c0_i32, %arg0 : i32, i32
  }
}

</mosaic_0001>

<bundles_post_ra>
// kernel: repconv_forward.1
= control target key start
LH: loop header
LB: loop body
LE: loop exit
PB: predicated region body
PF: predicated region fallthrough
CT: control target
= control target key end

     0   :  { %s13713_s0 = inlined_call_operand.hbm [shape: f32[512,576], index: 0, kind: input, shape index: {}]   ;;  %s13714_s1 = inlined_call_operand.hbm [shape: f32[512,64], index: 1, kind: input, shape index: {}]   ;;  %s13715_s2 = inlined_call_operand.hbm [shape: f32[576,256], index: 2, kind: input, shape index: {}]   ;;  %s13716_s3 = inlined_call_operand.hbm [shape: f32[64,256], index: 3, kind: input, shape index: {}]   ;;  %s13717_s4 = inlined_call_operand.hbm [shape: f32[4,256], index: 4, kind: input, shape index: {}]   ;;  %s13718_s5 = inlined_call_operand.hbm [shape: f32[512,256], index: 5, kind: output, shape index: {}]  }
   0x1   :  { %14187 = sst [smem:[#allocation294_spill]] %s13713_s0 }
   0x2   :  { %14188 = sst [smem:[#allocation295_spill]] %s13715_s2 }
   0x3   :  { %14189 = sst [smem:[#allocation296_spill]] %s13716_s3 }
   0x4   :  { %10 = vsyncpa [#allocation3], 0 }
   0x5   :  { %11 = vsyncpa [#allocation6], 0 }
   0x6   :  { %12 = vsyncpa [#allocation4], 0 }
   0x7   :  { %14 = vsyncpa [#allocation4 + $0x1], 0  ;;  %s6870_s18 = smov 0   ;;  %s6872_s19 = smov 0  }
   0x8   :  { %s6874_s20 = smov 0   ;;  %s6876_s21 = smov 0  }
   0x9 LB: > { %14190 = sst [smem:[#allocation15_spill]] %s6818_s20  ;;  %s6891_s22 = sadd.s32 4294967295, %s6822_s21   ;;  %s6822_s21 = sphi %s6876_s21, %s16082_s21   ;;  %s6818_s20 = sphi %s6874_s20, %s16084_s20   ;;  %s6814_s19 = sphi %s6872_s19, %s16086_s19   ;;  %s6810_s18 = sphi %s6870_s18, %s16085_s18  }
   0xa   : > { %s5481_s23 = sadd.s32 4294967294, %s6822_s21   ;;  %s6895_s24 = sadd.s32 1, %s6822_s21  }
   0xb   : > { %14191 = sst [smem:[#allocation16_spill]] %s6895_s24  ;;  %s69_s25 = sadd.s32 1, %s6818_s20 }
   0xc   : > { %s66_s26 = ssub.s32 %s6822_s21, %s6895_s24  ;;  %p76_p0 = scmp.ne.s32.totalorder %s6818_s20, %s6814_s19 }
   0xd   : > { %p67_p1 = scmp.eq.s32.totalorder %s66_s26, 0  ;;  %p77_p2 = scmp.eq.s32.totalorder %s6822_s21, 0 }
   0xe   : > { %p82_p3 = scmp.ne.s32.totalorder %s6814_s19, %s6810_s18  ;;  %p13719_p4 = scmp.eq.s32.totalorder %s6891_s22, 0 }
   0xf   : > { %s6907_s27 = scalar_select %p67_p1, %s6818_s20, %s69_s25  }
  0x10   : > { %p6909_p5 = por %p77_p2, %p76_p0  ;;  %p6915_p6 = por %p13719_p4, %p82_p3 }
  0x11   : > { %14192 = sst [smem:[#allocation17_spill]] %s6907_s27  ;;  %p158_p7 = scmp.eq.s32.totalorder %s6891_s22, 1 }
  0x12   : > { %s14193_s28 = scalar_select %p6909_p5, 1, 0 }
  0x13   : > { %s14194_s29 = scalar_select %p6915_p6, 1, 0 }
  0x14   : > { %p164_p8 = scmp.eq.s32.totalorder %s5481_s23, 1  ;;  %p5482_p9 = scmp.ge.s32.totalorder %s6822_s21, 1 }
  0x15   : > { %p171_p10 = scmp.lt.s32.totalorder %s6822_s21, 3  ;;  %p6922_p11 = por %p158_p7, %p76_p0 }
  0x16   : > { %p6926_p12 = por %p164_p8, %p82_p3  ;;  %s6824_s8 = smov [#allocation2]  }
  0x17   : > { %s14195_s30 = scalar_select %p6922_p11, 1, 0 }
  0x18   : > { %s14196_s6 = scalar_select %p6926_p12, 1, 0 }
  0x19   : > { %p6930_p13 = pnand %p5482_p9, %p171_p10  ;;  %s183_s9 = sshll.u32 %s6824_s8, 4  ;;  %s184_s9 = int_to_ptr.vmem [resolvable:$true] %s183_s9 }
  0x1a   : > { %s14199_s0 = sld [smem:[#allocation294_spill]] }
  0x1b   : > { %s14197_s7 = scalar_select %p6930_p13, 1, 0 }
  0x1c   : > { %p6271_p1 = pneg %p6930_p13 }
  0x1e   : > { %p6938_p2 = pnand %p6271_p1, %p13719_p4 }
  0x20   : > { %s14198_s10 = scalar_select %p6938_p2, 1, 0 }
  0x21   : > { %s6602_s13 = scalar_lea.hbm %s14199_s0, 40960  ;;  %p13723_p8 = pneg %p6938_p2 }
  0x22   : > { %p6603_p7 = scmp.ne.s32.totalorder %s14199_s0, %s6602_s13  ;;  %p6609_p1 = scmp.lt.u32.totalorder %s6602_s13, %s14199_s0 }
  0x24   : > { %p6605_p9 = pnand %p13723_p8, %p6603_p7 }
  0x26   : > { %p6606_p10 = pneg %p6605_p9 }
  0x28   : > { %p6611_p0 = pnand %p6609_p1, %p6606_p10 }
  0x2a   : > { %6614 = shalt.err (!%p6611_p0)
}
  0x2b   : > { %s6615_s23 = scalar_lea.vmem %s184_s9, 40960  ;;  %p6623_p11 = scmp.lt.s32.totalorder %s184_s9, %s184_s9 }
  0x2c   : > { %p6616_p4 = scmp.ne.s32.totalorder %s184_s9, %s6615_s23  ;;  %p6624_p6 = scmp.lt.s32.totalorder %s6615_s23, %s6615_s23 }
  0x2e   : > { %p6618_p3 = pnand %p6616_p4, %p13723_p8  ;;  %p6625_p13 = por %p6624_p6, %p6623_p11 }
  0x30   : > { %p6619_p12 = pneg %p6618_p3 }
  0x32   : > { %p6626_p5 = pnand %p6625_p13, %p6619_p12 }
  0x34   : > { %6629 = shalt.err (!%p6626_p5)
}
  0x35   : > { %s6825_s25 = smov 640   ;;  %s6826_s26 = smov 40  }
  0x36   : > { %6274 = dma.hbm_to_vmem [thread:$0]  (!%p6938_p2), %s14199_s0, 40960, %s184_s9, [#allocation3], %s6825_s25, %s6825_s25, %s6826_s26  }
  0x37   : > { %p14200_p4 = scmp.ne.s32.totalorder %s14193_s28, 0  ;;  %p14201_p0 = scmp.lt.s32.totalorder %s6822_s21, 2 }
  0x38   : > { %s210_s13 = sand.u32 1, %s6822_s21   ;;  %s6976_s14 = sand.u32 1, %s6818_s20  }
  0x39   : > { %p6970_p3 = pnand %p14201_p0, %p14200_p4  ;;  %s6253_s15 = smul.u32 576, %s6976_s14 }
  0x3a   : > { %s5486_s16 = sshll.u32 %s6822_s21, 7  ;;  %s14203_s2 = sld [smem:[#allocation295_spill]] }
  0x3b   : > { %s14202_s12 = scalar_select %p6970_p3, 1, 0 }
  0x3c   : > { %s214_s28 = scalar_lea.vmem [#allocation7], %s6253_s15  ;;  %s6990_s26 = scalar_lea.sflag [#allocation3], %s210_s13 }
  0x3d   : > { %s220_s9 = sshll.u32 %s214_s28, 4  ;;  %p6996_p6 = pneg %p6970_p3  ;;  %s6988_s9 = int_to_ptr.vmem [resolvable:$true] %s220_s9 }
  0x3f   : > { %s14204_s0 = scalar_select %p6996_p6, 1, 0 }
  0x40   : > { %s6985_s8 = scalar_lea.hbm %s14203_s2, %s5486_s16  ;;  %s6635_s15 = scalar_lea.hbm %s14203_s2, 18432 }
  0x41   : > { %s6630_s11 = scalar_lea.hbm %s6985_s8, 9216  ;;  %p6636_p13 = scmp.lt.u32.totalorder %s6985_s8, %s14203_s2 }
  0x42   : > { %p6631_p5 = scmp.ne.s32.totalorder %s6985_s8, %s6630_s11  ;;  %p6637_p7 = scmp.lt.u32.totalorder %s6635_s15, %s6630_s11 }
  0x43   : > { %p6639_p10 = scmp.lt.u32.totalorder %s6630_s11, %s6985_s8 }
  0x44   : > { %p6633_p11 = pnand %p6996_p6, %p6631_p5  ;;  %p6638_p9 = por %p6637_p7, %p6636_p13 }
  0x46   : > { %p6634_p12 = pneg %p6633_p11  ;;  %p6640_p1 = por %p6639_p10, %p6638_p9 }
  0x48   : > { %p6641_p4 = pnand %p6640_p1, %p6634_p12 }
  0x4a   : > { %6644 = shalt.err (!%p6641_p4)
}
  0x4b   : > { %s6645_s13 = scalar_lea.vmem %s6988_s9, 9216  ;;  %s6827_s17 = smov [#allocation7]  }
  0x4c   : > { %p6646_p0 = scmp.ne.s32.totalorder %s6988_s9, %s6645_s13  ;;  %s6650_s23 = sshll.u32 %s6827_s17, 4  ;;  %s6651_s23 = int_to_ptr.vmem [resolvable:$false] %s6650_s23 }
  0x4d   : > { %s6652_s25 = scalar_lea.vmem %s6651_s23, 18432  ;;  %p6653_p8 = scmp.lt.s32.totalorder %s6988_s9, %s6651_s23 }
  0x4e   : > { %p6648_p5 = pnand %p6646_p0, %p6996_p6  ;;  %p6654_p2 = scmp.lt.s32.totalorder %s6652_s25, %s6645_s13 }
  0x50   : > { %p6649_p11 = pneg %p6648_p5  ;;  %p6655_p13 = por %p6654_p2, %p6653_p8 }
  0x52   : > { %p6656_p7 = pnand %p6655_p13, %p6649_p11 }
  0x54   : > { %6659 = shalt.err (!%p6656_p7)
}
  0x55   : > { %s6828_s11 = smov 256   ;;  %s6829_s15 = smov 128  }
  0x56   : > { %s6830_s28 = smov 8   ;;  %s14205_s3 = sld [smem:[#allocation296_spill]] }
  0x57   : > { %6281 = dma.hbm_to_vmem [thread:$0]  (!%p6970_p3), %s6985_s8, 9216, %s6988_s9, %s6990_s26, %s6828_s11, %s6829_s15, %s6830_s28  }
  0x58   : > { %s14206_s25 = sshll.u32 %s6976_s14, 6 }
  0x59   : > { %s234_s2 = scalar_lea.vmem [#allocation8], %s14206_s25 }
  0x5a   : > { %s240_s27 = sshll.u32 %s234_s2, 4  ;;  %s7032_s27 = int_to_ptr.vmem [resolvable:$true] %s240_s27 }
  0x5c   : > { %s7028_s23 = scalar_lea.hbm %s14205_s3, %s5486_s16  ;;  %s6665_s13 = scalar_lea.hbm %s14205_s3, 2048 }
  0x5d   : > { %s6660_s20 = scalar_lea.hbm %s7028_s23, 1024  ;;  %p6666_p9 = scmp.lt.u32.totalorder %s7028_s23, %s14205_s3 }
  0x5e   : > { %p6661_p2 = scmp.ne.s32.totalorder %s7028_s23, %s6660_s20  ;;  %p6667_p10 = scmp.lt.u32.totalorder %s6665_s13, %s6660_s20 }
  0x5f   : > { %p6669_p4 = scmp.lt.u32.totalorder %s6660_s20, %s7028_s23 }
  0x60   : > { %p6663_p8 = pnand %p6661_p2, %p6996_p6  ;;  %p6668_p1 = por %p6667_p10, %p6666_p9 }
  0x62   : > { %p6664_p12 = pneg %p6663_p8  ;;  %p6670_p0 = por %p6669_p4, %p6668_p1 }
  0x64   : > { %p6671_p5 = pnand %p6670_p0, %p6664_p12 }
  0x66   : > { %6674 = shalt.err (!%p6671_p5)
}
  0x67   : > { %s6675_s2 = scalar_lea.vmem %s7032_s27, 1024  ;;  %s6831_s25 = smov [#allocation8]  }
  0x68   : > { %p6676_p11 = scmp.ne.s32.totalorder %s7032_s27, %s6675_s2  ;;  %s6680_s8 = sshll.u32 %s6831_s25, 4  ;;  %s6681_s8 = int_to_ptr.vmem [resolvable:$false] %s6680_s8 }
  0x69   : > { %s6682_s9 = scalar_lea.vmem %s6681_s8, 2048  ;;  %p6683_p2 = scmp.lt.s32.totalorder %s7032_s27, %s6681_s8 }
  0x6a   : > { %p6678_p13 = pnand %p6676_p11, %p6996_p6  ;;  %p6684_p8 = scmp.lt.s32.totalorder %s6682_s9, %s6675_s2 }
  0x6c   : > { %p6679_p7 = pneg %p6678_p13  ;;  %p6685_p9 = por %p6684_p8, %p6683_p2 }
  0x6e   : > { %p6686_p10 = pnand %p6685_p9, %p6679_p7 }
  0x70   : > { %6689 = shalt.err (!%p6686_p10)
}
  0x71   : > { %6284 = dma.hbm_to_vmem [thread:$0]  (!%p6970_p3), %s7028_s23, 1024, %s7032_s27, %s6990_s26, %s6828_s11, %s6829_s15, %s6830_s28  }
  0x72   : > { %s6832_s20 = smov [#allocation5]   ;;  %s5489_s16 = sshll.u32 %s6976_s14, 2 }
  0x73   : > { %s196_s13 = sshll.u32 %s6832_s20, 4  ;;  %s6690_s25 = scalar_lea.hbm %s13714_s1, 8192  ;;  %s197_s13 = int_to_ptr.vmem [resolvable:$true] %s196_s13 }
  0x74   : > { %p6691_p12 = scmp.ne.s32.totalorder %s13714_s1, %s6690_s25  ;;  %p14207_p1 = scmp.ne.s32.totalorder %s14198_s10, 0 }
  0x75   : > { %p6697_p11 = scmp.lt.u32.totalorder %s6690_s25, %s13714_s1 }
  0x76   : > { %p14208_p4 = pneg %p14207_p1 }
  0x78   : > { %p6693_p0 = pnand %p6691_p12, %p14208_p4 }
  0x7a   : > { %p6694_p5 = pneg %p6693_p0 }
  0x7c   : > { %p6699_p13 = pnand %p6697_p11, %p6694_p5 }
  0x7e   : > { %6702 = shalt.err (!%p6699_p13)
}
  0x7f   : > { %s6703_s27 = scalar_lea.vmem %s197_s13, 8192  ;;  %p14209_p2 = pmov %p14208_p4 }
  0x80   : > { %p6704_p7 = scmp.ne.s32.totalorder %s197_s13, %s6703_s27  ;;  %p6711_p10 = scmp.lt.s32.totalorder %s197_s13, %s197_s13 }
  0x81   : > { %p6712_p3 = scmp.lt.s32.totalorder %s6703_s27, %s6703_s27 }
  0x82   : > { %p6706_p8 = pnand %p6704_p7, %p14209_p2 }
  0x83   : > { %p6713_p6 = por %p6712_p3, %p6711_p10 }
  0x84   : > { %p6707_p9 = pneg %p6706_p8 }
  0x86   : > { %p6714_p4 = pnand %p6713_p6, %p6707_p9 }
  0x88   : > { %6717 = shalt.err (!%p6714_p4)
}
  0x89   : > { %6277 = dma.hbm_to_vmem [thread:$0]  (!%p14207_p1), %s13714_s1, 8192, %s197_s13, [#allocation6], %s6829_s15, %s6829_s15, %s6830_s28  }
  0x8a   : > { %s5490_s14 = sshll.u32 %s6822_s21, 6  ;;  %s254_s11 = scalar_lea.vmem [#allocation9], %s5489_s16 }
  0x8b   : > { %s261_s23 = sshll.u32 %s254_s11, 4  ;;  %s259_s2 = scalar_lea.hbm %s13717_s4, %s5490_s14  ;;  %s262_s23 = int_to_ptr.vmem [resolvable:$true] %s261_s23 }
  0x8c   : > { %s6718_s25 = scalar_lea.hbm %s259_s2, 64  ;;  %p14210_p6 = scmp.ne.s32.totalorder %s14204_s0, 0 }
  0x8d   : > { %p6719_p3 = scmp.ne.s32.totalorder %s259_s2, %s6718_s25  ;;  %s6723_s9 = scalar_lea.hbm %s13717_s4, 128 }
  0x8e   : > { %p6724_p1 = scmp.lt.u32.totalorder %s259_s2, %s13717_s4  ;;  %p6725_p5 = scmp.lt.u32.totalorder %s6723_s9, %s6718_s25 }
  0x8f   : > { %p6721_p12 = pnand %p6719_p3, %p14210_p6  ;;  %p6727_p13 = scmp.lt.u32.totalorder %s6718_s25, %s259_s2 }
  0x90   : > { %p6726_p11 = por %p6725_p5, %p6724_p1 }
  0x91   : > { %p6722_p0 = pneg %p6721_p12 }
  0x92   : > { %p6728_p7 = por %p6727_p13, %p6726_p11 }
  0x94   : > { %p6729_p2 = pnand %p6728_p7, %p6722_p0 }
  0x96   : > { %6732 = shalt.err (!%p6729_p2)
}
  0x97   : > { %s6733_s15 = scalar_lea.vmem %s262_s23, 64  ;;  %s6833_s28 = smov [#allocation9]  }
  0x98   : > { %p6734_p8 = scmp.ne.s32.totalorder %s262_s23, %s6733_s15  ;;  %s6738_s13 = sshll.u32 %s6833_s28, 4  ;;  %s6739_s13 = int_to_ptr.vmem [resolvable:$false] %s6738_s13 }
  0x99   : > { %s6740_s16 = scalar_lea.vmem %s6739_s13, 128  ;;  %p6741_p4 = scmp.lt.s32.totalorder %s262_s23, %s6739_s13 }
  0x9a   : > { %p6736_p9 = pnand %p6734_p8, %p14210_p6  ;;  %p6742_p3 = scmp.lt.s32.totalorder %s6740_s16, %s6733_s15 }
  0x9c   : > { %p6737_p10 = pneg %p6736_p9  ;;  %p6743_p12 = por %p6742_p3, %p6741_p4 }
  0x9e   : > { %p6744_p1 = pnand %p6743_p12, %p6737_p10 }
  0xa0   : > { %6747 = shalt.err (!%p6744_p1)
}
  0xa1   : > { %p14211_p5 = scmp.ne.s32.totalorder %s14202_s12, 0  ;;  %p14212_p0 = scmp.ne.s32.totalorder %s14197_s7, 0 }
  0xa3   : > { %6287 = dma.hbm_to_vmem [thread:$0]  (!%p14211_p5), %s259_s2, 64, %s262_s23, %s6990_s26  }
  0xa4   : > { %270 = sbr.rel (%p14212_p0) target bundleno = 1723 (0x6bb), region = 40 }
  0xab   : > { %p14213_p11 = scmp.eq.s32.totalorder %s6891_s22, 0 }
  0xad   : > { %6793 = dma.done.wait (%p14213_p11), [#allocation3], 40960   ;;  %p14214_p6 = pmov %p14213_p11 }
  0xaf   : > { %6795 = vsyncadd (%p14214_p6), [#allocation3], 4294926336  ;;  %p14215_p13 = pmov %p14214_p6 }
  0xb0   : > { %p14216_p7 = pmov %p14214_p6 }
  0xb1   : > { %6797 = dma.done.wait (%p14215_p13), [#allocation6], 8192  }
  0xb2   : > { %6799 = vsyncadd (%p14216_p7), [#allocation6], 4294959104  ;;  %s280_s0 = sand.u32 1, %s6891_s22   ;;  %s7112_s12 = sand.u32 1, %s6814_s19  }
  0xb3   : > { %s6254_s7 = smul.u32 576, %s7112_s12  ;;  %s281_s26 = scalar_lea.sflag [#allocation3], %s280_s0 }
  0xb4   : > { %p14217_p2 = scmp.ne.s32.totalorder %s14194_s29, 0 }
  0xb5   : > { %s7115_s24 = scalar_lea.vmem [#allocation7], %s6254_s7 }
  0xb6   : > { %6801 = dma.done.wait (%p14217_p2), %s281_s26, 10304  }
  0xb7   : > { %6803 = vsyncadd (%p14217_p2), %s281_s26, 4294956992  ;;  %v6834_v0 = vmov 0.0|0.0   ;;  %v659_v1 = vld [vmem:[%s7115_s24] sm:$0xff]  ;;  %v660_v2 = vld [vmem:[%s7115_s24 + $0x8] sm:$0xff]  ;;  %s5494_s29 = sshll.u32 %s7112_s12, 6  ;;  %vm731_vm0 = vcmask 523264  }
  0xb8   : > { %5997 = vmatprep.subr.bf16.mxu0 %v6834_v0  ;;  %6125 = vmatprep.subr.bf16.mxu1 %v6834_v0  ;;  %v661_v3 = vld [vmem:[%s7115_s24 + $0x10] sm:$0xff]  ;;  %v5998_v4 = vpack.c.bf16 %v660_v2, %v659_v1  ;;  %v662_v5 = vld [vmem:[%s7115_s24 + $0x18] sm:$0xff]  ;;  %v663_v7 = vld [vmem:[%s7115_s24 + $0x20] sm:$0xff]  ;;  %s7205_s14 = scalar_lea.vmem [#allocation8], %s5494_s29  ;;  %s5495_s11 = sshll.u32 %s7112_s12, 2 }
  0xb9   : > { %v6001_v6 = vpack.c.bf16 %v662_v5, %v661_v3  ;;  %v664_v8 = vld [vmem:[%s7115_s24 + $0x28] sm:$0xff]  ;;  %v665_v10 = vld [vmem:[%s7115_s24 + $0x30] sm:$0xff]  ;;  %v666_v11 = vld [vmem:[%s7115_s24 + $0x38] sm:$0xff]  ;;  %s8752_s23 = scalar_lea.vmem [#allocation9], %s5495_s11  ;;  %s5496_s20 = sshll.u32 %s7112_s12, 9 }
  0xba   : > { %5999 = vmatpush1.bf16.msra.mxu0 %v5998_v4  ;;  %6141 = vmatpush1.bf16.msra.mxu1 %v5998_v4  ;;  %v6004_v9 = vpack.c.bf16 %v664_v8, %v663_v7  ;;  %v340_v12 = vld [vmem:[#allocation2 + $0x8] sm:$0xff]  ;;  %v6007_v13 = vpack.c.bf16 %v666_v11, %v665_v10  ;;  %v667_v15 = vld [vmem:[%s7115_s24 + $0x40] sm:$0xff]  ;;  %v669_v18 = vld [vmem:[%s7115_s24 + $0x50] sm:$0xff]  ;;  %s9776_s17 = scalar_lea.vmem [#allocation10], %s5496_s20  ;;  %s5626_s2 = sshll.u32 %s6891_s22, 7 }
  0xbb   : > { %6000 = vmatprep.subr.bf16.mxu0 %v6834_v0  ;;  %6126 = vmatprep.subr.bf16.mxu1 %v6834_v0  ;;  %v500_v14 = vld [vmem:[#allocation2 + $0x508] sm:$0xff]  ;;  %v670_v19 = vld [vmem:[%s7115_s24 + $0x58] sm:$0xff]  ;;  %v671_v21 = vld [vmem:[%s7115_s24 + $0x60] sm:$0xff]  ;;  %s5349_s22 = sshll.u32 %s9776_s17, 4  ;;  %s13638_s8 = scalar_lea.hbm %s13718_s5, %s5626_s2  ;;  %s13652_s22 = int_to_ptr.vmem [resolvable:$true] %s5349_s22 }
  0xbc   : > { %v668_v16 = vld [vmem:[%s7115_s24 + $0x48] sm:$0xff]  ;;  %988 = vmatprep.mubr.f32.mxu0 %v340_v12  ;;  %1148 = vmatprep.mubr.f32.mxu1 %v500_v14  ;;  %v6013_v20 = vpack.c.bf16 %v670_v19, %v669_v18  ;;  %v673_v24 = vld [vmem:[%s7115_s24 + $0x70] sm:$0xff]  ;;  %v674_v25 = vld [vmem:[%s7115_s24 + $0x78] sm:$0xff]  ;;  %s5337_s9 = scalar_lea.sflag [#allocation4], %s7112_s12  ;;  %s6748_s27 = scalar_lea.vmem %s13652_s22, 8192 }
  0xbd   : > { %v6010_v17 = vpack.c.bf16 %v668_v16, %v667_v15  ;;  %v672_v22 = vld [vmem:[%s7115_s24 + $0x68] sm:$0xff]  ;;  %v6019_v26 = vpack.c.bf16 %v674_v25, %v673_v24  ;;  %v675_v27 = vld [vmem:[%s7115_s24 + $0x80] sm:$0xff]  ;;  %v677_v30 = vld [vmem:[%s7115_s24 + $0x90] sm:$0xff]  ;;  %p6749_p8 = scmp.ne.s32.totalorder %s13652_s22, %s6748_s27  ;;  %p16079_p9 = scmp.ne.s32.totalorder %s14195_s30, 0 }
  0xbe   : > { %6002 = vmatpush1.bf16.msra.mxu0 %v6001_v6  ;;  %6142 = vmatpush1.bf16.msra.mxu1 %v6001_v6  ;;  %v6016_v23 = vpack.c.bf16 %v672_v22, %v671_v21  ;;  %v676_v28 = vld [vmem:[%s7115_s24 + $0x88] sm:$0xff]  ;;  %v678_v31 = vld [vmem:[%s7115_s24 + $0x98] sm:$0xff]  ;;  %v679_v33 = vld [vmem:[%s7115_s24 + $0xa0] sm:$0xff]  ;;  %s6836_s3 = smov [#allocation10]  }
  0xbf   : > { %6003 = vmatprep.subr.bf16.mxu0 %v6834_v0  ;;  %6127 = vmatprep.subr.bf16.mxu1 %v6834_v0  ;;  %v6022_v29 = vpack.c.bf16 %v676_v28, %v675_v27  ;;  %v6025_v32 = vpack.c.bf16 %v678_v31, %v677_v30  ;;  %v680_v34 = vld [vmem:[%s7115_s24 + $0xa8] sm:$0xff]  ;;  %v681_v36 = vld [vmem:[%s7115_s24 + $0xb0] sm:$0xff]  ;;  %v682_v37 = vld [vmem:[%s7115_s24 + $0xb8] sm:$0xff]  ;;  %p6750_p10 = pnand %p6749_p8, %p16079_p9  ;;  %s6752_s15 = sshll.u32 %s6836_s3, 4  ;;  %s6753_s15 = int_to_ptr.vmem [resolvable:$false] %s6752_s15 }
  0xc0   : > { %v6028_v35 = vpack.c.bf16 %v680_v34, %v679_v33  ;;  %v6031_v38 = vpack.c.bf16 %v682_v37, %v681_v36  ;;  %v683_v39 = vld [vmem:[%s7115_s24 + $0xc0] sm:$0xff]  ;;  %v684_v40 = vld [vmem:[%s7115_s24 + $0xc8] sm:$0xff]  ;;  %v685_v42 = vld [vmem:[%s7115_s24 + $0xd0] sm:$0xff]  ;;  %s6754_s28 = scalar_lea.vmem %s6753_s15, 16384  ;;  %p6755_p3 = scmp.lt.s32.totalorder %s13652_s22, %s6753_s15 }
  0xc1   : > { %v6034_v41 = vpack.c.bf16 %v684_v40, %v683_v39  ;;  %v686_v43 = vld [vmem:[%s7115_s24 + $0xd8] sm:$0xff]  ;;  %v687_v45 = vld [vmem:[%s7115_s24 + $0xe0] sm:$0xff]  ;;  %v688_v46 = vld [vmem:[%s7115_s24 + $0xe8] sm:$0xff]  ;;  %p6751_p4 = pneg %p6750_p10  ;;  %p6756_p12 = scmp.lt.s32.totalorder %s6754_s28, %s6748_s27 }
  0xc2   : > { %6005 = vmatpush1.bf16.msra.mxu0 %v6004_v9  ;;  %6143 = vmatpush1.bf16.msra.mxu1 %v6004_v9  ;;  %v6037_v44 = vpack.c.bf16 %v686_v43, %v685_v42  ;;  %v6040_v47 = vpack.c.bf16 %v688_v46, %v687_v45  ;;  %v689_v48 = vld [vmem:[%s7115_s24 + $0xf0] sm:$0xff]  ;;  %v690_v49 = vld [vmem:[%s7115_s24 + $0xf8] sm:$0xff]  ;;  %v723_v50 = vld [vmem:[%s7115_s24 + $0x200] sm:$0xff] }
  0xc3   : > { %6006 = vmatprep.subr.bf16.mxu0 %v6834_v0  ;;  %6128 = vmatprep.subr.bf16.mxu1 %v6834_v0  ;;  %v724_v51 = vld [vmem:[%s7115_s24 + $0x208] sm:$0xff]  ;;  %v6043_v52 = vpack.c.bf16 %v690_v49, %v689_v48  ;;  %v691_v53 = vld [vmem:[%s7115_s24 + $0x100] sm:$0xff]  ;;  %v725_v56 = vld [vmem:[%s7115_s24 + $0x210] sm:$0xff]  ;;  %p6757_p1 = por %p6756_p12, %p6755_p3 }
  0xc4   : > { %v692_v54 = vld [vmem:[%s7115_s24 + $0x108] sm:$0xff]  ;;  %v6093_v55 = vpack.c.bf16 %v724_v51, %v723_v50  ;;  %v726_v57 = vld [vmem:[%s7115_s24 + $0x218] sm:$0xff]  ;;  %v339_v58 = vld [vmem:[#allocation2] sm:$0xff] }
  0xc5   : > { %v499_v59 = vld [vmem:[#allocation2 + $0x500] sm:$0xff]  ;;  %v6046_v60 = vpack.c.bf16 %v692_v54, %v691_v53  ;;  %v345_v61 = vld [vmem:[#allocation2 + $0x30] sm:$0xff]  ;;  %v694_v1 = vld [vmem:[%s7115_s24 + $0x118] sm:$0xff]  ;;  %v6097_v2 = vpack.c.bf16 %v726_v57, %v725_v56  ;;  %p6758_p5 = pnand %p6757_p1, %p6751_p4 }
  0xc6   : > { %6008 = vmatpush1.bf16.msra.mxu0 %v6007_v13  ;;  %6144 = vmatpush1.bf16.msra.mxu1 %v6007_v13  ;;  %v505_v62 = vld [vmem:[#allocation2 + $0x530] sm:$0xff]  ;;  %v727_v3 = vld [vmem:[%s7115_s24 + $0x220] sm:$0xff]  ;;  %v728_v4 = vld [vmem:[%s7115_s24 + $0x228] sm:$0xff] }
  0xc7   : > { %6009 = vmatprep.subr.bf16.mxu0 %v6834_v0  ;;  %6129 = vmatprep.subr.bf16.mxu1 %v6834_v0  ;;  %v693_v63 = vld [vmem:[%s7115_s24 + $0x110] sm:$0xff]  ;;  %v344_v5 = vld [vmem:[#allocation2 + $0x28] sm:$0xff]  ;;  %v350_v7 = vld [vmem:[#allocation2 + $0x58] sm:$0xff]  ;;  %v6101_v12 = vpack.c.bf16 %v728_v4, %v727_v3 }
  0xc8   : > { %v504_v6 = vld [vmem:[#allocation2 + $0x528] sm:$0xff]  ;;  %v510_v8 = vld [vmem:[#allocation2 + $0x558] sm:$0xff]  ;;  %v6049_v9 = vpack.c.bf16 %v694_v1, %v693_v63  ;;  %v695_v10 = vld [vmem:[%s7115_s24 + $0x120] sm:$0xff] }
  0xc9   : > { %v696_v11 = vld [vmem:[%s7115_s24 + $0x128] sm:$0xff]  ;;  %v729_v13 = vld [vmem:[%s7115_s24 + $0x230] sm:$0xff]  ;;  %v730_v14 = vld [vmem:[%s7115_s24 + $0x238] sm:$0xff] }
  0xca   : > { %6011 = vmatpush1.bf16.msra.mxu0 %v6010_v17  ;;  %6145 = vmatpush1.bf16.msra.mxu1 %v6010_v17  ;;  %v349_v15 = vld [vmem:[#allocation2 + $0x50] sm:$0xff]  ;;  %v355_v17 = vld [vmem:[#allocation2 + $0x80] sm:$0xff]  ;;  %v6052_v19 = vpack.c.bf16 %v696_v11, %v695_v10  ;;  %v698_v21 = vld [vmem:[%s7115_s24 + $0x138] sm:$0xff]  ;;  %v6105_v22 = vpack.c.bf16 %v730_v14, %v729_v13 }
  0xcb   : > { %6012 = vmatprep.subr.bf16.mxu0 %v6834_v0  ;;  %6130 = vmatprep.subr.bf16.mxu1 %v6834_v0  ;;  %v509_v16 = vld [vmem:[#allocation2 + $0x550] sm:$0xff]  ;;  %v515_v18 = vld [vmem:[#allocation2 + $0x580] sm:$0xff]  ;;  %v2144_v24 = vld [vmem:[%s7205_s14 + $0x8] sm:$0xff] }
  0xcc   : > { %v354_v25 = vld [vmem:[#allocation2 + $0x78] sm:$0xff]  ;;  %v360_v27 = vld [vmem:[#allocation2 + $0xa8] sm:$0xff]  ;;  %v699_v30 = vld [vmem:[%s7115_s24 + $0x140] sm:$0xff] }
  0xcd   : > { %v520_v28 = vld [vmem:[#allocation2 + $0x5a8] sm:$0xff]  ;;  %v359_v33 = vld [vmem:[#allocation2 + $0xa0] sm:$0xff]  ;;  %v525_v36 = vld [vmem:[#allocation2 + $0x5d0] sm:$0xff] }
  0xce   : > { %6014 = vmatpush1.bf16.msra.mxu0 %v6013_v20  ;;  %6146 = vmatpush1.bf16.msra.mxu1 %v6013_v20  ;;  %v697_v20 = vld [vmem:[%s7115_s24 + $0x130] sm:$0xff]  ;;  %v700_v31 = vld [vmem:[%s7115_s24 + $0x148] sm:$0xff]  ;;  %v519_v34 = vld [vmem:[#allocation2 + $0x5a0] sm:$0xff] }
  0xcf   : > { %6015 = vmatprep.subr.bf16.mxu0 %v6834_v0  ;;  %6131 = vmatprep.subr.bf16.mxu1 %v6834_v0  ;;  %v6058_v37 = vpack.c.bf16 %v700_v31, %v699_v30  ;;  %v702_v39 = vld [vmem:[%s7115_s24 + $0x158] sm:$0xff]  ;;  %v364_v40 = vld [vmem:[#allocation2 + $0xc8] sm:$0xff]  ;;  %v703_v45 = vld [vmem:[%s7115_s24 + $0x160] sm:$0xff] }
  0xd0   : > { %v370_v42 = vld [vmem:[#allocation2 + $0xf8] sm:$0xff]  ;;  %v704_v46 = vld [vmem:[%s7115_s24 + $0x168] sm:$0xff]  ;;  %v529_v48 = vld [vmem:[#allocation2 + $0x5f0] sm:$0xff] }
  0xd1   : > { %v530_v43 = vld [vmem:[#allocation2 + $0x5f8] sm:$0xff]  ;;  %v375_v49 = vld [vmem:[#allocation2 + $0x120] sm:$0xff]  ;;  %v6064_v51 = vpack.c.bf16 %v704_v46, %v703_v45  ;;  %v380_v56 = vld [vmem:[#allocation2 + $0x148] sm:$0xff] }
  0xd2   : > { %6017 = vmatpush1.bf16.msra.mxu0 %v6016_v23  ;;  %6147 = vmatpush1.bf16.msra.mxu1 %v6016_v23  ;;  %v2143_v23 = vld [vmem:[%s7205_s14] sm:$0xff]  ;;  %v706_v53 = vld [vmem:[%s7115_s24 + $0x178] sm:$0xff]  ;;  %v540_v57 = vld [vmem:[#allocation2 + $0x648] sm:$0xff] }
  0xd3   : > { %6018 = vmatprep.subr.bf16.mxu0 %v6834_v0  ;;  %6132 = vmatprep.subr.bf16.mxu1 %v6834_v0  ;;  %v535_v50 = vld [vmem:[#allocation2 + $0x620] sm:$0xff]  ;;  %v374_v54 = vld [vmem:[#allocation2 + $0x118] sm:$0xff]  ;;  %v385_v63 = vld [vmem:[#allocation2 + $0x170] sm:$0xff] }
  0xd4   : > { %v545_v1 = vld [vmem:[#allocation2 + $0x670] sm:$0xff]  ;;  %v710_v4 = vld [vmem:[%s7115_s24 + $0x198] sm:$0xff]  ;;  %v711_v10 = vld [vmem:[%s7115_s24 + $0x1a0] sm:$0xff] }
  0xd5   : > { %v709_v3 = vld [vmem:[%s7115_s24 + $0x190] sm:$0xff]  ;;  %v712_v11 = vld [vmem:[%s7115_s24 + $0x1a8] sm:$0xff]  ;;  %v395_v14 = vld [vmem:[#allocation2 + $0x1c0] sm:$0xff] }
  0xd6   : > { %6020 = vmatpush1.bf16.msra.mxu0 %v6019_v26  ;;  %6148 = vmatpush1.bf16.msra.mxu1 %v6019_v26  ;;  %v514_v26 = vld [vmem:[#allocation2 + $0x578] sm:$0xff]  ;;  %v549_v13 = vld [vmem:[#allocation2 + $0x690] sm:$0xff] }
  0xd7   : > { %6021 = vmatprep.subr.bf16.mxu0 %v6834_v0  ;;  %6133 = vmatprep.subr.bf16.mxu1 %v6834_v0  ;;  %v717_v31 = vld [vmem:[%s7115_s24 + $0x1d0] sm:$0xff] }
  0xd8   : > { %v721_v46 = vld [vmem:[%s7115_s24 + $0x1f0] sm:$0xff] }
  0xda   : > { %6023 = vmatpush1.bf16.msra.mxu0 %v6022_v29  ;;  %6149 = vmatpush1.bf16.msra.mxu1 %v6022_v29  ;;  %v6055_v29 = vpack.c.bf16 %v698_v21, %v697_v20  ;;  %v554_v20 = vld [vmem:[#allocation2 + $0x6b8] sm:$0xff]  ;;  %v400_v21 = vld [vmem:[#allocation2 + $0x1e8] sm:$0xff] }
  0xdb   : > { %6024 = vmatprep.subr.bf16.mxu0 %v6834_v0  ;;  %6134 = vmatprep.subr.bf16.mxu1 %v6834_v0 }
  0xde   : > { %6026 = vmatpush1.bf16.msra.mxu0 %v6025_v32  ;;  %6150 = vmatpush1.bf16.msra.mxu1 %v6025_v32  ;;  %v7212_v32 = vpack.c.bf16 %v2144_v24, %v2143_v23  ;;  %v715_v24 = vld [vmem:[%s7115_s24 + $0x1c0] sm:$0xff] }
  0xdf   : > { %6027 = vmatprep.subr.bf16.mxu0 %v6834_v0  ;;  %6135 = vmatprep.subr.bf16.mxu1 %v6834_v0 }
  0xe2   : > { %6029 = vmatpush1.bf16.msra.mxu0 %v6028_v35  ;;  %6151 = vmatpush1.bf16.msra.mxu1 %v6028_v35  ;;  %v365_v35 = vld [vmem:[#allocation2 + $0xd0] sm:$0xff] }
  0xe3   : > { %6030 = vmatprep.subr.bf16.mxu0 %v6834_v0  ;;  %6136 = vmatprep.subr.bf16.mxu1 %v6834_v0 }
  0xe6   : > { %6032 = vmatpush1.bf16.msra.mxu0 %v6031_v38  ;;  %6152 = vmatpush1.bf16.msra.mxu1 %v6031_v38  ;;  %v701_v38 = vld [vmem:[%s7115_s24 + $0x150] sm:$0xff] }
  0xe7   : > { %6033 = vmatprep.subr.bf16.mxu0 %v6834_v0  ;;  %6137 = vmatprep.subr.bf16.mxu1 %v6834_v0 }
  0xea   : > { %6035 = vmatpush1.bf16.msra.mxu0 %v6034_v41  ;;  %6153 = vmatpush1.bf16.msra.mxu1 %v6034_v41  ;;  %v524_v41 = vld [vmem:[#allocation2 + $0x5c8] sm:$0xff] }
  0xeb   : > { %6036 = vmatprep.subr.bf16.mxu0 %v6834_v0  ;;  %6138 = vmatprep.subr.bf16.mxu1 %v6834_v0 }
  0xee   : > { %6038 = vmatpush1.bf16.msra.mxu0 %v6037_v44  ;;  %6154 = vmatpush1.bf16.msra.mxu1 %v6037_v44  ;;  %v6061_v44 = vpack.c.bf16 %v702_v39, %v701_v38  ;;  %v719_v39 = vld [vmem:[%s7115_s24 + $0x1e0] sm:$0xff] }
  0xef   : > { %6039 = vmatprep.subr.bf16.mxu0 %v6834_v0  ;;  %6139 = vmatprep.subr.bf16.mxu1 %v6834_v0 }
  0xf2   : > { %6041 = vmatpush1.bf16.msra.mxu0 %v6040_v47  ;;  %6155 = vmatpush1.bf16.msra.mxu1 %v6040_v47  ;;  %v369_v47 = vld [vmem:[#allocation2 + $0xf0] sm:$0xff] }
  0xf3   : > { %6042 = vmatprep.subr.bf16.mxu0 %v6834_v0  ;;  %6140 = vmatprep.subr.bf16.mxu1 %v6834_v0 }
  0xf6   : > { %6044 = vmatpush1.bf16.msra.mxu0 %v6043_v52  ;;  %6156 = vmatpush1.bf16.msra.mxu1 %v6043_v52  ;;  %v705_v52 = vld [vmem:[%s7115_s24 + $0x170] sm:$0xff] }
  0xf7   : > { %6045 = vmatprep.subr.bf16.mxu0 %v6834_v0  ;;  %6094 = vmatprep.subr.bf16.mxu1 %v6093_v55 }
  0xf9   : > { %989 = vmatmul.mubr.f32.vlgmr.msra.gmra.mrb[0].mxu0 %v339_v58  ;;  %1149 = vmatmul.mubr.f32.vlgmr.msra.gmra.mrb[0].mxu1 %v499_v59  ;;  %v6067_v58 = vpack.c.bf16 %v706_v53, %v705_v52  ;;  %v707_v59 = vld [vmem:[%s7115_s24 + $0x180] sm:$0xff] }
  0xfa   : > { %6047 = vmatpush1.bf16.msra.mxu0 %v6046_v60  ;;  %6096 = vmatpush3.bf16.msra.mxu1 %v6093_v55  ;;  %v534_v55 = vld [vmem:[#allocation2 + $0x618] sm:$0xff]  ;;  %v708_v60 = vld [vmem:[%s7115_s24 + $0x188] sm:$0xff]  ;;  %v419_v53 = vld [vmem:[#allocation2 + $0x280] sm:$0xff] }
  0xfb   : > { %993 = vmatprep.mubr.f32.mxu0 %v345_v61  ;;  %1153 = vmatprep.mubr.f32.mxu1 %v505_v62  ;;  %v379_v61 = vld [vmem:[#allocation2 + $0x140] sm:$0xff] }
  0xfc   : > { %6048 = vmatprep.subr.bf16.mxu0 %v6834_v0  ;;  %6098 = vmatprep.subr.bf16.mxu1 %v6097_v2  ;;  %v539_v62 = vld [vmem:[#allocation2 + $0x640] sm:$0xff] }
  0xfd   : > { %994 = vmatmul.mubr.f32.gmra.mrb[2].mxu0 %v344_v5  ;;  %1154 = vmatmul.mubr.f32.gmra.mrb[2].mxu1 %v504_v6  ;;  %v384_v5 = vld [vmem:[#allocation2 + $0x168] sm:$0xff] }
  0xfe   : > { %998 = vmatprep.mubr.f32.mxu0 %v350_v7  ;;  %1158 = vmatprep.mubr.f32.mxu1 %v510_v8  ;;  %v544_v6 = vld [vmem:[#allocation2 + $0x668] sm:$0xff]  ;;  %v390_v7 = vld [vmem:[#allocation2 + $0x198] sm:$0xff] }
  0xff   : > { %6050 = vmatpush1.bf16.msra.mxu0 %v6049_v9  ;;  %6100 = vmatpush3.bf16.msra.mxu1 %v6097_v2  ;;  %v6070_v2 = vpack.c.bf16 %v708_v60, %v707_v59  ;;  %v550_v8 = vld [vmem:[#allocation2 + $0x698] sm:$0xff]  ;;  %v6073_v9 = vpack.c.bf16 %v710_v4, %v709_v3  ;;  %v440_v3 = vld [vmem:[#allocation2 + $0x328] sm:$0xff] }
 0x100   : > { %6051 = vmatprep.subr.bf16.mxu0 %v6834_v0  ;;  %6102 = vmatprep.subr.bf16.mxu1 %v6101_v12  ;;  %v430_v59 = vld [vmem:[#allocation2 + $0x2d8] sm:$0xff]  ;;  %v600_v4 = vld [vmem:[#allocation2 + $0x828] sm:$0xff] }
 0x101   : > { %999 = vmatmul.mubr.f32.gmra.mrb[4].mxu0 %v349_v15  ;;  %1159 = vmatmul.mubr.f32.gmra.mrb[4].mxu1 %v509_v16  ;;  %v555_v15 = vld [vmem:[#allocation2 + $0x6c0] sm:$0xff]  ;;  %v6076_v16 = vpack.c.bf16 %v712_v11, %v711_v10  ;;  %v590_v60 = vld [vmem:[#allocation2 + $0x7d8] sm:$0xff]  ;;  %v604_v10 = vld [vmem:[#allocation2 + $0x848] sm:$0xff] }
 0x102   : > { %1003 = vmatprep.mubr.f32.mxu0 %v355_v17  ;;  %1163 = vmatprep.mubr.f32.mxu1 %v515_v18  ;;  %v713_v17 = vld [vmem:[%s7115_s24 + $0x1b0] sm:$0xff]  ;;  %v714_v18 = vld [vmem:[%s7115_s24 + $0x1b8] sm:$0xff] }
 0x103   : > { %6053 = vmatpush1.bf16.msra.mxu0 %v6052_v19  ;;  %6104 = vmatpush3.bf16.msra.mxu1 %v6101_v12  ;;  %v389_v12 = vld [vmem:[#allocation2 + $0x190] sm:$0xff]  ;;  %v394_v19 = vld [vmem:[#allocation2 + $0x1b8] sm:$0xff]  ;;  %v6079_v23 = vpack.c.bf16 %v714_v18, %v713_v17 }
 0x104   : > { %6054 = vmatprep.subr.bf16.mxu0 %v6834_v0  ;;  %6106 = vmatprep.subr.bf16.mxu1 %v6105_v22  ;;  %v450_v11 = vld [vmem:[#allocation2 + $0x378] sm:$0xff] }
 0x105   : > { %1004 = vmatmul.mubr.f32.gmra.mrb[6].mxu0 %v354_v25  ;;  %1164 = vmatmul.mubr.f32.gmra.mrb[6].mxu1 %v514_v26  ;;  %v716_v25 = vld [vmem:[%s7115_s24 + $0x1c8] sm:$0xff]  ;;  %v399_v26 = vld [vmem:[#allocation2 + $0x1e0] sm:$0xff]  ;;  %v454_v17 = vld [vmem:[#allocation2 + $0x398] sm:$0xff] }
 0x106   : > { %1008 = vmatprep.mubr.f32.mxu0 %v360_v27  ;;  %1168 = vmatprep.mubr.f32.mxu1 %v520_v28  ;;  %v559_v27 = vld [vmem:[#allocation2 + $0x6e0] sm:$0xff]  ;;  %v405_v28 = vld [vmem:[#allocation2 + $0x210] sm:$0xff]  ;;  %v6082_v30 = vpack.c.bf16 %v716_v25, %v715_v24  ;;  %v614_v18 = vld [vmem:[#allocation2 + $0x898] sm:$0xff] }
 0x107   : > { %6056 = vmatpush1.bf16.msra.mxu0 %v6055_v29  ;;  %6108 = vmatpush3.bf16.msra.mxu1 %v6105_v22  ;;  %v560_v22 = vld [vmem:[#allocation2 + $0x6e8] sm:$0xff]  ;;  %v565_v29 = vld [vmem:[#allocation2 + $0x710] sm:$0xff] }
 0x108   : > { %6057 = vmatprep.subr.bf16.mxu0 %v6834_v0  ;;  %6110 = vmatprep.subr.bf16.mxu1 %v7212_v32  ;;  %v625_v24 = vld [vmem:[#allocation2 + $0x8f0] sm:$0xff]  ;;  %v464_v25 = vld [vmem:[#allocation2 + $0x3e8] sm:$0xff] }
 0x109   : > { %1009 = vmatmul.mubr.f32.gmra.mrb[8].mxu0 %v359_v33  ;;  %1169 = vmatmul.mubr.f32.gmra.mrb[8].mxu1 %v519_v34  ;;  %v718_v33 = vld [vmem:[%s7115_s24 + $0x1d8] sm:$0xff]  ;;  %v404_v34 = vld [vmem:[#allocation2 + $0x208] sm:$0xff] }
 0x10a   : > { %1013 = vmatprep.mubr.f32.mxu0 %v365_v35  ;;  %1173 = vmatprep.mubr.f32.mxu1 %v525_v36  ;;  %v564_v35 = vld [vmem:[#allocation2 + $0x708] sm:$0xff]  ;;  %v410_v36 = vld [vmem:[#allocation2 + $0x238] sm:$0xff]  ;;  %v6085_v38 = vpack.c.bf16 %v718_v33, %v717_v31  ;;  %v475_v31 = vld [vmem:[#allocation2 + $0x440] sm:$0xff] }
 0x10b   : > { %6059 = vmatpush1.bf16.msra.mxu0 %v6058_v37  ;;  %v570_v37 = vld [vmem:[#allocation2 + $0x738] sm:$0xff]  ;;  %v635_v33 = vld [vmem:[#allocation2 + $0x940] sm:$0xff] }
 0x10c   : > { %6060 = vmatprep.subr.bf16.mxu0 %v6834_v0 }
 0x10d   : > { %1014 = vmatmul.mubr.f32.gmra.mrb[10].mxu0 %v364_v40  ;;  %1174 = vmatmul.mubr.f32.gmra.mrb[10].mxu1 %v524_v41  ;;  %v720_v40 = vld [vmem:[%s7115_s24 + $0x1e8] sm:$0xff]  ;;  %v409_v41 = vld [vmem:[#allocation2 + $0x230] sm:$0xff] }
 0x10e   : > { %1018 = vmatprep.mubr.f32.mxu0 %v370_v42  ;;  %1178 = vmatprep.mubr.f32.mxu1 %v530_v43  ;;  %v569_v42 = vld [vmem:[#allocation2 + $0x730] sm:$0xff]  ;;  %v415_v43 = vld [vmem:[#allocation2 + $0x260] sm:$0xff]  ;;  %v6088_v45 = vpack.c.bf16 %v720_v40, %v719_v39 }
 0x10f   : > { %6062 = vmatpush1.bf16.msra.mxu0 %v6061_v44  ;;  %v575_v44 = vld [vmem:[#allocation2 + $0x760] sm:$0xff]  ;;  %v485_v40 = vld [vmem:[#allocation2 + $0x490] sm:$0xff] }
 0x110   : > { %6063 = vmatprep.subr.bf16.mxu0 %v6834_v0  ;;  %v639_v39 = vld [vmem:[#allocation2 + $0x960] sm:$0xff] }
 0x111   : > { %1019 = vmatmul.mubr.f32.gmra.mrb[12].mxu0 %v369_v47  ;;  %1179 = vmatmul.mubr.f32.gmra.mrb[12].mxu1 %v529_v48  ;;  %v722_v47 = vld [vmem:[%s7115_s24 + $0x1f8] sm:$0xff] }
 0x112   : > { %1023 = vmatprep.mubr.f32.mxu0 %v375_v49  ;;  %1183 = vmatprep.mubr.f32.mxu1 %v535_v50  ;;  %v414_v48 = vld [vmem:[#allocation2 + $0x258] sm:$0xff]  ;;  %v420_v50 = vld [vmem:[#allocation2 + $0x288] sm:$0xff]  ;;  %v6091_v52 = vpack.c.bf16 %v722_v47, %v721_v46  ;;  %v489_v46 = vld [vmem:[#allocation2 + $0x4b0] sm:$0xff] }
 0x113   : > { %6065 = vmatpush1.bf16.msra.mxu0 %v6064_v51  ;;  %v574_v49 = vld [vmem:[#allocation2 + $0x758] sm:$0xff]  ;;  %v580_v51 = vld [vmem:[#allocation2 + $0x788] sm:$0xff]  ;;  %v649_v47 = vld [vmem:[#allocation2 + $0x9b0] sm:$0xff] }
 0x114   : > { %6066 = vmatprep.subr.bf16.mxu0 %v6834_v0 }
 0x115   : > { %1024 = vmatmul.mubr.f32.gmra.mrb[14].mxu0 %v374_v54  ;;  %1184 = vmatmul.mubr.f32.gmra.mrb[14].mxu1 %v534_v55  ;;  %v579_v54 = vld [vmem:[#allocation2 + $0x780] sm:$0xff]  ;;  %v425_v55 = vld [vmem:[#allocation2 + $0x2b0] sm:$0xff] }
 0x116   : > { %1028 = vmatprep.mubr.f32.mxu0 %v380_v56  ;;  %1188 = vmatprep.mubr.f32.mxu1 %v540_v57  ;;  %v585_v56 = vld [vmem:[#allocation2 + $0x7b0] sm:$0xff]  ;;  %v424_v57 = vld [vmem:[#allocation2 + $0x2a8] sm:$0xff] }
 0x117   : > { %6068 = vmatpush1.bf16.msra.mxu0 %v6067_v58  ;;  %v584_v58 = vld [vmem:[#allocation2 + $0x7a8] sm:$0xff] }
 0x118   : > { %6069 = vmatprep.subr.bf16.mxu0 %v6834_v0 }
 0x119   : > { %1029 = vmatmul.mubr.f32.gmra.mrb[16].mxu0 %v379_v61  ;;  %1189 = vmatmul.mubr.f32.gmra.mrb[16].mxu1 %v539_v62  ;;  %v589_v61 = vld [vmem:[#allocation2 + $0x7d0] sm:$0xff]  ;;  %v435_v62 = vld [vmem:[#allocation2 + $0x300] sm:$0xff] }
 0x11a   : > { %1033 = vmatprep.mubr.f32.mxu0 %v385_v63  ;;  %1193 = vmatprep.mubr.f32.mxu1 %v545_v1  ;;  %v595_v63 = vld [vmem:[#allocation2 + $0x800] sm:$0xff]  ;;  %v434_v1 = vld [vmem:[#allocation2 + $0x2f8] sm:$0xff] }
 0x11b   : > { %6071 = vmatpush1.bf16.msra.mxu0 %v6070_v2  ;;  %v594_v2 = vld [vmem:[#allocation2 + $0x7f8] sm:$0xff] }
 0x11c   : > { %6072 = vmatprep.subr.bf16.mxu0 %v6834_v0 }
 0x11d   : > { %1034 = vmatmul.mubr.f32.gmra.mrb[18].mxu0 %v384_v5  ;;  %1194 = vmatmul.mubr.f32.gmra.mrb[18].mxu1 %v544_v6  ;;  %v439_v5 = vld [vmem:[#allocation2 + $0x320] sm:$0xff] }
 0x11e   : > { %1038 = vmatprep.mubr.f32.mxu0 %v390_v7  ;;  %1198 = vmatprep.mubr.f32.mxu1 %v550_v8  ;;  %v599_v6 = vld [vmem:[#allocation2 + $0x820] sm:$0xff]  ;;  %v445_v7 = vld [vmem:[#allocation2 + $0x350] sm:$0xff] }
 0x11f   : > { %6074 = vmatpush1.bf16.msra.mxu0 %v6073_v9  ;;  %v605_v8 = vld [vmem:[#allocation2 + $0x850] sm:$0xff]  ;;  %v444_v9 = vld [vmem:[#allocation2 + $0x348] sm:$0xff] }
 0x120   : > { %6075 = vmatprep.subr.bf16.mxu0 %v6834_v0 }
 0x121   : > { %1039 = vmatmul.mubr.f32.gmra.mrb[20].mxu0 %v389_v12  ;;  %1199 = vmatmul.mubr.f32.gmra.mrb[20].mxu1 %v549_v13  ;;  %v610_v12 = vld [vmem:[#allocation2 + $0x878] sm:$0xff]  ;;  %v449_v13 = vld [vmem:[#allocation2 + $0x370] sm:$0xff] }
 0x122   : > { %1043 = vmatprep.mubr.f32.mxu0 %v395_v14  ;;  %1203 = vmatprep.mubr.f32.mxu1 %v555_v15  ;;  %v609_v14 = vld [vmem:[#allocation2 + $0x870] sm:$0xff]  ;;  %v455_v15 = vld [vmem:[#allocation2 + $0x3a0] sm:$0xff] }
 0x123   : > { %6077 = vmatpush1.bf16.msra.mxu0 %v6076_v16  ;;  %v615_v16 = vld [vmem:[#allocation2 + $0x8a0] sm:$0xff] }
 0x124   : > { %6078 = vmatprep.subr.bf16.mxu0 %v6834_v0 }
 0x125   : > { %1044 = vmatmul.mubr.f32.gmra.mrb[22].mxu0 %v394_v19  ;;  %1204 = vmatmul.mubr.f32.gmra.mrb[22].mxu1 %v554_v20  ;;  %v460_v19 = vld [vmem:[#allocation2 + $0x3c8] sm:$0xff] }
 0x126   : > { %1048 = vmatprep.mubr.f32.mxu0 %v400_v21  ;;  %1208 = vmatprep.mubr.f32.mxu1 %v560_v22  ;;  %v620_v20 = vld [vmem:[#allocation2 + $0x8c8] sm:$0xff]  ;;  %v459_v21 = vld [vmem:[#allocation2 + $0x3c0] sm:$0xff] }
 0x127   : > { %6080 = vmatpush1.bf16.msra.mxu0 %v6079_v23  ;;  %v619_v22 = vld [vmem:[#allocation2 + $0x8c0] sm:$0xff]  ;;  %v465_v23 = vld [vmem:[#allocation2 + $0x3f0] sm:$0xff] }
 0x128   : > { %6081 = vmatprep.subr.bf16.mxu0 %v6834_v0 }
 0x129   : > { %1049 = vmatmul.mubr.f32.gmra.mrb[24].mxu0 %v399_v26  ;;  %1209 = vmatmul.mubr.f32.gmra.mrb[24].mxu1 %v559_v27  ;;  %v624_v26 = vld [vmem:[#allocation2 + $0x8e8] sm:$0xff]  ;;  %v470_v27 = vld [vmem:[#allocation2 + $0x418] sm:$0xff] }
 0x12a   : > { %1053 = vmatprep.mubr.f32.mxu0 %v405_v28  ;;  %1213 = vmatprep.mubr.f32.mxu1 %v565_v29  ;;  %v630_v28 = vld [vmem:[#allocation2 + $0x918] sm:$0xff]  ;;  %v469_v29 = vld [vmem:[#allocation2 + $0x410] sm:$0xff] }
 0x12b   : > { %6083 = vmatpush1.bf16.msra.mxu0 %v6082_v30  ;;  %v629_v30 = vld [vmem:[#allocation2 + $0x910] sm:$0xff] }
 0x12c   : > { %6084 = vmatprep.subr.bf16.mxu0 %v6834_v0 }
 0x12d   : > { %1054 = vmatmul.mubr.f32.gmra.mrb[26].mxu0 %v404_v34  ;;  %1214 = vmatmul.mubr.f32.gmra.mrb[26].mxu1 %v564_v35  ;;  %v474_v34 = vld [vmem:[#allocation2 + $0x438] sm:$0xff] }
 0x12e   : > { %1058 = vmatprep.mubr.f32.mxu0 %v410_v36  ;;  %1218 = vmatprep.mubr.f32.mxu1 %v570_v37  ;;  %v634_v35 = vld [vmem:[#allocation2 + $0x938] sm:$0xff]  ;;  %v480_v36 = vld [vmem:[#allocation2 + $0x468] sm:$0xff] }
 0x12f   : > { %6086 = vmatpush1.bf16.msra.mxu0 %v6085_v38  ;;  %v640_v37 = vld [vmem:[#allocation2 + $0x968] sm:$0xff]  ;;  %v479_v38 = vld [vmem:[#allocation2 + $0x460] sm:$0xff] }
 0x130   : > { %6087 = vmatprep.subr.bf16.mxu0 %v6834_v0 }
 0x131   : > { %1059 = vmatmul.mubr.f32.gmra.mrb[28].mxu0 %v409_v41  ;;  %1219 = vmatmul.mubr.f32.gmra.mrb[28].mxu1 %v569_v42  ;;  %v645_v41 = vld [vmem:[#allocation2 + $0x990] sm:$0xff]  ;;  %v484_v42 = vld [vmem:[#allocation2 + $0x488] sm:$0xff] }
 0x132   : > { %1063 = vmatprep.mubr.f32.mxu0 %v415_v43  ;;  %1223 = vmatprep.mubr.f32.mxu1 %v575_v44  ;;  %v644_v43 = vld [vmem:[#allocation2 + $0x988] sm:$0xff]  ;;  %v490_v44 = vld [vmem:[#allocation2 + $0x4b8] sm:$0xff] }
 0x133   : > { %6089 = vmatpush1.bf16.msra.mxu0 %v6088_v45  ;;  %v650_v45 = vld [vmem:[#allocation2 + $0x9b8] sm:$0xff] }
 0x134   : > { %6090 = vmatprep.subr.bf16.mxu0 %v6834_v0  ;;  %v429_v0 = vld [vmem:[#allocation2 + $0x2d0] sm:$0xff] }
 0x135   : > { %1064 = vmatmul.mubr.f32.gmra.mrb[30].mxu0 %v414_v48  ;;  %1224 = vmatmul.mubr.f32.gmra.mrb[30].mxu1 %v574_v49  ;;  %v495_v48 = vld [vmem:[#allocation2 + $0x4e0] sm:$0xff] }
 0x136   : > { %1068 = vmatprep.mubr.f32.mxu0 %v420_v50  ;;  %1228 = vmatprep.mubr.f32.mxu1 %v580_v51  ;;  %v655_v49 = vld [vmem:[#allocation2 + $0x9e0] sm:$0xff]  ;;  %v494_v50 = vld [vmem:[#allocation2 + $0x4d8] sm:$0xff] }
 0x137   : > { %6092 = vmatpush1.bf16.msra.mxu0 %v6091_v52  ;;  %v654_v51 = vld [vmem:[#allocation2 + $0x9d8] sm:$0xff] }
 0x138   : > { %v342_v52 = vld [vmem:[#allocation2 + $0x18] sm:$0xff] }
 0x139   : > { %1069 = vmatmul.mubr.f32.gmra.mrb[32].mxu0 %v419_v53  ;;  %1229 = vmatmul.mubr.f32.gmra.mrb[32].mxu1 %v579_v54  ;;  %v343_v53 = vld [vmem:[#allocation2 + $0x20] sm:$0xff]  ;;  %v2145_v54 = vld [vmem:[%s7205_s14 + $0x10] sm:$0xff] }
 0x13a   : > { %1073 = vmatprep.mubr.f32.mxu0 %v425_v55  ;;  %1233 = vmatprep.mubr.f32.mxu1 %v585_v56  ;;  %v2146_v55 = vld [vmem:[%s7205_s14 + $0x18] sm:$0xff]  ;;  %v341_v56 = vld [vmem:[#allocation2 + $0x10] sm:$0xff] }
 0x13d   : > { %1074 = vmatmul.mubr.f32.gmra.mrb[34].mxu0 %v424_v57  ;;  %1234 = vmatmul.mubr.f32.gmra.mrb[34].mxu1 %v584_v58  ;;  %v348_v57 = vld [vmem:[#allocation2 + $0x48] sm:$0xff]  ;;  %v347_v58 = vld [vmem:[#allocation2 + $0x40] sm:$0xff] }
 0x13e   : > { %1078 = vmatprep.mubr.f32.mxu0 %v430_v59  ;;  %1238 = vmatprep.mubr.f32.mxu1 %v590_v60  ;;  %v6113_v59 = vpack.c.bf16 %v2146_v55, %v2145_v54  ;;  %v353_v60 = vld [vmem:[#allocation2 + $0x70] sm:$0xff]  ;;  %v483_v54 = vld [vmem:[#allocation2 + $0x480] sm:$0xff] }
 0x13f   : > { %v411_v55 = vld [vmem:[#allocation2 + $0x240] sm:$0xff] }
 0x141   : > { %1079 = vmatmul.mubr.f32.gmra.mrb[36].mxu0 %v429_v0  ;;  %1239 = vmatmul.mubr.f32.gmra.mrb[36].mxu1 %v589_v61  ;;  %v2147_v0 = vld [vmem:[%s7205_s14 + $0x20] sm:$0xff]  ;;  %v2148_v61 = vld [vmem:[%s7205_s14 + $0x28] sm:$0xff] }
 0x142   : > { %1083 = vmatprep.mubr.f32.mxu0 %v435_v62  ;;  %1243 = vmatprep.mubr.f32.mxu1 %v595_v63  ;;  %v346_v62 = vld [vmem:[#allocation2 + $0x38] sm:$0xff] }
 0x143   : > { %v358_v63 = vld [vmem:[#allocation2 + $0x98] sm:$0xff] }
 0x145   : > { %1084 = vmatmul.mubr.f32.gmra.mrb[38].mxu0 %v434_v1  ;;  %1244 = vmatmul.mubr.f32.gmra.mrb[38].mxu1 %v594_v2  ;;  %v352_v1 = vld [vmem:[#allocation2 + $0x68] sm:$0xff]  ;;  %v363_v2 = vld [vmem:[#allocation2 + $0xc0] sm:$0xff] }
 0x146   : > { %1088 = vmatprep.mubr.f32.mxu0 %v440_v3  ;;  %1248 = vmatprep.mubr.f32.mxu1 %v600_v4  ;;  %v6117_v3 = vpack.c.bf16 %v2148_v61, %v2147_v0  ;;  %v2149_v4 = vld [vmem:[%s7205_s14 + $0x30] sm:$0xff]  ;;  %v422_v0 = vld [vmem:[#allocation2 + $0x298] sm:$0xff]  ;;  %v503_v61 = vld [vmem:[#allocation2 + $0x520] sm:$0xff] }
 0x149   : > { %1089 = vmatmul.mubr.f32.gmra.mrb[40].mxu0 %v439_v5  ;;  %1249 = vmatmul.mubr.f32.gmra.mrb[40].mxu1 %v599_v6  ;;  %v2150_v5 = vld [vmem:[%s7205_s14 + $0x38] sm:$0xff]  ;;  %v351_v6 = vld [vmem:[#allocation2 + $0x60] sm:$0xff] }
 0x14a   : > { %1093 = vmatprep.mubr.f32.mxu0 %v445_v7  ;;  %1253 = vmatprep.mubr.f32.mxu1 %v605_v8  ;;  %v368_v7 = vld [vmem:[#allocation2 + $0xe8] sm:$0xff]  ;;  %v373_v8 = vld [vmem:[#allocation2 + $0x110] sm:$0xff] }
 0x14d   : > { %1094 = vmatmul.mubr.f32.gmra.mrb[42].mxu0 %v444_v9  ;;  %1254 = vmatmul.mubr.f32.gmra.mrb[42].mxu1 %v604_v10  ;;  %v6121_v9 = vpack.c.bf16 %v2150_v5, %v2149_v4  ;;  %v356_v10 = vld [vmem:[#allocation2 + $0x88] sm:$0xff]  ;;  %v518_v4 = vld [vmem:[#allocation2 + $0x598] sm:$0xff] }
 0x14e   : > { %1098 = vmatprep.mubr.f32.mxu0 %v450_v11  ;;  %1258 = vmatprep.mubr.f32.mxu1 %v610_v12  ;;  %v378_v11 = vld [vmem:[#allocation2 + $0x138] sm:$0xff]  ;;  %v432_v5 = vld [vmem:[#allocation2 + $0x2e8] sm:$0xff] }
 0x14f   : > { %v362_v12 = vld [vmem:[#allocation2 + $0xb8] sm:$0xff] }
 0x151   : > { %1099 = vmatmul.mubr.f32.gmra.mrb[44].mxu0 %v449_v13  ;;  %1259 = vmatmul.mubr.f32.gmra.mrb[44].mxu1 %v609_v14  ;;  %v383_v13 = vld [vmem:[#allocation2 + $0x160] sm:$0xff]  ;;  %v361_v14 = vld [vmem:[#allocation2 + $0xb0] sm:$0xff] }
 0x152   : > { %1103 = vmatprep.mubr.f32.mxu0 %v455_v15  ;;  %1263 = vmatprep.mubr.f32.mxu1 %v615_v16  ;;  %v388_v15 = vld [vmem:[#allocation2 + $0x188] sm:$0xff]  ;;  %v367_v16 = vld [vmem:[#allocation2 + $0xe0] sm:$0xff] }
 0x155   : > { %1104 = vmatmul.mubr.f32.gmra.mrb[46].mxu0 %v454_v17  ;;  %1264 = vmatmul.mubr.f32.gmra.mrb[46].mxu1 %v614_v18  ;;  %v393_v17 = vld [vmem:[#allocation2 + $0x1b0] sm:$0xff]  ;;  %v366_v18 = vld [vmem:[#allocation2 + $0xd8] sm:$0xff] }
 0x156   : > { %1108 = vmatprep.mubr.f32.mxu0 %v460_v19  ;;  %1268 = vmatprep.mubr.f32.mxu1 %v620_v20  ;;  %v398_v19 = vld [vmem:[#allocation2 + $0x1d8] sm:$0xff]  ;;  %v372_v20 = vld [vmem:[#allocation2 + $0x108] sm:$0xff] }
 0x159   : > { %1109 = vmatmul.mubr.f32.gmra.mrb[48].mxu0 %v459_v21  ;;  %1269 = vmatmul.mubr.f32.gmra.mrb[48].mxu1 %v619_v22  ;;  %v403_v21 = vld [vmem:[#allocation2 + $0x200] sm:$0xff] }
 0x15a   : > { %1113 = vmatprep.mubr.f32.mxu0 %v465_v23  ;;  %1273 = vmatprep.mubr.f32.mxu1 %v625_v24  ;;  %v371_v22 = vld [vmem:[#allocation2 + $0x100] sm:$0xff]  ;;  %v408_v23 = vld [vmem:[#allocation2 + $0x228] sm:$0xff]  ;;  %v377_v24 = vld [vmem:[#allocation2 + $0x130] sm:$0xff] }
 0x15d   : > { %1114 = vmatmul.mubr.f32.gmra.mrb[50].mxu0 %v464_v25  ;;  %1274 = vmatmul.mubr.f32.gmra.mrb[50].mxu1 %v624_v26  ;;  %v413_v25 = vld [vmem:[#allocation2 + $0x250] sm:$0xff]  ;;  %v376_v26 = vld [vmem:[#allocation2 + $0x128] sm:$0xff] }
 0x15e   : > { %1118 = vmatprep.mubr.f32.mxu0 %v470_v27  ;;  %1278 = vmatprep.mubr.f32.mxu1 %v630_v28  ;;  %v418_v27 = vld [vmem:[#allocation2 + $0x278] sm:$0xff] }
 0x15f   : > { %v382_v28 = vld [vmem:[#allocation2 + $0x158] sm:$0xff] }
 0x161   : > { %1119 = vmatmul.mubr.f32.gmra.mrb[52].mxu0 %v469_v29  ;;  %1279 = vmatmul.mubr.f32.gmra.mrb[52].mxu1 %v629_v30  ;;  %v423_v29 = vld [vmem:[#allocation2 + $0x2a0] sm:$0xff]  ;;  %v381_v30 = vld [vmem:[#allocation2 + $0x150] sm:$0xff] }
 0x162   : > { %1123 = vmatprep.mubr.f32.mxu0 %v475_v31  ;;  %1283 = vmatprep.mubr.f32.mxu1 %v635_v33  ;;  %v428_v31 = vld [vmem:[#allocation2 + $0x2c8] sm:$0xff]  ;;  %v387_v33 = vld [vmem:[#allocation2 + $0x180] sm:$0xff] }
 0x165   : > { %1124 = vmatmul.mubr.f32.gmra.mrb[54].mxu0 %v474_v34  ;;  %1284 = vmatmul.mubr.f32.gmra.mrb[54].mxu1 %v634_v35  ;;  %v433_v34 = vld [vmem:[#allocation2 + $0x2f0] sm:$0xff]  ;;  %v386_v35 = vld [vmem:[#allocation2 + $0x178] sm:$0xff] }
 0x166   : > { %1128 = vmatprep.mubr.f32.mxu0 %v480_v36  ;;  %1288 = vmatprep.mubr.f32.mxu1 %v640_v37  ;;  %v438_v36 = vld [vmem:[#allocation2 + $0x318] sm:$0xff]  ;;  %v392_v37 = vld [vmem:[#allocation2 + $0x1a8] sm:$0xff] }
 0x169   : > { %1129 = vmatmul.mubr.f32.gmra.mrb[56].mxu0 %v479_v38  ;;  %1289 = vmatmul.mubr.f32.gmra.mrb[56].mxu1 %v639_v39  ;;  %v443_v38 = vld [vmem:[#allocation2 + $0x340] sm:$0xff] }
 0x16a   : > { %1133 = vmatprep.mubr.f32.mxu0 %v485_v40  ;;  %1293 = vmatprep.mubr.f32.mxu1 %v645_v41  ;;  %v391_v39 = vld [vmem:[#allocation2 + $0x1a0] sm:$0xff]  ;;  %v448_v40 = vld [vmem:[#allocation2 + $0x368] sm:$0xff]  ;;  %v397_v41 = vld [vmem:[#allocation2 + $0x1d0] sm:$0xff] }
 0x16d   : > { %1134 = vmatmul.mubr.f32.gmra.mrb[58].mxu0 %v484_v42  ;;  %1294 = vmatmul.mubr.f32.gmra.mrb[58].mxu1 %v644_v43  ;;  %v453_v42 = vld [vmem:[#allocation2 + $0x390] sm:$0xff]  ;;  %v396_v43 = vld [vmem:[#allocation2 + $0x1c8] sm:$0xff] }
 0x16e   : > { %1138 = vmatprep.mubr.f32.mxu0 %v490_v44  ;;  %1298 = vmatprep.mubr.f32.mxu1 %v650_v45  ;;  %v458_v44 = vld [vmem:[#allocation2 + $0x3b8] sm:$0xff] }
 0x16f   : > { %v402_v45 = vld [vmem:[#allocation2 + $0x1f8] sm:$0xff] }
 0x171   : > { %1139 = vmatmul.mubr.f32.gmra.mrb[60].mxu0 %v489_v46  ;;  %1299 = vmatmul.mubr.f32.gmra.mrb[60].mxu1 %v649_v47  ;;  %v463_v46 = vld [vmem:[#allocation2 + $0x3e0] sm:$0xff]  ;;  %v401_v47 = vld [vmem:[#allocation2 + $0x1f0] sm:$0xff] }
 0x172   : > { %1143 = vmatprep.mubr.f32.mxu0 %v495_v48  ;;  %1303 = vmatprep.mubr.f32.mxu1 %v655_v49  ;;  %v468_v48 = vld [vmem:[#allocation2 + $0x408] sm:$0xff]  ;;  %v407_v49 = vld [vmem:[#allocation2 + $0x220] sm:$0xff] }
 0x175   : > { %1144 = vmatmul.mubr.f32.gmra.mrb[62].mxu0 %v494_v50  ;;  %1304 = vmatmul.mubr.f32.gmra.mrb[62].mxu1 %v654_v51  ;;  %v473_v50 = vld [vmem:[#allocation2 + $0x430] sm:$0xff]  ;;  %v406_v51 = vld [vmem:[#allocation2 + $0x218] sm:$0xff] }
 0x176   : > { %1373 = vmatprep.mubr.f32.mxu0 %v342_v52  ;;  %5789 = vmatprep.mubr.msk.f32.mxu1 %vm731_vm0, %v343_v53  ;;  %v478_v52 = vld [vmem:[#allocation2 + $0x458] sm:$0xff]  ;;  %v412_v53 = vld [vmem:[#allocation2 + $0x248] sm:$0xff] }
 0x179   : > { %1374 = vmatmul.mubr.f32.vlgmr.msra.gmra.mrb[0].mxu0 %v341_v56  ;;  %5790 = vmatmul.mubr.msk.f32.vlgmr.msra.gmra.mrb[64].mxu1 %vm731_vm0, %v348_v57  ;;  %v488_v56 = vld [vmem:[#allocation2 + $0x4a8] sm:$0xff]  ;;  %v417_v57 = vld [vmem:[#allocation2 + $0x270] sm:$0xff] }
 0x17a   : > { %6112 = vmatpush3.bf16.msra.mxu1 %v7212_v32  ;;  %1378 = vmatprep.mubr.f32.mxu0 %v347_v58  ;;  %v357_v32 = vld [vmem:[#allocation2 + $0x90] sm:$0xff] }
 0x17b   : > { %5792 = vmatprep.mubr.msk.f32.mxu1 %vm731_vm0, %v353_v60  ;;  %6114 = vmatprep.subr.bf16.mxu1 %v6113_v59  ;;  %v493_v58 = vld [vmem:[#allocation2 + $0x4d0] sm:$0xff]  ;;  %v498_v60 = vld [vmem:[#allocation2 + $0x4f8] sm:$0xff] }
 0x17d   : > { %1379 = vmatmul.mubr.f32.gmra.mrb[2].mxu0 %v346_v62  ;;  %5793 = vmatmul.mubr.msk.f32.gmra.mrb[66].mxu1 %vm731_vm0, %v358_v63  ;;  %v421_v62 = vld [vmem:[#allocation2 + $0x290] sm:$0xff]  ;;  %v508_v63 = vld [vmem:[#allocation2 + $0x548] sm:$0xff] }
 0x17e   : > { %1383 = vmatprep.mubr.f32.mxu0 %v352_v1  ;;  %5795 = vmatprep.mubr.msk.f32.mxu1 %vm731_vm0, %v363_v2  ;;  %v427_v1 = vld [vmem:[#allocation2 + $0x2c0] sm:$0xff]  ;;  %v513_v2 = vld [vmem:[#allocation2 + $0x570] sm:$0xff] }
 0x17f   : > { %6116 = vmatpush3.bf16.msra.mxu1 %v6113_v59  ;;  %v416_v59 = vld [vmem:[#allocation2 + $0x268] sm:$0xff] }
 0x180   : > { %6118 = vmatprep.subr.bf16.mxu1 %v6117_v3 }
 0x181   : > { %1384 = vmatmul.mubr.f32.gmra.mrb[4].mxu0 %v351_v6  ;;  %5796 = vmatmul.mubr.msk.f32.gmra.mrb[68].mxu1 %vm731_vm0, %v368_v7  ;;  %v523_v6 = vld [vmem:[#allocation2 + $0x5c0] sm:$0xff] }
 0x182   : > { %1388 = vmatprep.mubr.f32.mxu0 %v357_v32  ;;  %5798 = vmatprep.mubr.msk.f32.mxu1 %vm731_vm0, %v373_v8  ;;  %v431_v7 = vld [vmem:[#allocation2 + $0x2e0] sm:$0xff]  ;;  %v528_v32 = vld [vmem:[#allocation2 + $0x5e8] sm:$0xff]  ;;  %v437_v8 = vld [vmem:[#allocation2 + $0x310] sm:$0xff] }
 0x183   : > { %6120 = vmatpush3.bf16.msra.mxu1 %v6117_v3  ;;  %v426_v3 = vld [vmem:[#allocation2 + $0x2b8] sm:$0xff] }
 0x184   : > { %6122 = vmatprep.subr.bf16.mxu1 %v6121_v9 }
 0x185   : > { %1389 = vmatmul.mubr.f32.gmra.mrb[6].mxu0 %v356_v10  ;;  %5799 = vmatmul.mubr.msk.f32.gmra.mrb[70].mxu1 %vm731_vm0, %v378_v11  ;;  %v436_v10 = vld [vmem:[#allocation2 + $0x308] sm:$0xff]  ;;  %v538_v11 = vld [vmem:[#allocation2 + $0x638] sm:$0xff] }
 0x186   : > { %1393 = vmatprep.mubr.f32.mxu0 %v362_v12  ;;  %5801 = vmatprep.mubr.msk.f32.mxu1 %vm731_vm0, %v383_v13  ;;  %v442_v12 = vld [vmem:[#allocation2 + $0x338] sm:$0xff]  ;;  %v543_v13 = vld [vmem:[#allocation2 + $0x660] sm:$0xff] }
 0x187   : > { %6124 = vmatpush3.bf16.msra.mxu1 %v6121_v9  ;;  %v533_v9 = vld [vmem:[#allocation2 + $0x610] sm:$0xff] }
 0x189   : > { %1394 = vmatmul.mubr.f32.gmra.mrb[8].mxu0 %v361_v14  ;;  %5802 = vmatmul.mubr.msk.f32.gmra.mrb[72].mxu1 %vm731_vm0, %v388_v15  ;;  %v441_v14 = vld [vmem:[#allocation2 + $0x330] sm:$0xff]  ;;  %v548_v15 = vld [vmem:[#allocation2 + $0x688] sm:$0xff] }
 0x18a   : > { %1398 = vmatprep.mubr.f32.mxu0 %v367_v16  ;;  %5804 = vmatprep.mubr.msk.f32.mxu1 %vm731_vm0, %v393_v17  ;;  %v447_v16 = vld [vmem:[#allocation2 + $0x360] sm:$0xff]  ;;  %v553_v17 = vld [vmem:[#allocation2 + $0x6b0] sm:$0xff] }
 0x18d   : > { %1399 = vmatmul.mubr.f32.gmra.mrb[10].mxu0 %v366_v18  ;;  %5805 = vmatmul.mubr.msk.f32.gmra.mrb[74].mxu1 %vm731_vm0, %v398_v19  ;;  %v446_v18 = vld [vmem:[#allocation2 + $0x358] sm:$0xff] }
 0x18e   : > { %1403 = vmatprep.mubr.f32.mxu0 %v372_v20  ;;  %5807 = vmatprep.mubr.msk.f32.mxu1 %vm731_vm0, %v403_v21  ;;  %v558_v19 = vld [vmem:[#allocation2 + $0x6d8] sm:$0xff]  ;;  %v452_v20 = vld [vmem:[#allocation2 + $0x388] sm:$0xff]  ;;  %v563_v21 = vld [vmem:[#allocation2 + $0x700] sm:$0xff] }
 0x191   : > { %1404 = vmatmul.mubr.f32.gmra.mrb[12].mxu0 %v371_v22  ;;  %5808 = vmatmul.mubr.msk.f32.gmra.mrb[76].mxu1 %vm731_vm0, %v408_v23 }
 0x192   : > { %1408 = vmatprep.mubr.f32.mxu0 %v377_v24  ;;  %5810 = vmatprep.mubr.msk.f32.mxu1 %vm731_vm0, %v413_v25  ;;  %v451_v24 = vld [vmem:[#allocation2 + $0x380] sm:$0xff]  ;;  %v568_v25 = vld [vmem:[#allocation2 + $0x728] sm:$0xff] }
 0x195   : > { %1409 = vmatmul.mubr.f32.gmra.mrb[14].mxu0 %v376_v26  ;;  %5811 = vmatmul.mubr.msk.f32.gmra.mrb[78].mxu1 %vm731_vm0, %v418_v27  ;;  %v457_v26 = vld [vmem:[#allocation2 + $0x3b0] sm:$0xff] }
 0x196   : > { %1413 = vmatprep.mubr.f32.mxu0 %v382_v28  ;;  %5813 = vmatprep.mubr.msk.f32.mxu1 %vm731_vm0, %v423_v29  ;;  %v573_v27 = vld [vmem:[#allocation2 + $0x750] sm:$0xff] }
 0x199   : > { %1414 = vmatmul.mubr.f32.gmra.mrb[16].mxu0 %v381_v30  ;;  %5814 = vmatmul.mubr.msk.f32.gmra.mrb[80].mxu1 %vm731_vm0, %v428_v31  ;;  %v456_v30 = vld [vmem:[#allocation2 + $0x3a8] sm:$0xff]  ;;  %v578_v31 = vld [vmem:[#allocation2 + $0x778] sm:$0xff] }
 0x19a   : > { %1418 = vmatprep.mubr.f32.mxu0 %v387_v33  ;;  %5816 = vmatprep.mubr.msk.f32.mxu1 %vm731_vm0, %v433_v34  ;;  %v462_v33 = vld [vmem:[#allocation2 + $0x3d8] sm:$0xff]  ;;  %v583_v34 = vld [vmem:[#allocation2 + $0x7a0] sm:$0xff] }
 0x19d   : > { %1419 = vmatmul.mubr.f32.gmra.mrb[18].mxu0 %v386_v35  ;;  %5817 = vmatmul.mubr.msk.f32.gmra.mrb[82].mxu1 %vm731_vm0, %v438_v36 }
 0x19e   : > { %1423 = vmatprep.mubr.f32.mxu0 %v392_v37  ;;  %5819 = vmatprep.mubr.msk.f32.mxu1 %vm731_vm0, %v443_v38  ;;  %v461_v37 = vld [vmem:[#allocation2 + $0x3d0] sm:$0xff]  ;;  %v588_v38 = vld [vmem:[#allocation2 + $0x7c8] sm:$0xff] }
 0x1a1   : > { %1424 = vmatmul.mubr.f32.gmra.mrb[20].mxu0 %v391_v39  ;;  %5820 = vmatmul.mubr.msk.f32.gmra.mrb[84].mxu1 %vm731_vm0, %v448_v40  ;;  %v467_v39 = vld [vmem:[#allocation2 + $0x400] sm:$0xff]  ;;  %v593_v40 = vld [vmem:[#allocation2 + $0x7f0] sm:$0xff] }
 0x1a2   : > { %1428 = vmatprep.mubr.f32.mxu0 %v397_v41  ;;  %5822 = vmatprep.mubr.msk.f32.mxu1 %vm731_vm0, %v453_v42 }
 0x1a5   : > { %1429 = vmatmul.mubr.f32.gmra.mrb[22].mxu0 %v396_v43  ;;  %5823 = vmatmul.mubr.msk.f32.gmra.mrb[86].mxu1 %vm731_vm0, %v458_v44  ;;  %v466_v43 = vld [vmem:[#allocation2 + $0x3f8] sm:$0xff] }
 0x1a6   : > { %1433 = vmatprep.mubr.f32.mxu0 %v402_v45  ;;  %5825 = vmatprep.mubr.msk.f32.mxu1 %vm731_vm0, %v463_v46  ;;  %v598_v44 = vld [vmem:[#allocation2 + $0x818] sm:$0xff]  ;;  %v472_v45 = vld [vmem:[#allocation2 + $0x428] sm:$0xff]  ;;  %v603_v46 = vld [vmem:[#allocation2 + $0x840] sm:$0xff] }
 0x1a9   : > { %1434 = vmatmul.mubr.f32.gmra.mrb[24].mxu0 %v401_v47  ;;  %5826 = vmatmul.mubr.msk.f32.gmra.mrb[88].mxu1 %vm731_vm0, %v468_v48 }
 0x1aa   : > { %1438 = vmatprep.mubr.f32.mxu0 %v407_v49  ;;  %5828 = vmatprep.mubr.msk.f32.mxu1 %vm731_vm0, %v473_v50  ;;  %v471_v49 = vld [vmem:[#allocation2 + $0x420] sm:$0xff]  ;;  %v608_v50 = vld [vmem:[#allocation2 + $0x868] sm:$0xff] }
 0x1ad   : > { %1439 = vmatmul.mubr.f32.gmra.mrb[26].mxu0 %v406_v51  ;;  %5829 = vmatmul.mubr.msk.f32.gmra.mrb[90].mxu1 %vm731_vm0, %v478_v52  ;;  %v477_v51 = vld [vmem:[#allocation2 + $0x450] sm:$0xff] }
 0x1ae   : > { %1443 = vmatprep.mubr.f32.mxu0 %v412_v53  ;;  %5831 = vmatprep.mubr.msk.f32.mxu1 %vm731_vm0, %v483_v54  ;;  %v613_v52 = vld [vmem:[#allocation2 + $0x890] sm:$0xff] }
 0x1b1   : > { %1444 = vmatmul.mubr.f32.gmra.mrb[28].mxu0 %v411_v55  ;;  %5832 = vmatmul.mubr.msk.f32.gmra.mrb[92].mxu1 %vm731_vm0, %v488_v56  ;;  %v476_v55 = vld [vmem:[#allocation2 + $0x448] sm:$0xff]  ;;  %v618_v56 = vld [vmem:[#allocation2 + $0x8b8] sm:$0xff] }
 0x1b2   : > { %1448 = vmatprep.mubr.f32.mxu0 %v417_v57  ;;  %5834 = vmatprep.mubr.msk.f32.mxu1 %vm731_vm0, %v493_v58  ;;  %v482_v57 = vld [vmem:[#allocation2 + $0x478] sm:$0xff]  ;;  %v623_v58 = vld [vmem:[#allocation2 + $0x8e0] sm:$0xff] }
 0x1b5   : > { %1449 = vmatmul.mubr.f32.gmra.mrb[30].mxu0 %v416_v59  ;;  %5835 = vmatmul.mubr.msk.f32.gmra.mrb[94].mxu1 %vm731_vm0, %v498_v60 }
 0x1b6   : > { %1453 = vmatprep.mubr.f32.mxu0 %v422_v0  ;;  %5837 = vmatprep.mubr.msk.f32.mxu1 %vm731_vm0, %v503_v61  ;;  %v481_v0 = vld [vmem:[#allocation2 + $0x470] sm:$0xff]  ;;  %v628_v61 = vld [vmem:[#allocation2 + $0x908] sm:$0xff] }
 0x1b9   : > { %1454 = vmatmul.mubr.f32.gmra.mrb[32].mxu0 %v421_v62  ;;  %5838 = vmatmul.mubr.msk.f32.gmra.mrb[96].mxu1 %vm731_vm0, %v508_v63  ;;  %v487_v62 = vld [vmem:[#allocation2 + $0x4a0] sm:$0xff]  ;;  %v633_v63 = vld [vmem:[#allocation2 + $0x930] sm:$0xff] }
 0x1ba   : > { %1458 = vmatprep.mubr.f32.mxu0 %v427_v1  ;;  %5840 = vmatprep.mubr.msk.f32.mxu1 %vm731_vm0, %v513_v2 }
 0x1bd   : > { %1459 = vmatmul.mubr.f32.gmra.mrb[34].mxu0 %v426_v3  ;;  %5841 = vmatmul.mubr.msk.f32.gmra.mrb[98].mxu1 %vm731_vm0, %v518_v4  ;;  %v486_v3 = vld [vmem:[#allocation2 + $0x498] sm:$0xff] }
 0x1be   : > { %1463 = vmatprep.mubr.f32.mxu0 %v432_v5  ;;  %5843 = vmatprep.mubr.msk.f32.mxu1 %vm731_vm0, %v523_v6  ;;  %v638_v4 = vld [vmem:[#allocation2 + $0x958] sm:$0xff]  ;;  %v492_v5 = vld [vmem:[#allocation2 + $0x4c8] sm:$0xff]  ;;  %v643_v6 = vld [vmem:[#allocation2 + $0x980] sm:$0xff] }
 0x1c1   : > { %1464 = vmatmul.mubr.f32.gmra.mrb[36].mxu0 %v431_v7  ;;  %5844 = vmatmul.mubr.msk.f32.gmra.mrb[100].mxu1 %vm731_vm0, %v528_v32 }
 0x1c2   : > { %1468 = vmatprep.mubr.f32.mxu0 %v437_v8  ;;  %5846 = vmatprep.mubr.msk.f32.mxu1 %vm731_vm0, %v533_v9  ;;  %v491_v8 = vld [vmem:[#allocation2 + $0x4c0] sm:$0xff]  ;;  %v648_v9 = vld [vmem:[#allocation2 + $0x9a8] sm:$0xff] }
 0x1c5   : > { %1469 = vmatmul.mubr.f32.gmra.mrb[38].mxu0 %v436_v10  ;;  %5847 = vmatmul.mubr.msk.f32.gmra.mrb[102].mxu1 %vm731_vm0, %v538_v11  ;;  %v497_v10 = vld [vmem:[#allocation2 + $0x4f0] sm:$0xff] }
 0x1c6   : > { %1473 = vmatprep.mubr.f32.mxu0 %v442_v12  ;;  %5849 = vmatprep.mubr.msk.f32.mxu1 %vm731_vm0, %v543_v13  ;;  %v653_v11 = vld [vmem:[#allocation2 + $0x9d0] sm:$0xff] }
 0x1c9   : > { %1474 = vmatmul.mubr.f32.gmra.mrb[40].mxu0 %v441_v14  ;;  %5850 = vmatmul.mubr.msk.f32.gmra.mrb[104].mxu1 %vm731_vm0, %v548_v15  ;;  %v496_v14 = vld [vmem:[#allocation2 + $0x4e8] sm:$0xff]  ;;  %v658_v15 = vld [vmem:[#allocation2 + $0x9f8] sm:$0xff] }
 0x1ca   : > { %1478 = vmatprep.mubr.f32.mxu0 %v447_v16  ;;  %5852 = vmatprep.mubr.msk.f32.mxu1 %vm731_vm0, %v553_v17  ;;  %v502_v16 = vld [vmem:[#allocation2 + $0x518] sm:$0xff]  ;;  %v2079_v17 = vld [vmem:[#allocation5] sm:$0xff] }
 0x1cc   : > { %v7299_v22 = vpop.f32.mrb[0].mxu1 }
 0x1cd   : > { %1479 = vmatmul.mubr.f32.gmra.mrb[42].mxu0 %v446_v18  ;;  %5853 = vmatmul.mubr.msk.f32.gmra.mrb[106].mxu1 %vm731_vm0, %v558_v19  ;;  %v1152_v23 = vpop.f32.mrb[1].mxu1 }
 0x1ce   : > { %1483 = vmatprep.mubr.f32.mxu0 %v452_v20  ;;  %5855 = vmatprep.mubr.msk.f32.mxu1 %vm731_vm0, %v563_v21  ;;  %v501_v20 = vld [vmem:[#allocation2 + $0x510] sm:$0xff]  ;;  %v2080_v21 = vld [vmem:[#allocation5 + $0x8] sm:$0xff]  ;;  %v507_v23 = vld [vmem:[#allocation2 + $0x540] sm:$0xff] }
 0x1d0   : > { %v7303_v28 = vpop.f32.mrb[2].mxu1 }
 0x1d1   : > { %1484 = vmatmul.mubr.f32.gmra.mrb[44].mxu0 %v451_v24  ;;  %5856 = vmatmul.mubr.msk.f32.gmra.mrb[108].mxu1 %vm731_vm0, %v568_v25  ;;  %v1157_v29 = vpop.f32.mrb[3].mxu1  ;;  %v2081_v24 = vld [vmem:[#allocation5 + $0x10] sm:$0xff] }
 0x1d2   : > { %1488 = vmatprep.mubr.f32.mxu0 %v457_v26  ;;  %5858 = vmatprep.mubr.msk.f32.mxu1 %vm731_vm0, %v573_v27  ;;  %v506_v27 = vld [vmem:[#allocation2 + $0x538] sm:$0xff] }
 0x1d3   : > { %v2082_v29 = vld [vmem:[#allocation5 + $0x18] sm:$0xff] }
 0x1d4   : > { %v7307_v35 = vpop.f32.mrb[4].mxu1 }
 0x1d5   : > { %1489 = vmatmul.mubr.f32.gmra.mrb[46].mxu0 %v456_v30  ;;  %5859 = vmatmul.mubr.msk.f32.gmra.mrb[110].mxu1 %vm731_vm0, %v578_v31  ;;  %v1162_v36 = vpop.f32.mrb[5].mxu1  ;;  %v512_v30 = vld [vmem:[#allocation2 + $0x568] sm:$0xff]  ;;  %v2083_v31 = vld [vmem:[#allocation5 + $0x20] sm:$0xff] }
 0x1d6   : > { %1493 = vmatprep.mubr.f32.mxu0 %v462_v33  ;;  %5861 = vmatprep.mubr.msk.f32.mxu1 %vm731_vm0, %v583_v34  ;;  %v511_v36 = vld [vmem:[#allocation2 + $0x560] sm:$0xff] }
 0x1d8   : > { %v7311_v41 = vpop.f32.mrb[6].mxu1 }
 0x1d9   : > { %1494 = vmatmul.mubr.f32.gmra.mrb[48].mxu0 %v461_v37  ;;  %5862 = vmatmul.mubr.msk.f32.gmra.mrb[112].mxu1 %vm731_vm0, %v588_v38  ;;  %v1167_v42 = vpop.f32.mrb[7].mxu1  ;;  %v2084_v37 = vld [vmem:[#allocation5 + $0x28] sm:$0xff]  ;;  %v517_v38 = vld [vmem:[#allocation2 + $0x590] sm:$0xff] }
 0x1da   : > { %1498 = vmatprep.mubr.f32.mxu0 %v467_v39  ;;  %5864 = vmatprep.mubr.msk.f32.mxu1 %vm731_vm0, %v593_v40  ;;  %v2085_v39 = vld [vmem:[#allocation5 + $0x30] sm:$0xff] }
 0x1dc   : > { %v7315_v47 = vpop.f32.mrb[8].mxu1 }
 0x1dd   : > { %1499 = vmatmul.mubr.f32.gmra.mrb[50].mxu0 %v466_v43  ;;  %5865 = vmatmul.mubr.msk.f32.gmra.mrb[114].mxu1 %vm731_vm0, %v598_v44  ;;  %v1172_v48 = vpop.f32.mrb[9].mxu1  ;;  %v516_v43 = vld [vmem:[#allocation2 + $0x588] sm:$0xff]  ;;  %v2086_v44 = vld [vmem:[#allocation5 + $0x38] sm:$0xff] }
 0x1de   : > { %1503 = vmatprep.mubr.f32.mxu0 %v472_v45  ;;  %5867 = vmatprep.mubr.msk.f32.mxu1 %vm731_vm0, %v603_v46  ;;  %v522_v45 = vld [vmem:[#allocation2 + $0x5b8] sm:$0xff]  ;;  %v2087_v46 = vld [vmem:[#allocation5 + $0x40] sm:$0xff] }
 0x1e0   : > { %v7319_v53 = vpop.f32.mrb[10].mxu1 }
 0x1e1   : > { %1504 = vmatmul.mubr.f32.gmra.mrb[52].mxu0 %v471_v49  ;;  %5868 = vmatmul.mubr.msk.f32.gmra.mrb[116].mxu1 %vm731_vm0, %v608_v50  ;;  %v1177_v54 = vpop.f32.mrb[11].mxu1  ;;  %v521_v50 = vld [vmem:[#allocation2 + $0x5b0] sm:$0xff] }
 0x1e2   : > { %1508 = vmatprep.mubr.f32.mxu0 %v477_v51  ;;  %5870 = vmatprep.mubr.msk.f32.mxu1 %vm731_vm0, %v613_v52  ;;  %v2088_v51 = vld [vmem:[#allocation5 + $0x48] sm:$0xff]  ;;  %v527_v52 = vld [vmem:[#allocation2 + $0x5e0] sm:$0xff]  ;;  %v2089_v54 = vld [vmem:[#allocation5 + $0x50] sm:$0xff] }
 0x1e4   : > { %v7323_v59 = vpop.f32.mrb[12].mxu1 }
 0x1e5   : > { %1509 = vmatmul.mubr.f32.gmra.mrb[54].mxu0 %v476_v55  ;;  %5871 = vmatmul.mubr.msk.f32.gmra.mrb[118].mxu1 %vm731_vm0, %v618_v56  ;;  %v1182_v60 = vpop.f32.mrb[13].mxu1 }
 0x1e6   : > { %1513 = vmatprep.mubr.f32.mxu0 %v482_v57  ;;  %5873 = vmatprep.mubr.msk.f32.mxu1 %vm731_vm0, %v623_v58  ;;  %v526_v57 = vld [vmem:[#allocation2 + $0x5d8] sm:$0xff]  ;;  %v532_v60 = vld [vmem:[#allocation2 + $0x608] sm:$0xff] }
 0x1e7   : > { %v2090_v58 = vld [vmem:[#allocation5 + $0x58] sm:$0xff] }
 0x1e8   : > { %v7327_v1 = vpop.f32.mrb[14].mxu1 }
 0x1e9   : > { %1514 = vmatmul.mubr.f32.gmra.mrb[56].mxu0 %v481_v0  ;;  %5874 = vmatmul.mubr.msk.f32.gmra.mrb[120].mxu1 %vm731_vm0, %v628_v61  ;;  %v1187_v2 = vpop.f32.mrb[15].mxu1  ;;  %v2091_v0 = vld [vmem:[#allocation5 + $0x60] sm:$0xff] }
 0x1ea   : > { %1518 = vmatprep.mubr.f32.mxu0 %v487_v62  ;;  %5876 = vmatprep.mubr.msk.f32.mxu1 %vm731_vm0, %v633_v63  ;;  %v531_v63 = vld [vmem:[#allocation2 + $0x600] sm:$0xff]  ;;  %v2092_v2 = vld [vmem:[#allocation5 + $0x68] sm:$0xff] }
 0x1ec   : > { %v7331_v7 = vpop.f32.mrb[16].mxu1 }
 0x1ed   : > { %1519 = vmatmul.mubr.f32.gmra.mrb[58].mxu0 %v486_v3  ;;  %5877 = vmatmul.mubr.msk.f32.gmra.mrb[122].mxu1 %vm731_vm0, %v638_v4  ;;  %v1192_v32 = vpop.f32.mrb[17].mxu1  ;;  %v537_v3 = vld [vmem:[#allocation2 + $0x630] sm:$0xff] }
 0x1ee   : > { %1523 = vmatprep.mubr.f32.mxu0 %v492_v5  ;;  %5879 = vmatprep.mubr.msk.f32.mxu1 %vm731_vm0, %v643_v6  ;;  %v2093_v4 = vld [vmem:[#allocation5 + $0x70] sm:$0xff]  ;;  %v536_v32 = vld [vmem:[#allocation2 + $0x628] sm:$0xff] }
 0x1f0   : > { %v7335_v12 = vpop.f32.mrb[18].mxu1 }
 0x1f1   : > { %14218 = vst [vmem:[#allocation18_spill] sm:$0xff] %v7335_v12  ;;  %1524 = vmatmul.mubr.f32.gmra.mrb[60].mxu0 %v491_v8  ;;  %5880 = vmatmul.mubr.msk.f32.gmra.mrb[124].mxu1 %vm731_vm0, %v648_v9  ;;  %v1197_v13 = vpop.f32.mrb[19].mxu1  ;;  %v2094_v8 = vld [vmem:[#allocation5 + $0x78] sm:$0xff] }
 0x1f2   : > { %1528 = vmatprep.mubr.f32.mxu0 %v497_v10  ;;  %5882 = vmatprep.mubr.msk.f32.mxu1 %vm731_vm0, %v653_v11  ;;  %v542_v9 = vld [vmem:[#allocation2 + $0x658] sm:$0xff]  ;;  %v2095_v10 = vld [vmem:[#allocation5 + $0x80] sm:$0xff] }
 0x1f4   : > { %v7339_v18 = vpop.f32.mrb[20].mxu1 }
 0x1f5   : > { %14219 = vst [vmem:[#allocation19_spill] sm:$0xff] %v7339_v18  ;;  %1529 = vmatmul.mubr.f32.gmra.mrb[62].mxu0 %v496_v14  ;;  %5883 = vmatmul.mubr.msk.f32.gmra.mrb[126].mxu1 %vm731_vm0, %v658_v15  ;;  %v1202_v19 = vpop.f32.mrb[21].mxu1  ;;  %v541_v14 = vld [vmem:[#allocation2 + $0x650] sm:$0xff]  ;;  %v2096_v15 = vld [vmem:[#allocation5 + $0x88] sm:$0xff] }
 0x1f6   : > { %1533 = vmatprep.mubr.f32.mxu0 %v502_v16  ;;  %5901 = vmatprep.mubr.msk.f32.mxu1 %vm731_vm0, %v2079_v17  ;;  %v547_v16 = vld [vmem:[#allocation2 + $0x680] sm:$0xff]  ;;  %v2097_v17 = vld [vmem:[#allocation5 + $0x90] sm:$0xff] }
 0x1f8   : > { %v7343_v25 = vpop.f32.mrb[22].mxu1 }
 0x1f9   : > { %14220 = vst [vmem:[#allocation20_spill] sm:$0xff] %v7343_v25  ;;  %1534 = vmatmul.mubr.f32.gmra.mrb[64].mxu0 %v501_v20  ;;  %5902 = vmatmul.mubr.msk.f32.vlgmr.msra.gmra.mrb[128].mxu1 %vm731_vm0, %v2080_v21  ;;  %v1207_v26 = vpop.f32.mrb[23].mxu1  ;;  %v546_v21 = vld [vmem:[#allocation2 + $0x678] sm:$0xff] }
 0x1fa   : > { %1538 = vmatprep.mubr.f32.mxu0 %v507_v23  ;;  %5904 = vmatprep.mubr.msk.f32.mxu1 %vm731_vm0, %v2081_v24  ;;  %v2098_v23 = vld [vmem:[#allocation5 + $0x98] sm:$0xff]  ;;  %v552_v24 = vld [vmem:[#allocation2 + $0x6a8] sm:$0xff]  ;;  %v2099_v26 = vld [vmem:[#allocation5 + $0xa0] sm:$0xff] }
 0x1fc   : > { %v7347_v33 = vpop.f32.mrb[24].mxu1 }
 0x1fd   : > { %14221 = vst [vmem:[#allocation21_spill] sm:$0xff] %v7347_v33  ;;  %1539 = vmatmul.mubr.f32.gmra.mrb[66].mxu0 %v506_v27  ;;  %5905 = vmatmul.mubr.msk.f32.gmra.mrb[130].mxu1 %vm731_vm0, %v2082_v29  ;;  %v1212_v34 = vpop.f32.mrb[25].mxu1 }
 0x1fe   : > { %1543 = vmatprep.mubr.f32.mxu0 %v512_v30  ;;  %5907 = vmatprep.mubr.msk.f32.mxu1 %vm731_vm0, %v2083_v31  ;;  %v551_v30 = vld [vmem:[#allocation2 + $0x6a0] sm:$0xff]  ;;  %v2100_v31 = vld [vmem:[#allocation5 + $0xa8] sm:$0xff]  ;;  %v557_v34 = vld [vmem:[#allocation2 + $0x6d0] sm:$0xff] }
 0x200   : > { %v7351_v40 = vpop.f32.mrb[26].mxu1 }
 0x201   : > { %14222 = vst [vmem:[#allocation22_spill] sm:$0xff] %v7351_v40  ;;  %1544 = vmatmul.mubr.f32.gmra.mrb[68].mxu0 %v511_v36  ;;  %5908 = vmatmul.mubr.msk.f32.gmra.mrb[132].mxu1 %vm731_vm0, %v2084_v37  ;;  %v1217_v42 = vpop.f32.mrb[27].mxu1  ;;  %v2101_v36 = vld [vmem:[#allocation5 + $0xb0] sm:$0xff] }
 0x202   : > { %1548 = vmatprep.mubr.f32.mxu0 %v517_v38  ;;  %5910 = vmatprep.mubr.msk.f32.mxu1 %vm731_vm0, %v2085_v39  ;;  %v556_v39 = vld [vmem:[#allocation2 + $0x6c8] sm:$0xff]  ;;  %v2102_v42 = vld [vmem:[#allocation5 + $0xb8] sm:$0xff] }
 0x204   : > { %v7355_v48 = vpop.f32.mrb[28].mxu1 }
 0x205   : > { %14223 = vst [vmem:[#allocation23_spill] sm:$0xff] %v7355_v48  ;;  %1549 = vmatmul.mubr.f32.gmra.mrb[70].mxu0 %v516_v43  ;;  %5911 = vmatmul.mubr.msk.f32.gmra.mrb[134].mxu1 %vm731_vm0, %v2086_v44  ;;  %v1222_v49 = vpop.f32.mrb[29].mxu1  ;;  %v562_v43 = vld [vmem:[#allocation2 + $0x6f8] sm:$0xff]  ;;  %v2103_v44 = vld [vmem:[#allocation5 + $0xc0] sm:$0xff] }
 0x206   : > { %1553 = vmatprep.mubr.f32.mxu0 %v522_v45  ;;  %5913 = vmatprep.mubr.msk.f32.mxu1 %vm731_vm0, %v2087_v46  ;;  %v561_v49 = vld [vmem:[#allocation2 + $0x6f0] sm:$0xff] }
 0x208   : > { %v7359_v55 = vpop.f32.mrb[30].mxu1 }
 0x209   : > { %14224 = vst [vmem:[#allocation24_spill] sm:$0xff] %v7359_v55  ;;  %1554 = vmatmul.mubr.f32.gmra.mrb[72].mxu0 %v521_v50  ;;  %5914 = vmatmul.mubr.msk.f32.gmra.mrb[136].mxu1 %vm731_vm0, %v2088_v51  ;;  %v1227_v56 = vpop.f32.mrb[31].mxu1  ;;  %v2104_v50 = vld [vmem:[#allocation5 + $0xc8] sm:$0xff]  ;;  %v567_v51 = vld [vmem:[#allocation2 + $0x720] sm:$0xff] }
 0x20a   : > { %1558 = vmatprep.mubr.f32.mxu0 %v527_v52  ;;  %5916 = vmatprep.mubr.msk.f32.mxu1 %vm731_vm0, %v2089_v54  ;;  %v2105_v52 = vld [vmem:[#allocation5 + $0xd0] sm:$0xff] }
 0x20c   : > { %v7363_v61 = vpop.f32.mrb[32].mxu1 }
 0x20d   : > { %14225 = vst [vmem:[#allocation25_spill] sm:$0xff] %v7363_v61  ;;  %1559 = vmatmul.mubr.f32.gmra.mrb[74].mxu0 %v526_v57  ;;  %5917 = vmatmul.mubr.msk.f32.gmra.mrb[138].mxu1 %vm731_vm0, %v2090_v58  ;;  %v1232_v62 = vpop.f32.mrb[33].mxu1  ;;  %v566_v57 = vld [vmem:[#allocation2 + $0x718] sm:$0xff] }
 0x20e   : > { %1563 = vmatprep.mubr.f32.mxu0 %v532_v60  ;;  %5919 = vmatprep.mubr.msk.f32.mxu1 %vm731_vm0, %v2091_v0  ;;  %v2106_v58 = vld [vmem:[#allocation5 + $0xd8] sm:$0xff]  ;;  %v572_v60 = vld [vmem:[#allocation2 + $0x748] sm:$0xff]  ;;  %v2107_v0 = vld [vmem:[#allocation5 + $0xe0] sm:$0xff] }
 0x210   : > { %v7367_v5 = vpop.f32.mrb[34].mxu1 }
 0x211   : > { %14226 = vst [vmem:[#allocation26_spill] sm:$0xff] %v7367_v5  ;;  %1564 = vmatmul.mubr.f32.gmra.mrb[76].mxu0 %v531_v63  ;;  %5920 = vmatmul.mubr.msk.f32.gmra.mrb[140].mxu1 %vm731_vm0, %v2092_v2  ;;  %v1237_v6 = vpop.f32.mrb[35].mxu1  ;;  %v571_v2 = vld [vmem:[#allocation2 + $0x740] sm:$0xff] }
 0x212   : > { %1568 = vmatprep.mubr.f32.mxu0 %v537_v3  ;;  %5922 = vmatprep.mubr.msk.f32.mxu1 %vm731_vm0, %v2093_v4  ;;  %v2108_v3 = vld [vmem:[#allocation5 + $0xe8] sm:$0xff]  ;;  %v577_v4 = vld [vmem:[#allocation2 + $0x770] sm:$0xff] }
 0x213   : > { %v2109_v6 = vld [vmem:[#allocation5 + $0xf0] sm:$0xff] }
 0x214   : > { %v7371_v11 = vpop.f32.mrb[36].mxu1 }
 0x215   : > { %14227 = vst [vmem:[#allocation27_spill] sm:$0xff] %v7371_v11  ;;  %1569 = vmatmul.mubr.f32.gmra.mrb[78].mxu0 %v536_v32  ;;  %5923 = vmatmul.mubr.msk.f32.gmra.mrb[142].mxu1 %vm731_vm0, %v2094_v8  ;;  %v1242_v13 = vpop.f32.mrb[37].mxu1 }
 0x216   : > { %1573 = vmatprep.mubr.f32.mxu0 %v542_v9  ;;  %5925 = vmatprep.mubr.msk.f32.mxu1 %vm731_vm0, %v2095_v10  ;;  %v576_v9 = vld [vmem:[#allocation2 + $0x768] sm:$0xff]  ;;  %v2110_v10 = vld [vmem:[#allocation5 + $0xf8] sm:$0xff] }
 0x217   : > { %v582_v13 = vld [vmem:[#allocation2 + $0x798] sm:$0xff] }
 0x218   : > { %v7375_v19 = vpop.f32.mrb[38].mxu1 }
 0x219   : > { %14228 = vst [vmem:[#allocation28_spill] sm:$0xff] %v7375_v19  ;;  %1574 = vmatmul.mubr.f32.gmra.mrb[80].mxu0 %v541_v14  ;;  %5926 = vmatmul.mubr.msk.f32.gmra.mrb[144].mxu1 %vm731_vm0, %v2096_v15  ;;  %v1247_v20 = vpop.f32.mrb[39].mxu1  ;;  %v2111_v14 = vld [vmem:[#allocation5 + $0x100] sm:$0xff] }
 0x21a   : > { %1578 = vmatprep.mubr.f32.mxu0 %v547_v16  ;;  %5928 = vmatprep.mubr.msk.f32.mxu1 %vm731_vm0, %v2097_v17  ;;  %v581_v17 = vld [vmem:[#allocation2 + $0x790] sm:$0xff]  ;;  %v2112_v20 = vld [vmem:[#allocation5 + $0x108] sm:$0xff] }
 0x21c   : > { %v7379_v27 = vpop.f32.mrb[40].mxu1 }
 0x21d   : > { %14229 = vst [vmem:[#allocation29_spill] sm:$0xff] %v7379_v27  ;;  %1579 = vmatmul.mubr.f32.gmra.mrb[82].mxu0 %v546_v21  ;;  %5929 = vmatmul.mubr.msk.f32.gmra.mrb[146].mxu1 %vm731_vm0, %v2098_v23  ;;  %v1252_v29 = vpop.f32.mrb[41].mxu1  ;;  %v587_v21 = vld [vmem:[#allocation2 + $0x7c0] sm:$0xff]  ;;  %v2113_v23 = vld [vmem:[#allocation5 + $0x110] sm:$0xff] }
 0x21e   : > { %1583 = vmatprep.mubr.f32.mxu0 %v552_v24  ;;  %5931 = vmatprep.mubr.msk.f32.mxu1 %vm731_vm0, %v2099_v26  ;;  %v586_v29 = vld [vmem:[#allocation2 + $0x7b8] sm:$0xff] }
 0x220   : > { %v7383_v37 = vpop.f32.mrb[42].mxu1 }
 0x221   : > { %14230 = vst [vmem:[#allocation30_spill] sm:$0xff] %v7383_v37  ;;  %1584 = vmatmul.mubr.f32.gmra.mrb[84].mxu0 %v551_v30  ;;  %5932 = vmatmul.mubr.msk.f32.gmra.mrb[148].mxu1 %vm731_vm0, %v2100_v31  ;;  %v1257_v38 = vpop.f32.mrb[43].mxu1  ;;  %v2114_v30 = vld [vmem:[#allocation5 + $0x118] sm:$0xff]  ;;  %v592_v31 = vld [vmem:[#allocation2 + $0x7e8] sm:$0xff] }
 0x222   : > { %1588 = vmatprep.mubr.f32.mxu0 %v557_v34  ;;  %5934 = vmatprep.mubr.msk.f32.mxu1 %vm731_vm0, %v2101_v36  ;;  %v2115_v34 = vld [vmem:[#allocation5 + $0x120] sm:$0xff] }
 0x224   : > { %v7387_v45 = vpop.f32.mrb[44].mxu1 }
 0x225   : > { %14231 = vst [vmem:[#allocation31_spill] sm:$0xff] %v7387_v45  ;;  %1589 = vmatmul.mubr.f32.gmra.mrb[86].mxu0 %v556_v39  ;;  %5935 = vmatmul.mubr.msk.f32.gmra.mrb[150].mxu1 %vm731_vm0, %v2102_v42  ;;  %v1262_v46 = vpop.f32.mrb[45].mxu1  ;;  %v591_v39 = vld [vmem:[#allocation2 + $0x7e0] sm:$0xff]  ;;  %v2116_v42 = vld [vmem:[#allocation5 + $0x128] sm:$0xff] }
 0x226   : > { %1593 = vmatprep.mubr.f32.mxu0 %v562_v43  ;;  %5937 = vmatprep.mubr.msk.f32.mxu1 %vm731_vm0, %v2103_v44  ;;  %v597_v43 = vld [vmem:[#allocation2 + $0x810] sm:$0xff] }
 0x227   : > { %v2117_v44 = vld [vmem:[#allocation5 + $0x130] sm:$0xff] }
 0x228   : > { %v7391_v54 = vpop.f32.mrb[46].mxu1 }
 0x229   : > { %14232 = vst [vmem:[#allocation32_spill] sm:$0xff] %v7391_v54  ;;  %1594 = vmatmul.mubr.f32.gmra.mrb[88].mxu0 %v561_v49  ;;  %5938 = vmatmul.mubr.msk.f32.gmra.mrb[152].mxu1 %vm731_vm0, %v2104_v50  ;;  %v1267_v56 = vpop.f32.mrb[47].mxu1  ;;  %v596_v50 = vld [vmem:[#allocation2 + $0x808] sm:$0xff] }
 0x22a   : > { %1598 = vmatprep.mubr.f32.mxu0 %v567_v51  ;;  %5940 = vmatprep.mubr.msk.f32.mxu1 %vm731_vm0, %v2105_v52  ;;  %v2118_v51 = vld [vmem:[#allocation5 + $0x138] sm:$0xff]  ;;  %v2119_v56 = vld [vmem:[#allocation5 + $0x140] sm:$0xff] }
 0x22b   : > { %v602_v52 = vld [vmem:[#allocation2 + $0x838] sm:$0xff] }
 0x22c   : > { %v7395_v62 = vpop.f32.mrb[48].mxu1 }
 0x22d   : > { %14233 = vst [vmem:[#allocation33_spill] sm:$0xff] %v7395_v62  ;;  %1599 = vmatmul.mubr.f32.gmra.mrb[90].mxu0 %v566_v57  ;;  %5941 = vmatmul.mubr.msk.f32.gmra.mrb[154].mxu1 %vm731_vm0, %v2106_v58  ;;  %v1272_v63 = vpop.f32.mrb[49].mxu1 }
 0x22e   : > { %1603 = vmatprep.mubr.f32.mxu0 %v572_v60  ;;  %5943 = vmatprep.mubr.msk.f32.mxu1 %vm731_vm0, %v2107_v0  ;;  %v601_v60 = vld [vmem:[#allocation2 + $0x830] sm:$0xff]  ;;  %v2120_v0 = vld [vmem:[#allocation5 + $0x148] sm:$0xff]  ;;  %v607_v63 = vld [vmem:[#allocation2 + $0x860] sm:$0xff] }
 0x230   : > { %v7399_v32 = vpop.f32.mrb[50].mxu1 }
 0x231   : > { %14234 = vst [vmem:[#allocation34_spill] sm:$0xff] %v7399_v32  ;;  %1604 = vmatmul.mubr.f32.gmra.mrb[92].mxu0 %v571_v2  ;;  %5944 = vmatmul.mubr.msk.f32.gmra.mrb[156].mxu1 %vm731_vm0, %v2108_v3  ;;  %v1277_v8 = vpop.f32.mrb[51].mxu1  ;;  %v2121_v2 = vld [vmem:[#allocation5 + $0x150] sm:$0xff] }
 0x232   : > { %1608 = vmatprep.mubr.f32.mxu0 %v577_v4  ;;  %5946 = vmatprep.mubr.msk.f32.mxu1 %vm731_vm0, %v2109_v6  ;;  %v606_v6 = vld [vmem:[#allocation2 + $0x858] sm:$0xff] }
 0x233   : > { %v2122_v8 = vld [vmem:[#allocation5 + $0x158] sm:$0xff] }
 0x234   : > { %v7403_v15 = vpop.f32.mrb[52].mxu1 }
 0x235   : > { %14235 = vst [vmem:[#allocation35_spill] sm:$0xff] %v7403_v15  ;;  %1609 = vmatmul.mubr.f32.gmra.mrb[94].mxu0 %v576_v9  ;;  %5947 = vmatmul.mubr.msk.f32.gmra.mrb[158].mxu1 %vm731_vm0, %v2110_v10  ;;  %v1282_v16 = vpop.f32.mrb[53].mxu1  ;;  %v612_v9 = vld [vmem:[#allocation2 + $0x888] sm:$0xff]  ;;  %v2123_v10 = vld [vmem:[#allocation5 + $0x160] sm:$0xff] }
 0x236   : > { %1613 = vmatprep.mubr.f32.mxu0 %v582_v13  ;;  %5949 = vmatprep.mubr.msk.f32.mxu1 %vm731_vm0, %v2111_v14 }
 0x238   : > { %v7407_v24 = vpop.f32.mrb[54].mxu1 }
 0x239   : > { %14236 = vst [vmem:[#allocation36_spill] sm:$0xff] %v7407_v24  ;;  %1614 = vmatmul.mubr.f32.gmra.mrb[96].mxu0 %v581_v17  ;;  %5950 = vmatmul.mubr.msk.f32.gmra.mrb[160].mxu1 %vm731_vm0, %v2112_v20  ;;  %v1287_v26 = vpop.f32.mrb[55].mxu1 }
 0x23a   : > { %1618 = vmatprep.mubr.f32.mxu0 %v587_v21  ;;  %5952 = vmatprep.mubr.msk.f32.mxu1 %vm731_vm0, %v2113_v23  ;;  %v611_v21 = vld [vmem:[#allocation2 + $0x880] sm:$0xff]  ;;  %v2124_v23 = vld [vmem:[#allocation5 + $0x168] sm:$0xff]  ;;  %v617_v26 = vld [vmem:[#allocation2 + $0x8b0] sm:$0xff] }
 0x23c   : > { %v7411_v36 = vpop.f32.mrb[56].mxu1 }
 0x23d   : > { %14237 = vst [vmem:[#allocation37_spill] sm:$0xff] %v7411_v36  ;;  %1619 = vmatmul.mubr.f32.gmra.mrb[98].mxu0 %v586_v29  ;;  %5953 = vmatmul.mubr.msk.f32.gmra.mrb[162].mxu1 %vm731_vm0, %v2114_v30  ;;  %v1292_v38 = vpop.f32.mrb[57].mxu1  ;;  %v2125_v29 = vld [vmem:[#allocation5 + $0x170] sm:$0xff] }
 0x23e   : > { %1623 = vmatprep.mubr.f32.mxu0 %v592_v31  ;;  %5955 = vmatprep.mubr.msk.f32.mxu1 %vm731_vm0, %v2115_v34 }
 0x240   : > { %v7415_v46 = vpop.f32.mrb[58].mxu1 }
 0x241   : > { %14238 = vst [vmem:[#allocation38_spill] sm:$0xff] %v7415_v46  ;;  %1624 = vmatmul.mubr.f32.gmra.mrb[100].mxu0 %v591_v39  ;;  %5956 = vmatmul.mubr.msk.f32.gmra.mrb[164].mxu1 %vm731_vm0, %v2116_v42  ;;  %v1297_v49 = vpop.f32.mrb[59].mxu1  ;;  %v616_v42 = vld [vmem:[#allocation2 + $0x8a8] sm:$0xff] }
 0x242   : > { %1628 = vmatprep.mubr.f32.mxu0 %v597_v43  ;;  %5958 = vmatprep.mubr.msk.f32.mxu1 %vm731_vm0, %v2117_v44  ;;  %v2126_v43 = vld [vmem:[#allocation5 + $0x178] sm:$0xff]  ;;  %v2127_v49 = vld [vmem:[#allocation5 + $0x180] sm:$0xff] }
 0x243   : > { %v622_v44 = vld [vmem:[#allocation2 + $0x8d8] sm:$0xff] }
 0x244   : > { %v7419_v57 = vpop.f32.mrb[60].mxu1 }
 0x245   : > { %14239 = vst [vmem:[#allocation39_spill] sm:$0xff] %v7419_v57  ;;  %1629 = vmatmul.mubr.f32.gmra.mrb[102].mxu0 %v596_v50  ;;  %5959 = vmatmul.mubr.msk.f32.gmra.mrb[166].mxu1 %vm731_vm0, %v2118_v51  ;;  %v1302_v58 = vpop.f32.mrb[61].mxu1 }
 0x246   : > { %1633 = vmatprep.mubr.f32.mxu0 %v602_v52  ;;  %5961 = vmatprep.mubr.msk.f32.mxu1 %vm731_vm0, %v2119_v56 }
 0x248   : > { %v7423_v3 = vpop.f32.mrb[62].mxu1 }
 0x249   : > { %14240 = vst [vmem:[#allocation40_spill] sm:$0xff] %v7423_v3  ;;  %1634 = vmatmul.mubr.f32.gmra.mrb[104].mxu0 %v601_v60  ;;  %5962 = vmatmul.mubr.msk.f32.gmra.mrb[168].mxu1 %vm731_vm0, %v2120_v0  ;;  %v1307_v4 = vpop.f32.mrb[63].mxu1  ;;  %v621_v60 = vld [vmem:[#allocation2 + $0x8d0] sm:$0xff]  ;;  %v2128_v0 = vld [vmem:[#allocation5 + $0x188] sm:$0xff] }
 0x24a   : > { %1638 = vmatprep.mubr.f32.mxu0 %v607_v63  ;;  %5964 = vmatprep.mubr.msk.f32.mxu1 %vm731_vm0, %v2121_v2  ;;  %v627_v63 = vld [vmem:[#allocation2 + $0x900] sm:$0xff]  ;;  %v2129_v2 = vld [vmem:[#allocation5 + $0x190] sm:$0xff] }
 0x24c   : > { %v1375_v13 = vpop.f32.mrb[0].mxu0  ;;  %v5791_v14 = vpop.f32.mrb[64].mxu1 }
 0x24d   : > { %v1377_v16 = vpop.f32.mrb[1].mxu0  ;;  %1639 = vmatmul.mubr.f32.gmra.mrb[106].mxu0 %v606_v6  ;;  %v1760_v17 = vpop.f32.mrb[65].mxu1  ;;  %5965 = vmatmul.mubr.msk.f32.gmra.mrb[170].mxu1 %vm731_vm0, %v2122_v8 }
 0x24e   : > { %v7428_v20 = vadd.f32 %v1760_v17, %v1375_v13  ;;  %1643 = vmatprep.mubr.f32.mxu0 %v612_v9  ;;  %5967 = vmatprep.mubr.msk.f32.mxu1 %vm731_vm0, %v2123_v10  ;;  %v626_v13 = vld [vmem:[#allocation2 + $0x8f8] sm:$0xff]  ;;  %v632_v16 = vld [vmem:[#allocation2 + $0x928] sm:$0xff]  ;;  %v2131_v17 = vld [vmem:[#allocation5 + $0x1a0] sm:$0xff] }
 0x250   : > { %14241 = vst [vmem:[#allocation41_spill] sm:$0xff] %v7428_v20  ;;  %v1380_v30 = vpop.f32.mrb[2].mxu0  ;;  %v5794_v31 = vpop.f32.mrb[66].mxu1 }
 0x251   : > { %v7431_v34 = vadd.f32 %v5791_v14, %v1380_v30  ;;  %v1382_v38 = vpop.f32.mrb[3].mxu0  ;;  %1644 = vmatmul.mubr.f32.gmra.mrb[108].mxu0 %v611_v21  ;;  %5968 = vmatmul.mubr.msk.f32.gmra.mrb[172].mxu1 %vm731_vm0, %v2124_v23  ;;  %v1770_v39 = vpop.f32.mrb[67].mxu1  ;;  %v2130_v14 = vld [vmem:[#allocation5 + $0x198] sm:$0xff] }
 0x252   : > { %1648 = vmatprep.mubr.f32.mxu0 %v617_v26  ;;  %5970 = vmatprep.mubr.msk.f32.mxu1 %vm731_vm0, %v2125_v29  ;;  %v2132_v38 = vld [vmem:[#allocation5 + $0x1a8] sm:$0xff] }
 0x253   : > { %14242 = vst [vmem:[#allocation42_spill] sm:$0xff] %v7431_v34 }
 0x254   : > { %v1385_v50 = vpop.f32.mrb[4].mxu0  ;;  %v5797_v51 = vpop.f32.mrb[68].mxu1 }
 0x255   : > { %v7435_v52 = vadd.f32 %v1770_v39, %v1385_v50  ;;  %v1387_v56 = vpop.f32.mrb[5].mxu0  ;;  %1649 = vmatmul.mubr.f32.gmra.mrb[110].mxu0 %v616_v42  ;;  %5971 = vmatmul.mubr.msk.f32.gmra.mrb[174].mxu1 %vm731_vm0, %v2126_v43  ;;  %v1780_v58 = vpop.f32.mrb[69].mxu1  ;;  %v637_v39 = vld [vmem:[#allocation2 + $0x950] sm:$0xff] }
 0x256   : > { %1653 = vmatprep.mubr.f32.mxu0 %v622_v44  ;;  %5973 = vmatprep.mubr.msk.f32.mxu1 %vm731_vm0, %v2127_v49  ;;  %v2133_v42 = vld [vmem:[#allocation5 + $0x1b0] sm:$0xff] }
 0x257   : > { %14243 = vst [vmem:[#allocation43_spill] sm:$0xff] %v7435_v52 }
 0x258   : > { %v1390_v4 = vpop.f32.mrb[6].mxu0  ;;  %v5800_v6 = vpop.f32.mrb[70].mxu1 }
 0x259   : > { %v7439_v8 = vadd.f32 %v5794_v31, %v1390_v4  ;;  %v1392_v9 = vpop.f32.mrb[7].mxu0  ;;  %1654 = vmatmul.mubr.f32.gmra.mrb[112].mxu0 %v621_v60  ;;  %5974 = vmatmul.mubr.msk.f32.gmra.mrb[176].mxu1 %vm731_vm0, %v2128_v0  ;;  %v1790_v10 = vpop.f32.mrb[71].mxu1  ;;  %v631_v31 = vld [vmem:[#allocation2 + $0x920] sm:$0xff]  ;;  %v2134_v60 = vld [vmem:[#allocation5 + $0x1b8] sm:$0xff] }
 0x25a   : > { %1658 = vmatprep.mubr.f32.mxu0 %v627_v63  ;;  %5976 = vmatprep.mubr.msk.f32.mxu1 %vm731_vm0, %v2129_v2  ;;  %v642_v0 = vld [vmem:[#allocation2 + $0x978] sm:$0xff]  ;;  %v2135_v63 = vld [vmem:[#allocation5 + $0x1c0] sm:$0xff] }
 0x25b   : > { %14244 = vst [vmem:[#allocation44_spill] sm:$0xff] %v7439_v8 }
 0x25c   : > { %v1395_v21 = vpop.f32.mrb[8].mxu0  ;;  %v7443_v23 = vpop.f32.mrb[72].mxu1 }
 0x25d   : > { %v7445_v26 = vadd.f32 %v1780_v58, %v1395_v21  ;;  %v1397_v29 = vpop.f32.mrb[9].mxu0  ;;  %1659 = vmatmul.mubr.f32.gmra.mrb[114].mxu0 %v626_v13  ;;  %5977 = vmatmul.mubr.msk.f32.gmra.mrb[178].mxu1 %vm731_vm0, %v2130_v14  ;;  %v1800_v30 = vpop.f32.mrb[73].mxu1  ;;  %v636_v58 = vld [vmem:[#allocation2 + $0x948] sm:$0xff]  ;;  %v641_v14 = vld [vmem:[#allocation2 + $0x970] sm:$0xff] }
 0x25e   : > { %1663 = vmatprep.mubr.f32.mxu0 %v632_v16  ;;  %5979 = vmatprep.mubr.msk.f32.mxu1 %vm731_vm0, %v2131_v17  ;;  %v2136_v16 = vld [vmem:[#allocation5 + $0x1c8] sm:$0xff]  ;;  %v647_v17 = vld [vmem:[#allocation2 + $0x9a0] sm:$0xff]  ;;  %v2137_v21 = vld [vmem:[#allocation5 + $0x1d0] sm:$0xff] }
 0x25f   : > { %14245 = vst [vmem:[#allocation45_spill] sm:$0xff] %v7445_v26 }
 0x260   : > { %v1400_v43 = vpop.f32.mrb[10].mxu0  ;;  %v7449_v44 = vpop.f32.mrb[74].mxu1 }
 0x261   : > { %v7451_v49 = vadd.f32 %v5797_v51, %v1400_v43  ;;  %v1402_v50 = vpop.f32.mrb[11].mxu0  ;;  %1664 = vmatmul.mubr.f32.gmra.mrb[116].mxu0 %v631_v31  ;;  %5980 = vmatmul.mubr.msk.f32.gmra.mrb[180].mxu1 %vm731_vm0, %v2132_v38  ;;  %v1810_v56 = vpop.f32.mrb[75].mxu1  ;;  %v2138_v43 = vld [vmem:[#allocation5 + $0x1d8] sm:$0xff] }
 0x262   : > { %1668 = vmatprep.mubr.f32.mxu0 %v637_v39  ;;  %5982 = vmatprep.mubr.msk.f32.mxu1 %vm731_vm0, %v2133_v42  ;;  %v646_v42 = vld [vmem:[#allocation2 + $0x998] sm:$0xff]  ;;  %v652_v50 = vld [vmem:[#allocation2 + $0x9c8] sm:$0xff] }
 0x263   : > { %14246 = vst [vmem:[#allocation46_spill] sm:$0xff] %v7451_v49 }
 0x264   : > { %v1405_v2 = vpop.f32.mrb[12].mxu0  ;;  %v7455_v4 = vpop.f32.mrb[76].mxu1 }
 0x265   : > { %v7457_v9 = vadd.f32 %v1790_v10, %v1405_v2  ;;  %v1407_v13 = vpop.f32.mrb[13].mxu0  ;;  %1669 = vmatmul.mubr.f32.gmra.mrb[118].mxu0 %v636_v58  ;;  %5983 = vmatmul.mubr.msk.f32.gmra.mrb[182].mxu1 %vm731_vm0, %v2134_v60  ;;  %v1820_v51 = vpop.f32.mrb[77].mxu1  ;;  %v2139_v58 = vld [vmem:[#allocation5 + $0x1e0] sm:$0xff] }
 0x266   : > { %1673 = vmatprep.mubr.f32.mxu0 %v642_v0  ;;  %5985 = vmatprep.mubr.msk.f32.mxu1 %vm731_vm0, %v2135_v63  ;;  %v651_v13 = vld [vmem:[#allocation2 + $0x9c0] sm:$0xff] }
 0x267   : > { %14247 = vst [vmem:[#allocation47_spill] sm:$0xff] %v7457_v9 }
 0x268   : > { %v1410_v29 = vpop.f32.mrb[14].mxu0  ;;  %v7461_v31 = vpop.f32.mrb[78].mxu1 }
 0x269   : > { %v7463_v38 = vadd.f32 %v5800_v6, %v1410_v29  ;;  %v1412_v39 = vpop.f32.mrb[15].mxu0  ;;  %1674 = vmatmul.mubr.f32.gmra.mrb[120].mxu0 %v641_v14  ;;  %5986 = vmatmul.mubr.msk.f32.gmra.mrb[184].mxu1 %vm731_vm0, %v2136_v16  ;;  %v1830_v10 = vpop.f32.mrb[79].mxu1  ;;  %v2140_v14 = vld [vmem:[#allocation5 + $0x1e8] sm:$0xff]  ;;  %v657_v16 = vld [vmem:[#allocation2 + $0x9f0] sm:$0xff] }
 0x26a   : > { %1678 = vmatprep.mubr.f32.mxu0 %v647_v17  ;;  %5988 = vmatprep.mubr.msk.f32.mxu1 %vm731_vm0, %v2137_v21  ;;  %v2141_v17 = vld [vmem:[#allocation5 + $0x1f0] sm:$0xff] }
 0x26b   : > { %14248 = vst [vmem:[#allocation48_spill] sm:$0xff] %v7463_v38 }
 0x26c   : > { %v1415_v60 = vpop.f32.mrb[16].mxu0  ;;  %v5815_v0 = vpop.f32.mrb[80].mxu1 }
 0x26d   : > { %v7467_v63 = vadd.f32 %v1800_v30, %v1415_v60  ;;  %v1417_v2 = vpop.f32.mrb[17].mxu0  ;;  %1679 = vmatmul.mubr.f32.gmra.mrb[122].mxu0 %v646_v42  ;;  %5989 = vmatmul.mubr.msk.f32.gmra.mrb[186].mxu1 %vm731_vm0, %v2138_v43  ;;  %v1840_v6 = vpop.f32.mrb[81].mxu1  ;;  %v656_v42 = vld [vmem:[#allocation2 + $0x9e8] sm:$0xff]  ;;  %v2142_v43 = vld [vmem:[#allocation5 + $0x1f8] sm:$0xff] }
 0x26e   : > { %1683 = vmatprep.mubr.f32.mxu0 %v652_v50  ;;  %5991 = vmatprep.mubr.msk.f32.mxu1 %vm731_vm0, %v2139_v58 }
 0x270   : > { %v1420_v21 = vpop.f32.mrb[18].mxu0  ;;  %v5818_v29 = vpop.f32.mrb[82].mxu1 }
 0x271   : > { %v7472_v39 = vadd.f32 %v7443_v23, %v1420_v21  ;;  %v1422_v3 = vpop.f32.mrb[19].mxu0  ;;  %1684 = vmatmul.mubr.f32.gmra.mrb[124].mxu0 %v651_v13  ;;  %5992 = vmatmul.mubr.msk.f32.gmra.mrb[188].mxu1 %vm731_vm0, %v2140_v14  ;;  %v1850_v30 = vpop.f32.mrb[83].mxu1 }
 0x272   : > { %1688 = vmatprep.mubr.f32.mxu0 %v657_v16  ;;  %5994 = vmatprep.mubr.msk.f32.mxu1 %vm731_vm0, %v2141_v17 }
 0x273   : > { %14249 = vst [vmem:[#allocation49_spill] sm:$0xff] %v7472_v39 }
 0x274   : > { %v1425_v50 = vpop.f32.mrb[20].mxu0  ;;  %v5821_v58 = vpop.f32.mrb[84].mxu1 }
 0x275   : > { %v7476_v60 = vadd.f32 %v1810_v56, %v1425_v50  ;;  %v1427_v2 = vpop.f32.mrb[21].mxu0  ;;  %1689 = vmatmul.mubr.f32.gmra.mrb[126].mxu0 %v656_v42  ;;  %5995 = vmatmul.mubr.msk.f32.gmra.mrb[190].mxu1 %vm731_vm0, %v2142_v43  ;;  %v1860_v23 = vpop.f32.mrb[85].mxu1 }
 0x278   : > { %v1430_v21 = vpop.f32.mrb[22].mxu0  ;;  %v5824_v3 = vpop.f32.mrb[86].mxu1 }
 0x279   : > { %v7480_v13 = vadd.f32 %v7449_v44, %v1430_v21  ;;  %v1432_v14 = vpop.f32.mrb[23].mxu0  ;;  %v1870_v16 = vpop.f32.mrb[87].mxu1 }
 0x27c   : > { %v1435_v57 = vpop.f32.mrb[24].mxu0  ;;  %v7482_v17 = vpop.f32.mrb[88].mxu1 }
 0x27d   : > { %v7484_v46 = vadd.f32 %v1820_v51, %v1435_v57  ;;  %v1437_v36 = vpop.f32.mrb[25].mxu0  ;;  %v1880_v56 = vpop.f32.mrb[89].mxu1 }
 0x280   : > { %v1440_v50 = vpop.f32.mrb[26].mxu0  ;;  %v7486_v2 = vpop.f32.mrb[90].mxu1 }
 0x281   : > { %v7489_v42 = vadd.f32 %v7455_v4, %v1440_v50  ;;  %v1442_v43 = vpop.f32.mrb[27].mxu0  ;;  %v7491_v24 = vpop.f32.mrb[91].mxu1 }
 0x283   : > { %14250 = vst [vmem:[#allocation50_spill] sm:$0xff] %v7489_v42 }
 0x284   : > { %v1445_v44 = vpop.f32.mrb[28].mxu0  ;;  %v7493_v21 = vpop.f32.mrb[92].mxu1 }
 0x285   : > { %v7495_v14 = vadd.f32 %v1830_v10, %v1445_v44  ;;  %v1447_v15 = vpop.f32.mrb[29].mxu0  ;;  %v7497_v32 = vpop.f32.mrb[93].mxu1 }
 0x287   : > { %14251 = vst [vmem:[#allocation51_spill] sm:$0xff] %v7495_v14 }
 0x288   : > { %v1450_v57 = vpop.f32.mrb[30].mxu0  ;;  %v7499_v36 = vpop.f32.mrb[94].mxu1 }
 0x289   : > { %v7502_v51 = vadd.f32 %v7461_v31, %v1450_v57  ;;  %v1452_v62 = vpop.f32.mrb[31].mxu0  ;;  %v7504_v4 = vpop.f32.mrb[95].mxu1 }
 0x28b   : > { %14252 = vst [vmem:[#allocation52_spill] sm:$0xff] %v7502_v51 }
 0x28c   : > { %v1455_v50 = vpop.f32.mrb[32].mxu0  ;;  %v7506_v43 = vpop.f32.mrb[96].mxu1 }
 0x28d   : > { %v7508_v54 = vadd.f32 %v1840_v6, %v1455_v50  ;;  %v1457_v45 = vpop.f32.mrb[33].mxu0  ;;  %v7510_v10 = vpop.f32.mrb[97].mxu1 }
 0x28f   : > { %14253 = vst [vmem:[#allocation53_spill] sm:$0xff] %v7508_v54 }
 0x290   : > { %v1460_v15 = vpop.f32.mrb[34].mxu0  ;;  %v7512_v44 = vpop.f32.mrb[98].mxu1 }
 0x291   : > { %v7514_v37 = vadd.f32 %v5815_v0, %v1460_v15  ;;  %v1462_v27 = vpop.f32.mrb[35].mxu0  ;;  %v7516_v19 = vpop.f32.mrb[99].mxu1 }
 0x293   : > { %14254 = vst [vmem:[#allocation54_spill] sm:$0xff] %v7514_v37 }
 0x294   : > { %v1465_v31 = vpop.f32.mrb[36].mxu0  ;;  %v7518_v62 = vpop.f32.mrb[100].mxu1 }
 0x295   : > { %v7520_v57 = vadd.f32 %v1850_v30, %v1465_v31  ;;  %v1467_v11 = vpop.f32.mrb[37].mxu0  ;;  %v7522_v5 = vpop.f32.mrb[101].mxu1 }
 0x297   : > { %14255 = vst [vmem:[#allocation55_spill] sm:$0xff] %v7520_v57 }
 0x298   : > { %v1470_v6 = vpop.f32.mrb[38].mxu0  ;;  %v7524_v45 = vpop.f32.mrb[102].mxu1 }
 0x299   : > { %v7526_v50 = vadd.f32 %v5818_v29, %v1470_v6  ;;  %v1472_v61 = vpop.f32.mrb[39].mxu0  ;;  %v7528_v55 = vpop.f32.mrb[103].mxu1 }
 0x29b   : > { %14256 = vst [vmem:[#allocation56_spill] sm:$0xff] %v7526_v50 }
 0x29c   : > { %v1475_v0 = vpop.f32.mrb[40].mxu0  ;;  %v7530_v27 = vpop.f32.mrb[104].mxu1 }
 0x29d   : > { %14257 = vst [vmem:[#allocation57_spill] sm:$0xff] %v7530_v27  ;;  %v7532_v15 = vadd.f32 %v1860_v23, %v1475_v0  ;;  %v1477_v48 = vpop.f32.mrb[41].mxu0  ;;  %v7534_v40 = vpop.f32.mrb[105].mxu1 }
 0x29f   : > { %14258 = vst [vmem:[#allocation58_spill] sm:$0xff] %v7532_v15 }
 0x2a0   : > { %v1480_v30 = vpop.f32.mrb[42].mxu0  ;;  %v7536_v11 = vpop.f32.mrb[106].mxu1 }
 0x2a1   : > { %14259 = vst [vmem:[#allocation59_spill] sm:$0xff] %v7536_v11  ;;  %v7538_v31 = vadd.f32 %v5821_v58, %v1480_v30  ;;  %v1482_v33 = vpop.f32.mrb[43].mxu0  ;;  %v7540_v25 = vpop.f32.mrb[107].mxu1 }
 0x2a2   : > { %14261 = vst [vmem:[#allocation61_spill] sm:$0xff] %v7540_v25 }
 0x2a3   : > { %14260 = vst [vmem:[#allocation60_spill] sm:$0xff] %v7538_v31 }
 0x2a4   : > { %v1485_v29 = vpop.f32.mrb[44].mxu0  ;;  %v7542_v61 = vpop.f32.mrb[108].mxu1 }
 0x2a5   : > { %14262 = vst [vmem:[#allocation62_spill] sm:$0xff] %v7542_v61  ;;  %v7544_v6 = vadd.f32 %v1870_v16, %v1485_v29  ;;  %v1487_v18 = vpop.f32.mrb[45].mxu0  ;;  %v7546_v27 = vpop.f32.mrb[109].mxu1 }
 0x2a7   : > { %14263 = vst [vmem:[#allocation63_spill] sm:$0xff] %v7544_v6 }
 0x2a8   : > { %v1490_v23 = vpop.f32.mrb[46].mxu0  ;;  %v7548_v48 = vpop.f32.mrb[110].mxu1 }
 0x2a9   : > { %14264 = vst [vmem:[#allocation64_spill] sm:$0xff] %v7548_v48  ;;  %v7550_v0 = vadd.f32 %v5824_v3, %v1490_v23  ;;  %v1492_v12 = vpop.f32.mrb[47].mxu0  ;;  %v7552_v11 = vpop.f32.mrb[111].mxu1 }
 0x2aa   : > { %14266 = vst [vmem:[#allocation66_spill] sm:$0xff] %v7552_v11 }
 0x2ab   : > { %14265 = vst [vmem:[#allocation65_spill] sm:$0xff] %v7550_v0 }
 0x2ac   : > { %v1495_v58 = vpop.f32.mrb[48].mxu0  ;;  %v7554_v33 = vpop.f32.mrb[112].mxu1 }
 0x2ad   : > { %14267 = vst [vmem:[#allocation67_spill] sm:$0xff] %v7554_v33  ;;  %v7556_v30 = vadd.f32 %v1880_v56, %v1495_v58  ;;  %v1497_v25 = vpop.f32.mrb[49].mxu0  ;;  %v7558_v61 = vpop.f32.mrb[113].mxu1 }
 0x2af   : > { %14268 = vst [vmem:[#allocation68_spill] sm:$0xff] %v7556_v30 }
 0x2b0   : > { %v1500_v16 = vpop.f32.mrb[50].mxu0  ;;  %v7560_v18 = vpop.f32.mrb[114].mxu1 }
 0x2b1   : > { %14269 = vst [vmem:[#allocation69_spill] sm:$0xff] %v7560_v18  ;;  %v7563_v29 = vadd.f32 %v7482_v17, %v1500_v16  ;;  %v1502_v48 = vpop.f32.mrb[51].mxu0  ;;  %v7565_v3 = vpop.f32.mrb[115].mxu1 }
 0x2b2   : > { %14271 = vst [vmem:[#allocation71_spill] sm:$0xff] %v7565_v3 }
 0x2b3   : > { %14270 = vst [vmem:[#allocation70_spill] sm:$0xff] %v7563_v29 }
 0x2b4   : > { %v1505_v12 = vpop.f32.mrb[52].mxu0  ;;  %v7567_v23 = vpop.f32.mrb[116].mxu1 }
 0x2b5   : > { %14272 = vst [vmem:[#allocation72_spill] sm:$0xff] %v7567_v23  ;;  %v7570_v11 = vadd.f32 %v7491_v24, %v1505_v12  ;;  %v1507_v56 = vpop.f32.mrb[53].mxu0  ;;  %v7572_v58 = vpop.f32.mrb[117].mxu1 }
 0x2b6   : > { %14274 = vst [vmem:[#allocation74_spill] sm:$0xff] %v7572_v58 }
 0x2b7   : > { %14273 = vst [vmem:[#allocation73_spill] sm:$0xff] %v7570_v11 }
 0x2b8   : > { %v1510_v25 = vpop.f32.mrb[54].mxu0  ;;  %v7574_v33 = vpop.f32.mrb[118].mxu1 }
 0x2b9   : > { %14275 = vst [vmem:[#allocation75_spill] sm:$0xff] %v7574_v33  ;;  %v7577_v18 = vadd.f32 %v7486_v2, %v1510_v25  ;;  %v1512_v17 = vpop.f32.mrb[55].mxu0  ;;  %v7579_v16 = vpop.f32.mrb[119].mxu1 }
 0x2ba   : > { %14277 = vst [vmem:[#allocation77_spill] sm:$0xff] %v7579_v16  ;;  %v2728_v17 = vadd.f32 %v7431_v34, %v7428_v20 }
 0x2bb   : > { %14276 = vst [vmem:[#allocation76_spill] sm:$0xff] %v7577_v18 }
 0x2bc   : > { %v1515_v48 = vpop.f32.mrb[56].mxu0  ;;  %v7581_v3 = vpop.f32.mrb[120].mxu1 }
 0x2bd   : > { %14278 = vst [vmem:[#allocation78_spill] sm:$0xff] %v7581_v3  ;;  %v7584_v23 = vadd.f32 %v7497_v32, %v1515_v48  ;;  %v1517_v24 = vpop.f32.mrb[57].mxu0  ;;  %v7586_v12 = vpop.f32.mrb[121].mxu1  ;;  %v2729_v32 = vadd.f32 %v2728_v17, %v7435_v52 }
 0x2be   : > { %14280 = vst [vmem:[#allocation80_spill] sm:$0xff] %v7586_v12 }
 0x2bf   : > { %14279 = vst [vmem:[#allocation79_spill] sm:$0xff] %v7584_v23 }
 0x2c0   : > { %v1520_v56 = vpop.f32.mrb[58].mxu0  ;;  %v7588_v58 = vpop.f32.mrb[122].mxu1 }
 0x2c1   : > { %14281 = vst [vmem:[#allocation81_spill] sm:$0xff] %v7588_v58  ;;  %v7591_v33 = vadd.f32 %v7493_v21, %v1520_v56  ;;  %v1522_v2 = vpop.f32.mrb[59].mxu0  ;;  %v7593_v25 = vpop.f32.mrb[123].mxu1  ;;  %v2730_v21 = vadd.f32 %v2729_v32, %v7439_v8 }
 0x2c3   : > { %14282 = vst [vmem:[#allocation82_spill] sm:$0xff] %v7591_v33  ;;  %v2731_v58 = vadd.f32 %v2730_v21, %v7445_v26 }
 0x2c4   : > { %v1525_v16 = vpop.f32.mrb[60].mxu0  ;;  %v7597_v3 = vpop.f32.mrb[124].mxu1 }
 0x2c5   : > { %14283 = vst [vmem:[#allocation83_spill] sm:$0xff] %v7597_v3  ;;  %v7601_v48 = vadd.f32 %v7504_v4, %v1525_v16  ;;  %v1527_v24 = vpop.f32.mrb[61].mxu0  ;;  %v7603_v12 = vpop.f32.mrb[125].mxu1  ;;  %v2732_v17 = vadd.f32 %v2731_v58, %v7451_v49 }
 0x2c7   : > { %14284 = vst [vmem:[#allocation84_spill] sm:$0xff] %v7601_v48  ;;  %v2733_v24 = vadd.f32 %v2732_v17, %v7457_v9 }
 0x2c8   : > { %v1530_v56 = vpop.f32.mrb[62].mxu0  ;;  %v7606_v2 = vpop.f32.mrb[126].mxu1 }
 0x2c9   : > { %v7610_v34 = vadd.f32 %v7499_v36, %v1530_v56  ;;  %v1532_v20 = vpop.f32.mrb[63].mxu0  ;;  %v7612_v3 = vpop.f32.mrb[127].mxu1  ;;  %v2734_v36 = vadd.f32 %v2733_v24, %v7463_v38 }
 0x2cb   : > { %14285 = vst [vmem:[#allocation85_spill] sm:$0xff] %v7610_v34  ;;  %v2735_v49 = vadd.f32 %v2734_v36, %v7467_v63 }
 0x2cc   : > { %v1535_v4 = vpop.f32.mrb[64].mxu0  ;;  %v7615_v16 = vpop.f32.mrb[128].mxu1 }
 0x2cd   : > { %v1536_v32 = vadd.f32 %v1535_v4, %v7299_v22  ;;  %v1537_v8 = vpop.f32.mrb[65].mxu0  ;;  %v7619_v52 = vpop.f32.mrb[129].mxu1  ;;  %v2736_v4 = vadd.f32 %v2735_v49, %v7472_v39 }
 0x2ce   : > { %v2997_v21 = vadd.f32 %v7615_v16, %v7619_v52 }
 0x2cf   : > { %v7625_v20 = vadd.f32 %v7510_v10, %v1536_v32  ;;  %v2737_v38 = vadd.f32 %v2736_v4, %v7476_v60 }
 0x2d0   : > { %v1540_v56 = vpop.f32.mrb[66].mxu0  ;;  %v7627_v58 = vpop.f32.mrb[130].mxu1 }
 0x2d1   : > { %14286 = vst [vmem:[#allocation86_spill] sm:$0xff] %v7625_v20  ;;  %v1541_v17 = vadd.f32 %v1540_v56, %v7303_v28  ;;  %v1542_v9 = vpop.f32.mrb[67].mxu0  ;;  %v7631_v22 = vpop.f32.mrb[131].mxu1 }
 0x2d2   : > { %v2998_v8 = vadd.f32 %v2997_v21, %v7631_v22  ;;  %v2738_v21 = vadd.f32 %v2737_v38, %v7480_v13 }
 0x2d3   : > { %v7636_v26 = vadd.f32 %v7506_v43, %v1541_v17 }
 0x2d4   : > { %v2999_v10 = vadd.f32 %v7627_v58, %v2998_v8  ;;  %v1545_v24 = vpop.f32.mrb[68].mxu0  ;;  %v7639_v32 = vpop.f32.mrb[132].mxu1  ;;  %v2739_v39 = vadd.f32 %v2738_v21, %v7484_v46 }
 0x2d5   : > { %14287 = vst [vmem:[#allocation87_spill] sm:$0xff] %v7636_v26  ;;  %v1546_v36 = vadd.f32 %v1545_v24, %v7307_v35  ;;  %v1547_v28 = vpop.f32.mrb[69].mxu0  ;;  %v7643_v9 = vpop.f32.mrb[133].mxu1 }
 0x2d6   : > { %14288 = vst [vmem:[#allocation88_spill] sm:$0xff] %v7643_v9  ;;  %v3000_v56 = vadd.f32 %v2999_v10, %v7643_v9  ;;  %v2740_v10 = vadd.f32 %v2739_v39, %v7489_v42 }
 0x2d7   : > { %v7648_v49 = vadd.f32 %v7516_v19, %v1546_v36 }
 0x2d8   : > { %v1550_v43 = vpop.f32.mrb[70].mxu0  ;;  %v7650_v17 = vpop.f32.mrb[134].mxu1  ;;  %v3001_v8 = vadd.f32 %v7639_v32, %v3000_v56  ;;  %v2741_v56 = vadd.f32 %v2740_v10, %v7495_v14 }
 0x2d9   : > { %14289 = vst [vmem:[#allocation89_spill] sm:$0xff] %v7648_v49  ;;  %v1551_v4 = vadd.f32 %v1550_v43, %v7311_v41  ;;  %v1552_v35 = vpop.f32.mrb[71].mxu0  ;;  %v7655_v24 = vpop.f32.mrb[135].mxu1 }
 0x2da   : > { %v3002_v28 = vadd.f32 %v3001_v8, %v7655_v24  ;;  %v2742_v8 = vadd.f32 %v2741_v56, %v7502_v51 }
 0x2db   : > { %v7660_v38 = vadd.f32 %v7512_v44, %v1551_v4 }
 0x2dc   : > { %v1555_v19 = vpop.f32.mrb[72].mxu0  ;;  %v7662_v36 = vpop.f32.mrb[136].mxu1  ;;  %v3003_v9 = vadd.f32 %v7650_v17, %v3002_v28  ;;  %v2743_v28 = vadd.f32 %v2742_v8, %v7508_v54 }
 0x2dd   : > { %14290 = vst [vmem:[#allocation90_spill] sm:$0xff] %v7660_v38  ;;  %v1556_v21 = vadd.f32 %v1555_v19, %v7315_v47  ;;  %v1557_v41 = vpop.f32.mrb[73].mxu0  ;;  %v7667_v43 = vpop.f32.mrb[137].mxu1 }
 0x2de   : > { %v3004_v35 = vadd.f32 %v3003_v9, %v7667_v43  ;;  %v2744_v9 = vadd.f32 %v2743_v28, %v7514_v37 }
 0x2df   : > { %v7672_v39 = vadd.f32 %v7522_v5, %v1556_v21 }
 0x2e0   : > { %v1560_v44 = vpop.f32.mrb[74].mxu0  ;;  %v7674_v4 = vpop.f32.mrb[138].mxu1  ;;  %v3005_v42 = vadd.f32 %v7662_v36, %v3004_v35  ;;  %v2745_v35 = vadd.f32 %v2744_v9, %v7520_v57 }
 0x2e1   : > { %14291 = vst [vmem:[#allocation91_spill] sm:$0xff] %v7672_v39  ;;  %v1561_v10 = vadd.f32 %v1560_v44, %v7319_v53  ;;  %v1562_v47 = vpop.f32.mrb[75].mxu0  ;;  %v7679_v19 = vpop.f32.mrb[139].mxu1 }
 0x2e2   : > { %v3006_v41 = vadd.f32 %v3005_v42, %v7679_v19  ;;  %v2746_v42 = vadd.f32 %v2745_v35, %v7526_v50 }
 0x2e3   : > { %v7684_v56 = vadd.f32 %v7518_v62, %v1561_v10 }
 0x2e4   : > { %v1565_v5 = vpop.f32.mrb[76].mxu0  ;;  %v7686_v21 = vpop.f32.mrb[140].mxu1  ;;  %v3007_v51 = vadd.f32 %v7674_v4, %v3006_v41  ;;  %v2747_v41 = vadd.f32 %v2746_v42, %v7532_v15 }
 0x2e5   : > { %14292 = vst [vmem:[#allocation92_spill] sm:$0xff] %v7684_v56  ;;  %v1566_v8 = vadd.f32 %v1565_v5, %v7323_v59  ;;  %v1567_v53 = vpop.f32.mrb[77].mxu0  ;;  %v7691_v44 = vpop.f32.mrb[141].mxu1 }
 0x2e6   : > { %v3008_v47 = vadd.f32 %v3007_v51, %v7691_v44  ;;  %v2748_v51 = vadd.f32 %v2747_v41, %v7538_v31 }
 0x2e7   : > { %v7696_v28 = vadd.f32 %v7528_v55, %v1566_v8 }
 0x2e8   : > { %v1570_v62 = vpop.f32.mrb[78].mxu0  ;;  %v7698_v10 = vpop.f32.mrb[142].mxu1  ;;  %v3009_v37 = vadd.f32 %v7686_v21, %v3008_v47  ;;  %v2749_v47 = vadd.f32 %v2748_v51, %v7544_v6  ;;  %v14296_v51 = vld [vmem:[#allocation18_spill] sm:$0xff] }
 0x2e9   : > { %14293 = vst [vmem:[#allocation93_spill] sm:$0xff] %v7696_v28  ;;  %v1571_v9 = vadd.f32 %v1570_v62, %v7327_v1  ;;  %v1572_v59 = vpop.f32.mrb[79].mxu0  ;;  %v7703_v5 = vpop.f32.mrb[143].mxu1 }
 0x2ea   : > { %v3010_v53 = vadd.f32 %v3009_v37, %v7703_v5  ;;  %v2750_v37 = vadd.f32 %v2749_v47, %v7550_v0  ;;  %v14297_v47 = vld [vmem:[#allocation57_spill] sm:$0xff] }
 0x2eb   : > { %v7708_v35 = vadd.f32 %v7524_v45, %v1571_v9 }
 0x2ec   : > { %v1575_v55 = vpop.f32.mrb[80].mxu0  ;;  %v7710_v8 = vpop.f32.mrb[144].mxu1  ;;  %v3011_v50 = vadd.f32 %v7698_v10, %v3010_v53  ;;  %v2751_v53 = vadd.f32 %v2750_v37, %v7556_v30  ;;  %v14299_v37 = vld [vmem:[#allocation19_spill] sm:$0xff] }
 0x2ed   : > { %14294 = vst [vmem:[#allocation94_spill] sm:$0xff] %v7708_v35  ;;  %v1576_v42 = vadd.f32 %v1575_v55, %v7331_v7  ;;  %v1577_v1 = vpop.f32.mrb[81].mxu0  ;;  %v7715_v62 = vpop.f32.mrb[145].mxu1 }
 0x2ee   : > { %v3012_v59 = vadd.f32 %v3011_v50, %v7715_v62  ;;  %v2752_v50 = vadd.f32 %v2751_v53, %v7563_v29  ;;  %v14300_v53 = vld [vmem:[#allocation61_spill] sm:$0xff] }
 0x2ef   : > { %v7720_v41 = vadd.f32 %v7534_v40, %v1576_v42 }
 0x2f0   : > { %v1580_v45 = vpop.f32.mrb[82].mxu0  ;;  %v7722_v9 = vpop.f32.mrb[146].mxu1  ;;  %v3013_v31 = vadd.f32 %v7710_v8, %v3012_v59  ;;  %v2753_v59 = vadd.f32 %v2752_v50, %v7570_v11  ;;  %v14302_v50 = vld [vmem:[#allocation20_spill] sm:$0xff] }
 0x2f1   : > { %14295 = vst [vmem:[#allocation95_spill] sm:$0xff] %v7720_v41  ;;  %v1581_v6 = vadd.f32 %v1580_v45, %v14296_v51  ;;  %v1582_v7 = vpop.f32.mrb[83].mxu0  ;;  %v7727_v55 = vpop.f32.mrb[147].mxu1 }
 0x2f2   : > { %v3014_v1 = vadd.f32 %v3013_v31, %v7727_v55  ;;  %v2754_v31 = vadd.f32 %v2753_v59, %v7577_v18  ;;  %v14303_v59 = vld [vmem:[#allocation59_spill] sm:$0xff] }
 0x2f3   : > { %v7732_v0 = vadd.f32 %v14297_v47, %v1581_v6 }
 0x2f4   : > { %v1585_v40 = vpop.f32.mrb[84].mxu0  ;;  %v7734_v42 = vpop.f32.mrb[148].mxu1  ;;  %v3015_v15 = vadd.f32 %v7722_v9, %v3014_v1  ;;  %v2755_v1 = vadd.f32 %v2754_v31, %v7584_v23  ;;  %v14305_v31 = vld [vmem:[#allocation21_spill] sm:$0xff] }
 0x2f5   : > { %14298 = vst [vmem:[#allocation18_spill] sm:$0xff] %v7732_v0  ;;  %v1586_v30 = vadd.f32 %v1585_v40, %v14299_v37  ;;  %v1587_v45 = vpop.f32.mrb[85].mxu0  ;;  %v7739_v51 = vpop.f32.mrb[149].mxu1 }
 0x2f6   : > { %v3016_v7 = vadd.f32 %v3015_v15, %v7739_v51  ;;  %v2756_v15 = vadd.f32 %v2755_v1, %v7591_v33 }
 0x2f7   : > { %v7744_v29 = vadd.f32 %v14300_v53, %v1586_v30 }
 0x2f8   : > { %v1590_v6 = vpop.f32.mrb[86].mxu0  ;;  %v7746_v47 = vpop.f32.mrb[150].mxu1  ;;  %v3017_v57 = vadd.f32 %v7734_v42, %v3016_v7  ;;  %v2757_v7 = vadd.f32 %v2756_v15, %v7601_v48  ;;  %v14307_v15 = vld [vmem:[#allocation22_spill] sm:$0xff] }
 0x2f9   : > { %14301 = vst [vmem:[#allocation57_spill] sm:$0xff] %v7744_v29  ;;  %v1591_v11 = vadd.f32 %v1590_v6, %v14302_v50  ;;  %v1592_v40 = vpop.f32.mrb[87].mxu0  ;;  %v7751_v37 = vpop.f32.mrb[151].mxu1 }
 0x2fa   : > { %v3018_v45 = vadd.f32 %v3017_v57, %v7751_v37  ;;  %v2758_v57 = vadd.f32 %v2757_v7, %v7610_v34  ;;  %v14309_v7 = vld [vmem:[#allocation62_spill] sm:$0xff] }
 0x2fb   : > { %v7756_v18 = vadd.f32 %v14303_v59, %v1591_v11 }
 0x2fc   : > { %v1595_v30 = vpop.f32.mrb[88].mxu0  ;;  %v7758_v53 = vpop.f32.mrb[152].mxu1  ;;  %v3019_v54 = vadd.f32 %v7746_v47, %v3018_v45  ;;  %v2759_v45 = vadd.f32 %v2758_v57, %v7625_v20  ;;  %v14311_v57 = vld [vmem:[#allocation23_spill] sm:$0xff] }
 0x2fd   : > { %14304 = vst [vmem:[#allocation19_spill] sm:$0xff] %v7756_v18  ;;  %v1596_v23 = vadd.f32 %v1595_v30, %v14305_v31  ;;  %v1597_v6 = vpop.f32.mrb[89].mxu0  ;;  %v7763_v50 = vpop.f32.mrb[153].mxu1 }
 0x2fe   : > { %v3020_v40 = vadd.f32 %v3019_v54, %v7763_v50  ;;  %v2760_v54 = vadd.f32 %v2759_v45, %v7636_v26  ;;  %v14313_v45 = vld [vmem:[#allocation66_spill] sm:$0xff] }
 0x2ff   : > { %v7768_v1 = vadd.f32 %v7546_v27, %v1596_v23 }
 0x300   : > { %v1600_v11 = vpop.f32.mrb[90].mxu0  ;;  %v7770_v59 = vpop.f32.mrb[154].mxu1  ;;  %v3021_v33 = vadd.f32 %v7758_v53, %v3020_v40  ;;  %v2761_v40 = vadd.f32 %v2760_v54, %v7648_v49  ;;  %v14315_v54 = vld [vmem:[#allocation24_spill] sm:$0xff] }
 0x301   : > { %14306 = vst [vmem:[#allocation61_spill] sm:$0xff] %v7768_v1  ;;  %v1601_v48 = vadd.f32 %v1600_v11, %v14307_v15  ;;  %v1602_v30 = vpop.f32.mrb[91].mxu0  ;;  %v7775_v31 = vpop.f32.mrb[155].mxu1 }
 0x302   : > { %14308 = vst [vmem:[#allocation20_spill] sm:$0xff] %v7775_v31  ;;  %v3022_v6 = vadd.f32 %v3021_v33, %v7775_v31  ;;  %v2762_v33 = vadd.f32 %v2761_v40, %v7660_v38  ;;  %v14316_v40 = vld [vmem:[#allocation64_spill] sm:$0xff] }
 0x303   : > { %v7780_v34 = vadd.f32 %v14309_v7, %v1601_v48 }
 0x304   : > { %v1605_v27 = vpop.f32.mrb[92].mxu0  ;;  %v7782_v23 = vpop.f32.mrb[156].mxu1  ;;  %v3023_v14 = vadd.f32 %v7770_v59, %v3022_v6  ;;  %v2763_v6 = vadd.f32 %v2762_v33, %v7672_v39  ;;  %v14318_v33 = vld [vmem:[#allocation25_spill] sm:$0xff] }
 0x305   : > { %14310 = vst [vmem:[#allocation59_spill] sm:$0xff] %v7780_v34  ;;  %v1606_v20 = vadd.f32 %v1605_v27, %v14311_v57  ;;  %v1607_v11 = vpop.f32.mrb[93].mxu0  ;;  %v7787_v15 = vpop.f32.mrb[157].mxu1 }
 0x306   : > { %14312 = vst [vmem:[#allocation21_spill] sm:$0xff] %v7787_v15  ;;  %v3024_v30 = vadd.f32 %v3023_v14, %v7787_v15  ;;  %v2764_v14 = vadd.f32 %v2763_v6, %v7684_v56 }
 0x307   : > { %v7792_v26 = vadd.f32 %v14313_v45, %v1606_v20 }
 0x308   : > { %v1610_v48 = vpop.f32.mrb[94].mxu0  ;;  %v7794_v7 = vpop.f32.mrb[158].mxu1  ;;  %v3025_v31 = vadd.f32 %v7782_v23, %v3024_v30  ;;  %v2765_v30 = vadd.f32 %v2764_v14, %v7696_v28  ;;  %v14322_v14 = vld [vmem:[#allocation26_spill] sm:$0xff] }
 0x309   : > { %14314 = vst [vmem:[#allocation22_spill] sm:$0xff] %v7792_v26  ;;  %v1611_v49 = vadd.f32 %v1610_v48, %v14315_v54  ;;  %v1612_v27 = vpop.f32.mrb[95].mxu0  ;;  %v7799_v57 = vpop.f32.mrb[159].mxu1 }
 0x30a   : > { %v3026_v11 = vadd.f32 %v3025_v31, %v7799_v57  ;;  %v2766_v31 = vadd.f32 %v2765_v30, %v7708_v35  ;;  %v14324_v30 = vld [vmem:[#allocation67_spill] sm:$0xff] }
 0x30b   : > { %v7804_v38 = vadd.f32 %v14316_v40, %v1611_v49 }
 0x30c   : > { %v1615_v20 = vpop.f32.mrb[96].mxu0  ;;  %v7806_v45 = vpop.f32.mrb[160].mxu1  ;;  %v3027_v15 = vadd.f32 %v7794_v7, %v3026_v11  ;;  %v2767_v11 = vadd.f32 %v2766_v31, %v7720_v41  ;;  %v14327_v31 = vld [vmem:[#allocation27_spill] sm:$0xff] }
 0x30d   : > { %14317 = vst [vmem:[#allocation62_spill] sm:$0xff] %v7804_v38  ;;  %v1616_v39 = vadd.f32 %v1615_v20, %v14318_v33  ;;  %v1617_v48 = vpop.f32.mrb[97].mxu0  ;;  %v7811_v54 = vpop.f32.mrb[161].mxu1 }
 0x30e   : > { %14319 = vst [vmem:[#allocation23_spill] sm:$0xff] %v7811_v54  ;;  %v3028_v27 = vadd.f32 %v3027_v15, %v7811_v54  ;;  %v2768_v15 = vadd.f32 %v2767_v11, %v7732_v0  ;;  %v14329_v11 = vld [vmem:[#allocation71_spill] sm:$0xff] }
 0x30f   : > { %v7816_v6 = vadd.f32 %v7558_v61, %v1616_v39 }
 0x310   : > { %v1620_v49 = vpop.f32.mrb[98].mxu0  ;;  %v7818_v40 = vpop.f32.mrb[162].mxu1  ;;  %v3029_v56 = vadd.f32 %v7806_v45, %v3028_v27  ;;  %v2769_v27 = vadd.f32 %v2768_v15, %v7744_v29  ;;  %v14332_v15 = vld [vmem:[#allocation28_spill] sm:$0xff] }
 0x311   : > { %14320 = vst [vmem:[#allocation66_spill] sm:$0xff] %v7816_v6  ;;  %14321 = vst [vmem:[#allocation24_spill] sm:$0xff] %v7818_v40  ;;  %v1621_v28 = vadd.f32 %v1620_v49, %v14322_v14  ;;  %v1622_v20 = vpop.f32.mrb[99].mxu0  ;;  %v7823_v33 = vpop.f32.mrb[163].mxu1 }
 0x312   : > { %14323 = vst [vmem:[#allocation64_spill] sm:$0xff] %v7823_v33  ;;  %v3030_v48 = vadd.f32 %v3029_v56, %v7823_v33  ;;  %v2770_v56 = vadd.f32 %v2769_v27, %v7756_v18  ;;  %v14334_v27 = vld [vmem:[#allocation69_spill] sm:$0xff] }
 0x313   : > { %v7828_v35 = vadd.f32 %v14324_v30, %v1621_v28 }
 0x314   : > { %v1625_v61 = vpop.f32.mrb[100].mxu0  ;;  %v7830_v39 = vpop.f32.mrb[164].mxu1  ;;  %v3031_v54 = vadd.f32 %v7818_v40, %v3030_v48  ;;  %v2771_v48 = vadd.f32 %v2770_v56, %v7768_v1  ;;  %v14337_v56 = vld [vmem:[#allocation29_spill] sm:$0xff] }
 0x315   : > { %14325 = vst [vmem:[#allocation25_spill] sm:$0xff] %v7828_v35  ;;  %14326 = vst [vmem:[#allocation26_spill] sm:$0xff] %v7830_v39  ;;  %v1626_v41 = vadd.f32 %v1625_v61, %v14327_v31  ;;  %v1627_v49 = vpop.f32.mrb[101].mxu0  ;;  %v7835_v14 = vpop.f32.mrb[165].mxu1 }
 0x316   : > { %14328 = vst [vmem:[#allocation67_spill] sm:$0xff] %v7835_v14  ;;  %v3032_v20 = vadd.f32 %v3031_v54, %v7835_v14  ;;  %v2772_v54 = vadd.f32 %v2771_v48, %v7780_v34  ;;  %v14339_v48 = vld [vmem:[#allocation74_spill] sm:$0xff] }
 0x317   : > { %v7840_v0 = vadd.f32 %v14329_v11, %v1626_v41 }
 0x318   : > { %v1630_v28 = vpop.f32.mrb[102].mxu0  ;;  %v7842_v30 = vpop.f32.mrb[166].mxu1  ;;  %v3033_v33 = vadd.f32 %v7830_v39, %v3032_v20  ;;  %v2773_v20 = vadd.f32 %v2772_v54, %v7792_v26  ;;  %v14342_v54 = vld [vmem:[#allocation30_spill] sm:$0xff] }
 0x319   : > { %14330 = vst [vmem:[#allocation27_spill] sm:$0xff] %v7840_v0  ;;  %14331 = vst [vmem:[#allocation71_spill] sm:$0xff] %v7842_v30  ;;  %v1631_v29 = vadd.f32 %v1630_v28, %v14332_v15  ;;  %v1632_v61 = vpop.f32.mrb[103].mxu0  ;;  %v7847_v31 = vpop.f32.mrb[167].mxu1 }
 0x31a   : > { %14333 = vst [vmem:[#allocation28_spill] sm:$0xff] %v7847_v31  ;;  %v3034_v49 = vadd.f32 %v3033_v33, %v7847_v31  ;;  %v2774_v33 = vadd.f32 %v2773_v20, %v7804_v38  ;;  %v14344_v20 = vld [vmem:[#allocation72_spill] sm:$0xff] }
 0x31b   : > { %v7852_v18 = vadd.f32 %v14334_v27, %v1631_v29 }
 0x31c   : > { %v1635_v41 = vpop.f32.mrb[104].mxu0  ;;  %v7854_v11 = vpop.f32.mrb[168].mxu1  ;;  %v3035_v14 = vadd.f32 %v7842_v30, %v3034_v49  ;;  %v2775_v49 = vadd.f32 %v2774_v33, %v7816_v6  ;;  %v14347_v33 = vld [vmem:[#allocation31_spill] sm:$0xff] }
 0x31d   : > { %14335 = vst [vmem:[#allocation69_spill] sm:$0xff] %v7852_v18  ;;  %14336 = vst [vmem:[#allocation96_spill] sm:$0xff] %v7854_v11  ;;  %v1636_v1 = vadd.f32 %v1635_v41, %v14337_v56  ;;  %v1637_v28 = vpop.f32.mrb[105].mxu0  ;;  %v7859_v15 = vpop.f32.mrb[169].mxu1 }
 0x31e   : > { %14338 = vst [vmem:[#allocation29_spill] sm:$0xff] %v7859_v15  ;;  %v3036_v61 = vadd.f32 %v3035_v14, %v7859_v15  ;;  %v2776_v14 = vadd.f32 %v2775_v49, %v7828_v35  ;;  %v14349_v49 = vld [vmem:[#allocation77_spill] sm:$0xff] }
 0x31f   : > { %v7864_v34 = vadd.f32 %v14339_v48, %v1636_v1 }
 0x320   : > { %v1640_v29 = vpop.f32.mrb[106].mxu0  ;;  %v7866_v27 = vpop.f32.mrb[170].mxu1  ;;  %v3037_v31 = vadd.f32 %v7854_v11, %v3036_v61  ;;  %v2777_v61 = vadd.f32 %v2776_v14, %v7840_v0  ;;  %v14352_v14 = vld [vmem:[#allocation32_spill] sm:$0xff] }
 0x321   : > { %14340 = vst [vmem:[#allocation74_spill] sm:$0xff] %v7864_v34  ;;  %14341 = vst [vmem:[#allocation97_spill] sm:$0xff] %v7866_v27  ;;  %v1641_v26 = vadd.f32 %v1640_v29, %v14342_v54  ;;  %v1642_v41 = vpop.f32.mrb[107].mxu0  ;;  %v7871_v56 = vpop.f32.mrb[171].mxu1 }
 0x322   : > { %14343 = vst [vmem:[#allocation30_spill] sm:$0xff] %v7871_v56  ;;  %v3038_v28 = vadd.f32 %v3037_v31, %v7871_v56  ;;  %v2778_v31 = vadd.f32 %v2777_v61, %v7852_v18  ;;  %v14354_v61 = vld [vmem:[#allocation75_spill] sm:$0xff] }
 0x323   : > { %v7876_v38 = vadd.f32 %v14344_v20, %v1641_v26 }
 0x324   : > { %v1645_v1 = vpop.f32.mrb[108].mxu0  ;;  %v7878_v48 = vpop.f32.mrb[172].mxu1  ;;  %v3039_v15 = vadd.f32 %v7866_v27, %v3038_v28  ;;  %v2779_v28 = vadd.f32 %v2778_v31, %v7864_v34  ;;  %v14356_v31 = vld [vmem:[#allocation33_spill] sm:$0xff] }
 0x325   : > { %14345 = vst [vmem:[#allocation72_spill] sm:$0xff] %v7876_v38  ;;  %14346 = vst [vmem:[#allocation98_spill] sm:$0xff] %v7878_v48  ;;  %v1646_v6 = vadd.f32 %v1645_v1, %v14347_v33  ;;  %v1647_v29 = vpop.f32.mrb[109].mxu0  ;;  %v7883_v54 = vpop.f32.mrb[173].mxu1  ;;  %v14371_v27 = vld [vmem:[#allocation37_spill] sm:$0xff] }
 0x326   : > { %14348 = vst [vmem:[#allocation31_spill] sm:$0xff] %v7883_v54  ;;  %v3040_v41 = vadd.f32 %v3039_v15, %v7883_v54  ;;  %v2780_v15 = vadd.f32 %v2779_v28, %v7876_v38  ;;  %v14358_v28 = vld [vmem:[#allocation80_spill] sm:$0xff] }
 0x327   : > { %v7888_v35 = vadd.f32 %v14349_v49, %v1646_v6 }
 0x328   : > { %v1650_v26 = vpop.f32.mrb[110].mxu0  ;;  %v7890_v20 = vpop.f32.mrb[174].mxu1  ;;  %v3041_v56 = vadd.f32 %v7878_v48, %v3040_v41 }
 0x329   : > { %14350 = vst [vmem:[#allocation77_spill] sm:$0xff] %v7888_v35  ;;  %14351 = vst [vmem:[#allocation99_spill] sm:$0xff] %v7890_v20  ;;  %v1651_v0 = vadd.f32 %v1650_v26, %v14352_v14  ;;  %v1652_v1 = vpop.f32.mrb[111].mxu0  ;;  %v7895_v33 = vpop.f32.mrb[175].mxu1  ;;  %v2781_v41 = vadd.f32 %v2780_v15, %v7888_v35  ;;  %v14360_v15 = vld [vmem:[#allocation34_spill] sm:$0xff] }
 0x32a   : > { %14353 = vst [vmem:[#allocation32_spill] sm:$0xff] %v7895_v33  ;;  %v3042_v29 = vadd.f32 %v3041_v56, %v7895_v33 }
 0x32b   : > { %v7900_v18 = vadd.f32 %v14354_v61, %v1651_v0 }
 0x32c   : > { %v1655_v6 = vpop.f32.mrb[112].mxu0  ;;  %v7902_v49 = vpop.f32.mrb[176].mxu1  ;;  %v3043_v54 = vadd.f32 %v7890_v20, %v3042_v29 }
 0x32d   : > { %14355 = vst [vmem:[#allocation75_spill] sm:$0xff] %v7902_v49  ;;  %v1656_v34 = vadd.f32 %v1655_v6, %v14356_v31  ;;  %v1657_v26 = vpop.f32.mrb[113].mxu0  ;;  %v7907_v14 = vpop.f32.mrb[177].mxu1  ;;  %v2782_v56 = vadd.f32 %v2781_v41, %v7900_v18 }
 0x32e   : > { %14357 = vst [vmem:[#allocation33_spill] sm:$0xff] %v7907_v14  ;;  %v3044_v1 = vadd.f32 %v3043_v54, %v7907_v14  ;;  %v14362_v54 = vld [vmem:[#allocation78_spill] sm:$0xff] }
 0x32f   : > { %v7912_v38 = vadd.f32 %v14358_v28, %v1656_v34 }
 0x330   : > { %v1660_v0 = vpop.f32.mrb[114].mxu0  ;;  %v7914_v61 = vpop.f32.mrb[178].mxu1  ;;  %v3045_v33 = vadd.f32 %v7902_v49, %v3044_v1  ;;  %v14364_v1 = vld [vmem:[#allocation35_spill] sm:$0xff] }
 0x331   : > { %14359 = vst [vmem:[#allocation80_spill] sm:$0xff] %v7914_v61  ;;  %v2783_v29 = vadd.f32 %v2782_v56, %v7912_v38  ;;  %v1661_v35 = vadd.f32 %v1660_v0, %v14360_v15  ;;  %v1662_v6 = vpop.f32.mrb[115].mxu0  ;;  %v7919_v31 = vpop.f32.mrb[179].mxu1 }
 0x332   : > { %14361 = vst [vmem:[#allocation34_spill] sm:$0xff] %v7919_v31  ;;  %v3046_v26 = vadd.f32 %v3045_v33, %v7919_v31 }
 0x333   : > { %v7923_v14 = vadd.f32 %v14362_v54, %v1661_v35 }
 0x334   : > { %v1665_v41 = vpop.f32.mrb[116].mxu0  ;;  %v7925_v34 = vpop.f32.mrb[180].mxu1  ;;  %v3047_v28 = vadd.f32 %v7914_v61, %v3046_v26  ;;  %v14367_v26 = vld [vmem:[#allocation36_spill] sm:$0xff] }
 0x335   : > { %14363 = vst [vmem:[#allocation78_spill] sm:$0xff] %v7925_v34  ;;  %v2784_v20 = vadd.f32 %v2783_v29, %v7923_v14  ;;  %v1666_v49 = vadd.f32 %v1665_v41, %v14364_v1  ;;  %v1667_v56 = vpop.f32.mrb[117].mxu0  ;;  %v7930_v48 = vpop.f32.mrb[181].mxu1  ;;  %v14369_v1 = vld [vmem:[#allocation81_spill] sm:$0xff] }
 0x336   : > { %14365 = vst [vmem:[#allocation35_spill] sm:$0xff] %v7930_v48  ;;  %v3048_v0 = vadd.f32 %v3047_v28, %v7930_v48 }
 0x337   : > { %v7934_v15 = vadd.f32 %v7593_v25, %v1666_v49 }
 0x338   : > { %v1670_v33 = vpop.f32.mrb[118].mxu0  ;;  %v7936_v35 = vpop.f32.mrb[182].mxu1  ;;  %v3049_v6 = vadd.f32 %v7925_v34, %v3048_v0 }
 0x339   : > { %14366 = vst [vmem:[#allocation100_spill] sm:$0xff] %v7936_v35  ;;  %v2785_v54 = vadd.f32 %v2784_v20, %v7934_v15  ;;  %v1671_v61 = vadd.f32 %v1670_v33, %v14367_v26  ;;  %v1672_v29 = vpop.f32.mrb[119].mxu0  ;;  %v7941_v31 = vpop.f32.mrb[183].mxu1 }
 0x33a   : > { %14368 = vst [vmem:[#allocation36_spill] sm:$0xff] %v7941_v31  ;;  %v3050_v41 = vadd.f32 %v3049_v6, %v7941_v31 }
 0x33b   : > { %v2056_v56 = vadd.f32 %v14369_v1, %v1671_v61  ;;  %v14374_v1 = vld [vmem:[#allocation38_spill] sm:$0xff] }
 0x33c   : > { %v1675_v28 = vpop.f32.mrb[120].mxu0  ;;  %v7945_v48 = vpop.f32.mrb[184].mxu1  ;;  %v3051_v25 = vadd.f32 %v7936_v35, %v3050_v41 }
 0x33d   : > { %14370 = vst [vmem:[#allocation81_spill] sm:$0xff] %v7945_v48  ;;  %v2786_v49 = vadd.f32 %v2785_v54, %v2056_v56  ;;  %v1676_v11 = vadd.f32 %v1675_v28, %v14371_v27  ;;  %v1677_v0 = vpop.f32.mrb[121].mxu0  ;;  %v7949_v34 = vpop.f32.mrb[185].mxu1  ;;  %v14376_v54 = vld [vmem:[#allocation83_spill] sm:$0xff] }
 0x33e   : > { %14372 = vst [vmem:[#allocation37_spill] sm:$0xff] %v7949_v34  ;;  %v3052_v20 = vadd.f32 %v3051_v25, %v7949_v34  ;;  %v14378_v25 = vld [vmem:[#allocation39_spill] sm:$0xff] }
 0x33f   : > { %v2061_v33 = vadd.f32 %v7603_v12, %v1676_v11 }
 0x340   : > { %v1680_v26 = vpop.f32.mrb[122].mxu0  ;;  %v7953_v29 = vpop.f32.mrb[186].mxu1  ;;  %v3053_v61 = vadd.f32 %v7945_v48, %v3052_v20 }
 0x341   : > { %14373 = vst [vmem:[#allocation101_spill] sm:$0xff] %v7953_v29  ;;  %v2787_v6 = vadd.f32 %v2786_v49, %v2061_v33  ;;  %v1681_v31 = vadd.f32 %v1680_v26, %v14374_v1  ;;  %v1682_v30 = vpop.f32.mrb[123].mxu0  ;;  %v7957_v41 = vpop.f32.mrb[187].mxu1 }
 0x342   : > { %14375 = vst [vmem:[#allocation38_spill] sm:$0xff] %v7957_v41  ;;  %v3054_v27 = vadd.f32 %v3053_v61, %v7957_v41 }
 0x343   : > { %v2066_v28 = vadd.f32 %v14376_v54, %v1681_v31  ;;  %v14380_v54 = vld [vmem:[#allocation40_spill] sm:$0xff] }
 0x344   : > { %v1685_v0 = vpop.f32.mrb[124].mxu0  ;;  %v7961_v35 = vpop.f32.mrb[188].mxu1  ;;  %v3055_v12 = vadd.f32 %v7953_v29, %v3054_v27 }
 0x345   : > { %14377 = vst [vmem:[#allocation83_spill] sm:$0xff] %v7961_v35  ;;  %v2788_v11 = vadd.f32 %v2787_v6, %v2066_v28  ;;  %v1686_v34 = vadd.f32 %v1685_v0, %v14378_v25  ;;  %v1687_v39 = vpop.f32.mrb[125].mxu0  ;;  %v7965_v20 = vpop.f32.mrb[189].mxu1 }
 0x346   : > { %14379 = vst [vmem:[#allocation39_spill] sm:$0xff] %v7965_v20  ;;  %v3056_v49 = vadd.f32 %v3055_v12, %v7965_v20 }
 0x347   : > { %v2071_v30 = vadd.f32 %v7612_v3, %v1686_v34 }
 0x348   : > { %v1690_v26 = vpop.f32.mrb[126].mxu0  ;;  %v7969_v1 = vpop.f32.mrb[190].mxu1  ;;  %v3057_v31 = vadd.f32 %v7961_v35, %v3056_v49 }
 0x349   : > { %v2789_v61 = vadd.f32 %v2788_v11, %v2071_v30  ;;  %v1691_v41 = vadd.f32 %v1690_v26, %v14380_v54  ;;  %v1692_v48 = vpop.f32.mrb[127].mxu0  ;;  %v7973_v27 = vpop.f32.mrb[191].mxu1 }
 0x34a   : > { %v3058_v6 = vadd.f32 %v3057_v31, %v7973_v27 }
 0x34b   : > { %v2076_v39 = vadd.f32 %v7606_v2, %v1691_v41 }
 0x34c   : > { %v3059_v0 = vadd.f32 %v7969_v1, %v3058_v6 }
 0x34d   : > { %v2790_v12 = vadd.f32 %v2789_v61, %v2076_v39 }
 0x34e   : > { %v3060_v25 = vrot.slane %v3059_v0, 4 }
 0x34f   : > { %v2791_v3 = vrot.slane %v2790_v12, 4 }
 0x350   : > { %v3061_v34 = vadd.f32 %v3060_v25, %v3059_v0 }
 0x351   : > { %v2792_v20 = vadd.f32 %v2791_v3, %v2790_v12  ;;  %v14402_v3 = vld [vmem:[#allocation46_spill] sm:$0xff] }
 0x352   : > { %v3062_v29 = vrot.slane %v3061_v34, 2 }
 0x353   : > { %v2793_v49 = vrot.slane %v2792_v20, 2 }
 0x354   : > { %v3063_v40 = vadd.f32 %v3062_v29, %v3061_v34 }
 0x355   : > { %v2794_v26 = vadd.f32 %v2793_v49, %v2792_v20  ;;  %v14404_v49 = vld [vmem:[#allocation47_spill] sm:$0xff] }
 0x356   : > { %v3064_v11 = vrot.slane %v3063_v40, 1 }
 0x358   : > { %v3065_v35 = vadd.f32 %v3064_v11, %v3063_v40  ;;  %v2795_v40 = vrot.slane %v2794_v26, 1 }
 0x35a   : > { %v7978_v48 = vmul.f32 0.001953125, %v3065_v35  ;;  %v2796_v20 = vadd.f32 %v2795_v40, %v2794_v26  ;;  %v14406_v26 = vld [vmem:[#allocation48_spill] sm:$0xff] }
 0x35c   : > { %v7982_v31 = vsub.f32 %v7619_v52, %v7978_v48  ;;  %v7986_v2 = vsub.f32 %v7615_v16, %v7978_v48  ;;  %v7990_v41 = vsub.f32 %v7631_v22, %v7978_v48  ;;  %v7994_v29 = vsub.f32 %v7627_v58, %v7978_v48 }
 0x35d   : > { %v7996_v35 = vmul.f32 0.001953125, %v2796_v20 }
 0x35e   : > { %14381 = vst [vmem:[#allocation40_spill] sm:$0xff] %v7982_v31  ;;  %14382 = vst [vmem:[#allocation102_spill] sm:$0xff] %v7986_v2 }
 0x35f   : > { %14383 = vst [vmem:[#allocation103_spill] sm:$0xff] %v7990_v41  ;;  %14384 = vst [vmem:[#allocation104_spill] sm:$0xff] %v7994_v29  ;;  %v8000_v52 = vsub.f32 %v7900_v18, %v7996_v35  ;;  %v8004_v16 = vsub.f32 %v7912_v38, %v7996_v35  ;;  %v8008_v22 = vsub.f32 %v7923_v14, %v7996_v35  ;;  %v14392_v14 = vld [vmem:[#allocation41_spill] sm:$0xff] }
 0x360   : > { %v8012_v58 = vsub.f32 %v7934_v15, %v7996_v35  ;;  %v8015_v61 = vsub.f32 %v2056_v56, %v7996_v35  ;;  %v8018_v54 = vsub.f32 %v2061_v33, %v7996_v35  ;;  %v8021_v18 = vsub.f32 %v2066_v28, %v7996_v35  ;;  %v14394_v15 = vld [vmem:[#allocation42_spill] sm:$0xff]  ;;  %v14396_v33 = vld [vmem:[#allocation43_spill] sm:$0xff]  ;;  %v14398_v28 = vld [vmem:[#allocation44_spill] sm:$0xff] }
 0x361   : > { %14385 = vst [vmem:[#allocation105_spill] sm:$0xff] %v8008_v22  ;;  %v8024_v38 = vsub.f32 %v2071_v30, %v7996_v35  ;;  %v8027_v6 = vsub.f32 %v2076_v39, %v7996_v35  ;;  %v8031_v0 = vsub.f32 %v14392_v14, %v7996_v35  ;;  %v8035_v56 = vsub.f32 %v14394_v15, %v7996_v35  ;;  %v14400_v30 = vld [vmem:[#allocation45_spill] sm:$0xff] }
 0x362   : > { %14386 = vst [vmem:[#allocation106_spill] sm:$0xff] %v8012_v58  ;;  %14387 = vst [vmem:[#allocation107_spill] sm:$0xff] %v8015_v61  ;;  %v8039_v12 = vsub.f32 %v14396_v33, %v7996_v35  ;;  %v8043_v25 = vsub.f32 %v14398_v28, %v7996_v35  ;;  %v8047_v39 = vsub.f32 %v14400_v30, %v7996_v35  ;;  %v14409_v14 = vld [vmem:[#allocation49_spill] sm:$0xff] }
 0x363   : > { %14388 = vst [vmem:[#allocation108_spill] sm:$0xff] %v8018_v54  ;;  %14389 = vst [vmem:[#allocation109_spill] sm:$0xff] %v8021_v18  ;;  %v8051_v34 = vsub.f32 %v14402_v3, %v7996_v35  ;;  %v8055_v11 = vsub.f32 %v14404_v49, %v7996_v35  ;;  %v8059_v40 = vsub.f32 %v14406_v26, %v7996_v35 }
 0x364   : > { %14390 = vst [vmem:[#allocation110_spill] sm:$0xff] %v8024_v38  ;;  %14391 = vst [vmem:[#allocation111_spill] sm:$0xff] %v8027_v6  ;;  %v8063_v20 = vsub.f32 %v7467_v63, %v7996_v35  ;;  %v8067_v15 = vsub.f32 %v14409_v14, %v7996_v35  ;;  %v8071_v33 = vsub.f32 %v7476_v60, %v7996_v35 }
 0x365   : > { %14393 = vst [vmem:[#allocation41_spill] sm:$0xff] %v8031_v0  ;;  %14395 = vst [vmem:[#allocation42_spill] sm:$0xff] %v8035_v56  ;;  %v2863_v28 = vmul.f32 %v8031_v0, %v8031_v0  ;;  %v2864_v30 = vmul.f32 %v8035_v56, %v8035_v56  ;;  %v8079_v3 = vsub.f32 %v7480_v13, %v7996_v35 }
 0x366   : > { %14397 = vst [vmem:[#allocation43_spill] sm:$0xff] %v8039_v12  ;;  %14399 = vst [vmem:[#allocation44_spill] sm:$0xff] %v8043_v25  ;;  %v8083_v63 = vsub.f32 %v7484_v46, %v7996_v35  ;;  %v2865_v49 = vmul.f32 %v8039_v12, %v8039_v12  ;;  %v2866_v60 = vmul.f32 %v8043_v25, %v8043_v25 }
 0x367   : > { %14401 = vst [vmem:[#allocation45_spill] sm:$0xff] %v8047_v39  ;;  %14403 = vst [vmem:[#allocation46_spill] sm:$0xff] %v8051_v34  ;;  %v2867_v26 = vmul.f32 %v8047_v39, %v8047_v39  ;;  %v2868_v14 = vmul.f32 %v8051_v34, %v8051_v34  ;;  %v2869_v13 = vmul.f32 %v8055_v11, %v8055_v11  ;;  %v14414_v34 = vld [vmem:[#allocation88_spill] sm:$0xff] }
 0x368   : > { %14405 = vst [vmem:[#allocation47_spill] sm:$0xff] %v8055_v11  ;;  %14407 = vst [vmem:[#allocation48_spill] sm:$0xff] %v8059_v40  ;;  %v2870_v56 = vmul.f32 %v8059_v40, %v8059_v40  ;;  %v2871_v46 = vmul.f32 %v8063_v20, %v8063_v20  ;;  %v8101_v12 = vmul.f32 %v8067_v15, %v8067_v15 }
 0x369   : > { %14408 = vst [vmem:[#allocation112_spill] sm:$0xff] %v8063_v20  ;;  %14410 = vst [vmem:[#allocation49_spill] sm:$0xff] %v8067_v15  ;;  %v8105_v25 = vmul.f32 %v8071_v33, %v8071_v33  ;;  %v2927_v39 = vadd.f32 %v2864_v30, %v2863_v28  ;;  %v8109_v0 = vsub.f32 %v14414_v34, %v7978_v48 }
 0x36a   : > { %14411 = vst [vmem:[#allocation113_spill] sm:$0xff] %v8071_v33  ;;  %14412 = vst [vmem:[#allocation114_spill] sm:$0xff] %v8079_v3  ;;  %v8113_v11 = vsub.f32 %v7639_v32, %v7978_v48  ;;  %v8117_v20 = vsub.f32 %v7655_v24, %v7978_v48  ;;  %v8121_v15 = vsub.f32 %v7650_v17, %v7978_v48 }
 0x36b   : > { %14413 = vst [vmem:[#allocation115_spill] sm:$0xff] %v8083_v63  ;;  %14415 = vst [vmem:[#allocation88_spill] sm:$0xff] %v8109_v0  ;;  %v8125_v33 = vsub.f32 %v7667_v43, %v7978_v48  ;;  %v8129_v34 = vsub.f32 %v7662_v36, %v7978_v48  ;;  %v8133_v32 = vsub.f32 %v7679_v19, %v7978_v48 }
 0x36c   : > { %14416 = vst [vmem:[#allocation116_spill] sm:$0xff] %v8113_v11  ;;  %14417 = vst [vmem:[#allocation117_spill] sm:$0xff] %v8117_v20  ;;  %v2928_v28 = vadd.f32 %v2927_v39, %v2865_v49  ;;  %v8137_v24 = vsub.f32 %v7674_v4, %v7978_v48  ;;  %v8141_v17 = vsub.f32 %v7691_v44, %v7978_v48 }
 0x36d   : > { %14418 = vst [vmem:[#allocation118_spill] sm:$0xff] %v8121_v15  ;;  %14419 = vst [vmem:[#allocation119_spill] sm:$0xff] %v8125_v33  ;;  %v8145_v43 = vsub.f32 %v7686_v21, %v7978_v48  ;;  %v8149_v36 = vsub.f32 %v7703_v5, %v7978_v48  ;;  %v8153_v19 = vsub.f32 %v7698_v10, %v7978_v48 }
 0x36e   : > { %14420 = vst [vmem:[#allocation120_spill] sm:$0xff] %v8129_v34  ;;  %14421 = vst [vmem:[#allocation121_spill] sm:$0xff] %v8133_v32  ;;  %v8157_v4 = vsub.f32 %v7715_v62, %v7978_v48  ;;  %v8161_v44 = vsub.f32 %v7710_v8, %v7978_v48  ;;  %v2929_v39 = vadd.f32 %v2928_v28, %v2866_v60 }
 0x36f   : > { %14422 = vst [vmem:[#allocation122_spill] sm:$0xff] %v8137_v24  ;;  %14423 = vst [vmem:[#allocation123_spill] sm:$0xff] %v8141_v17  ;;  %v8165_v21 = vsub.f32 %v7727_v55, %v7978_v48  ;;  %v8169_v5 = vsub.f32 %v7722_v9, %v7978_v48  ;;  %v8173_v10 = vsub.f32 %v7739_v51, %v7978_v48 }
 0x370   : > { %14424 = vst [vmem:[#allocation124_spill] sm:$0xff] %v8145_v43  ;;  %14425 = vst [vmem:[#allocation125_spill] sm:$0xff] %v8149_v36  ;;  %v8177_v62 = vsub.f32 %v7734_v42, %v7978_v48  ;;  %v8181_v8 = vsub.f32 %v7751_v37, %v7978_v48  ;;  %v8185_v55 = vsub.f32 %v7746_v47, %v7978_v48  ;;  %v14437_v42 = vld [vmem:[#allocation20_spill] sm:$0xff]  ;;  %v14440_v47 = vld [vmem:[#allocation21_spill] sm:$0xff] }
 0x371   : > { %14426 = vst [vmem:[#allocation126_spill] sm:$0xff] %v8153_v19  ;;  %14427 = vst [vmem:[#allocation127_spill] sm:$0xff] %v8157_v4  ;;  %v8189_v9 = vsub.f32 %v7763_v50, %v7978_v48  ;;  %v2930_v30 = vadd.f32 %v2929_v39, %v2867_v26  ;;  %v8193_v51 = vsub.f32 %v7758_v53, %v7978_v48 }
 0x372   : > { %14428 = vst [vmem:[#allocation128_spill] sm:$0xff] %v8161_v44  ;;  %14429 = vst [vmem:[#allocation129_spill] sm:$0xff] %v8165_v21  ;;  %v8197_v49 = vsub.f32 %v14437_v42, %v7978_v48  ;;  %v8201_v37 = vsub.f32 %v7770_v59, %v7978_v48  ;;  %v8205_v60 = vsub.f32 %v14440_v47, %v7978_v48  ;;  %v14445_v59 = vld [vmem:[#allocation23_spill] sm:$0xff] }
 0x373   : > { %14430 = vst [vmem:[#allocation130_spill] sm:$0xff] %v8169_v5  ;;  %14431 = vst [vmem:[#allocation131_spill] sm:$0xff] %v8173_v10  ;;  %v8209_v50 = vsub.f32 %v7782_v23, %v7978_v48  ;;  %v8213_v53 = vsub.f32 %v7799_v57, %v7978_v48  ;;  %v8217_v26 = vsub.f32 %v7794_v7, %v7978_v48  ;;  %v14448_v23 = vld [vmem:[#allocation64_spill] sm:$0xff]  ;;  %v14452_v7 = vld [vmem:[#allocation67_spill] sm:$0xff] }
 0x374   : > { %14432 = vst [vmem:[#allocation132_spill] sm:$0xff] %v8177_v62  ;;  %14433 = vst [vmem:[#allocation133_spill] sm:$0xff] %v8181_v8  ;;  %v2931_v28 = vadd.f32 %v2930_v30, %v2868_v14  ;;  %v8221_v39 = vsub.f32 %v14445_v59, %v7978_v48  ;;  %v8225_v42 = vsub.f32 %v7806_v45, %v7978_v48  ;;  %v14450_v57 = vld [vmem:[#allocation24_spill] sm:$0xff]  ;;  %v14454_v14 = vld [vmem:[#allocation26_spill] sm:$0xff] }
 0x375   : > { %14434 = vst [vmem:[#allocation134_spill] sm:$0xff] %v8185_v55  ;;  %14435 = vst [vmem:[#allocation135_spill] sm:$0xff] %v8189_v9  ;;  %v8229_v47 = vsub.f32 %v14448_v23, %v7978_v48  ;;  %v8233_v40 = vsub.f32 %v14450_v57, %v7978_v48  ;;  %v8237_v6 = vsub.f32 %v14452_v7, %v7978_v48  ;;  %v14456_v59 = vld [vmem:[#allocation28_spill] sm:$0xff]  ;;  %v14458_v23 = vld [vmem:[#allocation71_spill] sm:$0xff] }
 0x376   : > { %14436 = vst [vmem:[#allocation136_spill] sm:$0xff] %v8193_v51  ;;  %14438 = vst [vmem:[#allocation20_spill] sm:$0xff] %v8197_v49  ;;  %v8241_v30 = vsub.f32 %v14454_v14, %v7978_v48  ;;  %v8245_v45 = vsub.f32 %v14456_v59, %v7978_v48  ;;  %v2932_v38 = vadd.f32 %v2931_v28, %v2869_v13  ;;  %v14460_v57 = vld [vmem:[#allocation29_spill] sm:$0xff]  ;;  %v14462_v7 = vld [vmem:[#allocation96_spill] sm:$0xff] }
 0x377   : > { %14439 = vst [vmem:[#allocation137_spill] sm:$0xff] %v8201_v37  ;;  %14441 = vst [vmem:[#allocation21_spill] sm:$0xff] %v8205_v60  ;;  %v8249_v18 = vsub.f32 %v14458_v23, %v7978_v48  ;;  %v8253_v54 = vsub.f32 %v14460_v57, %v7978_v48  ;;  %v8257_v61 = vsub.f32 %v14462_v7, %v7978_v48  ;;  %v14464_v14 = vld [vmem:[#allocation30_spill] sm:$0xff]  ;;  %v14466_v59 = vld [vmem:[#allocation97_spill] sm:$0xff] }
 0x378   : > { %14442 = vst [vmem:[#allocation138_spill] sm:$0xff] %v8209_v50  ;;  %14443 = vst [vmem:[#allocation139_spill] sm:$0xff] %v8213_v53  ;;  %v8261_v58 = vsub.f32 %v14464_v14, %v7978_v48  ;;  %v8265_v22 = vsub.f32 %v14466_v59, %v7978_v48  ;;  %v14468_v13 = vld [vmem:[#allocation31_spill] sm:$0xff]  ;;  %v14470_v23 = vld [vmem:[#allocation98_spill] sm:$0xff] }
 0x379   : > { %14444 = vst [vmem:[#allocation140_spill] sm:$0xff] %v8217_v26  ;;  %14446 = vst [vmem:[#allocation23_spill] sm:$0xff] %v8221_v39  ;;  %v8269_v28 = vsub.f32 %v14468_v13, %v7978_v48  ;;  %v8273_v57 = vsub.f32 %v14470_v23, %v7978_v48  ;;  %v14472_v7 = vld [vmem:[#allocation32_spill] sm:$0xff]  ;;  %v14474_v14 = vld [vmem:[#allocation99_spill] sm:$0xff] }
 0x37a   : > { %14447 = vst [vmem:[#allocation141_spill] sm:$0xff] %v8225_v42  ;;  %14449 = vst [vmem:[#allocation64_spill] sm:$0xff] %v8229_v47  ;;  %v14476_v59 = vld [vmem:[#allocation33_spill] sm:$0xff]  ;;  %v14478_v13 = vld [vmem:[#allocation75_spill] sm:$0xff] }
 0x37b   : > { %14451 = vst [vmem:[#allocation24_spill] sm:$0xff] %v8233_v40  ;;  %14453 = vst [vmem:[#allocation67_spill] sm:$0xff] %v8237_v6  ;;  %v14480_v23 = vld [vmem:[#allocation34_spill] sm:$0xff] }
 0x37c   : > { %14455 = vst [vmem:[#allocation26_spill] sm:$0xff] %v8241_v30  ;;  %14457 = vst [vmem:[#allocation28_spill] sm:$0xff] %v8245_v45 }
 0x37d   : > { %14459 = vst [vmem:[#allocation71_spill] sm:$0xff] %v8249_v18  ;;  %14461 = vst [vmem:[#allocation29_spill] sm:$0xff] %v8253_v54  ;;  %v2933_v54 = vadd.f32 %v2932_v38, %v2870_v56  ;;  %v14482_v38 = vld [vmem:[#allocation80_spill] sm:$0xff] }
 0x37e   : > { %14463 = vst [vmem:[#allocation96_spill] sm:$0xff] %v8257_v61  ;;  %14465 = vst [vmem:[#allocation30_spill] sm:$0xff] %v8261_v58  ;;  %v8277_v61 = vsub.f32 %v14472_v7, %v7978_v48  ;;  %v8281_v58 = vsub.f32 %v14474_v14, %v7978_v48  ;;  %v8297_v56 = vsub.f32 %v14482_v38, %v7978_v48  ;;  %v14484_v7 = vld [vmem:[#allocation35_spill] sm:$0xff]  ;;  %v14492_v38 = vld [vmem:[#allocation37_spill] sm:$0xff] }
 0x37f   : > { %14467 = vst [vmem:[#allocation97_spill] sm:$0xff] %v8265_v22  ;;  %14469 = vst [vmem:[#allocation31_spill] sm:$0xff] %v8269_v28  ;;  %v8285_v22 = vsub.f32 %v14476_v59, %v7978_v48  ;;  %v8289_v28 = vsub.f32 %v14478_v13, %v7978_v48  ;;  %v8301_v14 = vsub.f32 %v14484_v7, %v7978_v48  ;;  %v14486_v59 = vld [vmem:[#allocation78_spill] sm:$0xff]  ;;  %v14488_v13 = vld [vmem:[#allocation36_spill] sm:$0xff] }
 0x380   : > { %14471 = vst [vmem:[#allocation98_spill] sm:$0xff] %v8273_v57  ;;  %14473 = vst [vmem:[#allocation32_spill] sm:$0xff] %v8277_v61  ;;  %v8293_v57 = vsub.f32 %v14480_v23, %v7978_v48  ;;  %v14490_v23 = vld [vmem:[#allocation100_spill] sm:$0xff]  ;;  %v14494_v7 = vld [vmem:[#allocation81_spill] sm:$0xff] }
 0x381   : > { %14475 = vst [vmem:[#allocation99_spill] sm:$0xff] %v8281_v58  ;;  %14477 = vst [vmem:[#allocation33_spill] sm:$0xff] %v8285_v22  ;;  %v2934_v58 = vadd.f32 %v2933_v54, %v2871_v46  ;;  %v8305_v22 = vsub.f32 %v14486_v59, %v7978_v48  ;;  %v14495_v54 = vld [vmem:[#allocation38_spill] sm:$0xff]  ;;  %v14497_v59 = vld [vmem:[#allocation101_spill] sm:$0xff] }
 0x382   : > { %14479 = vst [vmem:[#allocation75_spill] sm:$0xff] %v8289_v28  ;;  %14481 = vst [vmem:[#allocation34_spill] sm:$0xff] %v8293_v57  ;;  %v8309_v28 = vsub.f32 %v14488_v13, %v7978_v48  ;;  %v8313_v57 = vsub.f32 %v14490_v23, %v7978_v48  ;;  %v8325_v46 = vsub.f32 %v14495_v54, %v7978_v48  ;;  %v14499_v23 = vld [vmem:[#allocation39_spill] sm:$0xff] }
 0x383   : > { %14483 = vst [vmem:[#allocation80_spill] sm:$0xff] %v8297_v56  ;;  %14485 = vst [vmem:[#allocation35_spill] sm:$0xff] %v8301_v14  ;;  %v8317_v56 = vsub.f32 %v14492_v38, %v7978_v48  ;;  %v8321_v14 = vsub.f32 %v14494_v7, %v7978_v48  ;;  %v8329_v13 = vsub.f32 %v14497_v59, %v7978_v48  ;;  %v14501_v38 = vld [vmem:[#allocation83_spill] sm:$0xff]  ;;  %v14505_v59 = vld [vmem:[#allocation50_spill] sm:$0xff] }
 0x384   : > { %14487 = vst [vmem:[#allocation78_spill] sm:$0xff] %v8305_v22  ;;  %14489 = vst [vmem:[#allocation36_spill] sm:$0xff] %v8309_v28  ;;  %v2935_v28 = vadd.f32 %v2934_v58, %v8101_v12  ;;  %v8342_v7 = vsub.f32 %v7973_v27, %v7978_v48  ;;  %v8346_v54 = vsub.f32 %v7969_v1, %v7978_v48  ;;  %v14509_v1 = vld [vmem:[#allocation52_spill] sm:$0xff] }
 0x385   : > { %14491 = vst [vmem:[#allocation100_spill] sm:$0xff] %v8313_v57  ;;  %14493 = vst [vmem:[#allocation37_spill] sm:$0xff] %v8317_v56  ;;  %v8334_v57 = vsub.f32 %v14499_v23, %v7978_v48  ;;  %v8338_v56 = vsub.f32 %v14501_v38, %v7978_v48  ;;  %v2874_v58 = vmul.f32 %v8079_v3, %v8079_v3  ;;  %v14507_v23 = vld [vmem:[#allocation51_spill] sm:$0xff]  ;;  %v14511_v3 = vld [vmem:[#allocation53_spill] sm:$0xff] }
 0x386   : > { %14496 = vst [vmem:[#allocation81_spill] sm:$0xff] %v8325_v46  ;;  %14498 = vst [vmem:[#allocation38_spill] sm:$0xff] %v8329_v13  ;;  %v8350_v13 = vsub.f32 %v14505_v59, %v7996_v35  ;;  %v2936_v12 = vadd.f32 %v2935_v28, %v8105_v25  ;;  %v8357_v38 = vsub.f32 %v14507_v23, %v7996_v35  ;;  %v14513_v23 = vld [vmem:[#allocation54_spill] sm:$0xff] }
 0x387   : > { %14500 = vst [vmem:[#allocation101_spill] sm:$0xff] %v8334_v57  ;;  %14502 = vst [vmem:[#allocation39_spill] sm:$0xff] %v8338_v56  ;;  %v2875_v27 = vmul.f32 %v8083_v63, %v8083_v63  ;;  %v8363_v48 = vsub.f32 %v14509_v1, %v7996_v35  ;;  %v8369_v56 = vsub.f32 %v14511_v3, %v7996_v35  ;;  %v14515_v1 = vld [vmem:[#allocation55_spill] sm:$0xff] }
 0x388   : > { %14503 = vst [vmem:[#allocation83_spill] sm:$0xff] %v8342_v7  ;;  %14504 = vst [vmem:[#allocation142_spill] sm:$0xff] %v8346_v54  ;;  %v2937_v7 = vadd.f32 %v2936_v12, %v2874_v58  ;;  %v2876_v59 = vmul.f32 %v8350_v13, %v8350_v13  ;;  %v2877_v25 = vmul.f32 %v8357_v38, %v8357_v38 }
 0x389   : > { %14506 = vst [vmem:[#allocation50_spill] sm:$0xff] %v8350_v13  ;;  %14508 = vst [vmem:[#allocation51_spill] sm:$0xff] %v8357_v38  ;;  %v8375_v63 = vsub.f32 %v14513_v23, %v7996_v35  ;;  %v2878_v58 = vmul.f32 %v8363_v48, %v8363_v48  ;;  %v8381_v13 = vsub.f32 %v14515_v1, %v7996_v35  ;;  %v14519_v23 = vld [vmem:[#allocation58_spill] sm:$0xff] }
 0x38a   : > { %14510 = vst [vmem:[#allocation52_spill] sm:$0xff] %v8363_v48  ;;  %v2938_v54 = vadd.f32 %v2937_v7, %v2875_v27  ;;  %14512 = vst [vmem:[#allocation53_spill] sm:$0xff] %v8369_v56  ;;  %v2879_v3 = vmul.f32 %v8369_v56, %v8369_v56  ;;  %v14517_v27 = vld [vmem:[#allocation56_spill] sm:$0xff]  ;;  %v8393_v48 = vsub.f32 %v14519_v23, %v7996_v35  ;;  %v14522_v23 = vld [vmem:[#allocation63_spill] sm:$0xff] }
 0x38b   : > { %14514 = vst [vmem:[#allocation54_spill] sm:$0xff] %v8375_v63  ;;  %14516 = vst [vmem:[#allocation55_spill] sm:$0xff] %v8381_v13  ;;  %v8387_v38 = vsub.f32 %v14517_v27, %v7996_v35  ;;  %v3131_v1 = vmul.f32 %v7982_v31, %v7982_v31  ;;  %v3133_v31 = vmul.f32 %v7990_v41, %v7990_v41  ;;  %v14524_v56 = vld [vmem:[#allocation68_spill] sm:$0xff] }
 0x38c   : > { %v2939_v28 = vadd.f32 %v2938_v54, %v2876_v59  ;;  %v2880_v54 = vmul.f32 %v8375_v63, %v8375_v63  ;;  %14520 = vst [vmem:[#allocation58_spill] sm:$0xff] %v8393_v48  ;;  %v8409_v63 = vsub.f32 %v14522_v23, %v7996_v35 }
 0x38d   : > { %14518 = vst [vmem:[#allocation56_spill] sm:$0xff] %v8387_v38 }
 0x38e   : > { %v2940_v12 = vadd.f32 %v2939_v28, %v2877_v25  ;;  %v2881_v25 = vmul.f32 %v8381_v13, %v8381_v13  ;;  %v14523_v13 = vld [vmem:[#allocation65_spill] sm:$0xff] }
 0x390   : > { %v2941_v7 = vadd.f32 %v2940_v12, %v2878_v58  ;;  %v3132_v58 = vmul.f32 %v7986_v2, %v7986_v2  ;;  %v14521_v12 = vld [vmem:[#allocation60_spill] sm:$0xff] }
 0x391   : > { %v8403_v27 = vsub.f32 %v14521_v12, %v7996_v35  ;;  %v8417_v12 = vsub.f32 %v14523_v13, %v7996_v35  ;;  %v3135_v13 = vmul.f32 %v8109_v0, %v8109_v0 }
 0x392   : > { %v2942_v59 = vadd.f32 %v2941_v7, %v2879_v3  ;;  %v2882_v3 = vmul.f32 %v8387_v38, %v8387_v38  ;;  %v3195_v2 = vadd.f32 %v3132_v58, %v3131_v1 }
 0x393   : > { %v2884_v38 = vmul.f32 %v8403_v27, %v8403_v27 }
 0x394   : > { %v2943_v28 = vadd.f32 %v2942_v59, %v2880_v54  ;;  %v2883_v54 = vmul.f32 %v8393_v48, %v8393_v48  ;;  %v3196_v23 = vadd.f32 %v3195_v2, %v3133_v31  ;;  %v8425_v48 = vsub.f32 %v14524_v56, %v7996_v35 }
 0x395   : > { %v3136_v2 = vmul.f32 %v8113_v11, %v8113_v11 }
 0x396   : > { %v2944_v7 = vadd.f32 %v2943_v28, %v2881_v25  ;;  %v3134_v28 = vmul.f32 %v7994_v29, %v7994_v29 }
 0x398   : > { %v2945_v59 = vadd.f32 %v2944_v7, %v2882_v3  ;;  %v2885_v3 = vmul.f32 %v8409_v63, %v8409_v63  ;;  %v3197_v58 = vadd.f32 %v3196_v23, %v3134_v28  ;;  %v14525_v7 = vld [vmem:[#allocation70_spill] sm:$0xff]  ;;  %v3137_v28 = vmul.f32 %v8117_v20, %v8117_v20 }
 0x399   : > { %v8433_v41 = vsub.f32 %v14525_v7, %v7996_v35  ;;  %v14527_v7 = vld [vmem:[#allocation76_spill] sm:$0xff] }
 0x39a   : > { %v2946_v25 = vadd.f32 %v2945_v59, %v2883_v54  ;;  %v2886_v54 = vmul.f32 %v8417_v12, %v8417_v12  ;;  %v3198_v56 = vadd.f32 %v3197_v58, %v3135_v13  ;;  %v14526_v59 = vld [vmem:[#allocation73_spill] sm:$0xff]  ;;  %v8449_v0 = vsub.f32 %v14527_v7, %v7996_v35  ;;  %v14529_v7 = vld [vmem:[#allocation82_spill] sm:$0xff] }
 0x39b   : > { %v8441_v29 = vsub.f32 %v14526_v59, %v7996_v35  ;;  %v3138_v13 = vmul.f32 %v8121_v15, %v8121_v15  ;;  %v14528_v59 = vld [vmem:[#allocation79_spill] sm:$0xff]  ;;  %v8465_v20 = vsub.f32 %v14529_v7, %v7996_v35  ;;  %v14531_v7 = vld [vmem:[#allocation85_spill] sm:$0xff] }
 0x39c   : > { %v2947_v1 = vadd.f32 %v2946_v25, %v2884_v38  ;;  %v2887_v38 = vmul.f32 %v8425_v48, %v8425_v48  ;;  %v3199_v23 = vadd.f32 %v3198_v56, %v3136_v2  ;;  %v8457_v11 = vsub.f32 %v14528_v59, %v7996_v35  ;;  %v14530_v59 = vld [vmem:[#allocation84_spill] sm:$0xff] }
 0x39d   : > { %v3139_v2 = vmul.f32 %v8125_v33, %v8125_v33  ;;  %v8473_v15 = vsub.f32 %v14530_v59, %v7996_v35  ;;  %v8481_v33 = vsub.f32 %v14531_v7, %v7996_v35  ;;  %v14532_v59 = vld [vmem:[#allocation86_spill] sm:$0xff]  ;;  %v14533_v7 = vld [vmem:[#allocation87_spill] sm:$0xff] }
 0x39e   : > { %v2948_v31 = vadd.f32 %v2947_v1, %v2885_v3  ;;  %v2888_v3 = vmul.f32 %v8433_v41, %v8433_v41  ;;  %v3200_v58 = vadd.f32 %v3199_v23, %v3137_v28  ;;  %v3140_v28 = vmul.f32 %v8129_v34, %v8129_v34 }
 0x39f   : > { %v8489_v34 = vsub.f32 %v14532_v59, %v7996_v35  ;;  %v14534_v59 = vld [vmem:[#allocation89_spill] sm:$0xff] }
 0x3a0   : > { %v2949_v25 = vadd.f32 %v2948_v31, %v2886_v54  ;;  %v2889_v54 = vmul.f32 %v8441_v29, %v8441_v29  ;;  %v3201_v56 = vadd.f32 %v3200_v58, %v3138_v13  ;;  %v3141_v13 = vmul.f32 %v8133_v32, %v8133_v32 }
 0x3a1   : > { %v8497_v32 = vsub.f32 %v14533_v7, %v7996_v35  ;;  %v14535_v7 = vld [vmem:[#allocation90_spill] sm:$0xff] }
 0x3a2   : > { %v2950_v1 = vadd.f32 %v2949_v25, %v2887_v38  ;;  %v2890_v38 = vmul.f32 %v8449_v0, %v8449_v0  ;;  %v3202_v23 = vadd.f32 %v3201_v56, %v3139_v2  ;;  %v3142_v2 = vmul.f32 %v8137_v24, %v8137_v24 }
 0x3a3   : > { %v8505_v24 = vsub.f32 %v14534_v59, %v7996_v35  ;;  %v14536_v59 = vld [vmem:[#allocation91_spill] sm:$0xff] }
 0x3a4   : > { %v2951_v31 = vadd.f32 %v2950_v1, %v2888_v3  ;;  %v2891_v3 = vmul.f32 %v8457_v11, %v8457_v11  ;;  %v3203_v58 = vadd.f32 %v3202_v23, %v3140_v28  ;;  %v3143_v28 = vmul.f32 %v8141_v17, %v8141_v17 }
 0x3a5   : > { %v8513_v17 = vsub.f32 %v14535_v7, %v7996_v35  ;;  %v14537_v7 = vld [vmem:[#allocation92_spill] sm:$0xff] }
 0x3a6   : > { %v2952_v25 = vadd.f32 %v2951_v31, %v2889_v54  ;;  %v2892_v54 = vmul.f32 %v8465_v20, %v8465_v20  ;;  %v3204_v56 = vadd.f32 %v3203_v58, %v3141_v13  ;;  %v3144_v13 = vmul.f32 %v8145_v43, %v8145_v43 }
 0x3a7   : > { %v8521_v43 = vsub.f32 %v14536_v59, %v7996_v35  ;;  %v14538_v59 = vld [vmem:[#allocation93_spill] sm:$0xff] }
 0x3a8   : > { %v2953_v1 = vadd.f32 %v2952_v25, %v2890_v38  ;;  %v2893_v38 = vmul.f32 %v8473_v15, %v8473_v15  ;;  %v3205_v23 = vadd.f32 %v3204_v56, %v3142_v2  ;;  %v3145_v2 = vmul.f32 %v8149_v36, %v8149_v36 }
 0x3a9   : > { %v8529_v36 = vsub.f32 %v14537_v7, %v7996_v35  ;;  %v14539_v7 = vld [vmem:[#allocation94_spill] sm:$0xff] }
 0x3aa   : > { %v2954_v31 = vadd.f32 %v2953_v1, %v2891_v3  ;;  %v2894_v3 = vmul.f32 %v8481_v33, %v8481_v33  ;;  %v3206_v58 = vadd.f32 %v3205_v23, %v3143_v28  ;;  %v3146_v28 = vmul.f32 %v8153_v19, %v8153_v19 }
 0x3ab   : > { %v8537_v19 = vsub.f32 %v14538_v59, %v7996_v35  ;;  %v14540_v59 = vld [vmem:[#allocation95_spill] sm:$0xff] }
 0x3ac   : > { %v2955_v25 = vadd.f32 %v2954_v31, %v2892_v54  ;;  %v2895_v54 = vmul.f32 %v8489_v34, %v8489_v34  ;;  %v3207_v56 = vadd.f32 %v3206_v58, %v3144_v13  ;;  %v3147_v13 = vmul.f32 %v8157_v4, %v8157_v4 }
 0x3ad   : > { %v8545_v4 = vsub.f32 %v14539_v7, %v7996_v35  ;;  %v14541_v7 = vld [vmem:[#allocation18_spill] sm:$0xff] }
 0x3ae   : > { %v2956_v1 = vadd.f32 %v2955_v25, %v2893_v38  ;;  %v2896_v38 = vmul.f32 %v8497_v32, %v8497_v32  ;;  %v3208_v23 = vadd.f32 %v3207_v56, %v3145_v2  ;;  %v3148_v2 = vmul.f32 %v8161_v44, %v8161_v44 }
 0x3af   : > { %v8553_v44 = vsub.f32 %v14540_v59, %v7996_v35  ;;  %v14542_v59 = vld [vmem:[#allocation57_spill] sm:$0xff] }
 0x3b0   : > { %v2957_v31 = vadd.f32 %v2956_v1, %v2894_v3  ;;  %v2897_v3 = vmul.f32 %v8505_v24, %v8505_v24  ;;  %v3209_v58 = vadd.f32 %v3208_v23, %v3146_v28  ;;  %v3149_v28 = vmul.f32 %v8165_v21, %v8165_v21 }
 0x3b1   : > { %v8561_v21 = vsub.f32 %v14541_v7, %v7996_v35  ;;  %v14543_v7 = vld [vmem:[#allocation19_spill] sm:$0xff] }
 0x3b2   : > { %v2958_v25 = vadd.f32 %v2957_v31, %v2895_v54  ;;  %v2898_v54 = vmul.f32 %v8513_v17, %v8513_v17  ;;  %v3210_v56 = vadd.f32 %v3209_v58, %v3147_v13  ;;  %v3150_v13 = vmul.f32 %v8169_v5, %v8169_v5 }
 0x3b3   : > { %v8569_v5 = vsub.f32 %v14542_v59, %v7996_v35  ;;  %v14544_v59 = vld [vmem:[#allocation61_spill] sm:$0xff] }
 0x3b4   : > { %v2959_v1 = vadd.f32 %v2958_v25, %v2896_v38  ;;  %v2899_v38 = vmul.f32 %v8521_v43, %v8521_v43  ;;  %v3211_v23 = vadd.f32 %v3210_v56, %v3148_v2  ;;  %v3151_v2 = vmul.f32 %v8173_v10, %v8173_v10 }
 0x3b5   : > { %v8577_v10 = vsub.f32 %v14543_v7, %v7996_v35  ;;  %v14545_v7 = vld [vmem:[#allocation59_spill] sm:$0xff] }
 0x3b6   : > { %v2960_v31 = vadd.f32 %v2959_v1, %v2897_v3  ;;  %v2900_v3 = vmul.f32 %v8529_v36, %v8529_v36  ;;  %v3212_v58 = vadd.f32 %v3211_v23, %v3149_v28  ;;  %v3152_v28 = vmul.f32 %v8177_v62, %v8177_v62 }
 0x3b7   : > { %v8585_v62 = vsub.f32 %v14544_v59, %v7996_v35  ;;  %v14546_v59 = vld [vmem:[#allocation22_spill] sm:$0xff] }
 0x3b8   : > { %v2961_v25 = vadd.f32 %v2960_v31, %v2898_v54  ;;  %v2901_v54 = vmul.f32 %v8537_v19, %v8537_v19  ;;  %v3213_v56 = vadd.f32 %v3212_v58, %v3150_v13  ;;  %v3153_v13 = vmul.f32 %v8181_v8, %v8181_v8 }
 0x3b9   : > { %v8593_v8 = vsub.f32 %v14545_v7, %v7996_v35  ;;  %v14547_v7 = vld [vmem:[#allocation62_spill] sm:$0xff] }
 0x3ba   : > { %v2962_v1 = vadd.f32 %v2961_v25, %v2899_v38  ;;  %v2902_v38 = vmul.f32 %v8545_v4, %v8545_v4  ;;  %v3214_v23 = vadd.f32 %v3213_v56, %v3151_v2  ;;  %v3154_v2 = vmul.f32 %v8185_v55, %v8185_v55 }
 0x3bb   : > { %v8601_v55 = vsub.f32 %v14546_v59, %v7996_v35  ;;  %v14548_v59 = vld [vmem:[#allocation66_spill] sm:$0xff] }
 0x3bc   : > { %v2963_v31 = vadd.f32 %v2962_v1, %v2900_v3  ;;  %v2903_v3 = vmul.f32 %v8553_v44, %v8553_v44  ;;  %v3215_v58 = vadd.f32 %v3214_v23, %v3152_v28  ;;  %v3155_v28 = vmul.f32 %v8189_v9, %v8189_v9 }
 0x3bd   : > { %v8609_v9 = vsub.f32 %v14547_v7, %v7996_v35  ;;  %v14549_v7 = vld [vmem:[#allocation25_spill] sm:$0xff] }
 0x3be   : > { %v2964_v25 = vadd.f32 %v2963_v31, %v2901_v54  ;;  %v2904_v54 = vmul.f32 %v8561_v21, %v8561_v21  ;;  %v3216_v56 = vadd.f32 %v3215_v58, %v3153_v13  ;;  %v3156_v13 = vmul.f32 %v8193_v51, %v8193_v51 }
 0x3bf   : > { %v8617_v51 = vsub.f32 %v14548_v59, %v7996_v35  ;;  %v14550_v59 = vld [vmem:[#allocation27_spill] sm:$0xff] }
 0x3c0   : > { %v2965_v1 = vadd.f32 %v2964_v25, %v2902_v38  ;;  %v2905_v38 = vmul.f32 %v8569_v5, %v8569_v5  ;;  %v3217_v23 = vadd.f32 %v3216_v56, %v3154_v2  ;;  %v3157_v2 = vmul.f32 %v8197_v49, %v8197_v49 }
 0x3c1   : > { %v8625_v49 = vsub.f32 %v14549_v7, %v7996_v35  ;;  %v14551_v7 = vld [vmem:[#allocation69_spill] sm:$0xff] }
 0x3c2   : > { %v2966_v31 = vadd.f32 %v2965_v1, %v2903_v3  ;;  %v2906_v3 = vmul.f32 %v8577_v10, %v8577_v10  ;;  %v3218_v58 = vadd.f32 %v3217_v23, %v3155_v28  ;;  %v3158_v28 = vmul.f32 %v8201_v37, %v8201_v37 }
 0x3c3   : > { %v8633_v37 = vsub.f32 %v14550_v59, %v7996_v35  ;;  %v14552_v59 = vld [vmem:[#allocation74_spill] sm:$0xff] }
 0x3c4   : > { %v2967_v25 = vadd.f32 %v2966_v31, %v2904_v54  ;;  %v2907_v54 = vmul.f32 %v8585_v62, %v8585_v62  ;;  %v3219_v56 = vadd.f32 %v3218_v58, %v3156_v13  ;;  %v3159_v13 = vmul.f32 %v8205_v60, %v8205_v60 }
 0x3c5   : > { %v8641_v60 = vsub.f32 %v14551_v7, %v7996_v35  ;;  %v14553_v7 = vld [vmem:[#allocation72_spill] sm:$0xff] }
 0x3c6   : > { %v2968_v1 = vadd.f32 %v2967_v25, %v2905_v38  ;;  %v2908_v38 = vmul.f32 %v8593_v8, %v8593_v8  ;;  %v3220_v23 = vadd.f32 %v3219_v56, %v3157_v2  ;;  %v3160_v2 = vmul.f32 %v8209_v50, %v8209_v50 }
 0x3c7   : > { %v8649_v50 = vsub.f32 %v14552_v59, %v7996_v35  ;;  %v14554_v59 = vld [vmem:[#allocation77_spill] sm:$0xff] }
 0x3c8   : > { %v2969_v31 = vadd.f32 %v2968_v1, %v2906_v3  ;;  %v2909_v3 = vmul.f32 %v8601_v55, %v8601_v55  ;;  %v3221_v58 = vadd.f32 %v3220_v23, %v3158_v28  ;;  %v3161_v28 = vmul.f32 %v8213_v53, %v8213_v53 }
 0x3c9   : > { %v8657_v53 = vsub.f32 %v14553_v7, %v7996_v35 }
 0x3ca   : > { %v2970_v25 = vadd.f32 %v2969_v31, %v2907_v54  ;;  %v2910_v54 = vmul.f32 %v8609_v9, %v8609_v9  ;;  %v3222_v56 = vadd.f32 %v3221_v58, %v3159_v13  ;;  %v3162_v13 = vmul.f32 %v8217_v26, %v8217_v26 }
 0x3cb   : > { %v8665_v26 = vsub.f32 %v14554_v59, %v7996_v35  ;;  %v2916_v7 = vmul.f32 %v8657_v53, %v8657_v53  ;;  %v3167_v59 = vmul.f32 %v8237_v6, %v8237_v6 }
 0x3cc   : > { %v2971_v1 = vadd.f32 %v2970_v25, %v2908_v38  ;;  %v2911_v38 = vmul.f32 %v8617_v51, %v8617_v51  ;;  %v3223_v23 = vadd.f32 %v3222_v56, %v3160_v2  ;;  %v3163_v2 = vmul.f32 %v8221_v39, %v8221_v39  ;;  %v14562_v39 = vld [vmem:[#allocation108_spill] sm:$0xff] }
 0x3cd   : > { %v2917_v35 = vmul.f32 %v8665_v26, %v8665_v26 }
 0x3ce   : > { %v2972_v31 = vadd.f32 %v2971_v1, %v2909_v3  ;;  %v2912_v3 = vmul.f32 %v8625_v49, %v8625_v49  ;;  %v3224_v58 = vadd.f32 %v3223_v23, %v3161_v28  ;;  %v3164_v28 = vmul.f32 %v8225_v42, %v8225_v42 }
 0x3d0   : > { %v2973_v25 = vadd.f32 %v2972_v31, %v2910_v54  ;;  %v2913_v54 = vmul.f32 %v8633_v37, %v8633_v37  ;;  %v3225_v56 = vadd.f32 %v3224_v58, %v3162_v13  ;;  %v3165_v13 = vmul.f32 %v8229_v47, %v8229_v47  ;;  %v14558_v47 = vld [vmem:[#allocation96_spill] sm:$0xff] }
 0x3d2   : > { %v2974_v1 = vadd.f32 %v2973_v25, %v2911_v38  ;;  %v2914_v38 = vmul.f32 %v8641_v60, %v8641_v60  ;;  %v3226_v23 = vadd.f32 %v3225_v56, %v3163_v2 }
 0x3d4   : > { %v2975_v31 = vadd.f32 %v2974_v1, %v2912_v3  ;;  %v2915_v3 = vmul.f32 %v8649_v50, %v8649_v50  ;;  %v3227_v58 = vadd.f32 %v3226_v23, %v3164_v28  ;;  %v3168_v23 = vmul.f32 %v8241_v30, %v8241_v30 }
 0x3d6   : > { %v2976_v25 = vadd.f32 %v2975_v31, %v2913_v54  ;;  %v3166_v31 = vmul.f32 %v8233_v40, %v8233_v40  ;;  %v3228_v2 = vadd.f32 %v3227_v58, %v3165_v13  ;;  %v3169_v58 = vmul.f32 %v8245_v45, %v8245_v45  ;;  %v14556_v40 = vld [vmem:[#allocation106_spill] sm:$0xff]  ;;  %v14559_v45 = vld [vmem:[#allocation107_spill] sm:$0xff] }
 0x3d8   : > { %v2977_v1 = vadd.f32 %v2976_v25, %v2914_v38  ;;  %v3229_v38 = vadd.f32 %v3228_v2, %v3166_v31  ;;  %v2918_v25 = vmul.f32 %v8000_v52, %v8000_v52  ;;  %v3170_v2 = vmul.f32 %v8249_v18, %v8249_v18 }
 0x3da   : > { %v2978_v54 = vadd.f32 %v2977_v1, %v2915_v3  ;;  %v3230_v3 = vadd.f32 %v3229_v38, %v3167_v59  ;;  %v2919_v1 = vmul.f32 %v8004_v16, %v8004_v16  ;;  %v2921_v59 = vmul.f32 %v14556_v40, %v14556_v40  ;;  %v14557_v38 = vld [vmem:[#allocation29_spill] sm:$0xff] }
 0x3db   : > { %v3171_v30 = vmul.f32 %v14557_v38, %v14557_v38 }
 0x3dc   : > { %v2979_v56 = vadd.f32 %v2978_v54, %v2916_v7  ;;  %v3231_v7 = vadd.f32 %v3230_v3, %v3168_v23  ;;  %v14555_v54 = vld [vmem:[#allocation105_spill] sm:$0xff]  ;;  %v3172_v23 = vmul.f32 %v14558_v47, %v14558_v47 }
 0x3dd   : > { %v2920_v6 = vmul.f32 %v14555_v54, %v14555_v54 }
 0x3de   : > { %v2980_v28 = vadd.f32 %v2979_v56, %v2917_v35  ;;  %v3232_v35 = vadd.f32 %v3231_v7, %v3169_v58  ;;  %v14561_v7 = vld [vmem:[#allocation97_spill] sm:$0xff] }
 0x3e0   : > { %v2981_v13 = vadd.f32 %v2980_v28, %v2918_v25  ;;  %v3233_v25 = vadd.f32 %v3232_v35, %v3170_v2  ;;  %v2923_v2 = vmul.f32 %v14562_v39, %v14562_v39  ;;  %v14563_v35 = vld [vmem:[#allocation31_spill] sm:$0xff] }
 0x3e1   : > { %v14573_v39 = vld [vmem:[#allocation35_spill] sm:$0xff] }
 0x3e2   : > { %v2982_v31 = vadd.f32 %v2981_v13, %v2919_v1  ;;  %v3234_v3 = vadd.f32 %v3233_v25, %v3171_v30  ;;  %v2922_v1 = vmul.f32 %v14559_v45, %v14559_v45  ;;  %v14560_v13 = vld [vmem:[#allocation30_spill] sm:$0xff]  ;;  %v14565_v45 = vld [vmem:[#allocation109_spill] sm:$0xff] }
 0x3e3   : > { %v3173_v18 = vmul.f32 %v14560_v13, %v14560_v13  ;;  %v14564_v25 = vld [vmem:[#allocation98_spill] sm:$0xff] }
 0x3e4   : > { %v2983_v56 = vadd.f32 %v2982_v31, %v2920_v6  ;;  %v3235_v58 = vadd.f32 %v3234_v3, %v3172_v23  ;;  %v3174_v31 = vmul.f32 %v14561_v7, %v14561_v7  ;;  %v3176_v47 = vmul.f32 %v14564_v25, %v14564_v25  ;;  %v14567_v13 = vld [vmem:[#allocation110_spill] sm:$0xff] }
 0x3e5   : > { %v2924_v23 = vmul.f32 %v14565_v45, %v14565_v45  ;;  %v14570_v45 = vld [vmem:[#allocation111_spill] sm:$0xff] }
 0x3e6   : > { %v2984_v28 = vadd.f32 %v2983_v56, %v2921_v59  ;;  %v3236_v42 = vadd.f32 %v3235_v58, %v3173_v18  ;;  %v3175_v56 = vmul.f32 %v14563_v35, %v14563_v35 }
 0x3e8   : > { %v2985_v6 = vadd.f32 %v2984_v28, %v2922_v1  ;;  %v3237_v59 = vadd.f32 %v3236_v42, %v3174_v31  ;;  %v3177_v28 = vmul.f32 %v8277_v61, %v8277_v61  ;;  %v14566_v1 = vld [vmem:[#allocation99_spill] sm:$0xff]  ;;  %v2925_v42 = vmul.f32 %v14567_v13, %v14567_v13 }
 0x3e9   : > { %v3178_v58 = vmul.f32 %v14566_v1, %v14566_v1 }
 0x3ea   : > { %v2986_v30 = vadd.f32 %v2985_v6, %v2923_v2  ;;  %v3238_v38 = vadd.f32 %v3237_v59, %v3175_v56  ;;  %v14568_v6 = vld [vmem:[#allocation33_spill] sm:$0xff]  ;;  %v14569_v59 = vld [vmem:[#allocation75_spill] sm:$0xff] }
 0x3eb   : > { %v3179_v31 = vmul.f32 %v14568_v6, %v14568_v6  ;;  %v3180_v25 = vmul.f32 %v14569_v59, %v14569_v59  ;;  %v14574_v59 = vld [vmem:[#allocation36_spill] sm:$0xff] }
 0x3ec   : > { %v3239_v3 = vadd.f32 %v3238_v38, %v3176_v47  ;;  %v2987_v18 = vadd.f32 %v2986_v30, %v2924_v23  ;;  %v2926_v47 = vmul.f32 %v14570_v45, %v14570_v45  ;;  %v14571_v38 = vld [vmem:[#allocation34_spill] sm:$0xff]  ;;  %v3185_v6 = vmul.f32 %v14574_v59, %v14574_v59 }
 0x3ed   : > { %v3181_v30 = vmul.f32 %v14571_v38, %v14571_v38 }
 0x3ee   : > { %v3240_v7 = vadd.f32 %v3239_v3, %v3177_v28  ;;  %v2988_v56 = vadd.f32 %v2987_v18, %v2925_v42  ;;  %v14572_v3 = vld [vmem:[#allocation80_spill] sm:$0xff]  ;;  %v3184_v42 = vmul.f32 %v8305_v22, %v8305_v22  ;;  %v3188_v22 = vmul.f32 %v8321_v14, %v8321_v14 }
 0x3ef   : > { %v3182_v1 = vmul.f32 %v14572_v3, %v14572_v3 }
 0x3f0   : > { %v3241_v2 = vadd.f32 %v3240_v7, %v3178_v58  ;;  %v2989_v28 = vadd.f32 %v2988_v56, %v2926_v47  ;;  %v3183_v7 = vmul.f32 %v14573_v39, %v14573_v39 }
 0x3f2   : > { %v3242_v35 = vadd.f32 %v3241_v2, %v3179_v31  ;;  %v2990_v58 = vrot.slane %v2989_v28, 4 }
 0x3f4   : > { %v3243_v23 = vadd.f32 %v3242_v35, %v3180_v25  ;;  %v2991_v38 = vadd.f32 %v2990_v58, %v2989_v28  ;;  %v14575_v25 = vld [vmem:[#allocation100_spill] sm:$0xff]  ;;  %v3189_v28 = vmul.f32 %v8325_v46, %v8325_v46 }
 0x3f5   : > { %v3186_v56 = vmul.f32 %v14575_v25, %v14575_v25 }
 0x3f6   : > { %v3244_v61 = vadd.f32 %v3243_v23, %v3181_v30  ;;  %v2992_v47 = vrot.slane %v2991_v38, 2  ;;  %v14576_v23 = vld [vmem:[#allocation37_spill] sm:$0xff] }
 0x3f7   : > { %v3187_v39 = vmul.f32 %v14576_v23, %v14576_v23 }
 0x3f8   : > { %v3245_v18 = vadd.f32 %v3244_v61, %v3182_v1  ;;  %v2993_v61 = vadd.f32 %v2992_v47, %v2991_v38  ;;  %v3191_v38 = vmul.f32 %v8334_v57, %v8334_v57  ;;  %v14578_v47 = vld [vmem:[#allocation39_spill] sm:$0xff] }
 0x3fa   : > { %v3246_v31 = vadd.f32 %v3245_v18, %v3183_v7  ;;  %v2994_v7 = vrot.slane %v2993_v61, 1 }
 0x3fc   : > { %v3247_v2 = vadd.f32 %v3246_v31, %v3184_v42  ;;  %v14577_v42 = vld [vmem:[#allocation38_spill] sm:$0xff] }
 0x3fd   : > { %v3190_v31 = vmul.f32 %v14577_v42, %v14577_v42 }
 0x3fe   : > { %v3248_v35 = vadd.f32 %v3247_v2, %v3185_v6  ;;  %v2995_v6 = vadd.f32 %v2994_v7, %v2993_v61  ;;  %v14580_v61 = vld [vmem:[#allocation142_spill] sm:$0xff] }
 0x3ff   : > { %v3194_v7 = vmul.f32 %v14580_v61, %v14580_v61 }
 0x400   : > { %v3249_v30 = vadd.f32 %v3248_v35, %v3186_v56  ;;  %v2996_v2 = vmul.f32 0.001953125, %v2995_v6 }
 0x402   : > { %v3250_v1 = vadd.f32 %v3249_v30, %v3187_v39  ;;  %v3265_v39 = vadd.f32 1e-05, %v2996_v2  ;;  %v3192_v30 = vmul.f32 %v14578_v47, %v14578_v47 }
 0x404   : > { %v3251_v18 = vadd.f32 %v3250_v1, %v3188_v22  ;;  %6342 = vrsqrt.f32 %v3265_v39  ;;  %v14579_v22 = vld [vmem:[#allocation83_spill] sm:$0xff] }
 0x405   : > { %v3193_v1 = vmul.f32 %v14579_v22, %v14579_v22 }
 0x406   : > { %v3252_v58 = vadd.f32 %v3251_v18, %v3189_v28  ;;  %v3276_v28 = vlaneseq }
 0x408   : > { %v3253_v35 = vadd.f32 %v3252_v58, %v3190_v31  ;;  %v3277_v31 = vshrl.u32 %v3276_v28, 7 }
 0x40a   : > { %v3254_v56 = vadd.f32 %v3253_v35, %v3191_v38  ;;  %v3267_v35 = vld [vmem:[%s8752_s23] sm:$0x1]  ;;  %v8757_v47 = vsub.s32 0, %v3277_v31  ;;  %v14584_v31 = vld [vmem:[#allocation42_spill] sm:$0xff] }
 0x40c   : > { %v3255_v46 = vadd.f32 %v3254_v56, %v3192_v30  ;;  %v3273_v56 = vld [vmem:[%s8752_s23 + $0x1] sm:$0x1]  ;;  %v3274_v30 = vld [vmem:[%s8752_s23 + $0x3] sm:$0x1] }
 0x40d   : > { %v3275_v61 = vadd.f32 %v3274_v30, %v3273_v56  ;;  %v14586_v30 = vld [vmem:[#allocation44_spill] sm:$0xff] }
 0x40e   : > { %v3256_v18 = vadd.f32 %v3255_v46, %v3193_v1  ;;  %v6343_v2 = vpop.eup %6342 }
 0x40f   : > { %v3268_v39 = vmul.f32 %v6343_v2, %v3267_v35  ;;  %v14583_v2 = vld [vmem:[#allocation41_spill] sm:$0xff] }
 0x410   : > { %v3257_v6 = vadd.f32 %v3256_v18, %v3194_v7 }
 0x411   : > { %v8760_v7 = vrot.slane %v3268_v39, %v8757_v47  ;;  %v14585_v39 = vld [vmem:[#allocation43_spill] sm:$0xff] }
 0x412   : > { %v3258_v58 = vrot.slane %v3257_v6, 4 }
 0x413   : > { %v8771_v35 = vmul.f32 %v8760_v7, %v14583_v2  ;;  %v8779_v56 = vmul.f32 %v8760_v7, %v14585_v39  ;;  %v14592_v2 = vld [vmem:[#allocation47_spill] sm:$0xff] }
 0x414   : > { %v3259_v57 = vadd.f32 %v3258_v58, %v3257_v6  ;;  %v8763_v6 = vrot.slane %v3275_v61, %v8757_v47  ;;  %v8767_v58 = vmul.f32 %v8760_v7, %v14570_v45  ;;  %v8783_v61 = vmul.f32 %v8760_v7, %v14586_v30 }
 0x416   : > { %v3260_v38 = vrot.slane %v3259_v57, 2  ;;  %14581 = vst [vmem:[#allocation60_spill] sm:$0xff] %v8763_v6  ;;  %14582 = vst [vmem:[#allocation63_spill] sm:$0xff] %v8767_v58  ;;  %v14596_v58 = vld [vmem:[#allocation112_spill] sm:$0xff] }
 0x417   : > { %14587 = vst [vmem:[#allocation65_spill] sm:$0xff] %v8783_v61  ;;  %v8803_v30 = vmul.f32 %v8760_v7, %v14596_v58  ;;  %v14597_v61 = vld [vmem:[#allocation49_spill] sm:$0xff] }
 0x418   : > { %v3261_v46 = vadd.f32 %v3260_v38, %v3259_v57  ;;  %v8775_v57 = vmul.f32 %v8760_v7, %v14584_v31  ;;  %v8795_v31 = vmul.f32 %v8760_v7, %v14592_v2 }
 0x41a   : > { %v3262_v1 = vrot.slane %v3261_v46, 1  ;;  %14593 = vst [vmem:[#allocation73_spill] sm:$0xff] %v8795_v31  ;;  %v14603_v31 = vld [vmem:[#allocation115_spill] sm:$0xff] }
 0x41c   : > { %v3263_v18 = vadd.f32 %v3262_v1, %v3261_v46  ;;  %v14588_v46 = vld [vmem:[#allocation45_spill] sm:$0xff]  ;;  %v14590_v1 = vld [vmem:[#allocation46_spill] sm:$0xff] }
 0x41d   : > { %v8787_v45 = vmul.f32 %v8760_v7, %v14588_v46  ;;  %v8807_v46 = vmul.f32 %v8760_v7, %v14597_v61 }
 0x41e   : > { %v3264_v28 = vmul.f32 0.001953125, %v3263_v18  ;;  %v8791_v18 = vmul.f32 %v8760_v7, %v14590_v1 }
 0x41f   : > { %14589 = vst [vmem:[#allocation68_spill] sm:$0xff] %v8787_v45  ;;  %14598 = vst [vmem:[#allocation79_spill] sm:$0xff] %v8807_v46  ;;  %v14599_v45 = vld [vmem:[#allocation113_spill] sm:$0xff]  ;;  %v14609_v46 = vld [vmem:[#allocation52_spill] sm:$0xff] }
 0x420   : > { %v3269_v38 = vadd.f32 1e-05, %v3264_v28  ;;  %14591 = vst [vmem:[#allocation70_spill] sm:$0xff] %v8791_v18  ;;  %v14594_v28 = vld [vmem:[#allocation48_spill] sm:$0xff]  ;;  %v8811_v1 = vmul.f32 %v8760_v7, %v14599_v45  ;;  %v14601_v18 = vld [vmem:[#allocation114_spill] sm:$0xff]  ;;  %v8831_v45 = vmul.f32 %v8760_v7, %v14609_v46 }
 0x421   : > { %v8799_v39 = vmul.f32 %v8760_v7, %v14594_v28  ;;  %v8815_v2 = vmul.f32 %v8760_v7, %v14601_v18  ;;  %v8819_v28 = vmul.f32 %v8760_v7, %v14603_v31 }
 0x422   : > { %6344 = vrsqrt.f32 %v3269_v38  ;;  %14600 = vst [vmem:[#allocation82_spill] sm:$0xff] %v8811_v1  ;;  %v14607_v38 = vld [vmem:[#allocation51_spill] sm:$0xff]  ;;  %v14610_v1 = vld [vmem:[#allocation53_spill] sm:$0xff] }
 0x423   : > { %14595 = vst [vmem:[#allocation76_spill] sm:$0xff] %v8799_v39  ;;  %14602 = vst [vmem:[#allocation84_spill] sm:$0xff] %v8815_v2  ;;  %v14605_v39 = vld [vmem:[#allocation50_spill] sm:$0xff]  ;;  %v8827_v61 = vmul.f32 %v8760_v7, %v14607_v38  ;;  %v8835_v18 = vmul.f32 %v8760_v7, %v14610_v1  ;;  %v8855_v1 = vmul.f32 %v8760_v7, %v8403_v27 }
 0x424   : > { %14604 = vst [vmem:[#allocation85_spill] sm:$0xff] %v8819_v28  ;;  %v8823_v58 = vmul.f32 %v8760_v7, %v14605_v39  ;;  %v14611_v2 = vld [vmem:[#allocation54_spill] sm:$0xff]  ;;  %v14612_v28 = vld [vmem:[#allocation55_spill] sm:$0xff]  ;;  %v8875_v27 = vmul.f32 %v8760_v7, %v8441_v29  ;;  %v8895_v29 = vmul.f32 %v8760_v7, %v8481_v33  ;;  %v8915_v33 = vmul.f32 %v8760_v7, %v8521_v43 }
 0x425   : > { %14608 = vst [vmem:[#allocation87_spill] sm:$0xff] %v8827_v61  ;;  %v8839_v31 = vmul.f32 %v8760_v7, %v14611_v2  ;;  %v8843_v39 = vmul.f32 %v8760_v7, %v14612_v28  ;;  %v14614_v61 = vld [vmem:[#allocation58_spill] sm:$0xff]  ;;  %v8859_v2 = vmul.f32 %v8760_v7, %v8409_v63  ;;  %v8863_v28 = vmul.f32 %v8760_v7, %v8417_v12 }
 0x426   : > { %14606 = vst [vmem:[#allocation86_spill] sm:$0xff] %v8823_v58  ;;  %v14613_v58 = vld [vmem:[#allocation56_spill] sm:$0xff]  ;;  %v8851_v46 = vmul.f32 %v8760_v7, %v14614_v61  ;;  %v8871_v61 = vmul.f32 %v8760_v7, %v8433_v41  ;;  %v8879_v63 = vmul.f32 %v8760_v7, %v8449_v0  ;;  %v8883_v12 = vmul.f32 %v8760_v7, %v8457_v11 }
 0x427   : > { %v8847_v38 = vmul.f32 %v8760_v7, %v14613_v58  ;;  %v8867_v58 = vmul.f32 %v8760_v7, %v8425_v48  ;;  %v8887_v48 = vmul.f32 %v8760_v7, %v8465_v20  ;;  %v8891_v41 = vmul.f32 %v8760_v7, %v8473_v15  ;;  %14619 = vst [vmem:[#allocation93_spill] sm:$0xff] %v8895_v29 }
 0x428   : > { %14615 = vst [vmem:[#allocation89_spill] sm:$0xff] %v8879_v63  ;;  %14616 = vst [vmem:[#allocation90_spill] sm:$0xff] %v8883_v12  ;;  %v8899_v0 = vmul.f32 %v8760_v7, %v8489_v34  ;;  %v8903_v11 = vmul.f32 %v8760_v7, %v8497_v32  ;;  %v8907_v20 = vmul.f32 %v8760_v7, %v8505_v24  ;;  %v14703_v63 = vld [vmem:[#allocation26_spill] sm:$0xff] }
 0x429   : > { %14617 = vst [vmem:[#allocation91_spill] sm:$0xff] %v8887_v48  ;;  %14618 = vst [vmem:[#allocation92_spill] sm:$0xff] %v8891_v41  ;;  %v8911_v15 = vmul.f32 %v8760_v7, %v8513_v17  ;;  %v8919_v34 = vmul.f32 %v8760_v7, %v8529_v36  ;;  %v8923_v32 = vmul.f32 %v8760_v7, %v8537_v19 }
 0x42a   : > { %14620 = vst [vmem:[#allocation94_spill] sm:$0xff] %v8899_v0  ;;  %14621 = vst [vmem:[#allocation95_spill] sm:$0xff] %v8903_v11  ;;  %v8927_v24 = vmul.f32 %v8760_v7, %v8545_v4  ;;  %v8931_v17 = vmul.f32 %v8760_v7, %v8553_v44  ;;  %v8936_v43 = vmul.f32 %v8760_v7, %v8561_v21 }
 0x42b   : > { %14622 = vst [vmem:[#allocation18_spill] sm:$0xff] %v8907_v20  ;;  %14623 = vst [vmem:[#allocation57_spill] sm:$0xff] %v8911_v15  ;;  %v3271_v15 = vld [vmem:[%s8752_s23 + $0x2] sm:$0x1]  ;;  %v8940_v36 = vmul.f32 %v8760_v7, %v8569_v5  ;;  %v8944_v19 = vmul.f32 %v8760_v7, %v8577_v10  ;;  %v8948_v4 = vmul.f32 %v8760_v7, %v8585_v62 }
 0x42c   : > { %14624 = vst [vmem:[#allocation19_spill] sm:$0xff] %v8915_v33  ;;  %14625 = vst [vmem:[#allocation61_spill] sm:$0xff] %v8919_v34  ;;  %v8952_v44 = vmul.f32 %v8760_v7, %v8593_v8  ;;  %v8956_v21 = vmul.f32 %v8760_v7, %v8601_v55  ;;  %v8960_v5 = vmul.f32 %v8760_v7, %v8609_v9 }
 0x42d   : > { %14626 = vst [vmem:[#allocation59_spill] sm:$0xff] %v8923_v32  ;;  %14627 = vst [vmem:[#allocation22_spill] sm:$0xff] %v8927_v24  ;;  %v6345_v24 = vpop.eup %6344  ;;  %v8964_v10 = vmul.f32 %v8760_v7, %v8617_v51  ;;  %v8968_v62 = vmul.f32 %v8760_v7, %v8625_v49  ;;  %v8972_v8 = vmul.f32 %v8760_v7, %v8633_v37 }
 0x42e   : > { %14628 = vst [vmem:[#allocation62_spill] sm:$0xff] %v8931_v17  ;;  %14629 = vst [vmem:[#allocation66_spill] sm:$0xff] %v8936_v43  ;;  %v8976_v55 = vmul.f32 %v8760_v7, %v8641_v60  ;;  %v8980_v9 = vmul.f32 %v8760_v7, %v8649_v50  ;;  %v8984_v51 = vmul.f32 %v8760_v7, %v8657_v53  ;;  %v14675_v43 = vld [vmem:[#allocation132_spill] sm:$0xff] }
 0x42f   : > { %14630 = vst [vmem:[#allocation25_spill] sm:$0xff] %v8940_v36  ;;  %14631 = vst [vmem:[#allocation27_spill] sm:$0xff] %v8944_v19  ;;  %v8988_v49 = vmul.f32 %v8760_v7, %v8665_v26  ;;  %v8992_v37 = vmul.f32 %v8760_v7, %v8000_v52  ;;  %v8996_v60 = vmul.f32 %v8760_v7, %v8004_v16  ;;  %v14647_v52 = vld [vmem:[#allocation107_spill] sm:$0xff]  ;;  %v14649_v16 = vld [vmem:[#allocation108_spill] sm:$0xff] }
 0x430   : > { %14632 = vst [vmem:[#allocation69_spill] sm:$0xff] %v8948_v4  ;;  %14633 = vst [vmem:[#allocation74_spill] sm:$0xff] %v8952_v44  ;;  %v9000_v50 = vmul.f32 %v8760_v7, %v14555_v54  ;;  %v3342_v53 = vmul.f32 %v8760_v7, %v14567_v13  ;;  %v9009_v26 = vmul.f32 %v8760_v7, %v14556_v40  ;;  %v14651_v54 = vld [vmem:[#allocation109_spill] sm:$0xff]  ;;  %v14654_v40 = vld [vmem:[#allocation102_spill] sm:$0xff] }
 0x431   : > { %14634 = vst [vmem:[#allocation72_spill] sm:$0xff] %v8956_v21  ;;  %14635 = vst [vmem:[#allocation77_spill] sm:$0xff] %v8960_v5  ;;  %v3272_v21 = vmul.f32 %v6345_v24, %v3271_v15  ;;  %v9013_v24 = vmul.f32 %v8760_v7, %v14647_v52  ;;  %v14655_v52 = vld [vmem:[#allocation103_spill] sm:$0xff] }
 0x432   : > { %14636 = vst [vmem:[#allocation105_spill] sm:$0xff] %v8964_v10  ;;  %14637 = vst [vmem:[#allocation106_spill] sm:$0xff] %v8968_v62 }
 0x433   : > { %14638 = vst [vmem:[#allocation110_spill] sm:$0xff] %v8972_v8  ;;  %14639 = vst [vmem:[#allocation111_spill] sm:$0xff] %v8976_v55  ;;  %v9005_v15 = vrot.slane %v3272_v21, %v8757_v47  ;;  %v14653_v47 = vld [vmem:[#allocation40_spill] sm:$0xff]  ;;  %v14663_v55 = vld [vmem:[#allocation121_spill] sm:$0xff] }
 0x434   : > { %14640 = vst [vmem:[#allocation80_spill] sm:$0xff] %v8980_v9  ;;  %14641 = vst [vmem:[#allocation36_spill] sm:$0xff] %v8984_v51  ;;  %v14661_v51 = vld [vmem:[#allocation119_spill] sm:$0xff]  ;;  %v14662_v9 = vld [vmem:[#allocation120_spill] sm:$0xff] }
 0x435   : > { %14642 = vst [vmem:[#allocation100_spill] sm:$0xff] %v8988_v49  ;;  %14643 = vst [vmem:[#allocation37_spill] sm:$0xff] %v8992_v37  ;;  %v3410_v13 = vmul.f32 %v9005_v15, %v14579_v22  ;;  %v9027_v21 = vmul.f32 %v9005_v15, %v14653_v47  ;;  %v14658_v22 = vld [vmem:[#allocation116_spill] sm:$0xff]  ;;  %v14660_v49 = vld [vmem:[#allocation118_spill] sm:$0xff]  ;;  %v9114_v17 = vmul.f32 %v9005_v15, %v14675_v43 }
 0x436   : > { %14644 = vst [vmem:[#allocation38_spill] sm:$0xff] %v8996_v60  ;;  %14645 = vst [vmem:[#allocation83_spill] sm:$0xff] %v9000_v50  ;;  %v9017_v60 = vmul.f32 %v8760_v7, %v14649_v16  ;;  %v9021_v50 = vmul.f32 %v8760_v7, %v14651_v54  ;;  %v14656_v16 = vld [vmem:[#allocation104_spill] sm:$0xff]  ;;  %v9047_v47 = vmul.f32 %v9005_v15, %v14658_v22  ;;  %v14664_v8 = vld [vmem:[#allocation122_spill] sm:$0xff] }
 0x437   : > { %14646 = vst [vmem:[#allocation41_spill] sm:$0xff] %v9009_v26  ;;  %14648 = vst [vmem:[#allocation42_spill] sm:$0xff] %v9013_v24  ;;  %v9031_v26 = vmul.f32 %v9005_v15, %v14654_v40  ;;  %v9035_v24 = vmul.f32 %v9005_v15, %v14655_v52  ;;  %v14657_v7 = vld [vmem:[#allocation88_spill] sm:$0xff]  ;;  %v3474_v37 = vadd.f32 %v3410_v13, %v3342_v53  ;;  %v14665_v53 = vld [vmem:[#allocation123_spill] sm:$0xff] }
 0x438   : > { %14650 = vst [vmem:[#allocation43_spill] sm:$0xff] %v9017_v60  ;;  %14652 = vst [vmem:[#allocation44_spill] sm:$0xff] %v9021_v50  ;;  %v9039_v60 = vmul.f32 %v9005_v15, %v14656_v16  ;;  %v9043_v54 = vmul.f32 %v9005_v15, %v14657_v7  ;;  %v14659_v50 = vld [vmem:[#allocation117_spill] sm:$0xff]  ;;  %v9055_v52 = vmul.f32 %v9005_v15, %v14660_v49  ;;  %v14666_v13 = vld [vmem:[#allocation124_spill] sm:$0xff] }
 0x439   : > { %v9051_v40 = vmul.f32 %v9005_v15, %v14659_v50  ;;  %v9059_v16 = vmul.f32 %v9005_v15, %v14661_v51  ;;  %v9063_v7 = vmul.f32 %v9005_v15, %v14662_v9  ;;  %v9067_v22 = vmul.f32 %v9005_v15, %v14663_v55  ;;  %v14667_v9 = vld [vmem:[#allocation125_spill] sm:$0xff]  ;;  %v14668_v55 = vld [vmem:[#allocation126_spill] sm:$0xff] }
 0x43a   : > { %v9071_v50 = vmul.f32 %v9005_v15, %v14664_v8  ;;  %v9075_v49 = vmul.f32 %v9005_v15, %v14665_v53  ;;  %v9079_v51 = vmul.f32 %v9005_v15, %v14666_v13  ;;  %v3542_v62 = vadd.f32 %v8763_v6, %v3474_v37  ;;  %v14669_v8 = vld [vmem:[#allocation127_spill] sm:$0xff]  ;;  %v14670_v53 = vld [vmem:[#allocation128_spill] sm:$0xff]  ;;  %v14671_v13 = vld [vmem:[#allocation129_spill] sm:$0xff] }
 0x43b   : > { %v9084_v10 = vmul.f32 %v9005_v15, %v14667_v9  ;;  %v9088_v5 = vmul.f32 %v9005_v15, %v14668_v55  ;;  %v9092_v44 = vmul.f32 %v9005_v15, %v14669_v8  ;;  %v9096_v4 = vmul.f32 %v9005_v15, %v14670_v53  ;;  %v14672_v37 = vld [vmem:[#allocation130_spill] sm:$0xff]  ;;  %v14673_v6 = vld [vmem:[#allocation131_spill] sm:$0xff]  ;;  %v14676_v53 = vld [vmem:[#allocation133_spill] sm:$0xff] }
 0x43c   : > { %v9100_v19 = vmul.f32 %v9005_v15, %v14671_v13  ;;  %v9104_v9 = vmul.f32 %v9005_v15, %v14672_v37  ;;  %v9108_v55 = vmul.f32 %v9005_v15, %v14673_v6  ;;  %v9110_v36 = vmul.f32 0.5, %v3542_v62  ;;  %v14677_v13 = vld [vmem:[#allocation134_spill] sm:$0xff]  ;;  %v14678_v37 = vld [vmem:[#allocation135_spill] sm:$0xff]  ;;  %v14679_v6 = vld [vmem:[#allocation136_spill] sm:$0xff] }
 0x43d   : > { %v3670_v8 = vmul.f32 0.70710677, %v3542_v62  ;;  %v9118_v32 = vmul.f32 %v9005_v15, %v14676_v53  ;;  %v9122_v34 = vmul.f32 %v9005_v15, %v14677_v13  ;;  %v9126_v33 = vmul.f32 %v9005_v15, %v14678_v37  ;;  %v14680_v62 = vld [vmem:[#allocation20_spill] sm:$0xff]  ;;  %v14682_v53 = vld [vmem:[#allocation137_spill] sm:$0xff] }
 0x43e   : > { %14674 = vst [vmem:[#allocation45_spill] sm:$0xff] %v9110_v36  ;;  %v9130_v36 = vmul.f32 %v9005_v15, %v14679_v6  ;;  %v9134_v43 = vmul.f32 %v9005_v15, %v14680_v62  ;;  %v9138_v11 = vmul.f32 %v9005_v15, %v14682_v53  ;;  %v14684_v13 = vld [vmem:[#allocation21_spill] sm:$0xff]  ;;  %v13908_v37 = vmov -1.0   ;;  %v14687_v6 = vld [vmem:[#allocation138_spill] sm:$0xff]  ;;  %v14689_v62 = vld [vmem:[#allocation139_spill] sm:$0xff] }
 0x43f   : > { %vm3734_vm1 = vcmp.ge.f32.partialorder %v3670_v8, 0.0  ;;  %v3862_v20 = vand.u32 2147483647, %v3670_v8  ;;  %v9142_v0 = vmul.f32 %v9005_v15, %v14684_v13  ;;  %v9149_v41 = vmul.f32 %v9005_v15, %v14687_v6  ;;  %v14691_v8 = vld [vmem:[#allocation140_spill] sm:$0xff]  ;;  %v14693_v13 = vld [vmem:[#allocation23_spill] sm:$0xff] }
 0x440   : > { %14681 = vst [vmem:[#allocation46_spill] sm:$0xff] %v9134_v43  ;;  %14683 = vst [vmem:[#allocation47_spill] sm:$0xff] %v9138_v11  ;;  %v9145_v29 = vsel %vm3734_vm1, 1.0, %v13908_v37  ;;  %v9153_v48 = vmul.f32 %v9005_v15, %v14689_v62  ;;  %v9157_v53 = vmul.f32 %v9005_v15, %v14691_v8  ;;  %v14695_v37 = vld [vmem:[#allocation141_spill] sm:$0xff]  ;;  %v14697_v6 = vld [vmem:[#allocation64_spill] sm:$0xff] }
 0x441   : > { %14685 = vst [vmem:[#allocation48_spill] sm:$0xff] %v9142_v0  ;;  %14686 = vst [vmem:[#allocation112_spill] sm:$0xff] %v9145_v29  ;;  %v3926_v12 = vmul.f32 0.3275911, %v3862_v20  ;;  %v4758_v11 = vsub.f32 0.0, %v3862_v20  ;;  %v9161_v0 = vmul.f32 %v9005_v15, %v14693_v13  ;;  %v9165_v29 = vmul.f32 %v9005_v15, %v14695_v37  ;;  %v14699_v62 = vld [vmem:[#allocation24_spill] sm:$0xff] }
 0x442   : > { %14688 = vst [vmem:[#allocation49_spill] sm:$0xff] %v9149_v41  ;;  %14690 = vst [vmem:[#allocation113_spill] sm:$0xff] %v9153_v48  ;;  %v9169_v41 = vmul.f32 %v9005_v15, %v14697_v6  ;;  %v9173_v48 = vmul.f32 %v9005_v15, %v14699_v62  ;;  %v14701_v8 = vld [vmem:[#allocation67_spill] sm:$0xff]  ;;  %v9181_v13 = vmul.f32 %v9005_v15, %v14703_v63  ;;  %v14704_v37 = vld [vmem:[#allocation28_spill] sm:$0xff] }
 0x443   : > { %14692 = vst [vmem:[#allocation114_spill] sm:$0xff] %v9157_v53  ;;  %14694 = vst [vmem:[#allocation115_spill] sm:$0xff] %v9161_v0  ;;  %v9177_v53 = vmul.f32 %v9005_v15, %v14701_v8  ;;  %v3990_v0 = vadd.f32 1.0, %v3926_v12  ;;  %v4822_v43 = vmul.f32 %v4758_v11, %v3862_v20  ;;  %v14705_v6 = vld [vmem:[#allocation71_spill] sm:$0xff]  ;;  %v14707_v62 = vld [vmem:[#allocation29_spill] sm:$0xff] }
 0x444   : > { %14696 = vst [vmem:[#allocation50_spill] sm:$0xff] %v9165_v29  ;;  %14698 = vst [vmem:[#allocation51_spill] sm:$0xff] %v9169_v41  ;;  %v9185_v29 = vmul.f32 %v9005_v15, %v14704_v37  ;;  %v9189_v41 = vmul.f32 %v9005_v15, %v14705_v6  ;;  %v14709_v8 = vld [vmem:[#allocation96_spill] sm:$0xff]  ;;  %v14711_v63 = vld [vmem:[#allocation30_spill] sm:$0xff] }
 0x445   : > { %14700 = vst [vmem:[#allocation52_spill] sm:$0xff] %v9173_v48  ;;  %14702 = vst [vmem:[#allocation53_spill] sm:$0xff] %v9177_v53  ;;  %v9193_v48 = vmul.f32 %v9005_v15, %v14707_v62  ;;  %v9197_v53 = vmul.f32 %v9005_v15, %v14709_v8  ;;  %v9201_v12 = vmul.f32 %v9005_v15, %v14711_v63  ;;  %v14713_v11 = vld [vmem:[#allocation97_spill] sm:$0xff]  ;;  %6346 = vrcp.f32 %v3990_v0  ;;  %v14714_v6 = vld [vmem:[#allocation31_spill] sm:$0xff] }
 0x446   : > { %14706 = vst [vmem:[#allocation54_spill] sm:$0xff] %v9189_v41  ;;  %v9205_v20 = vmul.f32 %v9005_v15, %v14713_v11  ;;  %v4948_v37 = vmul.f32 1.442695, %v4822_v43  ;;  %v9209_v41 = vmul.f32 %v9005_v15, %v14714_v6  ;;  %v14716_v62 = vld [vmem:[#allocation98_spill] sm:$0xff]  ;;  %v14717_v8 = vld [vmem:[#allocation32_spill] sm:$0xff]  ;;  %v14719_v63 = vld [vmem:[#allocation99_spill] sm:$0xff] }
 0x447   : > { %14708 = vst [vmem:[#allocation55_spill] sm:$0xff] %v9193_v48  ;;  %14710 = vst [vmem:[#allocation56_spill] sm:$0xff] %v9197_v53  ;;  %v9213_v48 = vmul.f32 %v9005_v15, %v14716_v62  ;;  %v9217_v53 = vmul.f32 %v9005_v15, %v14717_v8  ;;  %v14721_v11 = vld [vmem:[#allocation33_spill] sm:$0xff]  ;;  %v14722_v43 = vld [vmem:[#allocation75_spill] sm:$0xff]  ;;  %v9237_v8 = vmul.f32 %v9005_v15, %v14572_v3 }
 0x448   : > { %14712 = vst [vmem:[#allocation58_spill] sm:$0xff] %v9201_v12  ;;  %14715 = vst [vmem:[#allocation107_spill] sm:$0xff] %v9209_v41  ;;  %v9221_v12 = vmul.f32 %v9005_v15, %v14719_v63  ;;  %v9225_v0 = vmul.f32 %v9005_v15, %v14721_v11  ;;  %v9229_v6 = vmul.f32 %v9005_v15, %v14722_v43  ;;  %6348 = vpow2.f32 %v4948_v37  ;;  %v14723_v41 = vld [vmem:[#allocation34_spill] sm:$0xff]  ;;  %v14729_v37 = vld [vmem:[#allocation81_spill] sm:$0xff] }
 0x449   : > { %14718 = vst [vmem:[#allocation108_spill] sm:$0xff] %v9217_v53  ;;  %v9233_v62 = vmul.f32 %v9005_v15, %v14723_v41  ;;  %v14724_v53 = vld [vmem:[#allocation35_spill] sm:$0xff]  ;;  %v9249_v43 = vmul.f32 %v9005_v15, %v14574_v59  ;;  %v9253_v41 = vmul.f32 %v9005_v15, %v14575_v25  ;;  %v9257_v3 = vmul.f32 %v9005_v15, %v14576_v23 }
 0x44a   : > { %14720 = vst [vmem:[#allocation109_spill] sm:$0xff] %v9221_v12  ;;  %v9241_v63 = vmul.f32 %v9005_v15, %v14724_v53  ;;  %v14725_v12 = vld [vmem:[#allocation78_spill] sm:$0xff]  ;;  %v9261_v53 = vmul.f32 %v9005_v15, %v8321_v14  ;;  %v9269_v59 = vmul.f32 %v9005_v15, %v14577_v42  ;;  %v9289_v42 = vadd.f32 %v9031_v26, %v8775_v57  ;;  %v14739_v26 = vld [vmem:[#allocation76_spill] sm:$0xff] }
 0x44b   : > { %v9245_v11 = vmul.f32 %v9005_v15, %v14725_v12  ;;  %14726 = vst [vmem:[#allocation40_spill] sm:$0xff] %v9249_v43  ;;  %14727 = vst [vmem:[#allocation102_spill] sm:$0xff] %v9253_v41  ;;  %v9265_v12 = vmul.f32 %v9005_v15, %v14729_v37  ;;  %v14730_v43 = vld [vmem:[#allocation101_spill] sm:$0xff]  ;;  %v14732_v41 = vld [vmem:[#allocation39_spill] sm:$0xff]  ;;  %v9285_v37 = vadd.f32 %v9027_v21, %v8771_v35 }
 0x44c   : > { %14728 = vst [vmem:[#allocation103_spill] sm:$0xff] %v9257_v3  ;;  %v9273_v25 = vmul.f32 %v9005_v15, %v14730_v43  ;;  %v9277_v23 = vmul.f32 %v9005_v15, %v14732_v41  ;;  %v14734_v3 = vld [vmem:[#allocation142_spill] sm:$0xff]  ;;  %v9293_v43 = vadd.f32 %v9035_v24, %v8779_v56  ;;  %v14738_v21 = vld [vmem:[#allocation73_spill] sm:$0xff]  ;;  %v9313_v56 = vadd.f32 %v9055_v52, %v14739_v26  ;;  %v14740_v24 = vld [vmem:[#allocation79_spill] sm:$0xff] }
 0x44d   : > { %v9281_v14 = vmul.f32 %v9005_v15, %v14734_v3  ;;  %v14737_v3 = vld [vmem:[#allocation70_spill] sm:$0xff]  ;;  %v9309_v57 = vadd.f32 %v9051_v40, %v14738_v21 }
 0x44e   : > { %14731 = vst [vmem:[#allocation104_spill] sm:$0xff] %v9273_v25  ;;  %14733 = vst [vmem:[#allocation88_spill] sm:$0xff] %v9277_v23  ;;  %v14735_v25 = vld [vmem:[#allocation65_spill] sm:$0xff]  ;;  %v14736_v23 = vld [vmem:[#allocation68_spill] sm:$0xff]  ;;  %v9305_v35 = vadd.f32 %v9047_v47, %v14737_v3 }
 0x44f   : > { %v9297_v41 = vadd.f32 %v9039_v60, %v14735_v25  ;;  %v9301_v15 = vadd.f32 %v9043_v54, %v14736_v23  ;;  %v9317_v60 = vadd.f32 %v9059_v16, %v8803_v30  ;;  %v9321_v54 = vadd.f32 %v9063_v7, %v14740_v24  ;;  %v14741_v25 = vld [vmem:[#allocation82_spill] sm:$0xff]  ;;  %v14742_v23 = vld [vmem:[#allocation84_spill] sm:$0xff]  ;;  %v14743_v3 = vld [vmem:[#allocation85_spill] sm:$0xff]  ;;  %v9355_v26 = vpop.eup %6346 }
 0x450   : > { %v9325_v47 = vadd.f32 %v9067_v22, %v14741_v25  ;;  %v9329_v40 = vadd.f32 %v9071_v50, %v14742_v23  ;;  %v9333_v52 = vadd.f32 %v9075_v49, %v14743_v3  ;;  %v14744_v21 = vld [vmem:[#allocation86_spill] sm:$0xff]  ;;  %v14745_v16 = vld [vmem:[#allocation87_spill] sm:$0xff]  ;;  %v9345_v22 = vadd.f32 %v9088_v5, %v8831_v45  ;;  %v14753_v24 = vld [vmem:[#allocation92_spill] sm:$0xff] }
 0x451   : > { %v9337_v30 = vadd.f32 %v9079_v51, %v14744_v21  ;;  %v9341_v7 = vadd.f32 %v9084_v10, %v14745_v16  ;;  %v9349_v50 = vadd.f32 %v9092_v44, %v8835_v18  ;;  %v9353_v49 = vadd.f32 %v9096_v4, %v8839_v31  ;;  %v14755_v25 = vld [vmem:[#allocation93_spill] sm:$0xff]  ;;  %v14758_v3 = vld [vmem:[#allocation94_spill] sm:$0xff]  ;;  %v14759_v21 = vld [vmem:[#allocation115_spill] sm:$0xff] }
 0x452   : > { %v9359_v51 = vadd.f32 %v9100_v19, %v8843_v39  ;;  %v9363_v10 = vadd.f32 %v9104_v9, %v8847_v38  ;;  %v9367_v45 = vadd.f32 %v9108_v55, %v8851_v46  ;;  %v9371_v18 = vadd.f32 %v9114_v17, %v8855_v1  ;;  %v9386_v46 = vpop.eup %6348  ;;  %v14746_v17 = vld [vmem:[#allocation46_spill] sm:$0xff]  ;;  %v14752_v9 = vld [vmem:[#allocation49_spill] sm:$0xff] }
 0x453   : > { %v4182_v31 = vmul.f32 1.0614054, %v9355_v26  ;;  %v9376_v4 = vadd.f32 %v9118_v32, %v8859_v2  ;;  %v9380_v39 = vadd.f32 %v9122_v34, %v8863_v28  ;;  %v9384_v38 = vadd.f32 %v9126_v33, %v8867_v58  ;;  %v14747_v2 = vld [vmem:[#allocation89_spill] sm:$0xff]  ;;  %v14748_v32 = vld [vmem:[#allocation47_spill] sm:$0xff]  ;;  %v14749_v28 = vld [vmem:[#allocation90_spill] sm:$0xff] }
 0x454   : > { %v9390_v1 = vadd.f32 %v9130_v36, %v8871_v61  ;;  %v9394_v19 = vadd.f32 %v14746_v17, %v8875_v27  ;;  %v9398_v44 = vadd.f32 %v14748_v32, %v14747_v2  ;;  %v14750_v34 = vld [vmem:[#allocation48_spill] sm:$0xff]  ;;  %v14751_v33 = vld [vmem:[#allocation91_spill] sm:$0xff]  ;;  %v14754_v61 = vld [vmem:[#allocation113_spill] sm:$0xff]  ;;  %v9418_v16 = vadd.f32 %v14759_v21, %v14758_v3 }
 0x455   : > { %v9402_v5 = vadd.f32 %v14750_v34, %v14749_v28  ;;  %v4246_v58 = vadd.f32 -1.4531521, %v4182_v31  ;;  %v9406_v55 = vadd.f32 %v14752_v9, %v14751_v33  ;;  %v9410_v36 = vadd.f32 %v14754_v61, %v14753_v24  ;;  %v14756_v27 = vld [vmem:[#allocation114_spill] sm:$0xff]  ;;  %v14760_v17 = vld [vmem:[#allocation95_spill] sm:$0xff]  ;;  %v14766_v33 = vld [vmem:[#allocation57_spill] sm:$0xff] }
 0x456   : > { %v9414_v23 = vadd.f32 %v14756_v27, %v14755_v25  ;;  %v14761_v2 = vld [vmem:[#allocation50_spill] sm:$0xff]  ;;  %v14764_v28 = vld [vmem:[#allocation51_spill] sm:$0xff]  ;;  %v14767_v9 = vld [vmem:[#allocation52_spill] sm:$0xff] }
 0x457   : > { %v9422_v32 = vadd.f32 %v14761_v2, %v14760_v17  ;;  %v14763_v31 = vld [vmem:[#allocation18_spill] sm:$0xff]  ;;  %v9430_v24 = vadd.f32 %v14767_v9, %v14766_v33  ;;  %v4310_v61 = vmul.f32 %v9355_v26, %v4246_v58  ;;  %v14769_v25 = vld [vmem:[#allocation19_spill] sm:$0xff]  ;;  %v14770_v27 = vld [vmem:[#allocation53_spill] sm:$0xff] }
 0x458   : > { %14757 = vst [vmem:[#allocation116_spill] sm:$0xff] %v9414_v23  ;;  %v9426_v34 = vadd.f32 %v14764_v28, %v14763_v31  ;;  %v9435_v23 = vadd.f32 %v14770_v27, %v14769_v25  ;;  %v14772_v3 = vld [vmem:[#allocation61_spill] sm:$0xff]  ;;  %v14774_v17 = vld [vmem:[#allocation59_spill] sm:$0xff]  ;;  %v14775_v31 = vld [vmem:[#allocation22_spill] sm:$0xff] }
 0x459   : > { %14762 = vst [vmem:[#allocation117_spill] sm:$0xff] %v9422_v32  ;;  %14768 = vst [vmem:[#allocation119_spill] sm:$0xff] %v9430_v24  ;;  %v9439_v21 = vadd.f32 %v9181_v13, %v14772_v3  ;;  %v9443_v2 = vadd.f32 %v9185_v29, %v14774_v17  ;;  %v14776_v28 = vld [vmem:[#allocation54_spill] sm:$0xff]  ;;  %v14779_v9 = vld [vmem:[#allocation55_spill] sm:$0xff]  ;;  %v4374_v3 = vadd.f32 1.4214138, %v4310_v61 }
 0x45a   : > { %14765 = vst [vmem:[#allocation118_spill] sm:$0xff] %v9426_v34  ;;  %14771 = vst [vmem:[#allocation120_spill] sm:$0xff] %v9435_v23  ;;  %v9447_v34 = vadd.f32 %v14776_v28, %v14775_v31  ;;  %v14778_v33 = vld [vmem:[#allocation62_spill] sm:$0xff]  ;;  %v14781_v32 = vld [vmem:[#allocation56_spill] sm:$0xff] }
 0x45b   : > { %14773 = vst [vmem:[#allocation121_spill] sm:$0xff] %v9439_v21  ;;  %v9451_v24 = vadd.f32 %v14779_v9, %v14778_v33  ;;  %v14780_v58 = vld [vmem:[#allocation66_spill] sm:$0xff]  ;;  %v14783_v27 = vld [vmem:[#allocation25_spill] sm:$0xff]  ;;  %v14785_v21 = vld [vmem:[#allocation27_spill] sm:$0xff] }
 0x45c   : > { %14777 = vst [vmem:[#allocation122_spill] sm:$0xff] %v9447_v34  ;;  %v9455_v25 = vadd.f32 %v14781_v32, %v14780_v58  ;;  %v14784_v23 = vld [vmem:[#allocation58_spill] sm:$0xff]  ;;  %v9463_v29 = vadd.f32 %v9205_v20, %v14785_v21  ;;  %v14786_v17 = vld [vmem:[#allocation69_spill] sm:$0xff]  ;;  %v14787_v31 = vld [vmem:[#allocation107_spill] sm:$0xff] }
 0x45d   : > { %v9459_v13 = vadd.f32 %v14784_v23, %v14783_v27  ;;  %v9467_v28 = vadd.f32 %v14787_v31, %v14786_v17  ;;  %v14788_v34 = vld [vmem:[#allocation74_spill] sm:$0xff]  ;;  %v14789_v9 = vld [vmem:[#allocation72_spill] sm:$0xff]  ;;  %v14792_v23 = vld [vmem:[#allocation109_spill] sm:$0xff]  ;;  %v4438_v31 = vmul.f32 %v9355_v26, %v4374_v3 }
 0x45e   : > { %14782 = vst [vmem:[#allocation123_spill] sm:$0xff] %v9455_v25  ;;  %v9471_v33 = vadd.f32 %v9213_v48, %v14788_v34  ;;  %v14790_v32 = vld [vmem:[#allocation108_spill] sm:$0xff]  ;;  %v14791_v25 = vld [vmem:[#allocation77_spill] sm:$0xff]  ;;  %v14795_v21 = vld [vmem:[#allocation106_spill] sm:$0xff] }
 0x45f   : > { %v9475_v58 = vadd.f32 %v14790_v32, %v14789_v9  ;;  %v9479_v27 = vadd.f32 %v14792_v23, %v14791_v25  ;;  %v14793_v61 = vld [vmem:[#allocation105_spill] sm:$0xff]  ;;  %v9487_v17 = vadd.f32 %v9229_v6, %v14795_v21  ;;  %v14797_v48 = vld [vmem:[#allocation110_spill] sm:$0xff]  ;;  %v14799_v9 = vld [vmem:[#allocation111_spill] sm:$0xff] }
 0x460   : > { %v9483_v20 = vadd.f32 %v9225_v0, %v14793_v61  ;;  %v9492_v34 = vadd.f32 %v9233_v62, %v14797_v48  ;;  %v9496_v32 = vadd.f32 %v9237_v8, %v14799_v9  ;;  %v14801_v25 = vld [vmem:[#allocation80_spill] sm:$0xff]  ;;  %v14805_v3 = vld [vmem:[#allocation37_spill] sm:$0xff]  ;;  %v14808_v48 = vld [vmem:[#allocation38_spill] sm:$0xff]  ;;  %v4502_v9 = vadd.f32 -0.28449672, %v4438_v31 }
 0x461   : > { %14796 = vst [vmem:[#allocation125_spill] sm:$0xff] %v9487_v17  ;;  %v9500_v23 = vadd.f32 %v9241_v63, %v14801_v25  ;;  %v14802_v0 = vld [vmem:[#allocation36_spill] sm:$0xff]  ;;  %v14811_v25 = vld [vmem:[#allocation41_spill] sm:$0xff]  ;;  %v14817_v31 = vld [vmem:[#allocation63_spill] sm:$0xff] }
 0x462   : > { %14794 = vst [vmem:[#allocation124_spill] sm:$0xff] %v9483_v20  ;;  %14798 = vst [vmem:[#allocation126_spill] sm:$0xff] %v9492_v34  ;;  %v9504_v61 = vadd.f32 %v9245_v11, %v14802_v0  ;;  %v14803_v6 = vld [vmem:[#allocation100_spill] sm:$0xff]  ;;  %v14806_v20 = vld [vmem:[#allocation102_spill] sm:$0xff]  ;;  %v9524_v11 = vadd.f32 %v9265_v12, %v14811_v25  ;;  %v4566_v25 = vmul.f32 %v9355_v26, %v4502_v9 }
 0x463   : > { %14800 = vst [vmem:[#allocation127_spill] sm:$0xff] %v9496_v32  ;;  %v14804_v21 = vld [vmem:[#allocation40_spill] sm:$0xff]  ;;  %v9512_v62 = vadd.f32 %v14806_v20, %v14805_v3  ;;  %v14809_v34 = vld [vmem:[#allocation103_spill] sm:$0xff]  ;;  %v14812_v0 = vld [vmem:[#allocation42_spill] sm:$0xff] }
 0x464   : > { %v9508_v17 = vadd.f32 %v14804_v21, %v14803_v6  ;;  %v9516_v8 = vadd.f32 %v14809_v34, %v14808_v48  ;;  %v14810_v32 = vld [vmem:[#allocation83_spill] sm:$0xff]  ;;  %v9528_v6 = vadd.f32 %v9269_v59, %v14812_v0  ;;  %v14814_v20 = vld [vmem:[#allocation104_spill] sm:$0xff]  ;;  %v4630_v9 = vadd.f32 0.2548296, %v4566_v25 }
 0x465   : > { %14807 = vst [vmem:[#allocation128_spill] sm:$0xff] %v9512_v62  ;;  %v9520_v63 = vadd.f32 %v9261_v53, %v14810_v32  ;;  %v14813_v21 = vld [vmem:[#allocation43_spill] sm:$0xff]  ;;  %v14815_v62 = vld [vmem:[#allocation44_spill] sm:$0xff]  ;;  %v9540_v53 = vadd.f32 %v9281_v14, %v14817_v31  ;;  %v14823_v31 = vld [vmem:[#allocation118_spill] sm:$0xff] }
 0x466   : > { %v9532_v3 = vadd.f32 %v14814_v20, %v14813_v21  ;;  %v14816_v34 = vld [vmem:[#allocation88_spill] sm:$0xff]  ;;  %v4694_v21 = vmul.f32 %v9355_v26, %v4630_v9  ;;  %v14825_v25 = vld [vmem:[#allocation119_spill] sm:$0xff] }
 0x467   : > { %v9536_v48 = vadd.f32 %v14816_v34, %v14815_v62  ;;  %v14818_v32 = vld [vmem:[#allocation60_spill] sm:$0xff]  ;;  %v14822_v34 = vld [vmem:[#allocation117_spill] sm:$0xff] }
 0x468   : > { %v9544_v12 = vadd.f32 %v14818_v32, %v9285_v37  ;;  %v9549_v59 = vadd.f32 %v14818_v32, %v9289_v42  ;;  %v9553_v0 = vadd.f32 %v14818_v32, %v9293_v43  ;;  %v9557_v62 = vadd.f32 %v14818_v32, %v9297_v41  ;;  %v14820_v20 = vld [vmem:[#allocation116_spill] sm:$0xff] }
 0x469   : > { %v9561_v14 = vadd.f32 %v14818_v32, %v9301_v15  ;;  %v9565_v37 = vadd.f32 %v14818_v32, %v9305_v35  ;;  %v9569_v42 = vadd.f32 %v14818_v32, %v9309_v57  ;;  %v9573_v43 = vadd.f32 %v14818_v32, %v9313_v56  ;;  %v14827_v9 = vld [vmem:[#allocation112_spill] sm:$0xff] }
 0x46a   : > { %v9577_v41 = vadd.f32 %v14818_v32, %v9317_v60  ;;  %v9581_v15 = vadd.f32 %v14818_v32, %v9321_v54  ;;  %v9585_v35 = vadd.f32 %v14818_v32, %v9325_v47  ;;  %v9589_v57 = vadd.f32 %v14818_v32, %v9329_v40 }
 0x46b   : > { %v9593_v56 = vadd.f32 %v14818_v32, %v9333_v52  ;;  %v9597_v60 = vadd.f32 %v14818_v32, %v9337_v30  ;;  %v9601_v54 = vadd.f32 %v14818_v32, %v9341_v7  ;;  %v9606_v47 = vadd.f32 %v14818_v32, %v9345_v22 }
 0x46c   : > { %v9610_v40 = vadd.f32 %v14818_v32, %v9349_v50  ;;  %v9614_v52 = vadd.f32 %v14818_v32, %v9353_v49  ;;  %v9618_v30 = vadd.f32 %v14818_v32, %v9359_v51  ;;  %v9622_v7 = vadd.f32 %v14818_v32, %v9363_v10 }
 0x46d   : > { %v9626_v22 = vadd.f32 %v14818_v32, %v9367_v45  ;;  %v9630_v50 = vadd.f32 %v14818_v32, %v9371_v18  ;;  %v5014_v26 = vmul.f32 %v9386_v46, %v4694_v21  ;;  %v9635_v49 = vadd.f32 %v14818_v32, %v9376_v4 }
 0x46e   : > { %v9639_v51 = vadd.f32 %v14818_v32, %v9380_v39  ;;  %v9643_v10 = vadd.f32 %v14818_v32, %v9384_v38  ;;  %v9647_v45 = vadd.f32 %v14818_v32, %v9390_v1  ;;  %v9651_v18 = vadd.f32 %v14818_v32, %v9394_v19 }
 0x46f   : > { %v9655_v4 = vadd.f32 %v14818_v32, %v9398_v44  ;;  %v9659_v39 = vadd.f32 %v14818_v32, %v9402_v5  ;;  %v5078_v46 = vsub.f32 1.0, %v5014_v26  ;;  %v9663_v38 = vadd.f32 %v14818_v32, %v9406_v55  ;;  %v14828_v26 = vld [vmem:[#allocation120_spill] sm:$0xff] }
 0x470   : > { %v9667_v1 = vadd.f32 %v14818_v32, %v9410_v36  ;;  %v9671_v19 = vadd.f32 %v14818_v32, %v14820_v20  ;;  %v9675_v44 = vadd.f32 %v14818_v32, %v9418_v16  ;;  %v9679_v5 = vadd.f32 %v14818_v32, %v14822_v34  ;;  %v14830_v16 = vld [vmem:[#allocation121_spill] sm:$0xff] }
 0x471   : > { %14819 = vst [vmem:[#allocation129_spill] sm:$0xff] %v9655_v4  ;;  %v9683_v55 = vadd.f32 %v14818_v32, %v14823_v31  ;;  %v9687_v36 = vadd.f32 %v14818_v32, %v14825_v25  ;;  %v5142_v21 = vmul.f32 %v5078_v46, %v14827_v9  ;;  %v9693_v20 = vadd.f32 %v14818_v32, %v14828_v26  ;;  %v14833_v31 = vld [vmem:[#allocation122_spill] sm:$0xff]  ;;  %v14835_v46 = vld [vmem:[#allocation123_spill] sm:$0xff] }
 0x472   : > { %14821 = vst [vmem:[#allocation130_spill] sm:$0xff] %v9675_v44  ;;  %v9697_v44 = vadd.f32 %v14818_v32, %v14830_v16  ;;  %v9701_v34 = vadd.f32 %v14818_v32, %v9443_v2  ;;  %v9709_v25 = vadd.f32 %v14818_v32, %v9451_v24  ;;  %v9713_v9 = vadd.f32 %v14818_v32, %v14835_v46 }
 0x473   : > { %14824 = vst [vmem:[#allocation131_spill] sm:$0xff] %v9683_v55  ;;  %14826 = vst [vmem:[#allocation132_spill] sm:$0xff] %v9687_v36  ;;  %v9705_v55 = vadd.f32 %v14818_v32, %v14833_v31  ;;  %v9717_v26 = vadd.f32 %v14818_v32, %v9459_v13  ;;  %v5206_v16 = vadd.f32 1.0, %v5142_v21  ;;  %v9721_v2 = vadd.f32 %v14818_v32, %v9463_v29  ;;  %v14841_v21 = vld [vmem:[#allocation124_spill] sm:$0xff] }
 0x474   : > { %14829 = vst [vmem:[#allocation133_spill] sm:$0xff] %v9693_v20  ;;  %14831 = vst [vmem:[#allocation134_spill] sm:$0xff] %v9697_v44  ;;  %v9725_v31 = vadd.f32 %v14818_v32, %v9467_v28  ;;  %v9729_v24 = vadd.f32 %v14818_v32, %v9471_v33  ;;  %v9733_v46 = vadd.f32 %v14818_v32, %v9475_v58  ;;  %v14844_v33 = vld [vmem:[#allocation126_spill] sm:$0xff]  ;;  %v14845_v58 = vld [vmem:[#allocation127_spill] sm:$0xff] }
 0x475   : > { %14832 = vst [vmem:[#allocation135_spill] sm:$0xff] %v9701_v34  ;;  %14834 = vst [vmem:[#allocation136_spill] sm:$0xff] %v9705_v55  ;;  %v9737_v13 = vadd.f32 %v14818_v32, %v9479_v27  ;;  %v9741_v29 = vadd.f32 %v14818_v32, %v14841_v21  ;;  %v9758_v27 = vadd.f32 %v14818_v32, %v9500_v23 }
 0x476   : > { %14836 = vst [vmem:[#allocation20_spill] sm:$0xff] %v9717_v26  ;;  %14837 = vst [vmem:[#allocation137_spill] sm:$0xff] %v9721_v2  ;;  %v14842_v2 = vld [vmem:[#allocation125_spill] sm:$0xff]  ;;  %v9762_v21 = vadd.f32 %v14818_v32, %v9504_v61  ;;  %v9781_v23 = vadd.f32 %v14818_v32, %v9520_v63  ;;  %v9789_v61 = vadd.f32 %v14818_v32, %v9528_v6  ;;  %v9810_v6 = vmul.f32 0.5, %v9553_v0 }
 0x477   : > { %14838 = vst [vmem:[#allocation21_spill] sm:$0xff] %v9725_v31  ;;  %14839 = vst [vmem:[#allocation138_spill] sm:$0xff] %v9729_v24  ;;  %v9745_v28 = vadd.f32 %v14818_v32, %v14842_v2  ;;  %v14843_v31 = vld [vmem:[#allocation45_spill] sm:$0xff]  ;;  %v9750_v24 = vadd.f32 %v14818_v32, %v14844_v33  ;;  %v9766_v2 = vadd.f32 %v14818_v32, %v9508_v17 }
 0x478   : > { %14840 = vst [vmem:[#allocation139_spill] sm:$0xff] %v9733_v46  ;;  %v5270_v26 = vmul.f32 %v5206_v16, %v14843_v31  ;;  %v9754_v46 = vadd.f32 %v14818_v32, %v14845_v58  ;;  %v14846_v16 = vld [vmem:[#allocation128_spill] sm:$0xff]  ;;  %v9774_v33 = vadd.f32 %v14818_v32, %v9516_v8  ;;  %v9785_v17 = vadd.f32 %v14818_v32, %v9524_v11 }
 0x479   : > { %v9770_v31 = vadd.f32 %v14818_v32, %v14846_v16  ;;  %v9793_v8 = vadd.f32 %v14818_v32, %v9532_v3  ;;  %v9797_v58 = vadd.f32 %v14818_v32, %v9536_v48  ;;  %v9801_v63 = vadd.f32 %v14818_v32, %v9540_v53  ;;  %14849 = vst [vmem:[#allocation141_spill] sm:$0xff] %v9810_v6 }
 0x47a   : > { %5334 = vst [vmem:[%s9776_s17 + $0x1f0] sm:$0xff] %v5270_v26  ;;  %v9804_v26 = vmul.f32 0.5, %v9544_v12  ;;  %v9807_v11 = vmul.f32 0.5, %v9549_v59  ;;  %v9813_v3 = vmul.f32 0.5, %v9557_v62  ;;  %v9816_v16 = vmul.f32 0.5, %v9561_v14 }
 0x47b   : > { %v9819_v48 = vmul.f32 0.5, %v9565_v37  ;;  %v9822_v53 = vmul.f32 0.5, %v9569_v42  ;;  %v9825_v32 = vmul.f32 0.5, %v9573_v43  ;;  %v9831_v6 = vmul.f32 0.5, %v9581_v15 }
 0x47c   : > { %14847 = vst [vmem:[#allocation140_spill] sm:$0xff] %v9804_v26  ;;  %14848 = vst [vmem:[#allocation23_spill] sm:$0xff] %v9807_v11  ;;  %v9828_v11 = vmul.f32 0.5, %v9577_v41  ;;  %v14879_v26 = vld [vmem:[#allocation130_spill] sm:$0xff] }
 0x47d   : > { %14850 = vst [vmem:[#allocation64_spill] sm:$0xff] %v9813_v3  ;;  %14851 = vst [vmem:[#allocation24_spill] sm:$0xff] %v9816_v16  ;;  %v9834_v3 = vmul.f32 0.5, %v9585_v35  ;;  %v9837_v16 = vmul.f32 0.5, %v9589_v57 }
 0x47e   : > { %14852 = vst [vmem:[#allocation67_spill] sm:$0xff] %v9819_v48  ;;  %14853 = vst [vmem:[#allocation26_spill] sm:$0xff] %v9822_v53  ;;  %v9840_v48 = vmul.f32 0.5, %v9593_v56  ;;  %v9843_v53 = vmul.f32 0.5, %v9597_v60 }
 0x47f   : > { %14854 = vst [vmem:[#allocation28_spill] sm:$0xff] %v9825_v32  ;;  %14855 = vst [vmem:[#allocation71_spill] sm:$0xff] %v9828_v11  ;;  %v9846_v32 = vmul.f32 0.5, %v9601_v54  ;;  %v9849_v11 = vmul.f32 0.5, %v9606_v47 }
 0x480   : > { %14856 = vst [vmem:[#allocation29_spill] sm:$0xff] %v9831_v6  ;;  %14857 = vst [vmem:[#allocation96_spill] sm:$0xff] %v9834_v3  ;;  %v9852_v6 = vmul.f32 0.5, %v9610_v40  ;;  %v9855_v3 = vmul.f32 0.5, %v9614_v52 }
 0x481   : > { %14858 = vst [vmem:[#allocation30_spill] sm:$0xff] %v9837_v16  ;;  %14859 = vst [vmem:[#allocation97_spill] sm:$0xff] %v9840_v48  ;;  %v9858_v16 = vmul.f32 0.5, %v9618_v30  ;;  %v9861_v48 = vmul.f32 0.5, %v9622_v7 }
 0x482   : > { %14860 = vst [vmem:[#allocation31_spill] sm:$0xff] %v9843_v53  ;;  %14861 = vst [vmem:[#allocation98_spill] sm:$0xff] %v9846_v32  ;;  %v9864_v53 = vmul.f32 0.5, %v9626_v22  ;;  %v9867_v32 = vmul.f32 0.5, %v9630_v50 }
 0x483   : > { %14862 = vst [vmem:[#allocation32_spill] sm:$0xff] %v9849_v11  ;;  %14863 = vst [vmem:[#allocation99_spill] sm:$0xff] %v9852_v6  ;;  %v9870_v11 = vmul.f32 0.5, %v9635_v49  ;;  %v9873_v6 = vmul.f32 0.5, %v9639_v51 }
 0x484   : > { %14864 = vst [vmem:[#allocation33_spill] sm:$0xff] %v9855_v3  ;;  %14865 = vst [vmem:[#allocation75_spill] sm:$0xff] %v9858_v16  ;;  %v9876_v3 = vmul.f32 0.5, %v9643_v10  ;;  %v9879_v16 = vmul.f32 0.5, %v9647_v45 }
 0x485   : > { %14866 = vst [vmem:[#allocation34_spill] sm:$0xff] %v9861_v48  ;;  %14867 = vst [vmem:[#allocation35_spill] sm:$0xff] %v9864_v53  ;;  %v9882_v48 = vmul.f32 0.5, %v9651_v18  ;;  %v9885_v53 = vmul.f32 0.5, %v9655_v4  ;;  %v14882_v4 = vld [vmem:[#allocation131_spill] sm:$0xff] }
 0x486   : > { %14868 = vst [vmem:[#allocation78_spill] sm:$0xff] %v9867_v32  ;;  %14869 = vst [vmem:[#allocation81_spill] sm:$0xff] %v9870_v11  ;;  %v9888_v32 = vmul.f32 0.5, %v9659_v39  ;;  %v9891_v11 = vmul.f32 0.5, %v9663_v38 }
 0x487   : > { %14870 = vst [vmem:[#allocation101_spill] sm:$0xff] %v9873_v6  ;;  %14871 = vst [vmem:[#allocation39_spill] sm:$0xff] %v9876_v3  ;;  %v9894_v6 = vmul.f32 0.5, %v9667_v1  ;;  %v9897_v3 = vmul.f32 0.5, %v9671_v19 }
 0x488   : > { %14872 = vst [vmem:[#allocation142_spill] sm:$0xff] %v9879_v16  ;;  %14873 = vst [vmem:[#allocation65_spill] sm:$0xff] %v9882_v48  ;;  %v9900_v16 = vmul.f32 0.5, %v14879_v26  ;;  %v9903_v48 = vmul.f32 0.5, %v9679_v5 }
 0x489   : > { %14874 = vst [vmem:[#allocation68_spill] sm:$0xff] %v9885_v53  ;;  %14875 = vst [vmem:[#allocation70_spill] sm:$0xff] %v9888_v32  ;;  %v9906_v53 = vmul.f32 0.5, %v14882_v4  ;;  %v9909_v32 = vmul.f32 0.5, %v9687_v36  ;;  %v14891_v36 = vld [vmem:[#allocation20_spill] sm:$0xff] }
 0x48a   : > { %14876 = vst [vmem:[#allocation73_spill] sm:$0xff] %v9891_v11  ;;  %14877 = vst [vmem:[#allocation76_spill] sm:$0xff] %v9894_v6  ;;  %v9912_v11 = vmul.f32 0.5, %v9693_v20  ;;  %v9915_v6 = vmul.f32 0.5, %v9697_v44  ;;  %v14893_v20 = vld [vmem:[#allocation137_spill] sm:$0xff] }
 0x48b   : > { %14878 = vst [vmem:[#allocation79_spill] sm:$0xff] %v9897_v3  ;;  %14880 = vst [vmem:[#allocation82_spill] sm:$0xff] %v9900_v16  ;;  %v9918_v3 = vmul.f32 0.5, %v9701_v34  ;;  %v9921_v16 = vmul.f32 0.5, %v9705_v55  ;;  %v14895_v44 = vld [vmem:[#allocation21_spill] sm:$0xff]  ;;  %v14897_v34 = vld [vmem:[#allocation138_spill] sm:$0xff] }
 0x48c   : > { %14881 = vst [vmem:[#allocation84_spill] sm:$0xff] %v9903_v48  ;;  %14883 = vst [vmem:[#allocation85_spill] sm:$0xff] %v9906_v53  ;;  %v9924_v48 = vmul.f32 0.5, %v9709_v25  ;;  %v9927_v53 = vmul.f32 0.5, %v9713_v9  ;;  %v14899_v55 = vld [vmem:[#allocation139_spill] sm:$0xff] }
 0x48d   : > { %14884 = vst [vmem:[#allocation86_spill] sm:$0xff] %v9909_v32  ;;  %14885 = vst [vmem:[#allocation87_spill] sm:$0xff] %v9912_v11  ;;  %v9930_v32 = vmul.f32 0.5, %v14891_v36  ;;  %v9933_v11 = vmul.f32 0.5, %v14893_v20 }
 0x48e   : > { %14886 = vst [vmem:[#allocation46_spill] sm:$0xff] %v9915_v6  ;;  %14887 = vst [vmem:[#allocation89_spill] sm:$0xff] %v9918_v3  ;;  %v9936_v6 = vmul.f32 0.5, %v14895_v44  ;;  %v9939_v3 = vmul.f32 0.5, %v14897_v34 }
 0x48f   : > { %14888 = vst [vmem:[#allocation47_spill] sm:$0xff] %v9921_v16  ;;  %14889 = vst [vmem:[#allocation90_spill] sm:$0xff] %v9924_v48  ;;  %v9942_v16 = vmul.f32 0.5, %v14899_v55  ;;  %v9945_v48 = vmul.f32 0.5, %v9737_v13 }
 0x490   : > { %14890 = vst [vmem:[#allocation48_spill] sm:$0xff] %v9927_v53  ;;  %14892 = vst [vmem:[#allocation91_spill] sm:$0xff] %v9930_v32  ;;  %v9948_v53 = vmul.f32 0.5, %v9741_v29  ;;  %v9951_v32 = vmul.f32 0.5, %v9745_v28 }
 0x491   : > { %14894 = vst [vmem:[#allocation49_spill] sm:$0xff] %v9933_v11  ;;  %14896 = vst [vmem:[#allocation92_spill] sm:$0xff] %v9936_v6  ;;  %v9954_v11 = vmul.f32 0.5, %v9750_v24  ;;  %v9957_v6 = vmul.f32 0.5, %v9754_v46 }
 0x492   : > { %14898 = vst [vmem:[#allocation113_spill] sm:$0xff] %v9939_v3  ;;  %14900 = vst [vmem:[#allocation93_spill] sm:$0xff] %v9942_v16  ;;  %v9960_v3 = vmul.f32 0.5, %v9758_v27  ;;  %v9963_v16 = vmul.f32 0.5, %v9762_v21 }
 0x493   : > { %14901 = vst [vmem:[#allocation114_spill] sm:$0xff] %v9945_v48  ;;  %14902 = vst [vmem:[#allocation94_spill] sm:$0xff] %v9948_v53  ;;  %v9966_v48 = vmul.f32 0.5, %v9766_v2  ;;  %v9969_v53 = vmul.f32 0.5, %v9770_v31 }
 0x494   : > { %14903 = vst [vmem:[#allocation115_spill] sm:$0xff] %v9951_v32  ;;  %14904 = vst [vmem:[#allocation95_spill] sm:$0xff] %v9954_v11  ;;  %v9972_v32 = vmul.f32 0.5, %v9774_v33  ;;  %v9975_v11 = vmul.f32 0.5, %v9781_v23 }
 0x495   : > { %14905 = vst [vmem:[#allocation50_spill] sm:$0xff] %v9957_v6  ;;  %14906 = vst [vmem:[#allocation18_spill] sm:$0xff] %v9960_v3  ;;  %v9978_v6 = vmul.f32 0.5, %v9785_v17  ;;  %v9981_v3 = vmul.f32 0.5, %v9789_v61 }
 0x496   : > { %14907 = vst [vmem:[#allocation51_spill] sm:$0xff] %v9963_v16  ;;  %14908 = vst [vmem:[#allocation57_spill] sm:$0xff] %v9966_v48  ;;  %v9984_v16 = vmul.f32 0.5, %v9793_v8  ;;  %v9987_v48 = vmul.f32 0.5, %v9797_v58 }
 0x497   : > { %14909 = vst [vmem:[#allocation52_spill] sm:$0xff] %v9969_v53  ;;  %14910 = vst [vmem:[#allocation19_spill] sm:$0xff] %v9972_v32  ;;  %v9990_v53 = vmul.f32 0.5, %v9801_v63  ;;  %v9993_v32 = vmul.f32 0.70710677, %v9544_v12 }
 0x498   : > { %14911 = vst [vmem:[#allocation53_spill] sm:$0xff] %v9975_v11  ;;  %14912 = vst [vmem:[#allocation61_spill] sm:$0xff] %v9978_v6  ;;  %v9996_v11 = vmul.f32 0.70710677, %v9549_v59  ;;  %v9999_v6 = vmul.f32 0.70710677, %v9553_v0 }
 0x499   : > { %14913 = vst [vmem:[#allocation59_spill] sm:$0xff] %v9981_v3  ;;  %14914 = vst [vmem:[#allocation22_spill] sm:$0xff] %v9984_v16  ;;  %v10002_v3 = vmul.f32 0.70710677, %v9557_v62  ;;  %v10005_v16 = vmul.f32 0.70710677, %v9561_v14 }
 0x49a   : > { %14915 = vst [vmem:[#allocation54_spill] sm:$0xff] %v9987_v48  ;;  %14916 = vst [vmem:[#allocation62_spill] sm:$0xff] %v9990_v53  ;;  %v10008_v48 = vmul.f32 0.70710677, %v9565_v37  ;;  %v10011_v53 = vmul.f32 0.70710677, %v9569_v42 }
 0x49b   : > { %14917 = vst [vmem:[#allocation55_spill] sm:$0xff] %v9999_v6  ;;  %v10014_v12 = vmul.f32 0.70710677, %v9573_v43  ;;  %v10017_v59 = vmul.f32 0.70710677, %v9577_v41  ;;  %vm3672_vm2 = vcmp.ge.f32.partialorder %v9993_v32, 0.0 }
 0x49c   : > { %v10020_v0 = vmul.f32 0.70710677, %v9581_v15  ;;  %v10023_v62 = vmul.f32 0.70710677, %v9585_v35  ;;  %v10026_v14 = vmul.f32 0.70710677, %v9589_v57 }
 0x49d   : > { %v10029_v37 = vmul.f32 0.70710677, %v9593_v56  ;;  %v10032_v42 = vmul.f32 0.70710677, %v9597_v60  ;;  %v10035_v43 = vmul.f32 0.70710677, %v9601_v54 }
 0x49e   : > { %v10038_v41 = vmul.f32 0.70710677, %v9606_v47  ;;  %v10041_v15 = vmul.f32 0.70710677, %v9610_v40  ;;  %v10044_v35 = vmul.f32 0.70710677, %v9614_v52 }
 0x49f   : > { %v10047_v57 = vmul.f32 0.70710677, %v9618_v30  ;;  %v10050_v56 = vmul.f32 0.70710677, %v9622_v7  ;;  %v10053_v60 = vmul.f32 0.70710677, %v9626_v22 }
 0x4a0   : > { %14918 = vst [vmem:[#allocation66_spill] sm:$0xff] %v10038_v41  ;;  %v10056_v54 = vmul.f32 0.70710677, %v9630_v50  ;;  %v10059_v47 = vmul.f32 0.70710677, %v9635_v49  ;;  %v14920_v22 = vld [vmem:[#allocation129_spill] sm:$0xff] }
 0x4a1   : > { %14919 = vst [vmem:[#allocation56_spill] sm:$0xff] %v10053_v60  ;;  %v10062_v40 = vmul.f32 0.70710677, %v9639_v51  ;;  %v10065_v52 = vmul.f32 0.70710677, %v9643_v10  ;;  %vm3673_vm3 = vcmp.ge.f32.partialorder %v9996_v11, 0.0 }
 0x4a2   : > { %v10068_v30 = vmul.f32 0.70710677, %v9647_v45  ;;  %v10071_v7 = vmul.f32 0.70710677, %v9651_v18  ;;  %v10074_v60 = vmul.f32 0.70710677, %v14920_v22 }
 0x4a3   : > { %v10077_v50 = vmul.f32 0.70710677, %v9659_v39  ;;  %v10080_v49 = vmul.f32 0.70710677, %v9663_v38  ;;  %v10083_v51 = vmul.f32 0.70710677, %v9667_v1 }
 0x4a4   : > { %v10086_v10 = vmul.f32 0.70710677, %v9671_v19  ;;  %v10089_v45 = vmul.f32 0.70710677, %v14879_v26  ;;  %v10092_v18 = vmul.f32 0.70710677, %v9679_v5 }
 0x4a5   : > { %14921 = vst [vmem:[#allocation25_spill] sm:$0xff] %v10077_v50  ;;  %14922 = vst [vmem:[#allocation58_spill] sm:$0xff] %v10080_v49  ;;  %v10095_v22 = vmul.f32 0.70710677, %v14882_v4  ;;  %v14926_v39 = vld [vmem:[#allocation132_spill] sm:$0xff]  ;;  %v14927_v38 = vld [vmem:[#allocation133_spill] sm:$0xff] }
 0x4a6   : > { %14923 = vst [vmem:[#allocation27_spill] sm:$0xff] %v10083_v51  ;;  %14924 = vst [vmem:[#allocation69_spill] sm:$0xff] %v10086_v10  ;;  %v10098_v50 = vmul.f32 0.70710677, %v14926_v39  ;;  %v10101_v49 = vmul.f32 0.70710677, %v14927_v38 }
 0x4a7   : > { %14925 = vst [vmem:[#allocation107_spill] sm:$0xff] %v10089_v45  ;;  %v14929_v1 = vld [vmem:[#allocation134_spill] sm:$0xff]  ;;  %v14930_v19 = vld [vmem:[#allocation135_spill] sm:$0xff]  ;;  %v14931_v26 = vld [vmem:[#allocation136_spill] sm:$0xff]  ;;  %v10113_v5 = vmul.f32 0.70710677, %v9709_v25 }
 0x4a8   : > { %14928 = vst [vmem:[#allocation74_spill] sm:$0xff] %v10101_v49  ;;  %v10104_v51 = vmul.f32 0.70710677, %v14929_v1  ;;  %v10107_v10 = vmul.f32 0.70710677, %v14930_v19  ;;  %vm3674_vm4 = vcmp.ge.f32.partialorder %v9999_v6, 0.0 }
 0x4a9   : > { %v10110_v45 = vmul.f32 0.70710677, %v14931_v26  ;;  %14933 = vst [vmem:[#allocation108_spill] sm:$0xff] %v10113_v5  ;;  %v10116_v4 = vmul.f32 0.70710677, %v9713_v9  ;;  %vm3675_vm5 = vcmp.ge.f32.partialorder %v10002_v3, 0.0 }
 0x4aa   : > { %v10119_v39 = vmul.f32 0.70710677, %v14891_v36  ;;  %v10122_v38 = vmul.f32 0.70710677, %v14893_v20  ;;  %v10125_v1 = vmul.f32 0.70710677, %v14895_v44 }
 0x4ab   : > { %14932 = vst [vmem:[#allocation72_spill] sm:$0xff] %v10110_v45  ;;  %v10128_v19 = vmul.f32 0.70710677, %v14897_v34  ;;  %v10131_v26 = vmul.f32 0.70710677, %v14899_v55  ;;  %vm3676_vm6 = vcmp.ge.f32.partialorder %v10005_v16, 0.0 }
 0x4ac   : > { %14934 = vst [vmem:[#allocation77_spill] sm:$0xff] %v10122_v38  ;;  %v10134_v25 = vmul.f32 0.70710677, %v9737_v13  ;;  %v10137_v9 = vmul.f32 0.70710677, %v9741_v29  ;;  %vm3677_vm7 = vcmp.ge.f32.partialorder %v10008_v48, 0.0 }
 0x4ad   : > { %v10140_v36 = vmul.f32 0.70710677, %v9745_v28  ;;  %v10143_v20 = vmul.f32 0.70710677, %v9750_v24  ;;  %v10146_v44 = vmul.f32 0.70710677, %v9754_v46 }
 0x4ae   : > { %v10149_v34 = vmul.f32 0.70710677, %v9758_v27  ;;  %v10152_v55 = vmul.f32 0.70710677, %v9762_v21  ;;  %v10155_v13 = vmul.f32 0.70710677, %v9766_v2 }
 0x4af   : > { %v10158_v29 = vmul.f32 0.70710677, %v9770_v31  ;;  %v10161_v28 = vmul.f32 0.70710677, %v9774_v33  ;;  %v10164_v24 = vmul.f32 0.70710677, %v9781_v23 }
 0x4b0   : > { %v10167_v46 = vmul.f32 0.70710677, %v9785_v17  ;;  %v10170_v27 = vmul.f32 0.70710677, %v9789_v61  ;;  %v10173_v21 = vmul.f32 0.70710677, %v9793_v8 }
 0x4b1   : > { %v10176_v2 = vmul.f32 0.70710677, %v9797_v58  ;;  %v10179_v31 = vmul.f32 0.70710677, %v9801_v63  ;;  %v14939_v33 = vld [vmem:[#allocation56_spill] sm:$0xff]  ;;  %v14940_v23 = vld [vmem:[#allocation25_spill] sm:$0xff] }
 0x4b2   : > { %14935 = vst [vmem:[#allocation109_spill] sm:$0xff] %v10167_v46  ;;  %14936 = vst [vmem:[#allocation105_spill] sm:$0xff] %v10170_v27  ;;  %v14941_v17 = vld [vmem:[#allocation58_spill] sm:$0xff]  ;;  %v14942_v61 = vld [vmem:[#allocation27_spill] sm:$0xff]  ;;  %vm3709_vm9 = vcmp.ge.f32.partialorder %v10104_v51, 0.0  ;;  %vm3710_vm10 = vcmp.ge.f32.partialorder %v10107_v10, 0.0 }
 0x4b3   : > { %14937 = vst [vmem:[#allocation106_spill] sm:$0xff] %v10173_v21  ;;  %14938 = vst [vmem:[#allocation110_spill] sm:$0xff] %v10179_v31  ;;  %v14943_v8 = vld [vmem:[#allocation69_spill] sm:$0xff]  ;;  %v14944_v58 = vld [vmem:[#allocation107_spill] sm:$0xff]  ;;  %vm3711_vm11 = vcmp.ge.f32.partialorder %v10110_v45, 0.0  ;;  %vm3712_vm12 = vcmp.ge.f32.partialorder %v10113_v5, 0.0 }
 0x4b4   : > { %vm3713_vm13 = vcmp.ge.f32.partialorder %v10116_v4, 0.0  ;;  %vm3714_vm14 = vcmp.ge.f32.partialorder %v10119_v39, 0.0  ;;  %v14945_v63 = vmov -1.0   ;;  %vm3719_vm0 = vcmp.ge.f32.partialorder %v10134_v25, 0.0 }
 0x4b5   : > { %v10231_v31 = vsel %vm3672_vm2, 1.0, %v14945_v63  ;;  %v10236_v5 = vsel %vm3673_vm3, 1.0, %v14945_v63  ;;  %v10241_v38 = vsel %vm3674_vm4, 1.0, %v14945_v63  ;;  %vm3720_vm1 = vcmp.ge.f32.partialorder %v10137_v9, 0.0 }
 0x4b6   : > { %14946 = vst [vmem:[#allocation111_spill] sm:$0xff] %v10231_v31  ;;  %14947 = vst [vmem:[#allocation80_spill] sm:$0xff] %v10236_v5  ;;  %vm3721_vm8 = vcmp.ge.f32.partialorder %v10140_v36, 0.0  ;;  %v10250_v31 = vsel %vm3675_vm5, 1.0, %v14945_v63  ;;  %v10255_v5 = vsel %vm3676_vm6, 1.0, %v14945_v63  ;;  %vm14952_vm2 = vcmp.ge.f32.partialorder %v10011_v53, 0.0 }
 0x4b7   : > { %14948 = vst [vmem:[#allocation36_spill] sm:$0xff] %v10241_v38  ;;  %14949 = vst [vmem:[#allocation100_spill] sm:$0xff] %v10250_v31  ;;  %v10260_v38 = vsel %vm3677_vm7, 1.0, %v14945_v63  ;;  %v10265_v6 = vsel %vm14952_vm2, 1.0, %v14945_v63  ;;  %vm14954_vm6 = vcmp.ge.f32.partialorder %v10014_v12, 0.0  ;;  %vm14956_vm7 = vcmp.ge.f32.partialorder %v10017_v59, 0.0 }
 0x4b8   : > { %14950 = vst [vmem:[#allocation40_spill] sm:$0xff] %v10255_v5  ;;  %14951 = vst [vmem:[#allocation37_spill] sm:$0xff] %v10260_v38  ;;  %v10274_v5 = vsel %vm14954_vm6, 1.0, %v14945_v63  ;;  %v10279_v38 = vsel %vm14956_vm7, 1.0, %v14945_v63  ;;  %vm14958_vm2 = vcmp.ge.f32.partialorder %v10020_v0, 0.0  ;;  %vm14960_vm5 = vcmp.ge.f32.partialorder %v10023_v62, 0.0 }
 0x4b9   : > { %14953 = vst [vmem:[#allocation102_spill] sm:$0xff] %v10265_v6  ;;  %14955 = vst [vmem:[#allocation38_spill] sm:$0xff] %v10274_v5  ;;  %v10284_v6 = vsel %vm14958_vm2, 1.0, %v14945_v63  ;;  %v10289_v31 = vsel %vm14960_vm5, 1.0, %v14945_v63  ;;  %vm3727_vm15 = vcmp.ge.f32.partialorder %v10158_v29, 0.0  ;;  %vm14962_vm7 = vcmp.ge.f32.partialorder %v10026_v14, 0.0 }
 0x4ba   : > { %14957 = vst [vmem:[#allocation103_spill] sm:$0xff] %v10279_v38  ;;  %14959 = vst [vmem:[#allocation83_spill] sm:$0xff] %v10284_v6  ;;  %v10298_v38 = vsel %vm14962_vm7, 1.0, %v14945_v63  ;;  %vm14964_vm2 = vcmp.ge.f32.partialorder %v10029_v37, 0.0  ;;  %vm14966_vm5 = vcmp.ge.f32.partialorder %v10032_v42, 0.0  ;;  %vm14968_vm4 = vcmp.ge.f32.partialorder %v10035_v43, 0.0 }
 0x4bb   : > { %14961 = vst [vmem:[#allocation41_spill] sm:$0xff] %v10289_v31  ;;  %14963 = vst [vmem:[#allocation42_spill] sm:$0xff] %v10298_v38  ;;  %v10303_v6 = vsel %vm14964_vm2, 1.0, %v14945_v63  ;;  %v10308_v31 = vsel %vm14966_vm5, 1.0, %v14945_v63  ;;  %v10313_v5 = vsel %vm14968_vm4, 1.0, %v14945_v63  ;;  %vm3731_vm3 = vcmp.ge.f32.partialorder %v10170_v27, 0.0 }
 0x4bc   : > { %14965 = vst [vmem:[#allocation43_spill] sm:$0xff] %v10303_v6  ;;  %14967 = vst [vmem:[#allocation104_spill] sm:$0xff] %v10308_v31  ;;  %vm14970_vm2 = vcmp.ge.f32.partialorder %v10038_v41, 0.0  ;;  %vm14972_vm5 = vcmp.ge.f32.partialorder %v10041_v15, 0.0  ;;  %vm14974_vm4 = vcmp.ge.f32.partialorder %v10044_v35, 0.0  ;;  %vm14976_vm7 = vcmp.ge.f32.partialorder %v10047_v57, 0.0 }
 0x4bd   : > { %14969 = vst [vmem:[#allocation44_spill] sm:$0xff] %v10313_v5  ;;  %v10321_v6 = vsel %vm14970_vm2, 1.0, %v14945_v63  ;;  %v10326_v31 = vsel %vm14972_vm5, 1.0, %v14945_v63  ;;  %v10331_v5 = vsel %vm14974_vm4, 1.0, %v14945_v63  ;;  %v10336_v38 = vsel %vm14976_vm7, 1.0, %v14945_v63 }
 0x4be   : > { %14971 = vst [vmem:[#allocation88_spill] sm:$0xff] %v10321_v6  ;;  %14973 = vst [vmem:[#allocation63_spill] sm:$0xff] %v10326_v31  ;;  %vm14978_vm6 = vcmp.ge.f32.partialorder %v10050_v56, 0.0  ;;  %vm14980_vm2 = vcmp.ge.f32.partialorder %v14939_v33, 0.0  ;;  %vm14982_vm5 = vcmp.ge.f32.partialorder %v10056_v54, 0.0  ;;  %vm14984_vm4 = vcmp.ge.f32.partialorder %v10059_v47, 0.0 }
 0x4bf   : > { %14975 = vst [vmem:[#allocation60_spill] sm:$0xff] %v10331_v5  ;;  %14977 = vst [vmem:[#allocation116_spill] sm:$0xff] %v10336_v38  ;;  %v10341_v41 = vsel %vm14978_vm6, 1.0, %v14945_v63  ;;  %v10346_v6 = vsel %vm14980_vm2, 1.0, %v14945_v63  ;;  %v10351_v31 = vsel %vm14982_vm5, 1.0, %v14945_v63  ;;  %v10356_v5 = vsel %vm14984_vm4, 1.0, %v14945_v63 }
 0x4c0   : > { %14979 = vst [vmem:[#allocation117_spill] sm:$0xff] %v10341_v41  ;;  %14981 = vst [vmem:[#allocation118_spill] sm:$0xff] %v10346_v6  ;;  %vm14986_vm7 = vcmp.ge.f32.partialorder %v10062_v40, 0.0  ;;  %vm14988_vm6 = vcmp.ge.f32.partialorder %v10065_v52, 0.0  ;;  %vm14990_vm2 = vcmp.ge.f32.partialorder %v10068_v30, 0.0  ;;  %vm14992_vm5 = vcmp.ge.f32.partialorder %v10071_v7, 0.0 }
 0x4c1   : > { %14983 = vst [vmem:[#allocation119_spill] sm:$0xff] %v10351_v31  ;;  %14985 = vst [vmem:[#allocation112_spill] sm:$0xff] %v10356_v5  ;;  %v10361_v38 = vsel %vm14986_vm7, 1.0, %v14945_v63  ;;  %v10366_v41 = vsel %vm14988_vm6, 1.0, %v14945_v63  ;;  %v10371_v6 = vsel %vm14990_vm2, 1.0, %v14945_v63  ;;  %v10376_v31 = vsel %vm14992_vm5, 1.0, %v14945_v63 }
 0x4c2   : > { %14987 = vst [vmem:[#allocation120_spill] sm:$0xff] %v10361_v38  ;;  %14989 = vst [vmem:[#allocation121_spill] sm:$0xff] %v10366_v41  ;;  %vm14994_vm4 = vcmp.ge.f32.partialorder %v10074_v60, 0.0  ;;  %vm14996_vm7 = vcmp.ge.f32.partialorder %v14940_v23, 0.0  ;;  %vm14998_vm6 = vcmp.ge.f32.partialorder %v14941_v17, 0.0  ;;  %vm15000_vm2 = vcmp.ge.f32.partialorder %v14942_v61, 0.0 }
 0x4c3   : > { %14991 = vst [vmem:[#allocation122_spill] sm:$0xff] %v10371_v6  ;;  %14993 = vst [vmem:[#allocation123_spill] sm:$0xff] %v10376_v31  ;;  %v10381_v5 = vsel %vm14994_vm4, 1.0, %v14945_v63  ;;  %v10386_v38 = vsel %vm14996_vm7, 1.0, %v14945_v63  ;;  %v10391_v41 = vsel %vm14998_vm6, 1.0, %v14945_v63  ;;  %v10396_v6 = vsel %vm15000_vm2, 1.0, %v14945_v63 }
 0x4c4   : > { %14995 = vst [vmem:[#allocation124_spill] sm:$0xff] %v10381_v5  ;;  %14997 = vst [vmem:[#allocation125_spill] sm:$0xff] %v10386_v38  ;;  %vm15002_vm5 = vcmp.ge.f32.partialorder %v14943_v8, 0.0  ;;  %vm15004_vm4 = vcmp.ge.f32.partialorder %v14944_v58, 0.0  ;;  %vm15006_vm7 = vcmp.ge.f32.partialorder %v10092_v18, 0.0  ;;  %vm15008_vm6 = vcmp.ge.f32.partialorder %v10095_v22, 0.0 }
 0x4c5   : > { %14999 = vst [vmem:[#allocation45_spill] sm:$0xff] %v10391_v41  ;;  %15001 = vst [vmem:[#allocation126_spill] sm:$0xff] %v10396_v6  ;;  %v10401_v31 = vsel %vm15002_vm5, 1.0, %v14945_v63  ;;  %v10406_v5 = vsel %vm15004_vm4, 1.0, %v14945_v63  ;;  %v10411_v38 = vsel %vm15006_vm7, 1.0, %v14945_v63  ;;  %v10416_v41 = vsel %vm15008_vm6, 1.0, %v14945_v63 }
 0x4c6   : > { %15003 = vst [vmem:[#allocation127_spill] sm:$0xff] %v10401_v31  ;;  %15005 = vst [vmem:[#allocation128_spill] sm:$0xff] %v10406_v5  ;;  %vm15010_vm2 = vcmp.ge.f32.partialorder %v10098_v50, 0.0  ;;  %vm15012_vm5 = vcmp.ge.f32.partialorder %v10101_v49, 0.0  ;;  %v10431_v5 = vsel %vm3709_vm9, 1.0, %v14945_v63  ;;  %v10446_v49 = vsel %vm3712_vm12, 1.0, %v14945_v63 }
 0x4c7   : > { %15007 = vst [vmem:[#allocation130_spill] sm:$0xff] %v10411_v38  ;;  %15009 = vst [vmem:[#allocation131_spill] sm:$0xff] %v10416_v41  ;;  %v10421_v6 = vsel %vm15010_vm2, 1.0, %v14945_v63  ;;  %v10426_v31 = vsel %vm15012_vm5, 1.0, %v14945_v63  ;;  %v10436_v38 = vsel %vm3710_vm10, 1.0, %v14945_v63  ;;  %v10441_v41 = vsel %vm3711_vm11, 1.0, %v14945_v63 }
 0x4c8   : > { %15011 = vst [vmem:[#allocation20_spill] sm:$0xff] %v10421_v6  ;;  %15013 = vst [vmem:[#allocation137_spill] sm:$0xff] %v10426_v31  ;;  %v15017_v6 = vld [vmem:[#allocation108_spill] sm:$0xff]  ;;  %v10451_v31 = vsel %vm3713_vm13, 1.0, %v14945_v63  ;;  %vm15024_vm10 = vcmp.ge.f32.partialorder %v10125_v1, 0.0  ;;  %vm15026_vm11 = vcmp.ge.f32.partialorder %v10128_v19, 0.0 }
 0x4c9   : > { %15014 = vst [vmem:[#allocation21_spill] sm:$0xff] %v10431_v5  ;;  %15015 = vst [vmem:[#allocation138_spill] sm:$0xff] %v10436_v38  ;;  %v10456_v5 = vsel %vm3714_vm14, 1.0, %v14945_v63  ;;  %v15021_v38 = vld [vmem:[#allocation77_spill] sm:$0xff]  ;;  %vm15028_vm12 = vcmp.ge.f32.partialorder %v10131_v26, 0.0  ;;  %vm15033_vm13 = vcmp.ge.f32.partialorder %v10143_v20, 0.0 }
 0x4ca   : > { %15016 = vst [vmem:[#allocation139_spill] sm:$0xff] %v10441_v41  ;;  %15018 = vst [vmem:[#allocation129_spill] sm:$0xff] %v10446_v49  ;;  %vm15022_vm9 = vcmp.ge.f32.partialorder %v15021_v38, 0.0  ;;  %v10466_v41 = vsel %vm15024_vm10, 1.0, %v14945_v63  ;;  %v10471_v49 = vsel %vm15026_vm11, 1.0, %v14945_v63  ;;  %vm15035_vm14 = vcmp.ge.f32.partialorder %v10146_v44, 0.0 }
 0x4cb   : > { %15019 = vst [vmem:[#allocation132_spill] sm:$0xff] %v10451_v31  ;;  %15020 = vst [vmem:[#allocation133_spill] sm:$0xff] %v10456_v5  ;;  %v10461_v45 = vsel %vm15022_vm9, 1.0, %v14945_v63  ;;  %v10476_v31 = vsel %vm15028_vm12, 1.0, %v14945_v63  ;;  %v10481_v5 = vsel %vm3719_vm0, 1.0, %v14945_v63  ;;  %vm15037_vm0 = vcmp.ge.f32.partialorder %v10149_v34, 0.0 }
 0x4cc   : > { %15023 = vst [vmem:[#allocation134_spill] sm:$0xff] %v10461_v45  ;;  %15025 = vst [vmem:[#allocation135_spill] sm:$0xff] %v10466_v41  ;;  %v10486_v45 = vsel %vm3720_vm1, 1.0, %v14945_v63  ;;  %v10491_v41 = vsel %vm3721_vm8, 1.0, %v14945_v63  ;;  %vm15039_vm1 = vcmp.ge.f32.partialorder %v10152_v55, 0.0  ;;  %vm15041_vm8 = vcmp.ge.f32.partialorder %v10155_v13, 0.0 }
 0x4cd   : > { %15027 = vst [vmem:[#allocation136_spill] sm:$0xff] %v10471_v49  ;;  %15029 = vst [vmem:[#allocation56_spill] sm:$0xff] %v10476_v31  ;;  %v10496_v49 = vsel %vm15033_vm13, 1.0, %v14945_v63  ;;  %v10501_v31 = vsel %vm15035_vm14, 1.0, %v14945_v63  ;;  %vm15044_vm4 = vcmp.ge.f32.partialorder %v10161_v28, 0.0  ;;  %vm15046_vm7 = vcmp.ge.f32.partialorder %v10164_v24, 0.0 }
 0x4ce   : > { %15030 = vst [vmem:[#allocation25_spill] sm:$0xff] %v10481_v5  ;;  %15031 = vst [vmem:[#allocation58_spill] sm:$0xff] %v10486_v45  ;;  %v10506_v5 = vsel %vm15037_vm0, 1.0, %v14945_v63  ;;  %v10511_v45 = vsel %vm15039_vm1, 1.0, %v14945_v63  ;;  %vm15048_vm6 = vcmp.ge.f32.partialorder %v10167_v46, 0.0  ;;  %vm15053_vm2 = vcmp.ge.f32.partialorder %v10176_v2, 0.0 }
 0x4cf   : > { %15032 = vst [vmem:[#allocation27_spill] sm:$0xff] %v10491_v41  ;;  %15034 = vst [vmem:[#allocation69_spill] sm:$0xff] %v10496_v49  ;;  %v10516_v41 = vsel %vm15041_vm8, 1.0, %v14945_v63  ;;  %v10521_v49 = vsel %vm3727_vm15, 1.0, %v14945_v63  ;;  %vm15051_vm15 = vcmp.ge.f32.partialorder %v10173_v21, 0.0  ;;  %v15057_v46 = vld [vmem:[#allocation55_spill] sm:$0xff] }
 0x4d0   : > { %15036 = vst [vmem:[#allocation107_spill] sm:$0xff] %v10501_v31  ;;  %15038 = vst [vmem:[#allocation108_spill] sm:$0xff] %v10506_v5  ;;  %v10526_v31 = vsel %vm15044_vm4, 1.0, %v14945_v63  ;;  %v10531_v5 = vsel %vm15046_vm7, 1.0, %v14945_v63  ;;  %v10560_v27 = vand.u32 2147483647, %v15057_v46 }
 0x4d1   : > { %15040 = vst [vmem:[#allocation77_spill] sm:$0xff] %v10511_v45  ;;  %15042 = vst [vmem:[#allocation143_spill] sm:$0xff] %v10516_v41  ;;  %v10536_v45 = vsel %vm15048_vm6, 1.0, %v14945_v63  ;;  %v10541_v41 = vsel %vm3731_vm3, 1.0, %v14945_v63  ;;  %v10566_v21 = vand.u32 2147483647, %v10005_v16 }
 0x4d2   : > { %15043 = vst [vmem:[#allocation144_spill] sm:$0xff] %v10521_v49  ;;  %15045 = vst [vmem:[#allocation145_spill] sm:$0xff] %v10526_v31  ;;  %v10546_v49 = vsel %vm15051_vm15, 1.0, %v14945_v63  ;;  %v10551_v31 = vsel %vm15053_vm2, 1.0, %v14945_v63  ;;  %v10581_v46 = vand.u32 2147483647, %v10020_v0 }
 0x4d3   : > { %15047 = vst [vmem:[#allocation146_spill] sm:$0xff] %v10531_v5  ;;  %15049 = vst [vmem:[#allocation147_spill] sm:$0xff] %v10536_v45  ;;  %v10554_v5 = vand.u32 2147483647, %v9993_v32  ;;  %v10557_v45 = vand.u32 2147483647, %v9996_v11 }
 0x4d4   : > { %15050 = vst [vmem:[#allocation148_spill] sm:$0xff] %v10541_v41  ;;  %15052 = vst [vmem:[#allocation149_spill] sm:$0xff] %v10546_v49  ;;  %v10563_v41 = vand.u32 2147483647, %v10002_v3  ;;  %v10569_v49 = vand.u32 2147483647, %v10008_v48 }
 0x4d5   : > { %15054 = vst [vmem:[#allocation150_spill] sm:$0xff] %v10551_v31  ;;  %15055 = vst [vmem:[#allocation151_spill] sm:$0xff] %v10554_v5  ;;  %v10572_v31 = vand.u32 2147483647, %v10011_v53  ;;  %v10575_v32 = vand.u32 2147483647, %v10014_v12 }
 0x4d6   : > { %15056 = vst [vmem:[#allocation152_spill] sm:$0xff] %v10557_v45  ;;  %15058 = vst [vmem:[#allocation55_spill] sm:$0xff] %v10560_v27  ;;  %v10578_v11 = vand.u32 2147483647, %v10017_v59  ;;  %v10584_v3 = vand.u32 2147483647, %v10023_v62 }
 0x4d7   : > { %15059 = vst [vmem:[#allocation153_spill] sm:$0xff] %v10563_v41  ;;  %15060 = vst [vmem:[#allocation154_spill] sm:$0xff] %v10566_v21  ;;  %v10587_v16 = vand.u32 2147483647, %v10026_v14  ;;  %v10590_v48 = vand.u32 2147483647, %v10029_v37 }
 0x4d8   : > { %15061 = vst [vmem:[#allocation155_spill] sm:$0xff] %v10569_v49  ;;  %15062 = vst [vmem:[#allocation156_spill] sm:$0xff] %v10572_v31  ;;  %v10593_v53 = vand.u32 2147483647, %v10032_v42  ;;  %v10596_v12 = vand.u32 2147483647, %v10035_v43 }
 0x4d9   : > { %15063 = vst [vmem:[#allocation157_spill] sm:$0xff] %v10575_v32  ;;  %15064 = vst [vmem:[#allocation158_spill] sm:$0xff] %v10578_v11  ;;  %v15071_v59 = vld [vmem:[#allocation66_spill] sm:$0xff]  ;;  %v10602_v0 = vand.u32 2147483647, %v10041_v15 }
 0x4da   : > { %15065 = vst [vmem:[#allocation159_spill] sm:$0xff] %v10581_v46  ;;  %15066 = vst [vmem:[#allocation160_spill] sm:$0xff] %v10584_v3  ;;  %v10599_v63 = vand.u32 2147483647, %v15071_v59  ;;  %v10605_v62 = vand.u32 2147483647, %v10044_v35 }
 0x4db   : > { %15067 = vst [vmem:[#allocation161_spill] sm:$0xff] %v10587_v16  ;;  %15068 = vst [vmem:[#allocation162_spill] sm:$0xff] %v10590_v48  ;;  %v10608_v14 = vand.u32 2147483647, %v10047_v57  ;;  %v10611_v37 = vand.u32 2147483647, %v10050_v56 }
 0x4dc   : > { %15069 = vst [vmem:[#allocation163_spill] sm:$0xff] %v10593_v53  ;;  %15070 = vst [vmem:[#allocation164_spill] sm:$0xff] %v10596_v12  ;;  %v10614_v42 = vand.u32 2147483647, %v14939_v33  ;;  %v10617_v43 = vand.u32 2147483647, %v10056_v54 }
 0x4dd   : > { %15072 = vst [vmem:[#allocation66_spill] sm:$0xff] %v10599_v63  ;;  %15073 = vst [vmem:[#allocation165_spill] sm:$0xff] %v10602_v0  ;;  %v10620_v59 = vand.u32 2147483647, %v10059_v47  ;;  %v10623_v15 = vand.u32 2147483647, %v10062_v40 }
 0x4de   : > { %15074 = vst [vmem:[#allocation166_spill] sm:$0xff] %v10605_v62  ;;  %15075 = vst [vmem:[#allocation167_spill] sm:$0xff] %v10608_v14  ;;  %v10626_v35 = vand.u32 2147483647, %v10065_v52  ;;  %v10629_v57 = vand.u32 2147483647, %v10068_v30 }
 0x4df   : > { %15076 = vst [vmem:[#allocation168_spill] sm:$0xff] %v10611_v37  ;;  %15077 = vst [vmem:[#allocation169_spill] sm:$0xff] %v10614_v42  ;;  %v10632_v56 = vand.u32 2147483647, %v10071_v7  ;;  %v10635_v33 = vand.u32 2147483647, %v10074_v60 }
 0x4e0   : > { %15078 = vst [vmem:[#allocation170_spill] sm:$0xff] %v10617_v43  ;;  %15079 = vst [vmem:[#allocation171_spill] sm:$0xff] %v10620_v59  ;;  %v10638_v54 = vand.u32 2147483647, %v14940_v23  ;;  %v10641_v47 = vand.u32 2147483647, %v14941_v17 }
 0x4e1   : > { %15080 = vst [vmem:[#allocation172_spill] sm:$0xff] %v10623_v15  ;;  %15081 = vst [vmem:[#allocation173_spill] sm:$0xff] %v10626_v35  ;;  %v10644_v40 = vand.u32 2147483647, %v14942_v61  ;;  %v10647_v52 = vand.u32 2147483647, %v14943_v8 }
 0x4e2   : > { %15082 = vst [vmem:[#allocation174_spill] sm:$0xff] %v10629_v57  ;;  %15083 = vst [vmem:[#allocation175_spill] sm:$0xff] %v10632_v56  ;;  %v10650_v30 = vand.u32 2147483647, %v14944_v58  ;;  %v10653_v7 = vand.u32 2147483647, %v10092_v18 }
 0x4e3   : > { %15084 = vst [vmem:[#allocation176_spill] sm:$0xff] %v10635_v33  ;;  %15085 = vst [vmem:[#allocation177_spill] sm:$0xff] %v10638_v54  ;;  %v10656_v60 = vand.u32 2147483647, %v10095_v22  ;;  %v10659_v23 = vand.u32 2147483647, %v10098_v50 }
 0x4e4   : > { %15086 = vst [vmem:[#allocation178_spill] sm:$0xff] %v10641_v47  ;;  %15087 = vst [vmem:[#allocation179_spill] sm:$0xff] %v10644_v40  ;;  %v15093_v17 = vld [vmem:[#allocation74_spill] sm:$0xff]  ;;  %v10665_v61 = vand.u32 2147483647, %v10104_v51  ;;  %v15097_v58 = vld [vmem:[#allocation72_spill] sm:$0xff] }
 0x4e5   : > { %15088 = vst [vmem:[#allocation180_spill] sm:$0xff] %v10647_v52  ;;  %15089 = vst [vmem:[#allocation181_spill] sm:$0xff] %v10650_v30  ;;  %v10662_v47 = vand.u32 2147483647, %v15093_v17  ;;  %v10668_v8 = vand.u32 2147483647, %v10107_v10 }
 0x4e6   : > { %15090 = vst [vmem:[#allocation182_spill] sm:$0xff] %v10653_v7  ;;  %15091 = vst [vmem:[#allocation183_spill] sm:$0xff] %v10656_v60  ;;  %v10671_v30 = vand.u32 2147483647, %v15097_v58  ;;  %v10674_v18 = vand.u32 2147483647, %v15017_v6 }
 0x4e7   : > { %15092 = vst [vmem:[#allocation184_spill] sm:$0xff] %v10659_v23  ;;  %15094 = vst [vmem:[#allocation74_spill] sm:$0xff] %v10662_v47  ;;  %v10677_v22 = vand.u32 2147483647, %v10116_v4  ;;  %v10680_v50 = vand.u32 2147483647, %v10119_v39 }
 0x4e8   : > { %15095 = vst [vmem:[#allocation185_spill] sm:$0xff] %v10665_v61  ;;  %15096 = vst [vmem:[#allocation186_spill] sm:$0xff] %v10668_v8  ;;  %v10683_v17 = vand.u32 2147483647, %v15021_v38  ;;  %v10686_v51 = vand.u32 2147483647, %v10125_v1 }
 0x4e9   : > { %15098 = vst [vmem:[#allocation72_spill] sm:$0xff] %v10671_v30  ;;  %15099 = vst [vmem:[#allocation187_spill] sm:$0xff] %v10674_v18  ;;  %v10689_v10 = vand.u32 2147483647, %v10128_v19  ;;  %v10692_v58 = vand.u32 2147483647, %v10131_v26 }
 0x4ea   : > { %15100 = vst [vmem:[#allocation188_spill] sm:$0xff] %v10677_v22  ;;  %15101 = vst [vmem:[#allocation189_spill] sm:$0xff] %v10680_v50  ;;  %v10695_v6 = vand.u32 2147483647, %v10134_v25  ;;  %v10698_v4 = vand.u32 2147483647, %v10137_v9 }
 0x4eb   : > { %15102 = vst [vmem:[#allocation190_spill] sm:$0xff] %v10683_v17  ;;  %15103 = vst [vmem:[#allocation191_spill] sm:$0xff] %v10686_v51  ;;  %v10701_v39 = vand.u32 2147483647, %v10140_v36  ;;  %v10704_v38 = vand.u32 2147483647, %v10143_v20 }
 0x4ec   : > { %15104 = vst [vmem:[#allocation192_spill] sm:$0xff] %v10689_v10  ;;  %15105 = vst [vmem:[#allocation193_spill] sm:$0xff] %v10692_v58  ;;  %v10707_v1 = vand.u32 2147483647, %v10146_v44  ;;  %v10710_v19 = vand.u32 2147483647, %v10149_v34 }
 0x4ed   : > { %15106 = vst [vmem:[#allocation194_spill] sm:$0xff] %v10695_v6  ;;  %15107 = vst [vmem:[#allocation195_spill] sm:$0xff] %v10698_v4  ;;  %v10713_v26 = vand.u32 2147483647, %v10152_v55  ;;  %v10716_v25 = vand.u32 2147483647, %v10155_v13 }
 0x4ee   : > { %15108 = vst [vmem:[#allocation196_spill] sm:$0xff] %v10701_v39  ;;  %15109 = vst [vmem:[#allocation197_spill] sm:$0xff] %v10704_v38  ;;  %v10719_v9 = vand.u32 2147483647, %v10158_v29  ;;  %v10722_v36 = vand.u32 2147483647, %v10161_v28 }
 0x4ef   : > { %15110 = vst [vmem:[#allocation198_spill] sm:$0xff] %v10707_v1  ;;  %15111 = vst [vmem:[#allocation199_spill] sm:$0xff] %v10710_v19  ;;  %v10725_v20 = vand.u32 2147483647, %v10164_v24  ;;  %v15117_v44 = vld [vmem:[#allocation109_spill] sm:$0xff]  ;;  %v15121_v55 = vld [vmem:[#allocation106_spill] sm:$0xff] }
 0x4f0   : > { %15112 = vst [vmem:[#allocation200_spill] sm:$0xff] %v10713_v26  ;;  %15113 = vst [vmem:[#allocation201_spill] sm:$0xff] %v10716_v25  ;;  %v10728_v1 = vand.u32 2147483647, %v15117_v44  ;;  %v15119_v34 = vld [vmem:[#allocation105_spill] sm:$0xff]  ;;  %v15124_v29 = vld [vmem:[#allocation110_spill] sm:$0xff] }
 0x4f1   : > { %15114 = vst [vmem:[#allocation202_spill] sm:$0xff] %v10719_v9  ;;  %15115 = vst [vmem:[#allocation203_spill] sm:$0xff] %v10722_v36  ;;  %v10731_v19 = vand.u32 2147483647, %v15119_v34  ;;  %v10734_v26 = vand.u32 2147483647, %v15121_v55 }
 0x4f2   : > { %15116 = vst [vmem:[#allocation204_spill] sm:$0xff] %v10725_v20  ;;  %15118 = vst [vmem:[#allocation109_spill] sm:$0xff] %v10728_v1  ;;  %v10737_v13 = vand.u32 2147483647, %v10176_v2  ;;  %v10740_v9 = vand.u32 2147483647, %v15124_v29 }
 0x4f3   : > { %15120 = vst [vmem:[#allocation105_spill] sm:$0xff] %v10731_v19  ;;  %15122 = vst [vmem:[#allocation106_spill] sm:$0xff] %v10734_v26  ;;  %v10743_v28 = vmul.f32 0.3275911, %v10554_v5  ;;  %v10746_v24 = vmul.f32 0.3275911, %v10557_v45 }
 0x4f4   : > { %15123 = vst [vmem:[#allocation205_spill] sm:$0xff] %v10737_v13  ;;  %15125 = vst [vmem:[#allocation110_spill] sm:$0xff] %v10740_v9  ;;  %v10749_v44 = vmul.f32 0.3275911, %v10560_v27  ;;  %v10752_v34 = vmul.f32 0.3275911, %v10563_v41 }
 0x4f5   : > { %v10755_v55 = vmul.f32 0.3275911, %v10566_v21  ;;  %v10758_v2 = vmul.f32 0.3275911, %v10569_v49  ;;  %v10761_v9 = vmul.f32 0.3275911, %v10572_v31 }
 0x4f6   : > { %v10764_v5 = vmul.f32 0.3275911, %v10575_v32  ;;  %v10767_v45 = vmul.f32 0.3275911, %v10578_v11  ;;  %v10770_v27 = vmul.f32 0.3275911, %v10581_v46 }
 0x4f7   : > { %v10773_v41 = vmul.f32 0.3275911, %v10584_v3  ;;  %v10776_v21 = vmul.f32 0.3275911, %v10587_v16  ;;  %v10779_v49 = vmul.f32 0.3275911, %v10590_v48 }
 0x4f8   : > { %v10782_v31 = vmul.f32 0.3275911, %v10593_v53  ;;  %v10785_v32 = vmul.f32 0.3275911, %v10596_v12  ;;  %v10788_v11 = vmul.f32 0.3275911, %v10599_v63 }
 0x4f9   : > { %v10791_v46 = vmul.f32 0.3275911, %v10602_v0  ;;  %v10794_v3 = vmul.f32 0.3275911, %v10605_v62  ;;  %v10797_v16 = vmul.f32 0.3275911, %v10608_v14 }
 0x4fa   : > { %v10800_v48 = vmul.f32 0.3275911, %v10611_v37  ;;  %v10803_v53 = vmul.f32 0.3275911, %v10614_v42  ;;  %v10806_v12 = vmul.f32 0.3275911, %v10617_v43 }
 0x4fb   : > { %v10809_v63 = vmul.f32 0.3275911, %v10620_v59  ;;  %v10812_v0 = vmul.f32 0.3275911, %v10623_v15  ;;  %v10815_v62 = vmul.f32 0.3275911, %v10626_v35 }
 0x4fc   : > { %v10818_v14 = vmul.f32 0.3275911, %v10629_v57  ;;  %v10821_v37 = vmul.f32 0.3275911, %v10632_v56  ;;  %v10824_v42 = vmul.f32 0.3275911, %v10635_v33 }
 0x4fd   : > { %vm3735_vm3 = vcmp.ge.f32.partialorder %v15124_v29, 0.0  ;;  %v10828_v59 = vmul.f32 0.3275911, %v10638_v54  ;;  %v15128_v43 = vld [vmem:[#allocation178_spill] sm:$0xff]  ;;  %v10834_v35 = vmul.f32 0.3275911, %v10644_v40 }
 0x4fe   : > { %15126 = vst [vmem:[#allocation206_spill] sm:$0xff] %v10818_v14  ;;  %15127 = vst [vmem:[#allocation207_spill] sm:$0xff] %v10824_v42  ;;  %v10831_v15 = vmul.f32 0.3275911, %v15128_v43  ;;  %v10837_v57 = vmul.f32 0.3275911, %v10647_v52 }
 0x4ff   : > { %v15129_v14 = vld [vmem:[#allocation181_spill] sm:$0xff]  ;;  %v10843_v33 = vmul.f32 0.3275911, %v10653_v7  ;;  %v10846_v42 = vmul.f32 0.3275911, %v10656_v60  ;;  %v3933_v29 = vadd.f32 1.0, %v10758_v2 }
 0x500   : > { %v10840_v56 = vmul.f32 0.3275911, %v15129_v14  ;;  %v10849_v54 = vmul.f32 0.3275911, %v10659_v23  ;;  %v10852_v43 = vmul.f32 0.3275911, %v10662_v47 }
 0x501   : > { %v10855_v40 = vmul.f32 0.3275911, %v10665_v61  ;;  %v10858_v52 = vmul.f32 0.3275911, %v10668_v8  ;;  %v10861_v14 = vmul.f32 0.3275911, %v10671_v30 }
 0x502   : > { %v10864_v7 = vmul.f32 0.3275911, %v10674_v18  ;;  %v10867_v60 = vmul.f32 0.3275911, %v10677_v22  ;;  %v10870_v23 = vmul.f32 0.3275911, %v10680_v50 }
 0x503   : > { %v10873_v47 = vmul.f32 0.3275911, %v10683_v17  ;;  %v10876_v61 = vmul.f32 0.3275911, %v10686_v51  ;;  %v10879_v8 = vmul.f32 0.3275911, %v10689_v10 }
 0x504   : > { %v10882_v30 = vmul.f32 0.3275911, %v10692_v58  ;;  %v10885_v18 = vmul.f32 0.3275911, %v10695_v6  ;;  %v10888_v22 = vmul.f32 0.3275911, %v10698_v4 }
 0x505   : > { %15130 = vst [vmem:[#allocation208_spill] sm:$0xff] %v10876_v61  ;;  %15131 = vst [vmem:[#allocation209_spill] sm:$0xff] %v10879_v8  ;;  %v10891_v50 = vmul.f32 0.3275911, %v10701_v39  ;;  %v10894_v17 = vmul.f32 0.3275911, %v10704_v38 }
 0x506   : > { %15132 = vst [vmem:[#allocation210_spill] sm:$0xff] %v10882_v30  ;;  %15133 = vst [vmem:[#allocation211_spill] sm:$0xff] %v10888_v22  ;;  %v15134_v51 = vld [vmem:[#allocation198_spill] sm:$0xff]  ;;  %v15135_v10 = vld [vmem:[#allocation199_spill] sm:$0xff]  ;;  %v10906_v6 = vmul.f32 0.3275911, %v10716_v25 }
 0x507   : > { %v10897_v61 = vmul.f32 0.3275911, %v15134_v51  ;;  %v10900_v8 = vmul.f32 0.3275911, %v15135_v10  ;;  %v15136_v58 = vld [vmem:[#allocation200_spill] sm:$0xff]  ;;  %v15137_v4 = vld [vmem:[#allocation202_spill] sm:$0xff] }
 0x508   : > { %v10903_v30 = vmul.f32 0.3275911, %v15136_v58  ;;  %v10909_v22 = vmul.f32 0.3275911, %v15137_v4  ;;  %v10912_v39 = vmul.f32 0.3275911, %v10722_v36 }
 0x509   : > { %v10915_v38 = vmul.f32 0.3275911, %v10725_v20  ;;  %v10918_v51 = vmul.f32 0.3275911, %v10728_v1  ;;  %v10921_v10 = vmul.f32 0.3275911, %v10731_v19 }
 0x50a   : > { %15138 = vst [vmem:[#allocation212_spill] sm:$0xff] %v10912_v39  ;;  %v10924_v58 = vmul.f32 0.3275911, %v10734_v26  ;;  %v15141_v25 = vmov -1.0   ;;  %v10932_v36 = vmul.f32 0.3275911, %v10737_v13 }
 0x50b   : > { %15139 = vst [vmem:[#allocation213_spill] sm:$0xff] %v10918_v51  ;;  %v10929_v4 = vsel %vm3735_vm3, 1.0, %v15141_v25  ;;  %v15143_v39 = vld [vmem:[#allocation110_spill] sm:$0xff]  ;;  %v3928_v1 = vadd.f32 1.0, %v10743_v28  ;;  %v3929_v51 = vadd.f32 1.0, %v10746_v24  ;;  %v3930_v19 = vadd.f32 1.0, %v10749_v44 }
 0x50c   : > { %15140 = vst [vmem:[#allocation214_spill] sm:$0xff] %v10924_v58  ;;  %15142 = vst [vmem:[#allocation215_spill] sm:$0xff] %v10929_v4  ;;  %v10935_v20 = vmul.f32 0.3275911, %v15143_v39  ;;  %v3931_v26 = vadd.f32 1.0, %v10752_v34  ;;  %v3932_v58 = vadd.f32 1.0, %v10755_v55 }
 0x50d   : > { %v3934_v25 = vadd.f32 1.0, %v10761_v9  ;;  %v3935_v4 = vadd.f32 1.0, %v10764_v5  ;;  %v3936_v13 = vadd.f32 1.0, %v10767_v45  ;;  %v10947_v39 = vadd.f32 1.0, %v10770_v27 }
 0x50e   : > { %v10950_v28 = vadd.f32 1.0, %v10773_v41  ;;  %v10953_v24 = vadd.f32 1.0, %v10776_v21  ;;  %v10956_v44 = vadd.f32 1.0, %v10779_v49  ;;  %v10959_v34 = vadd.f32 1.0, %v10782_v31 }
 0x50f   : > { %v10962_v9 = vadd.f32 1.0, %v10785_v32  ;;  %v10965_v45 = vadd.f32 1.0, %v10788_v11  ;;  %v10968_v5 = vadd.f32 1.0, %v10791_v46  ;;  %v10971_v41 = vadd.f32 1.0, %v10794_v3  ;;  %v15144_v3 = vld [vmem:[#allocation206_spill] sm:$0xff] }
 0x510   : > { %v10974_v27 = vadd.f32 1.0, %v10797_v16  ;;  %v10977_v49 = vadd.f32 1.0, %v10800_v48  ;;  %v10980_v21 = vadd.f32 1.0, %v10803_v53  ;;  %v10983_v31 = vadd.f32 1.0, %v10806_v12  ;;  %v15145_v53 = vld [vmem:[#allocation207_spill] sm:$0xff] }
 0x511   : > { %v10986_v32 = vadd.f32 1.0, %v10809_v63  ;;  %v10989_v11 = vadd.f32 1.0, %v10812_v0  ;;  %v10992_v46 = vadd.f32 1.0, %v10815_v62  ;;  %v10995_v16 = vadd.f32 1.0, %v15144_v3 }
 0x512   : > { %v10998_v48 = vadd.f32 1.0, %v10821_v37  ;;  %v11001_v55 = vadd.f32 1.0, %v15145_v53  ;;  %v11004_v12 = vadd.f32 1.0, %v10828_v59  ;;  %v11007_v63 = vadd.f32 1.0, %v10831_v15  ;;  %v15148_v53 = vld [vmem:[#allocation209_spill] sm:$0xff] }
 0x513   : > { %v11010_v0 = vadd.f32 1.0, %v10834_v35  ;;  %v11013_v62 = vadd.f32 1.0, %v10837_v57  ;;  %v11016_v2 = vadd.f32 1.0, %v10840_v56  ;;  %v11019_v37 = vadd.f32 1.0, %v10843_v33 }
 0x514   : > { %v11022_v3 = vadd.f32 1.0, %v10846_v42  ;;  %v11025_v59 = vadd.f32 1.0, %v10849_v54  ;;  %v11028_v15 = vadd.f32 1.0, %v10852_v43  ;;  %v11031_v35 = vadd.f32 1.0, %v10855_v40  ;;  %v15147_v40 = vld [vmem:[#allocation208_spill] sm:$0xff] }
 0x515   : > { %v11034_v57 = vadd.f32 1.0, %v10858_v52  ;;  %v11037_v56 = vadd.f32 1.0, %v10861_v14  ;;  %6350 = vrcp.f32 %v3928_v1  ;;  %v11040_v33 = vadd.f32 1.0, %v10864_v7  ;;  %v15149_v1 = vld [vmem:[#allocation210_spill] sm:$0xff] }
 0x516   : > { %v11043_v42 = vadd.f32 1.0, %v10867_v60  ;;  %v11046_v54 = vadd.f32 1.0, %v10870_v23  ;;  %6352 = vrcp.f32 %v3929_v51  ;;  %v11049_v43 = vadd.f32 1.0, %v10873_v47 }
 0x517   : > { %v11052_v52 = vadd.f32 1.0, %v15147_v40  ;;  %v11055_v14 = vadd.f32 1.0, %v15148_v53  ;;  %6354 = vrcp.f32 %v3930_v19  ;;  %v11058_v7 = vadd.f32 1.0, %v15149_v1  ;;  %v15155_v53 = vld [vmem:[#allocation214_spill] sm:$0xff] }
 0x518   : > { %15146 = vst [vmem:[#allocation206_spill] sm:$0xff] %v11043_v42  ;;  %v11061_v60 = vadd.f32 1.0, %v10885_v18  ;;  %v15150_v42 = vld [vmem:[#allocation211_spill] sm:$0xff]  ;;  %6356 = vrcp.f32 %v3931_v26  ;;  %v11067_v47 = vadd.f32 1.0, %v10891_v50  ;;  %v11070_v51 = vadd.f32 1.0, %v10894_v17  ;;  %v15151_v26 = vld [vmem:[#allocation212_spill] sm:$0xff] }
 0x519   : > { %v11064_v23 = vadd.f32 1.0, %v15150_v42  ;;  %v11073_v40 = vadd.f32 1.0, %v10897_v61  ;;  %6358 = vrcp.f32 %v3932_v58  ;;  %v11076_v19 = vadd.f32 1.0, %v10900_v8  ;;  %v15152_v58 = vld [vmem:[#allocation213_spill] sm:$0xff] }
 0x51a   : > { %v11079_v18 = vadd.f32 1.0, %v10903_v30  ;;  %v11082_v42 = vadd.f32 1.0, %v10906_v6  ;;  %6360 = vrcp.f32 %v3933_v29  ;;  %v11085_v50 = vadd.f32 1.0, %v10909_v22 }
 0x51b   : > { %v11088_v17 = vadd.f32 1.0, %v15151_v26  ;;  %v11091_v61 = vadd.f32 1.0, %v10915_v38  ;;  %6362 = vrcp.f32 %v3934_v25  ;;  %v11094_v8 = vadd.f32 1.0, %v15152_v58 }
 0x51c   : > { %v11097_v30 = vadd.f32 1.0, %v10921_v10  ;;  %v11100_v6 = vadd.f32 1.0, %v15155_v53  ;;  %6364 = vrcp.f32 %v3935_v4  ;;  %v11103_v22 = vadd.f32 1.0, %v10932_v36 }
 0x51d   : > { %15153 = vst [vmem:[#allocation207_spill] sm:$0xff] %v11094_v8  ;;  %v11106_v29 = vadd.f32 1.0, %v10935_v20  ;;  %6366 = vrcp.f32 %v3936_v13 }
 0x51e   : > { %15154 = vst [vmem:[#allocation208_spill] sm:$0xff] %v11097_v30  ;;  %15156 = vst [vmem:[#allocation209_spill] sm:$0xff] %v11100_v6  ;;  %6368 = vrcp.f32 %v10947_v39 }
 0x51f   : > { %15157 = vst [vmem:[#allocation210_spill] sm:$0xff] %v11103_v22  ;;  %15158 = vst [vmem:[#allocation211_spill] sm:$0xff] %v11106_v29  ;;  %v11113_v53 = vpop.eup %6350  ;;  %6370 = vrcp.f32 %v10950_v28 }
 0x520   : > { %15163 = vst [vmem:[#allocation212_spill] sm:$0xff] %v11113_v53  ;;  %v11119_v6 = vpop.eup %6352  ;;  %6372 = vrcp.f32 %v10953_v24  ;;  %v4120_v39 = vmul.f32 1.0614054, %v11113_v53 }
 0x521   : > { %15167 = vst [vmem:[#allocation213_spill] sm:$0xff] %v11119_v6  ;;  %v11125_v30 = vpop.eup %6354  ;;  %6374 = vrcp.f32 %v10956_v44  ;;  %v4121_v28 = vmul.f32 1.0614054, %v11119_v6 }
 0x522   : > { %15170 = vst [vmem:[#allocation214_spill] sm:$0xff] %v11125_v30  ;;  %v11131_v29 = vpop.eup %6356  ;;  %6376 = vrcp.f32 %v10959_v34  ;;  %v4122_v24 = vmul.f32 1.0614054, %v11125_v30  ;;  %v4184_v4 = vadd.f32 -1.4531521, %v4120_v39 }
 0x523   : > { %15173 = vst [vmem:[#allocation216_spill] sm:$0xff] %v11131_v29  ;;  %v11136_v8 = vpop.eup %6358  ;;  %6378 = vrcp.f32 %v10962_v9  ;;  %v4123_v44 = vmul.f32 1.0614054, %v11131_v29  ;;  %v4185_v1 = vadd.f32 -1.4531521, %v4121_v28 }
 0x524   : > { %15175 = vst [vmem:[#allocation217_spill] sm:$0xff] %v11136_v8  ;;  %v11141_v36 = vpop.eup %6360  ;;  %6380 = vrcp.f32 %v10965_v45  ;;  %v4124_v34 = vmul.f32 1.0614054, %v11136_v8  ;;  %v4186_v13 = vadd.f32 -1.4531521, %v4122_v24  ;;  %v11156_v24 = vmul.f32 %v11113_v53, %v4184_v4 }
 0x525   : > { %15177 = vst [vmem:[#allocation218_spill] sm:$0xff] %v11141_v36  ;;  %v11146_v25 = vpop.eup %6362  ;;  %6382 = vrcp.f32 %v10968_v5  ;;  %v4125_v9 = vmul.f32 1.0614054, %v11141_v36  ;;  %v4187_v26 = vadd.f32 -1.4531521, %v4123_v44  ;;  %v11163_v44 = vmul.f32 %v11119_v6, %v4185_v1  ;;  %v15206_v6 = vld [vmem:[#allocation206_spill] sm:$0xff] }
 0x526   : > { %15179 = vst [vmem:[#allocation219_spill] sm:$0xff] %v11146_v25  ;;  %v11151_v38 = vpop.eup %6364  ;;  %6384 = vrcp.f32 %v10971_v41  ;;  %v4126_v45 = vmul.f32 1.0614054, %v11146_v25  ;;  %v4188_v20 = vadd.f32 -1.4531521, %v4124_v34  ;;  %v11170_v4 = vmul.f32 %v11125_v30, %v4186_v13 }
 0x527   : > { %15181 = vst [vmem:[#allocation220_spill] sm:$0xff] %v11151_v38  ;;  %v11158_v39 = vpop.eup %6366  ;;  %6386 = vrcp.f32 %v10974_v27  ;;  %v4127_v5 = vmul.f32 1.0614054, %v11151_v38  ;;  %v4189_v22 = vadd.f32 -1.4531521, %v4125_v9  ;;  %v11177_v1 = vmul.f32 %v11131_v29, %v4187_v26 }
 0x528   : > { %15182 = vst [vmem:[#allocation221_spill] sm:$0xff] %v11158_v39  ;;  %v11165_v28 = vpop.eup %6368  ;;  %6388 = vrcp.f32 %v10977_v49  ;;  %v4128_v41 = vmul.f32 1.0614054, %v11158_v39  ;;  %v4190_v34 = vadd.f32 -1.4531521, %v4126_v45  ;;  %v11184_v13 = vmul.f32 %v11136_v8, %v4188_v20 }
 0x529   : > { %15183 = vst [vmem:[#allocation222_spill] sm:$0xff] %v11165_v28  ;;  %v11172_v10 = vpop.eup %6370  ;;  %6390 = vrcp.f32 %v10980_v21  ;;  %v4129_v27 = vmul.f32 1.0614054, %v11165_v28  ;;  %v4191_v9 = vadd.f32 -1.4531521, %v4127_v5  ;;  %v11191_v26 = vmul.f32 %v11141_v36, %v4189_v22 }
 0x52a   : > { %15184 = vst [vmem:[#allocation223_spill] sm:$0xff] %v11172_v10  ;;  %v11179_v58 = vpop.eup %6372  ;;  %6392 = vrcp.f32 %v10983_v31  ;;  %v4130_v49 = vmul.f32 1.0614054, %v11172_v10  ;;  %v4192_v45 = vadd.f32 -1.4531521, %v4128_v41  ;;  %v11198_v20 = vmul.f32 %v11146_v25, %v4190_v34 }
 0x52b   : > { %15185 = vst [vmem:[#allocation224_spill] sm:$0xff] %v11179_v58  ;;  %v11186_v30 = vpop.eup %6374  ;;  %6394 = vrcp.f32 %v10986_v32  ;;  %v4131_v21 = vmul.f32 1.0614054, %v11179_v58  ;;  %v4193_v5 = vadd.f32 -1.4531521, %v4129_v27  ;;  %v11205_v22 = vmul.f32 %v11151_v38, %v4191_v9 }
 0x52c   : > { %15186 = vst [vmem:[#allocation225_spill] sm:$0xff] %v11186_v30  ;;  %v11193_v29 = vpop.eup %6376  ;;  %6396 = vrcp.f32 %v10989_v11  ;;  %v4132_v31 = vmul.f32 1.0614054, %v11186_v30  ;;  %v4194_v41 = vadd.f32 -1.4531521, %v4130_v49  ;;  %v11212_v34 = vmul.f32 %v11158_v39, %v4192_v45 }
 0x52d   : > { %15187 = vst [vmem:[#allocation226_spill] sm:$0xff] %v11193_v29  ;;  %v11200_v8 = vpop.eup %6378  ;;  %6398 = vrcp.f32 %v10992_v46  ;;  %v4133_v32 = vmul.f32 1.0614054, %v11193_v29  ;;  %v4195_v27 = vadd.f32 -1.4531521, %v4131_v21  ;;  %v11219_v9 = vmul.f32 %v11165_v28, %v4193_v5 }
 0x52e   : > { %15188 = vst [vmem:[#allocation227_spill] sm:$0xff] %v11200_v8  ;;  %v11207_v36 = vpop.eup %6380  ;;  %6400 = vrcp.f32 %v10995_v16  ;;  %v4134_v11 = vmul.f32 1.0614054, %v11200_v8  ;;  %v4196_v49 = vadd.f32 -1.4531521, %v4132_v31  ;;  %v11226_v45 = vmul.f32 %v11172_v10, %v4194_v41 }
 0x52f   : > { %15189 = vst [vmem:[#allocation228_spill] sm:$0xff] %v11207_v36  ;;  %v11214_v25 = vpop.eup %6382  ;;  %6402 = vrcp.f32 %v10998_v48  ;;  %v4135_v46 = vmul.f32 1.0614054, %v11207_v36  ;;  %v4197_v21 = vadd.f32 -1.4531521, %v4133_v32  ;;  %v11233_v5 = vmul.f32 %v11179_v58, %v4195_v27 }
 0x530   : > { %15190 = vst [vmem:[#allocation229_spill] sm:$0xff] %v11214_v25  ;;  %v11221_v38 = vpop.eup %6384  ;;  %6404 = vrcp.f32 %v11001_v55  ;;  %v4136_v16 = vmul.f32 1.0614054, %v11214_v25  ;;  %v4198_v31 = vadd.f32 -1.4531521, %v4134_v11  ;;  %v11240_v41 = vmul.f32 %v11186_v30, %v4196_v49 }
 0x531   : > { %15191 = vst [vmem:[#allocation230_spill] sm:$0xff] %v11221_v38  ;;  %v11228_v39 = vpop.eup %6386  ;;  %6406 = vrcp.f32 %v11004_v12  ;;  %v4137_v48 = vmul.f32 1.0614054, %v11221_v38  ;;  %v4199_v32 = vadd.f32 -1.4531521, %v4135_v46  ;;  %v11247_v27 = vmul.f32 %v11193_v29, %v4197_v21 }
 0x532   : > { %15192 = vst [vmem:[#allocation231_spill] sm:$0xff] %v11228_v39  ;;  %v11235_v28 = vpop.eup %6388  ;;  %6408 = vrcp.f32 %v11007_v63  ;;  %v4138_v55 = vmul.f32 1.0614054, %v11228_v39  ;;  %v4200_v11 = vadd.f32 -1.4531521, %v4136_v16  ;;  %v11254_v49 = vmul.f32 %v11200_v8, %v4198_v31 }
 0x533   : > { %15193 = vst [vmem:[#allocation232_spill] sm:$0xff] %v11235_v28  ;;  %v11242_v10 = vpop.eup %6390  ;;  %6410 = vrcp.f32 %v11010_v0  ;;  %v4139_v12 = vmul.f32 1.0614054, %v11235_v28  ;;  %v4201_v46 = vadd.f32 -1.4531521, %v4137_v48  ;;  %v11261_v21 = vmul.f32 %v11207_v36, %v4199_v32 }
 0x534   : > { %15194 = vst [vmem:[#allocation233_spill] sm:$0xff] %v11242_v10  ;;  %v11249_v58 = vpop.eup %6392  ;;  %6412 = vrcp.f32 %v11013_v62  ;;  %v4140_v63 = vmul.f32 1.0614054, %v11242_v10  ;;  %v4202_v16 = vadd.f32 -1.4531521, %v4138_v55  ;;  %v11268_v31 = vmul.f32 %v11214_v25, %v4200_v11 }
 0x535   : > { %15195 = vst [vmem:[#allocation234_spill] sm:$0xff] %v11249_v58  ;;  %v11256_v30 = vpop.eup %6394  ;;  %6414 = vrcp.f32 %v11016_v2  ;;  %v4141_v0 = vmul.f32 1.0614054, %v11249_v58  ;;  %v4203_v48 = vadd.f32 -1.4531521, %v4139_v12  ;;  %v11275_v32 = vmul.f32 %v11221_v38, %v4201_v46 }
 0x536   : > { %15196 = vst [vmem:[#allocation235_spill] sm:$0xff] %v11256_v30  ;;  %v11263_v29 = vpop.eup %6396  ;;  %6416 = vrcp.f32 %v11019_v37  ;;  %v4142_v62 = vmul.f32 1.0614054, %v11256_v30  ;;  %v4204_v55 = vadd.f32 -1.4531521, %v4140_v63  ;;  %v11282_v11 = vmul.f32 %v11228_v39, %v4202_v16 }
 0x537   : > { %15197 = vst [vmem:[#allocation236_spill] sm:$0xff] %v11263_v29  ;;  %v11270_v8 = vpop.eup %6398  ;;  %6418 = vrcp.f32 %v11022_v3  ;;  %v4143_v2 = vmul.f32 1.0614054, %v11263_v29  ;;  %v4205_v12 = vadd.f32 -1.4531521, %v4141_v0  ;;  %v11289_v46 = vmul.f32 %v11235_v28, %v4203_v48 }
 0x538   : > { %15198 = vst [vmem:[#allocation237_spill] sm:$0xff] %v11270_v8  ;;  %v11277_v36 = vpop.eup %6400  ;;  %6420 = vrcp.f32 %v11025_v59  ;;  %v4144_v37 = vmul.f32 1.0614054, %v11270_v8  ;;  %v4206_v63 = vadd.f32 -1.4531521, %v4142_v62  ;;  %v11296_v16 = vmul.f32 %v11242_v10, %v4204_v55 }
 0x539   : > { %15199 = vst [vmem:[#allocation238_spill] sm:$0xff] %v11277_v36  ;;  %v11284_v25 = vpop.eup %6402  ;;  %6422 = vrcp.f32 %v11028_v15  ;;  %v4145_v3 = vmul.f32 1.0614054, %v11277_v36  ;;  %v4207_v0 = vadd.f32 -1.4531521, %v4143_v2  ;;  %v11303_v48 = vmul.f32 %v11249_v58, %v4205_v12 }
 0x53a   : > { %15200 = vst [vmem:[#allocation239_spill] sm:$0xff] %v11284_v25  ;;  %v11291_v38 = vpop.eup %6404  ;;  %6424 = vrcp.f32 %v11031_v35  ;;  %v4146_v59 = vmul.f32 1.0614054, %v11284_v25  ;;  %v4208_v62 = vadd.f32 -1.4531521, %v4144_v37  ;;  %v11310_v55 = vmul.f32 %v11256_v30, %v4206_v63 }
 0x53b   : > { %15201 = vst [vmem:[#allocation240_spill] sm:$0xff] %v11291_v38  ;;  %v11298_v39 = vpop.eup %6406  ;;  %6426 = vrcp.f32 %v11034_v57  ;;  %v4147_v15 = vmul.f32 1.0614054, %v11291_v38  ;;  %v4209_v2 = vadd.f32 -1.4531521, %v4145_v3  ;;  %v11317_v12 = vmul.f32 %v11263_v29, %v4207_v0 }
 0x53c   : > { %15202 = vst [vmem:[#allocation241_spill] sm:$0xff] %v11298_v39  ;;  %v11305_v28 = vpop.eup %6408  ;;  %6428 = vrcp.f32 %v11037_v56  ;;  %v4148_v35 = vmul.f32 1.0614054, %v11298_v39  ;;  %v4210_v37 = vadd.f32 -1.4531521, %v4146_v59  ;;  %v11324_v63 = vmul.f32 %v11270_v8, %v4208_v62 }
 0x53d   : > { %15203 = vst [vmem:[#allocation242_spill] sm:$0xff] %v11305_v28  ;;  %v11312_v10 = vpop.eup %6410  ;;  %6430 = vrcp.f32 %v11040_v33  ;;  %v4149_v57 = vmul.f32 1.0614054, %v11305_v28  ;;  %v4211_v3 = vadd.f32 -1.4531521, %v4147_v15  ;;  %v11331_v0 = vmul.f32 %v11277_v36, %v4209_v2 }
 0x53e   : > { %15204 = vst [vmem:[#allocation243_spill] sm:$0xff] %v11312_v10  ;;  %v11319_v58 = vpop.eup %6412  ;;  %6432 = vrcp.f32 %v15206_v6  ;;  %v4150_v56 = vmul.f32 1.0614054, %v11312_v10  ;;  %v4212_v59 = vadd.f32 -1.4531521, %v4148_v35  ;;  %v11338_v62 = vmul.f32 %v11284_v25, %v4210_v37 }
 0x53f   : > { %15205 = vst [vmem:[#allocation244_spill] sm:$0xff] %v11319_v58  ;;  %v11326_v30 = vpop.eup %6414  ;;  %6434 = vrcp.f32 %v11046_v54  ;;  %v4151_v33 = vmul.f32 1.0614054, %v11319_v58  ;;  %v4213_v15 = vadd.f32 -1.4531521, %v4149_v57  ;;  %v11345_v2 = vmul.f32 %v11291_v38, %v4211_v3 }
 0x540   : > { %15207 = vst [vmem:[#allocation206_spill] sm:$0xff] %v11326_v30  ;;  %v11333_v29 = vpop.eup %6416  ;;  %6436 = vrcp.f32 %v11049_v43  ;;  %v4152_v6 = vmul.f32 1.0614054, %v11326_v30  ;;  %v4214_v35 = vadd.f32 -1.4531521, %v4150_v56  ;;  %v11352_v37 = vmul.f32 %v11298_v39, %v4212_v59 }
 0x541   : > { %15208 = vst [vmem:[#allocation245_spill] sm:$0xff] %v11333_v29  ;;  %v11340_v8 = vpop.eup %6418  ;;  %6438 = vrcp.f32 %v11052_v52  ;;  %v4153_v54 = vmul.f32 1.0614054, %v11333_v29  ;;  %v4215_v57 = vadd.f32 -1.4531521, %v4151_v33  ;;  %v11359_v3 = vmul.f32 %v11305_v28, %v4213_v15 }
 0x542   : > { %15209 = vst [vmem:[#allocation246_spill] sm:$0xff] %v11340_v8  ;;  %v11347_v36 = vpop.eup %6420  ;;  %6440 = vrcp.f32 %v11055_v14  ;;  %v4154_v43 = vmul.f32 1.0614054, %v11340_v8  ;;  %v4216_v56 = vadd.f32 -1.4531521, %v4152_v6  ;;  %v11366_v59 = vmul.f32 %v11312_v10, %v4214_v35 }
 0x543   : > { %15210 = vst [vmem:[#allocation247_spill] sm:$0xff] %v11347_v36  ;;  %v11354_v25 = vpop.eup %6422  ;;  %6442 = vrcp.f32 %v11058_v7  ;;  %v4155_v52 = vmul.f32 1.0614054, %v11347_v36  ;;  %v4217_v33 = vadd.f32 -1.4531521, %v4153_v54  ;;  %v11373_v15 = vmul.f32 %v11319_v58, %v4215_v57 }
 0x544   : > { %15211 = vst [vmem:[#allocation248_spill] sm:$0xff] %v11354_v25  ;;  %v11361_v38 = vpop.eup %6424  ;;  %6444 = vrcp.f32 %v11061_v60  ;;  %v4156_v14 = vmul.f32 1.0614054, %v11354_v25  ;;  %v4218_v6 = vadd.f32 -1.4531521, %v4154_v43  ;;  %v11380_v35 = vmul.f32 %v11326_v30, %v4216_v56 }
 0x545   : > { %15212 = vst [vmem:[#allocation249_spill] sm:$0xff] %v11361_v38  ;;  %v11368_v39 = vpop.eup %6426  ;;  %6446 = vrcp.f32 %v11064_v23  ;;  %v4157_v7 = vmul.f32 1.0614054, %v11361_v38  ;;  %v4219_v54 = vadd.f32 -1.4531521, %v4155_v52  ;;  %v11387_v57 = vmul.f32 %v11333_v29, %v4217_v33 }
 0x546   : > { %15213 = vst [vmem:[#allocation250_spill] sm:$0xff] %v11368_v39  ;;  %v11375_v28 = vpop.eup %6428  ;;  %6448 = vrcp.f32 %v11067_v47  ;;  %v4158_v60 = vmul.f32 1.0614054, %v11368_v39  ;;  %v4220_v43 = vadd.f32 -1.4531521, %v4156_v14  ;;  %v11394_v56 = vmul.f32 %v11340_v8, %v4218_v6 }
 0x547   : > { %15214 = vst [vmem:[#allocation251_spill] sm:$0xff] %v11375_v28  ;;  %v11382_v10 = vpop.eup %6430  ;;  %6450 = vrcp.f32 %v11070_v51  ;;  %v4159_v23 = vmul.f32 1.0614054, %v11375_v28  ;;  %v4221_v52 = vadd.f32 -1.4531521, %v4157_v7  ;;  %v11401_v33 = vmul.f32 %v11347_v36, %v4219_v54 }
 0x548   : > { %15215 = vst [vmem:[#allocation252_spill] sm:$0xff] %v11382_v10  ;;  %v11389_v58 = vpop.eup %6432  ;;  %6452 = vrcp.f32 %v11073_v40  ;;  %v4160_v47 = vmul.f32 1.0614054, %v11382_v10  ;;  %v4222_v14 = vadd.f32 -1.4531521, %v4158_v60  ;;  %v11408_v6 = vmul.f32 %v11354_v25, %v4220_v43 }
 0x549   : > { %15216 = vst [vmem:[#allocation253_spill] sm:$0xff] %v11389_v58  ;;  %v11396_v30 = vpop.eup %6434  ;;  %6454 = vrcp.f32 %v11076_v19  ;;  %v4161_v51 = vmul.f32 1.0614054, %v11389_v58  ;;  %v4223_v7 = vadd.f32 -1.4531521, %v4159_v23  ;;  %v11415_v54 = vmul.f32 %v11361_v38, %v4221_v52 }
 0x54a   : > { %15217 = vst [vmem:[#allocation254_spill] sm:$0xff] %v11396_v30  ;;  %v11403_v29 = vpop.eup %6436  ;;  %6456 = vrcp.f32 %v11079_v18  ;;  %v4162_v40 = vmul.f32 1.0614054, %v11396_v30  ;;  %v4224_v60 = vadd.f32 -1.4531521, %v4160_v47  ;;  %v11422_v43 = vmul.f32 %v11368_v39, %v4222_v14 }
 0x54b   : > { %15218 = vst [vmem:[#allocation255_spill] sm:$0xff] %v11403_v29  ;;  %v11410_v8 = vpop.eup %6438  ;;  %6458 = vrcp.f32 %v11082_v42  ;;  %v4163_v19 = vmul.f32 1.0614054, %v11403_v29  ;;  %v4225_v23 = vadd.f32 -1.4531521, %v4161_v51  ;;  %v11429_v52 = vmul.f32 %v11375_v28, %v4223_v7 }
 0x54c   : > { %15219 = vst [vmem:[#allocation256_spill] sm:$0xff] %v11410_v8  ;;  %v11417_v36 = vpop.eup %6440  ;;  %6460 = vrcp.f32 %v11085_v50  ;;  %v4164_v18 = vmul.f32 1.0614054, %v11410_v8  ;;  %v4226_v47 = vadd.f32 -1.4531521, %v4162_v40  ;;  %15221 = vst [vmem:[#allocation258_spill] sm:$0xff] %v11422_v43  ;;  %v11436_v14 = vmul.f32 %v11382_v10, %v4224_v60 }
 0x54d   : > { %15220 = vst [vmem:[#allocation257_spill] sm:$0xff] %v11417_v36  ;;  %v11424_v25 = vpop.eup %6442  ;;  %6462 = vrcp.f32 %v11088_v17  ;;  %v4165_v42 = vmul.f32 1.0614054, %v11417_v36  ;;  %v4227_v51 = vadd.f32 -1.4531521, %v4163_v19  ;;  %15223 = vst [vmem:[#allocation260_spill] sm:$0xff] %v11429_v52  ;;  %v11443_v7 = vmul.f32 %v11389_v58, %v4225_v23 }
 0x54e   : > { %15222 = vst [vmem:[#allocation259_spill] sm:$0xff] %v11424_v25  ;;  %v11431_v38 = vpop.eup %6444  ;;  %6464 = vrcp.f32 %v11091_v61  ;;  %v4166_v50 = vmul.f32 1.0614054, %v11424_v25  ;;  %v4228_v40 = vadd.f32 -1.4531521, %v4164_v18  ;;  %15225 = vst [vmem:[#allocation262_spill] sm:$0xff] %v11436_v14  ;;  %v11450_v60 = vmul.f32 %v11396_v30, %v4226_v47 }
 0x54f   : > { %15224 = vst [vmem:[#allocation261_spill] sm:$0xff] %v11431_v38  ;;  %v11438_v39 = vpop.eup %6446  ;;  %v15227_v43 = vld [vmem:[#allocation207_spill] sm:$0xff]  ;;  %v4167_v17 = vmul.f32 1.0614054, %v11431_v38  ;;  %v4229_v19 = vadd.f32 -1.4531521, %v4165_v42  ;;  %v11457_v23 = vmul.f32 %v11403_v29, %v4227_v51 }
 0x550   : > { %15226 = vst [vmem:[#allocation263_spill] sm:$0xff] %v11438_v39  ;;  %6466 = vrcp.f32 %v15227_v43  ;;  %15228 = vst [vmem:[#allocation207_spill] sm:$0xff] %v11443_v7  ;;  %v11445_v28 = vpop.eup %6448  ;;  %v15230_v52 = vld [vmem:[#allocation208_spill] sm:$0xff]  ;;  %v4168_v61 = vmul.f32 1.0614054, %v11438_v39  ;;  %v15233_v14 = vld [vmem:[#allocation209_spill] sm:$0xff]  ;;  %v11464_v47 = vmul.f32 %v11410_v8, %v4228_v40 }
 0x551   : > { %15229 = vst [vmem:[#allocation264_spill] sm:$0xff] %v11445_v28  ;;  %6468 = vrcp.f32 %v15230_v52  ;;  %v4230_v18 = vadd.f32 -1.4531521, %v4166_v50  ;;  %15231 = vst [vmem:[#allocation208_spill] sm:$0xff] %v11450_v60  ;;  %v11452_v10 = vpop.eup %6450  ;;  %v4169_v43 = vmul.f32 1.0614054, %v11445_v28  ;;  %v11471_v51 = vmul.f32 %v11417_v36, %v4229_v19 }
 0x552   : > { %15232 = vst [vmem:[#allocation265_spill] sm:$0xff] %v11452_v10  ;;  %6470 = vrcp.f32 %v15233_v14  ;;  %v4231_v42 = vadd.f32 -1.4531521, %v4167_v17  ;;  %15234 = vst [vmem:[#allocation209_spill] sm:$0xff] %v11457_v23  ;;  %v11459_v58 = vpop.eup %6452  ;;  %v15236_v7 = vld [vmem:[#allocation210_spill] sm:$0xff]  ;;  %v15239_v60 = vld [vmem:[#allocation211_spill] sm:$0xff] }
 0x553   : > { %15235 = vst [vmem:[#allocation266_spill] sm:$0xff] %v11459_v58  ;;  %6472 = vrcp.f32 %v15236_v7  ;;  %v4170_v52 = vmul.f32 1.0614054, %v11452_v10  ;;  %v4232_v50 = vadd.f32 -1.4531521, %v4168_v61  ;;  %15237 = vst [vmem:[#allocation210_spill] sm:$0xff] %v11464_v47  ;;  %v11466_v30 = vpop.eup %6454  ;;  %v11477_v61 = vmul.f32 %v11424_v25, %v4230_v18 }
 0x554   : > { %15238 = vst [vmem:[#allocation267_spill] sm:$0xff] %v11466_v30  ;;  %6474 = vrcp.f32 %v15239_v60  ;;  %v4171_v14 = vmul.f32 1.0614054, %v11459_v58  ;;  %v4233_v17 = vadd.f32 -1.4531521, %v4169_v43  ;;  %v11473_v29 = vpop.eup %6456  ;;  %v11480_v40 = vmul.f32 %v11431_v38, %v4231_v42 }
 0x555   : > { %15240 = vst [vmem:[#allocation211_spill] sm:$0xff] %v11473_v29  ;;  %v4172_v7 = vmul.f32 1.0614054, %v11466_v30  ;;  %v4234_v23 = vadd.f32 -1.4531521, %v4170_v52  ;;  %v11482_v8 = vpop.eup %6458  ;;  %v11486_v43 = vmul.f32 %v11438_v39, %v4232_v50 }
 0x556   : > { %15241 = vst [vmem:[#allocation268_spill] sm:$0xff] %v11480_v40  ;;  %15242 = vst [vmem:[#allocation269_spill] sm:$0xff] %v11482_v8  ;;  %v4173_v60 = vmul.f32 1.0614054, %v11473_v29  ;;  %v4235_v47 = vadd.f32 -1.4531521, %v4171_v14  ;;  %v11491_v36 = vpop.eup %6460  ;;  %v11495_v25 = vmul.f32 %v11445_v28, %v4233_v17 }
 0x557   : > { %15243 = vst [vmem:[#allocation270_spill] sm:$0xff] %v11486_v43  ;;  %v11489_v19 = vadd.f32 1.4214138, %v11156_v24  ;;  %15244 = vst [vmem:[#allocation271_spill] sm:$0xff] %v11491_v36  ;;  %v4174_v52 = vmul.f32 1.0614054, %v11482_v8  ;;  %v11500_v38 = vpop.eup %6462  ;;  %v11504_v39 = vmul.f32 %v11452_v10, %v4234_v23 }
 0x558   : > { %v4236_v18 = vadd.f32 -1.4531521, %v4172_v7  ;;  %15245 = vst [vmem:[#allocation272_spill] sm:$0xff] %v11495_v25  ;;  %v11498_v42 = vadd.f32 1.4214138, %v11163_v44  ;;  %15246 = vst [vmem:[#allocation273_spill] sm:$0xff] %v11500_v38  ;;  %v11509_v43 = vpop.eup %6464  ;;  %v11513_v28 = vmul.f32 %v11459_v58, %v4235_v47 }
 0x559   : > { %v4175_v14 = vmul.f32 1.0614054, %v11491_v36  ;;  %v4237_v50 = vadd.f32 -1.4531521, %v4173_v60  ;;  %15247 = vst [vmem:[#allocation274_spill] sm:$0xff] %v11504_v39  ;;  %15248 = vst [vmem:[#allocation275_spill] sm:$0xff] %v11509_v43 }
 0x55a   : > { %v11507_v24 = vadd.f32 1.4214138, %v11170_v4  ;;  %v4176_v7 = vmul.f32 1.0614054, %v11500_v38  ;;  %v4238_v17 = vadd.f32 -1.4531521, %v4174_v52  ;;  %v11518_v25 = vpop.eup %6466  ;;  %v11522_v10 = vmul.f32 %v11466_v30, %v4236_v18 }
 0x55b   : > { %15249 = vst [vmem:[#allocation276_spill] sm:$0xff] %v11513_v28  ;;  %v11516_v44 = vadd.f32 1.4214138, %v11177_v1  ;;  %15250 = vst [vmem:[#allocation277_spill] sm:$0xff] %v11518_v25  ;;  %v4177_v60 = vmul.f32 1.0614054, %v11509_v43  ;;  %v11527_v39 = vpop.eup %6468  ;;  %v11531_v58 = vmul.f32 %v11473_v29, %v4237_v50 }
 0x55c   : > { %v4239_v23 = vadd.f32 -1.4531521, %v4175_v14  ;;  %15251 = vst [vmem:[#allocation278_spill] sm:$0xff] %v11522_v10  ;;  %v11525_v4 = vadd.f32 1.4214138, %v11184_v13  ;;  %15252 = vst [vmem:[#allocation279_spill] sm:$0xff] %v11527_v39  ;;  %v11536_v28 = vpop.eup %6470  ;;  %v11540_v30 = vmul.f32 %v11482_v8, %v4238_v17 }
 0x55d   : > { %v4178_v52 = vmul.f32 1.0614054, %v11518_v25  ;;  %v4240_v47 = vadd.f32 -1.4531521, %v4176_v7  ;;  %15253 = vst [vmem:[#allocation280_spill] sm:$0xff] %v11531_v58  ;;  %15254 = vst [vmem:[#allocation281_spill] sm:$0xff] %v11536_v28  ;;  %v11543_v10 = vpop.eup %6472 }
 0x55e   : > { %v11534_v1 = vadd.f32 1.4214138, %v11191_v26  ;;  %v4179_v14 = vmul.f32 1.0614054, %v11527_v39  ;;  %v4241_v18 = vadd.f32 -1.4531521, %v4177_v60  ;;  %v11547_v50 = vmul.f32 %v11491_v36, %v4239_v23  ;;  %v11550_v29 = vpop.eup %6474 }
 0x55f   : > { %15255 = vst [vmem:[#allocation282_spill] sm:$0xff] %v11540_v30  ;;  %v4318_v13 = vadd.f32 1.4214138, %v11198_v20  ;;  %15256 = vst [vmem:[#allocation283_spill] sm:$0xff] %v11543_v10  ;;  %v4180_v7 = vmul.f32 1.0614054, %v11536_v28  ;;  %v11554_v17 = vmul.f32 %v11500_v38, %v4240_v47 }
 0x560   : > { %v4242_v40 = vadd.f32 -1.4531521, %v4178_v52  ;;  %15257 = vst [vmem:[#allocation284_spill] sm:$0xff] %v11547_v50  ;;  %v4319_v26 = vadd.f32 1.4214138, %v11205_v22  ;;  %15258 = vst [vmem:[#allocation285_spill] sm:$0xff] %v11550_v29  ;;  %v11559_v52 = vmul.f32 %v11509_v43, %v4241_v18 }
 0x561   : > { %v4181_v58 = vmul.f32 1.0614054, %v11543_v10  ;;  %v4243_v60 = vadd.f32 -1.4531521, %v4179_v14  ;;  %v4320_v20 = vadd.f32 1.4214138, %v11212_v34 }
 0x562   : > { %v4183_v8 = vmul.f32 1.0614054, %v11550_v29  ;;  %v4244_v30 = vadd.f32 -1.4531521, %v4180_v7  ;;  %v4321_v23 = vadd.f32 1.4214138, %v11219_v9  ;;  %v11563_v22 = vmul.f32 %v11518_v25, %v4242_v40 }
 0x563   : > { %v4245_v36 = vadd.f32 -1.4531521, %v4181_v58  ;;  %v4322_v50 = vadd.f32 1.4214138, %v11226_v45  ;;  %v11567_v14 = vadd.f32 1.4214138, %v11233_v5  ;;  %v11570_v34 = vmul.f32 %v11527_v39, %v4243_v60 }
 0x564   : > { %v4247_v47 = vadd.f32 -1.4531521, %v4183_v8  ;;  %v11573_v7 = vadd.f32 1.4214138, %v11240_v41  ;;  %v11576_v18 = vadd.f32 1.4214138, %v11247_v27  ;;  %v4308_v58 = vmul.f32 %v11536_v28, %v4244_v30 }
 0x565   : > { %v11580_v9 = vadd.f32 1.4214138, %v11254_v49  ;;  %v11583_v45 = vadd.f32 1.4214138, %v11261_v21  ;;  %v11586_v5 = vadd.f32 1.4214138, %v11268_v31  ;;  %v4309_v8 = vmul.f32 %v11543_v10, %v4245_v36 }
 0x566   : > { %v11590_v40 = vadd.f32 1.4214138, %v11275_v32  ;;  %v11593_v41 = vadd.f32 1.4214138, %v11282_v11  ;;  %v11596_v27 = vadd.f32 1.4214138, %v11289_v46  ;;  %v4311_v30 = vmul.f32 %v11550_v29, %v4247_v47 }
 0x567   : > { %v11600_v49 = vadd.f32 1.4214138, %v11296_v16  ;;  %v11603_v21 = vadd.f32 1.4214138, %v11303_v48  ;;  %v11606_v31 = vadd.f32 1.4214138, %v11310_v55  ;;  %v11619_v46 = vmul.f32 %v11113_v53, %v11489_v19 }
 0x568   : > { %v11609_v36 = vadd.f32 1.4214138, %v11317_v12  ;;  %v11612_v32 = vadd.f32 1.4214138, %v11324_v63  ;;  %v11615_v11 = vadd.f32 1.4214138, %v11331_v0 }
 0x569   : > { %15262 = vst [vmem:[#allocation289_spill] sm:$0xff] %v11619_v46  ;;  %v4338_v16 = vadd.f32 1.4214138, %v11338_v62  ;;  %v4339_v48 = vadd.f32 1.4214138, %v11345_v2  ;;  %v15263_v60 = vld [vmem:[#allocation213_spill] sm:$0xff] }
 0x56a   : > { %15259 = vst [vmem:[#allocation286_spill] sm:$0xff] %v11609_v36  ;;  %15260 = vst [vmem:[#allocation287_spill] sm:$0xff] %v11612_v32  ;;  %v4340_v55 = vadd.f32 1.4214138, %v11352_v37  ;;  %v11626_v12 = vmul.f32 %v15263_v60, %v11498_v42  ;;  %v4341_v63 = vadd.f32 1.4214138, %v11359_v3 }
 0x56b   : > { %15261 = vst [vmem:[#allocation288_spill] sm:$0xff] %v11615_v11  ;;  %v4342_v47 = vadd.f32 1.4214138, %v11366_v59  ;;  %v4343_v0 = vadd.f32 1.4214138, %v11373_v15  ;;  %v15265_v29 = vld [vmem:[#allocation214_spill] sm:$0xff] }
 0x56c   : > { %15264 = vst [vmem:[#allocation290_spill] sm:$0xff] %v11626_v12  ;;  %v11633_v19 = vmul.f32 %v15265_v29, %v11507_v24  ;;  %v4344_v62 = vadd.f32 1.4214138, %v11380_v35  ;;  %v4345_v2 = vadd.f32 1.4214138, %v11387_v57  ;;  %v15267_v53 = vld [vmem:[#allocation216_spill] sm:$0xff] }
 0x56d   : > { %v4346_v37 = vadd.f32 1.4214138, %v11394_v56  ;;  %v11640_v42 = vmul.f32 %v15267_v53, %v11516_v44  ;;  %v4347_v3 = vadd.f32 1.4214138, %v11401_v33  ;;  %v4348_v59 = vadd.f32 1.4214138, %v11408_v6 }
 0x56e   : > { %15266 = vst [vmem:[#allocation291_spill] sm:$0xff] %v11633_v19  ;;  %v4349_v15 = vadd.f32 1.4214138, %v11415_v54  ;;  %v15269_v60 = vld [vmem:[#allocation217_spill] sm:$0xff]  ;;  %v15271_v29 = vld [vmem:[#allocation258_spill] sm:$0xff]  ;;  %v15272_v19 = vld [vmem:[#allocation260_spill] sm:$0xff] }
 0x56f   : > { %15268 = vst [vmem:[#allocation292_spill] sm:$0xff] %v11640_v42  ;;  %v11647_v24 = vmul.f32 %v15269_v60, %v11525_v4  ;;  %v4350_v35 = vadd.f32 1.4214138, %v15271_v29  ;;  %v4351_v57 = vadd.f32 1.4214138, %v15272_v19  ;;  %v15273_v12 = vld [vmem:[#allocation262_spill] sm:$0xff] }
 0x570   : > { %v4352_v56 = vadd.f32 1.4214138, %v15273_v12  ;;  %v15274_v46 = vld [vmem:[#allocation218_spill] sm:$0xff]  ;;  %v15276_v53 = vld [vmem:[#allocation207_spill] sm:$0xff]  ;;  %v15277_v42 = vld [vmem:[#allocation208_spill] sm:$0xff] }
 0x571   : > { %15270 = vst [vmem:[#allocation293_spill] sm:$0xff] %v11647_v24  ;;  %v11654_v44 = vmul.f32 %v15274_v46, %v11534_v1  ;;  %v4353_v33 = vadd.f32 1.4214138, %v15276_v53  ;;  %v4354_v6 = vadd.f32 1.4214138, %v15277_v42  ;;  %v15278_v10 = vld [vmem:[#allocation209_spill] sm:$0xff] }
 0x572   : > { %v4355_v54 = vadd.f32 1.4214138, %v15278_v10  ;;  %v15279_v28 = vld [vmem:[#allocation219_spill] sm:$0xff]  ;;  %v15281_v4 = vld [vmem:[#allocation210_spill] sm:$0xff]  ;;  %v4357_v29 = vadd.f32 1.4214138, %v11471_v51 }
 0x573   : > { %15275 = vst [vmem:[#allocation258_spill] sm:$0xff] %v11654_v44  ;;  %v11660_v39 = vmul.f32 %v15279_v28, %v4318_v13  ;;  %v4356_v60 = vadd.f32 1.4214138, %v15281_v4  ;;  %v4358_v19 = vadd.f32 1.4214138, %v11477_v61  ;;  %v15282_v12 = vld [vmem:[#allocation220_spill] sm:$0xff] }
 0x574   : > { %v11666_v24 = vmul.f32 %v15282_v12, %v4319_v26  ;;  %v15284_v1 = vld [vmem:[#allocation268_spill] sm:$0xff]  ;;  %v15285_v44 = vld [vmem:[#allocation270_spill] sm:$0xff]  ;;  %v15287_v43 = vld [vmem:[#allocation221_spill] sm:$0xff] }
 0x575   : > { %15280 = vst [vmem:[#allocation260_spill] sm:$0xff] %v11660_v39  ;;  %v4359_v46 = vadd.f32 1.4214138, %v15284_v1  ;;  %v4360_v53 = vadd.f32 1.4214138, %v15285_v44  ;;  %v15286_v25 = vld [vmem:[#allocation272_spill] sm:$0xff]  ;;  %v11672_v10 = vmul.f32 %v15287_v43, %v4320_v20 }
 0x576   : > { %15283 = vst [vmem:[#allocation262_spill] sm:$0xff] %v11666_v24  ;;  %v4361_v42 = vadd.f32 1.4214138, %v15286_v25  ;;  %v15288_v13 = vld [vmem:[#allocation274_spill] sm:$0xff]  ;;  %v15289_v39 = vld [vmem:[#allocation276_spill] sm:$0xff]  ;;  %v15295_v36 = vld [vmem:[#allocation223_spill] sm:$0xff] }
 0x577   : > { %v4362_v28 = vadd.f32 1.4214138, %v15288_v13  ;;  %v4363_v4 = vadd.f32 1.4214138, %v15289_v39  ;;  %v15290_v38 = vld [vmem:[#allocation278_spill] sm:$0xff]  ;;  %v15292_v26 = vld [vmem:[#allocation280_spill] sm:$0xff]  ;;  %v11684_v25 = vmul.f32 %v15295_v36, %v4322_v50 }
 0x578   : > { %v4364_v51 = vadd.f32 1.4214138, %v15290_v38  ;;  %v15291_v11 = vld [vmem:[#allocation222_spill] sm:$0xff]  ;;  %v4365_v12 = vadd.f32 1.4214138, %v15292_v26  ;;  %v15294_v32 = vld [vmem:[#allocation284_spill] sm:$0xff] }
 0x579   : > { %v11678_v61 = vmul.f32 %v15291_v11, %v4321_v23  ;;  %v15293_v24 = vld [vmem:[#allocation282_spill] sm:$0xff]  ;;  %v4367_v44 = vadd.f32 1.4214138, %v15294_v32  ;;  %v4368_v20 = vadd.f32 1.4214138, %v11554_v17  ;;  %v15296_v38 = vld [vmem:[#allocation224_spill] sm:$0xff] }
 0x57a   : > { %v4366_v1 = vadd.f32 1.4214138, %v15293_v24  ;;  %v4369_v13 = vadd.f32 1.4214138, %v11559_v52  ;;  %v4370_v39 = vadd.f32 1.4214138, %v11563_v22  ;;  %v11691_v43 = vmul.f32 %v15296_v38, %v11567_v14 }
 0x57b   : > { %v4371_v23 = vadd.f32 1.4214138, %v11570_v34  ;;  %v4372_v26 = vadd.f32 1.4214138, %v4308_v58  ;;  %v4373_v11 = vadd.f32 1.4214138, %v4309_v8 }
 0x57c   : > { %v15297_v24 = vld [vmem:[#allocation225_spill] sm:$0xff]  ;;  %v4375_v50 = vadd.f32 1.4214138, %v4311_v30  ;;  %v15298_v36 = vld [vmem:[#allocation226_spill] sm:$0xff]  ;;  %v15299_v52 = vld [vmem:[#allocation227_spill] sm:$0xff] }
 0x57d   : > { %v11696_v32 = vmul.f32 %v15297_v24, %v11573_v7  ;;  %v11700_v17 = vmul.f32 %v15298_v36, %v11576_v18  ;;  %v11704_v22 = vmul.f32 %v15299_v52, %v11580_v9  ;;  %v15300_v14 = vld [vmem:[#allocation228_spill] sm:$0xff]  ;;  %v15301_v34 = vld [vmem:[#allocation229_spill] sm:$0xff]  ;;  %v15302_v7 = vld [vmem:[#allocation230_spill] sm:$0xff] }
 0x57e   : > { %v11708_v38 = vmul.f32 %v15300_v14, %v11583_v45  ;;  %v11712_v58 = vmul.f32 %v15301_v34, %v11586_v5  ;;  %v11716_v8 = vmul.f32 %v15302_v7, %v11590_v40  ;;  %v15303_v30 = vld [vmem:[#allocation231_spill] sm:$0xff]  ;;  %v15305_v36 = vld [vmem:[#allocation232_spill] sm:$0xff]  ;;  %v15307_v52 = vld [vmem:[#allocation233_spill] sm:$0xff] }
 0x57f   : > { %v11720_v18 = vmul.f32 %v15303_v30, %v11593_v41  ;;  %v11724_v9 = vmul.f32 %v15305_v36, %v11596_v27  ;;  %v11728_v45 = vmul.f32 %v15307_v52, %v11600_v49  ;;  %v15309_v14 = vld [vmem:[#allocation234_spill] sm:$0xff]  ;;  %v15310_v34 = vld [vmem:[#allocation235_spill] sm:$0xff]  ;;  %v15313_v24 = vld [vmem:[#allocation236_spill] sm:$0xff] }
 0x580   : > { %v11732_v5 = vmul.f32 %v15309_v14, %v11603_v21  ;;  %v11736_v40 = vmul.f32 %v15310_v34, %v11606_v31  ;;  %v15312_v7 = vld [vmem:[#allocation286_spill] sm:$0xff]  ;;  %v15315_v30 = vld [vmem:[#allocation287_spill] sm:$0xff]  ;;  %v15317_v36 = vld [vmem:[#allocation288_spill] sm:$0xff] }
 0x581   : > { %15304 = vst [vmem:[#allocation207_spill] sm:$0xff] %v11720_v18  ;;  %15306 = vst [vmem:[#allocation208_spill] sm:$0xff] %v11724_v9  ;;  %v11740_v41 = vmul.f32 %v15313_v24, %v15312_v7  ;;  %v15316_v18 = vld [vmem:[#allocation237_spill] sm:$0xff]  ;;  %v15318_v9 = vld [vmem:[#allocation238_spill] sm:$0xff] }
 0x582   : > { %15308 = vst [vmem:[#allocation209_spill] sm:$0xff] %v11728_v45  ;;  %15311 = vst [vmem:[#allocation210_spill] sm:$0xff] %v11736_v40  ;;  %v11744_v27 = vmul.f32 %v15316_v18, %v15315_v30  ;;  %v11748_v49 = vmul.f32 %v15318_v9, %v15317_v36  ;;  %v15319_v52 = vld [vmem:[#allocation239_spill] sm:$0xff]  ;;  %v15320_v21 = vld [vmem:[#allocation240_spill] sm:$0xff] }
 0x583   : > { %15314 = vst [vmem:[#allocation268_spill] sm:$0xff] %v11740_v41  ;;  %v11751_v45 = vmul.f32 %v15319_v52, %v4338_v16  ;;  %v11754_v14 = vmul.f32 %v15320_v21, %v4339_v48  ;;  %v15321_v31 = vld [vmem:[#allocation241_spill] sm:$0xff]  ;;  %v15322_v40 = vld [vmem:[#allocation242_spill] sm:$0xff]  ;;  %v15323_v24 = vld [vmem:[#allocation243_spill] sm:$0xff] }
 0x584   : > { %v11757_v34 = vmul.f32 %v15321_v31, %v4340_v55  ;;  %v11760_v7 = vmul.f32 %v15322_v40, %v4341_v63  ;;  %v11763_v41 = vmul.f32 %v15323_v24, %v4342_v47  ;;  %v15324_v30 = vld [vmem:[#allocation244_spill] sm:$0xff]  ;;  %v15325_v36 = vld [vmem:[#allocation206_spill] sm:$0xff]  ;;  %v15326_v16 = vld [vmem:[#allocation245_spill] sm:$0xff] }
 0x585   : > { %v11766_v18 = vmul.f32 %v15324_v30, %v4343_v0  ;;  %v11769_v9 = vmul.f32 %v15325_v36, %v4344_v62  ;;  %v11772_v52 = vmul.f32 %v15326_v16, %v4345_v2  ;;  %v15327_v48 = vld [vmem:[#allocation246_spill] sm:$0xff]  ;;  %v15328_v55 = vld [vmem:[#allocation247_spill] sm:$0xff]  ;;  %v15329_v63 = vld [vmem:[#allocation248_spill] sm:$0xff] }
 0x586   : > { %v11775_v21 = vmul.f32 %v15327_v48, %v4346_v37  ;;  %v11778_v31 = vmul.f32 %v15328_v55, %v4347_v3  ;;  %v11781_v40 = vmul.f32 %v15329_v63, %v4348_v59  ;;  %v15330_v47 = vld [vmem:[#allocation249_spill] sm:$0xff]  ;;  %v15331_v0 = vld [vmem:[#allocation250_spill] sm:$0xff]  ;;  %v15332_v62 = vld [vmem:[#allocation251_spill] sm:$0xff] }
 0x587   : > { %v11784_v24 = vmul.f32 %v15330_v47, %v4349_v15  ;;  %v11787_v30 = vmul.f32 %v15331_v0, %v4350_v35  ;;  %v11790_v36 = vmul.f32 %v15332_v62, %v4351_v57  ;;  %v15333_v2 = vld [vmem:[#allocation252_spill] sm:$0xff]  ;;  %v15334_v37 = vld [vmem:[#allocation253_spill] sm:$0xff]  ;;  %v15335_v3 = vld [vmem:[#allocation254_spill] sm:$0xff] }
 0x588   : > { %v11793_v16 = vmul.f32 %v15333_v2, %v4352_v56  ;;  %v11796_v48 = vmul.f32 %v15334_v37, %v4353_v33  ;;  %v11799_v55 = vmul.f32 %v15335_v3, %v4354_v6  ;;  %v15336_v59 = vld [vmem:[#allocation255_spill] sm:$0xff]  ;;  %v15337_v15 = vld [vmem:[#allocation256_spill] sm:$0xff]  ;;  %v15338_v35 = vld [vmem:[#allocation257_spill] sm:$0xff] }
 0x589   : > { %v11802_v63 = vmul.f32 %v15336_v59, %v4355_v54  ;;  %v11805_v47 = vmul.f32 %v15337_v15, %v4356_v60  ;;  %v11808_v0 = vmul.f32 %v15338_v35, %v4357_v29  ;;  %v15339_v57 = vld [vmem:[#allocation259_spill] sm:$0xff]  ;;  %v15340_v56 = vld [vmem:[#allocation261_spill] sm:$0xff]  ;;  %v15342_v6 = vld [vmem:[#allocation264_spill] sm:$0xff] }
 0x58a   : > { %v11811_v62 = vmul.f32 %v15339_v57, %v4358_v19  ;;  %v11814_v2 = vmul.f32 %v15340_v56, %v4359_v46  ;;  %v15341_v33 = vld [vmem:[#allocation263_spill] sm:$0xff]  ;;  %v11820_v3 = vmul.f32 %v15342_v6, %v4361_v42  ;;  %v15343_v54 = vld [vmem:[#allocation265_spill] sm:$0xff]  ;;  %v15344_v60 = vld [vmem:[#allocation266_spill] sm:$0xff] }
 0x58b   : > { %v11817_v37 = vmul.f32 %v15341_v33, %v4360_v53  ;;  %v11823_v59 = vmul.f32 %v15343_v54, %v4362_v28  ;;  %v11826_v15 = vmul.f32 %v15344_v60, %v4363_v4  ;;  %v15345_v29 = vld [vmem:[#allocation267_spill] sm:$0xff]  ;;  %v15347_v46 = vld [vmem:[#allocation269_spill] sm:$0xff] }
 0x58c   : > { %v11829_v35 = vmul.f32 %v15345_v29, %v4364_v51  ;;  %v15346_v19 = vld [vmem:[#allocation211_spill] sm:$0xff]  ;;  %v11835_v56 = vmul.f32 %v15347_v46, %v4366_v1  ;;  %v15350_v42 = vld [vmem:[#allocation273_spill] sm:$0xff] }
 0x58d   : > { %v11832_v57 = vmul.f32 %v15346_v19, %v4365_v12  ;;  %v15348_v53 = vld [vmem:[#allocation271_spill] sm:$0xff]  ;;  %v11841_v6 = vmul.f32 %v15350_v42, %v4368_v20  ;;  %v15354_v4 = vld [vmem:[#allocation277_spill] sm:$0xff] }
 0x58e   : > { %v11838_v33 = vmul.f32 %v15348_v53, %v4367_v44  ;;  %v15352_v28 = vld [vmem:[#allocation275_spill] sm:$0xff]  ;;  %v11847_v60 = vmul.f32 %v15354_v4, %v4370_v39  ;;  %v15358_v12 = vld [vmem:[#allocation281_spill] sm:$0xff]  ;;  %v15367_v39 = vld [vmem:[#allocation292_spill] sm:$0xff] }
 0x58f   : > { %15351 = vst [vmem:[#allocation272_spill] sm:$0xff] %v11841_v6  ;;  %v11844_v54 = vmul.f32 %v15352_v28, %v4369_v13  ;;  %v15356_v51 = vld [vmem:[#allocation279_spill] sm:$0xff]  ;;  %v11853_v19 = vmul.f32 %v15358_v12, %v4372_v26  ;;  %v15362_v44 = vld [vmem:[#allocation289_spill] sm:$0xff]  ;;  %v4443_v4 = vadd.f32 -0.28449672, %v15367_v39  ;;  %v15370_v26 = vld [vmem:[#allocation260_spill] sm:$0xff] }
 0x590   : > { %15349 = vst [vmem:[#allocation270_spill] sm:$0xff] %v11838_v33  ;;  %15355 = vst [vmem:[#allocation276_spill] sm:$0xff] %v11847_v60  ;;  %v11850_v29 = vmul.f32 %v15356_v51, %v4371_v23  ;;  %v15360_v1 = vld [vmem:[#allocation283_spill] sm:$0xff]  ;;  %v4440_v53 = vadd.f32 -0.28449672, %v15362_v44  ;;  %v15363_v33 = vld [vmem:[#allocation290_spill] sm:$0xff] }
 0x591   : > { %15353 = vst [vmem:[#allocation274_spill] sm:$0xff] %v11844_v54  ;;  %15359 = vst [vmem:[#allocation280_spill] sm:$0xff] %v11853_v19  ;;  %v11856_v46 = vmul.f32 %v15360_v1, %v4373_v11  ;;  %v4441_v20 = vadd.f32 -0.28449672, %v15363_v33  ;;  %v15364_v42 = vld [vmem:[#allocation285_spill] sm:$0xff]  ;;  %v15366_v13 = vld [vmem:[#allocation291_spill] sm:$0xff] }
 0x592   : > { %15357 = vst [vmem:[#allocation278_spill] sm:$0xff] %v11850_v29  ;;  %v11861_v6 = vmul.f32 %v15364_v42, %v4375_v50  ;;  %v4442_v28 = vadd.f32 -0.28449672, %v15366_v13  ;;  %v15368_v60 = vld [vmem:[#allocation293_spill] sm:$0xff]  ;;  %v15369_v51 = vld [vmem:[#allocation258_spill] sm:$0xff]  ;;  %v15372_v1 = vld [vmem:[#allocation151_spill] sm:$0xff] }
 0x593   : > { %15361 = vst [vmem:[#allocation282_spill] sm:$0xff] %v11856_v46  ;;  %v4444_v23 = vadd.f32 -0.28449672, %v15368_v60  ;;  %v4445_v29 = vadd.f32 -0.28449672, %v15369_v51  ;;  %v15371_v19 = vld [vmem:[#allocation262_spill] sm:$0xff] }
 0x594   : > { %15365 = vst [vmem:[#allocation284_spill] sm:$0xff] %v11861_v6  ;;  %v4446_v12 = vadd.f32 -0.28449672, %v15370_v26  ;;  %v4447_v11 = vadd.f32 -0.28449672, %v15371_v19  ;;  %v15373_v44 = vsub.f32 0.0, %v15372_v1 }
 0x595   : > { %v4448_v50 = vadd.f32 -0.28449672, %v11672_v10  ;;  %v4449_v33 = vadd.f32 -0.28449672, %v11678_v61  ;;  %v4450_v13 = vadd.f32 -0.28449672, %v11684_v25 }
 0x596   : > { %v11872_v46 = vmul.f32 %v15373_v44, %v15372_v1  ;;  %v15375_v39 = vld [vmem:[#allocation212_spill] sm:$0xff]  ;;  %v4451_v60 = vadd.f32 -0.28449672, %v11691_v43  ;;  %v4452_v51 = vadd.f32 -0.28449672, %v11696_v32  ;;  %v15377_v26 = vld [vmem:[#allocation213_spill] sm:$0xff] }
 0x597   : > { %v11878_v42 = vmul.f32 %v15375_v39, %v4440_v53  ;;  %v4453_v19 = vadd.f32 -0.28449672, %v11700_v17  ;;  %v11884_v6 = vmul.f32 %v15377_v26, %v4441_v20  ;;  %v4454_v1 = vadd.f32 -0.28449672, %v11704_v22  ;;  %v15379_v44 = vld [vmem:[#allocation214_spill] sm:$0xff]  ;;  %v15382_v39 = vld [vmem:[#allocation208_spill] sm:$0xff] }
 0x598   : > { %15374 = vst [vmem:[#allocation286_spill] sm:$0xff] %v11872_v46  ;;  %v4455_v10 = vadd.f32 -0.28449672, %v11708_v38  ;;  %v4456_v61 = vadd.f32 -0.28449672, %v11712_v58  ;;  %v11890_v25 = vmul.f32 %v15379_v44, %v4442_v28  ;;  %v15381_v46 = vld [vmem:[#allocation207_spill] sm:$0xff] }
 0x599   : > { %15376 = vst [vmem:[#allocation287_spill] sm:$0xff] %v11878_v42  ;;  %15378 = vst [vmem:[#allocation288_spill] sm:$0xff] %v11884_v6  ;;  %v4457_v53 = vadd.f32 -0.28449672, %v11716_v8  ;;  %v4458_v43 = vadd.f32 -0.28449672, %v15381_v46 }
 0x59a   : > { %15380 = vst [vmem:[#allocation289_spill] sm:$0xff] %v11890_v25  ;;  %v4459_v32 = vadd.f32 -0.28449672, %v15382_v39  ;;  %v15383_v42 = vld [vmem:[#allocation216_spill] sm:$0xff]  ;;  %v15384_v20 = vld [vmem:[#allocation209_spill] sm:$0xff]  ;;  %v15385_v6 = vld [vmem:[#allocation210_spill] sm:$0xff] }
 0x59b   : > { %v11896_v17 = vmul.f32 %v15383_v42, %v4443_v4  ;;  %v4460_v26 = vadd.f32 -0.28449672, %v15384_v20  ;;  %v4461_v22 = vadd.f32 -0.28449672, %v11732_v5  ;;  %v4462_v38 = vadd.f32 -0.28449672, %v15385_v6 }
 0x59c   : > { %v15386_v54 = vld [vmem:[#allocation217_spill] sm:$0xff]  ;;  %v15387_v28 = vld [vmem:[#allocation268_spill] sm:$0xff]  ;;  %v4464_v8 = vadd.f32 -0.28449672, %v11744_v27  ;;  %v4465_v46 = vadd.f32 -0.28449672, %v11748_v49 }
 0x59d   : > { %v11902_v58 = vmul.f32 %v15386_v54, %v4444_v23  ;;  %v4463_v44 = vadd.f32 -0.28449672, %v15387_v28  ;;  %v15388_v25 = vld [vmem:[#allocation218_spill] sm:$0xff]  ;;  %v4466_v4 = vadd.f32 -0.28449672, %v11751_v45  ;;  %v15389_v42 = vld [vmem:[#allocation219_spill] sm:$0xff] }
 0x59e   : > { %v11908_v39 = vmul.f32 %v15388_v25, %v4445_v29  ;;  %v4467_v20 = vadd.f32 -0.28449672, %v11754_v14  ;;  %v4468_v5 = vadd.f32 -0.28449672, %v11757_v34  ;;  %v11914_v6 = vmul.f32 %v15389_v42, %v4446_v12  ;;  %v15390_v54 = vld [vmem:[#allocation220_spill] sm:$0xff]  ;;  %v15392_v25 = vld [vmem:[#allocation221_spill] sm:$0xff] }
 0x59f   : > { %v4469_v23 = vadd.f32 -0.28449672, %v11760_v7  ;;  %v4470_v28 = vadd.f32 -0.28449672, %v11763_v41  ;;  %v4471_v27 = vadd.f32 -0.28449672, %v11766_v18  ;;  %v11920_v49 = vmul.f32 %v15390_v54, %v4447_v11 }
 0x5a0   : > { %v4472_v29 = vadd.f32 -0.28449672, %v11769_v9  ;;  %v4473_v45 = vadd.f32 -0.28449672, %v11772_v52  ;;  %v4474_v14 = vadd.f32 -0.28449672, %v11775_v21  ;;  %v11926_v34 = vmul.f32 %v15392_v25, %v4448_v50 }
 0x5a1   : > { %15391 = vst [vmem:[#allocation290_spill] sm:$0xff] %v11920_v49  ;;  %v4475_v12 = vadd.f32 -0.28449672, %v11778_v31  ;;  %v4476_v7 = vadd.f32 -0.28449672, %v11781_v40  ;;  %v15394_v42 = vld [vmem:[#allocation222_spill] sm:$0xff] }
 0x5a2   : > { %15393 = vst [vmem:[#allocation291_spill] sm:$0xff] %v11926_v34  ;;  %v4477_v41 = vadd.f32 -0.28449672, %v11784_v24  ;;  %v11932_v18 = vmul.f32 %v15394_v42, %v4449_v33  ;;  %v4478_v11 = vadd.f32 -0.28449672, %v11787_v30  ;;  %v15396_v54 = vld [vmem:[#allocation223_spill] sm:$0xff] }
 0x5a3   : > { %v4479_v9 = vadd.f32 -0.28449672, %v11790_v36  ;;  %v4480_v52 = vadd.f32 -0.28449672, %v11793_v16  ;;  %v11938_v21 = vmul.f32 %v15396_v54, %v4450_v13  ;;  %v4481_v50 = vadd.f32 -0.28449672, %v11796_v48 }
 0x5a4   : > { %15395 = vst [vmem:[#allocation292_spill] sm:$0xff] %v11932_v18  ;;  %v4482_v31 = vadd.f32 -0.28449672, %v11799_v55  ;;  %v4483_v40 = vadd.f32 -0.28449672, %v11802_v63  ;;  %v15398_v25 = vld [vmem:[#allocation224_spill] sm:$0xff] }
 0x5a5   : > { %15397 = vst [vmem:[#allocation293_spill] sm:$0xff] %v11938_v21  ;;  %v11944_v24 = vmul.f32 %v15398_v25, %v4451_v60  ;;  %v4484_v33 = vadd.f32 -0.28449672, %v11805_v47  ;;  %v4485_v30 = vadd.f32 -0.28449672, %v11808_v0  ;;  %v15400_v42 = vld [vmem:[#allocation225_spill] sm:$0xff] }
 0x5a6   : > { %v4486_v36 = vadd.f32 -0.28449672, %v11811_v62  ;;  %v11950_v16 = vmul.f32 %v15400_v42, %v4452_v51  ;;  %v4487_v13 = vadd.f32 -0.28449672, %v11814_v2  ;;  %v4488_v48 = vadd.f32 -0.28449672, %v11817_v37 }
 0x5a7   : > { %15399 = vst [vmem:[#allocation258_spill] sm:$0xff] %v11944_v24  ;;  %v4489_v55 = vadd.f32 -0.28449672, %v11820_v3  ;;  %v15402_v54 = vld [vmem:[#allocation226_spill] sm:$0xff]  ;;  %v4490_v60 = vadd.f32 -0.28449672, %v11823_v59 }
 0x5a8   : > { %15401 = vst [vmem:[#allocation260_spill] sm:$0xff] %v11950_v16  ;;  %v11956_v63 = vmul.f32 %v15402_v54, %v4453_v19  ;;  %v4491_v47 = vadd.f32 -0.28449672, %v11826_v15  ;;  %v4492_v0 = vadd.f32 -0.28449672, %v11829_v35  ;;  %v15404_v25 = vld [vmem:[#allocation227_spill] sm:$0xff] }
 0x5a9   : > { %v11962_v62 = vmul.f32 %v15404_v25, %v4454_v1  ;;  %v4493_v51 = vadd.f32 -0.28449672, %v11832_v57  ;;  %v4494_v2 = vadd.f32 -0.28449672, %v11835_v56  ;;  %v15406_v42 = vld [vmem:[#allocation270_spill] sm:$0xff]  ;;  %v15407_v16 = vld [vmem:[#allocation228_spill] sm:$0xff] }
 0x5aa   : > { %15403 = vst [vmem:[#allocation262_spill] sm:$0xff] %v11956_v63  ;;  %v4495_v37 = vadd.f32 -0.28449672, %v15406_v42  ;;  %v11968_v3 = vmul.f32 %v15407_v16, %v4455_v10  ;;  %v15409_v19 = vld [vmem:[#allocation272_spill] sm:$0xff]  ;;  %v15410_v63 = vld [vmem:[#allocation274_spill] sm:$0xff]  ;;  %v15412_v21 = vld [vmem:[#allocation229_spill] sm:$0xff] }
 0x5ab   : > { %15405 = vst [vmem:[#allocation151_spill] sm:$0xff] %v11962_v62  ;;  %v4496_v54 = vadd.f32 -0.28449672, %v15409_v19  ;;  %v4497_v59 = vadd.f32 -0.28449672, %v15410_v63  ;;  %v15411_v24 = vld [vmem:[#allocation276_spill] sm:$0xff]  ;;  %v11974_v35 = vmul.f32 %v15412_v21, %v4456_v61 }
 0x5ac   : > { %15408 = vst [vmem:[#allocation207_spill] sm:$0xff] %v11968_v3  ;;  %v4498_v15 = vadd.f32 -0.28449672, %v15411_v24  ;;  %v15414_v1 = vld [vmem:[#allocation278_spill] sm:$0xff]  ;;  %v15415_v62 = vld [vmem:[#allocation280_spill] sm:$0xff]  ;;  %v15419_v3 = vld [vmem:[#allocation231_spill] sm:$0xff] }
 0x5ad   : > { %15413 = vst [vmem:[#allocation208_spill] sm:$0xff] %v11974_v35  ;;  %v4499_v25 = vadd.f32 -0.28449672, %v15414_v1  ;;  %v4500_v57 = vadd.f32 -0.28449672, %v15415_v62  ;;  %v15416_v18 = vld [vmem:[#allocation282_spill] sm:$0xff]  ;;  %v11984_v19 = vmul.f32 %v15419_v3, %v4458_v43 }
 0x5ae   : > { %v4501_v56 = vadd.f32 -0.28449672, %v15416_v18  ;;  %v15417_v34 = vld [vmem:[#allocation230_spill] sm:$0xff]  ;;  %v15418_v10 = vld [vmem:[#allocation284_spill] sm:$0xff]  ;;  %v15421_v24 = vld [vmem:[#allocation233_spill] sm:$0xff] }
 0x5af   : > { %v11980_v42 = vmul.f32 %v15417_v34, %v4457_v53  ;;  %v4503_v16 = vadd.f32 -0.28449672, %v15418_v10  ;;  %v15420_v63 = vld [vmem:[#allocation232_spill] sm:$0xff]  ;;  %v11990_v61 = vmul.f32 %v15421_v24, %v4460_v26  ;;  %v15422_v21 = vld [vmem:[#allocation234_spill] sm:$0xff]  ;;  %v15423_v62 = vld [vmem:[#allocation235_spill] sm:$0xff] }
 0x5b0   : > { %v11987_v49 = vmul.f32 %v15420_v63, %v4459_v32  ;;  %v11993_v1 = vmul.f32 %v15422_v21, %v4461_v22  ;;  %v11996_v35 = vmul.f32 %v15423_v62, %v4462_v38  ;;  %v15424_v18 = vld [vmem:[#allocation236_spill] sm:$0xff]  ;;  %v15425_v34 = vld [vmem:[#allocation237_spill] sm:$0xff]  ;;  %v15426_v43 = vld [vmem:[#allocation238_spill] sm:$0xff] }
 0x5b1   : > { %v11999_v53 = vmul.f32 %v15424_v18, %v4463_v44  ;;  %v12002_v10 = vmul.f32 %v15425_v34, %v4464_v8  ;;  %v12005_v3 = vmul.f32 %v15426_v43, %v4465_v46  ;;  %v15427_v32 = vld [vmem:[#allocation239_spill] sm:$0xff]  ;;  %v15428_v26 = vld [vmem:[#allocation240_spill] sm:$0xff]  ;;  %v15429_v22 = vld [vmem:[#allocation241_spill] sm:$0xff] }
 0x5b2   : > { %v12008_v63 = vmul.f32 %v15427_v32, %v4466_v4  ;;  %v12011_v24 = vmul.f32 %v15428_v26, %v4467_v20  ;;  %v12014_v21 = vmul.f32 %v15429_v22, %v4468_v5  ;;  %v15430_v38 = vld [vmem:[#allocation242_spill] sm:$0xff]  ;;  %v15431_v44 = vld [vmem:[#allocation243_spill] sm:$0xff]  ;;  %v15432_v8 = vld [vmem:[#allocation244_spill] sm:$0xff] }
 0x5b3   : > { %v12017_v62 = vmul.f32 %v15430_v38, %v4469_v23  ;;  %v12020_v18 = vmul.f32 %v15431_v44, %v4470_v28  ;;  %v12023_v34 = vmul.f32 %v15432_v8, %v4471_v27  ;;  %v15433_v46 = vld [vmem:[#allocation206_spill] sm:$0xff]  ;;  %v15434_v4 = vld [vmem:[#allocation245_spill] sm:$0xff]  ;;  %v15436_v5 = vld [vmem:[#allocation247_spill] sm:$0xff] }
 0x5b4   : > { %v12026_v43 = vmul.f32 %v15433_v46, %v4472_v29  ;;  %v12029_v32 = vmul.f32 %v15434_v4, %v4473_v45  ;;  %v15435_v20 = vld [vmem:[#allocation246_spill] sm:$0xff]  ;;  %v12035_v22 = vmul.f32 %v15436_v5, %v4475_v12  ;;  %v15437_v23 = vld [vmem:[#allocation248_spill] sm:$0xff]  ;;  %v15438_v28 = vld [vmem:[#allocation249_spill] sm:$0xff] }
 0x5b5   : > { %v12032_v26 = vmul.f32 %v15435_v20, %v4474_v14  ;;  %v12038_v38 = vmul.f32 %v15437_v23, %v4476_v7  ;;  %v12041_v44 = vmul.f32 %v15438_v28, %v4477_v41  ;;  %v15439_v27 = vld [vmem:[#allocation250_spill] sm:$0xff]  ;;  %v15440_v29 = vld [vmem:[#allocation251_spill] sm:$0xff]  ;;  %v15441_v45 = vld [vmem:[#allocation252_spill] sm:$0xff] }
 0x5b6   : > { %v12044_v8 = vmul.f32 %v15439_v27, %v4478_v11  ;;  %v12047_v46 = vmul.f32 %v15440_v29, %v4479_v9  ;;  %v12050_v4 = vmul.f32 %v15441_v45, %v4480_v52  ;;  %v15442_v14 = vld [vmem:[#allocation253_spill] sm:$0xff]  ;;  %v15443_v12 = vld [vmem:[#allocation254_spill] sm:$0xff]  ;;  %v15444_v7 = vld [vmem:[#allocation255_spill] sm:$0xff] }
 0x5b7   : > { %v12053_v20 = vmul.f32 %v15442_v14, %v4481_v50  ;;  %v12056_v5 = vmul.f32 %v15443_v12, %v4482_v31  ;;  %v12059_v23 = vmul.f32 %v15444_v7, %v4483_v40  ;;  %v15445_v41 = vld [vmem:[#allocation256_spill] sm:$0xff]  ;;  %v15446_v11 = vld [vmem:[#allocation257_spill] sm:$0xff]  ;;  %v15447_v9 = vld [vmem:[#allocation259_spill] sm:$0xff] }
 0x5b8   : > { %v12062_v28 = vmul.f32 %v15445_v41, %v4484_v33  ;;  %v12065_v27 = vmul.f32 %v15446_v11, %v4485_v30  ;;  %v12068_v29 = vmul.f32 %v15447_v9, %v4486_v36  ;;  %v15448_v52 = vld [vmem:[#allocation261_spill] sm:$0xff]  ;;  %v15449_v50 = vld [vmem:[#allocation263_spill] sm:$0xff]  ;;  %v15450_v31 = vld [vmem:[#allocation264_spill] sm:$0xff] }
 0x5b9   : > { %v12071_v45 = vmul.f32 %v15448_v52, %v4487_v13  ;;  %v12074_v14 = vmul.f32 %v15449_v50, %v4488_v48  ;;  %v12077_v12 = vmul.f32 %v15450_v31, %v4489_v55  ;;  %v15451_v40 = vld [vmem:[#allocation265_spill] sm:$0xff]  ;;  %v15452_v33 = vld [vmem:[#allocation266_spill] sm:$0xff]  ;;  %v15453_v30 = vld [vmem:[#allocation267_spill] sm:$0xff] }
 0x5ba   : > { %v12080_v7 = vmul.f32 %v15451_v40, %v4490_v60  ;;  %v12083_v41 = vmul.f32 %v15452_v33, %v4491_v47  ;;  %v12086_v11 = vmul.f32 %v15453_v30, %v4492_v0  ;;  %v15455_v36 = vld [vmem:[#allocation211_spill] sm:$0xff]  ;;  %v15457_v13 = vld [vmem:[#allocation269_spill] sm:$0xff] }
 0x5bb   : > { %v12089_v9 = vmul.f32 %v15455_v36, %v4493_v51  ;;  %v12092_v52 = vmul.f32 %v15457_v13, %v4494_v2  ;;  %v15459_v48 = vld [vmem:[#allocation271_spill] sm:$0xff]  ;;  %v15461_v55 = vld [vmem:[#allocation273_spill] sm:$0xff] }
 0x5bc   : > { %15454 = vst [vmem:[#allocation209_spill] sm:$0xff] %v12086_v11  ;;  %v12095_v50 = vmul.f32 %v15459_v48, %v4495_v37  ;;  %v12098_v31 = vmul.f32 %v15461_v55, %v4496_v54  ;;  %v15463_v60 = vld [vmem:[#allocation275_spill] sm:$0xff]  ;;  %v15465_v47 = vld [vmem:[#allocation277_spill] sm:$0xff]  ;;  %v15498_v11 = vld [vmem:[#allocation214_spill] sm:$0xff] }
 0x5bd   : > { %15456 = vst [vmem:[#allocation210_spill] sm:$0xff] %v12089_v9  ;;  %15458 = vst [vmem:[#allocation268_spill] sm:$0xff] %v12092_v52  ;;  %v12101_v40 = vmul.f32 %v15463_v60, %v4497_v59  ;;  %v12104_v33 = vmul.f32 %v15465_v47, %v4498_v15  ;;  %v15467_v0 = vld [vmem:[#allocation279_spill] sm:$0xff]  ;;  %v15469_v51 = vld [vmem:[#allocation281_spill] sm:$0xff]  ;;  %v4571_v15 = vadd.f32 0.2548296, %v11896_v17 }
 0x5be   : > { %15460 = vst [vmem:[#allocation270_spill] sm:$0xff] %v12095_v50  ;;  %15462 = vst [vmem:[#allocation272_spill] sm:$0xff] %v12098_v31  ;;  %v12107_v30 = vmul.f32 %v15467_v0, %v4499_v25  ;;  %v12110_v36 = vmul.f32 %v15469_v51, %v4500_v57  ;;  %v15471_v2 = vld [vmem:[#allocation283_spill] sm:$0xff]  ;;  %v15473_v37 = vld [vmem:[#allocation285_spill] sm:$0xff]  ;;  %v4572_v25 = vadd.f32 0.2548296, %v11902_v58 }
 0x5bf   : > { %15464 = vst [vmem:[#allocation274_spill] sm:$0xff] %v12101_v40  ;;  %15466 = vst [vmem:[#allocation276_spill] sm:$0xff] %v12104_v33  ;;  %v12113_v13 = vmul.f32 %v15471_v2, %v4501_v56  ;;  %v12116_v48 = vmul.f32 %v15473_v37, %v4503_v16  ;;  %v15475_v54 = vld [vmem:[#allocation287_spill] sm:$0xff]  ;;  %v15476_v31 = vld [vmem:[#allocation288_spill] sm:$0xff]  ;;  %v4573_v56 = vadd.f32 0.2548296, %v11908_v39 }
 0x5c0   : > { %15468 = vst [vmem:[#allocation278_spill] sm:$0xff] %v12107_v30  ;;  %15470 = vst [vmem:[#allocation280_spill] sm:$0xff] %v12110_v36  ;;  %v4568_v55 = vadd.f32 0.2548296, %v15475_v54  ;;  %v4569_v59 = vadd.f32 0.2548296, %v15476_v31 }
 0x5c1   : > { %15472 = vst [vmem:[#allocation282_spill] sm:$0xff] %v12113_v13  ;;  %15474 = vst [vmem:[#allocation284_spill] sm:$0xff] %v12116_v48  ;;  %v15477_v60 = vld [vmem:[#allocation289_spill] sm:$0xff]  ;;  %v15478_v0 = vld [vmem:[#allocation152_spill] sm:$0xff]  ;;  %v4574_v16 = vadd.f32 0.2548296, %v11914_v6 }
 0x5c2   : > { %v4570_v40 = vadd.f32 0.2548296, %v15477_v60  ;;  %v15479_v57 = vsub.f32 0.0, %v15478_v0  ;;  %v15481_v37 = vld [vmem:[#allocation290_spill] sm:$0xff]  ;;  %v15482_v54 = vld [vmem:[#allocation55_spill] sm:$0xff]  ;;  %v15486_v48 = vld [vmem:[#allocation292_spill] sm:$0xff] }
 0x5c3   : > { %v4575_v2 = vadd.f32 0.2548296, %v15481_v37  ;;  %v15483_v31 = vsub.f32 0.0, %v15482_v54  ;;  %v15485_v60 = vld [vmem:[#allocation291_spill] sm:$0xff]  ;;  %v4577_v58 = vadd.f32 0.2548296, %v15486_v48 }
 0x5c4   : > { %v12126_v51 = vmul.f32 %v15479_v57, %v15478_v0  ;;  %v4576_v17 = vadd.f32 0.2548296, %v15485_v60  ;;  %v15487_v13 = vld [vmem:[#allocation293_spill] sm:$0xff]  ;;  %v15488_v30 = vld [vmem:[#allocation212_spill] sm:$0xff]  ;;  %v15490_v57 = vld [vmem:[#allocation258_spill] sm:$0xff] }
 0x5c5   : > { %v12134_v47 = vmul.f32 %v15483_v31, %v15482_v54  ;;  %v4578_v36 = vadd.f32 0.2548296, %v15487_v13  ;;  %v12140_v0 = vmul.f32 %v15488_v30, %v4568_v55  ;;  %v4579_v39 = vadd.f32 0.2548296, %v15490_v57  ;;  %v15492_v33 = vld [vmem:[#allocation262_spill] sm:$0xff]  ;;  %v15493_v50 = vld [vmem:[#allocation213_spill] sm:$0xff] }
 0x5c6   : > { %15480 = vst [vmem:[#allocation287_spill] sm:$0xff] %v12126_v51  ;;  %v15491_v51 = vld [vmem:[#allocation260_spill] sm:$0xff]  ;;  %v4581_v37 = vadd.f32 0.2548296, %v15492_v33  ;;  %v12146_v52 = vmul.f32 %v15493_v50, %v4569_v59  ;;  %v15495_v54 = vld [vmem:[#allocation151_spill] sm:$0xff]  ;;  %v12152_v13 = vmul.f32 %v15498_v11, %v4570_v40  ;;  %v15504_v40 = vld [vmem:[#allocation218_spill] sm:$0xff] }
 0x5c7   : > { %15484 = vst [vmem:[#allocation288_spill] sm:$0xff] %v12134_v47  ;;  %15489 = vst [vmem:[#allocation289_spill] sm:$0xff] %v12140_v0  ;;  %v4580_v6 = vadd.f32 0.2548296, %v15491_v51  ;;  %v4582_v31 = vadd.f32 0.2548296, %v15495_v54 }
 0x5c8   : > { %15494 = vst [vmem:[#allocation152_spill] sm:$0xff] %v12146_v52  ;;  %v15496_v47 = vld [vmem:[#allocation207_spill] sm:$0xff]  ;;  %v15497_v9 = vld [vmem:[#allocation208_spill] sm:$0xff]  ;;  %15499 = vst [vmem:[#allocation290_spill] sm:$0xff] %v12152_v13  ;;  %v4585_v30 = vadd.f32 0.2548296, %v11980_v42 }
 0x5c9   : > { %v4583_v60 = vadd.f32 0.2548296, %v15496_v47  ;;  %v4584_v48 = vadd.f32 0.2548296, %v15497_v9  ;;  %v4586_v55 = vadd.f32 0.2548296, %v11984_v19 }
 0x5ca   : > { %v4587_v51 = vadd.f32 0.2548296, %v11987_v49  ;;  %v15500_v57 = vld [vmem:[#allocation216_spill] sm:$0xff]  ;;  %v4588_v50 = vadd.f32 0.2548296, %v11990_v61  ;;  %v15502_v54 = vld [vmem:[#allocation217_spill] sm:$0xff]  ;;  %v12170_v49 = vmul.f32 %v15504_v40, %v4573_v56 }
 0x5cb   : > { %v12158_v33 = vmul.f32 %v15500_v57, %v4571_v15  ;;  %v4589_v59 = vadd.f32 0.2548296, %v11993_v1  ;;  %v4590_v47 = vadd.f32 0.2548296, %v11996_v35  ;;  %v12164_v9 = vmul.f32 %v15502_v54, %v4572_v25  ;;  %v15506_v57 = vld [vmem:[#allocation219_spill] sm:$0xff]  ;;  %v15508_v54 = vld [vmem:[#allocation220_spill] sm:$0xff] }
 0x5cc   : > { %v4591_v11 = vadd.f32 0.2548296, %v11999_v53  ;;  %v4592_v42 = vadd.f32 0.2548296, %v12002_v10  ;;  %v4593_v19 = vadd.f32 0.2548296, %v12005_v3  ;;  %v12176_v35 = vmul.f32 %v15506_v57, %v4574_v16 }
 0x5cd   : > { %15501 = vst [vmem:[#allocation55_spill] sm:$0xff] %v12158_v33  ;;  %15503 = vst [vmem:[#allocation291_spill] sm:$0xff] %v12164_v9  ;;  %v4594_v15 = vadd.f32 0.2548296, %v12008_v63  ;;  %v4595_v61 = vadd.f32 0.2548296, %v12011_v24  ;;  %v12182_v3 = vmul.f32 %v15508_v54, %v4575_v2 }
 0x5ce   : > { %15505 = vst [vmem:[#allocation292_spill] sm:$0xff] %v12170_v49  ;;  %v4596_v1 = vadd.f32 0.2548296, %v12014_v21  ;;  %15507 = vst [vmem:[#allocation293_spill] sm:$0xff] %v12176_v35  ;;  %v4597_v25 = vadd.f32 0.2548296, %v12017_v62 }
 0x5cf   : > { %v4598_v53 = vadd.f32 0.2548296, %v12020_v18  ;;  %v4599_v10 = vadd.f32 0.2548296, %v12023_v34  ;;  %15509 = vst [vmem:[#allocation212_spill] sm:$0xff] %v12182_v3  ;;  %v15510_v40 = vld [vmem:[#allocation221_spill] sm:$0xff] }
 0x5d0   : > { %v4600_v56 = vadd.f32 0.2548296, %v12026_v43  ;;  %v4601_v63 = vadd.f32 0.2548296, %v12029_v32  ;;  %v4602_v24 = vadd.f32 0.2548296, %v12032_v26  ;;  %v12188_v21 = vmul.f32 %v15510_v40, %v4576_v17 }
 0x5d1   : > { %v4603_v16 = vadd.f32 0.2548296, %v12035_v22  ;;  %v4604_v62 = vadd.f32 0.2548296, %v12038_v38  ;;  %v4605_v18 = vadd.f32 0.2548296, %v12041_v44 }
 0x5d2   : > { %15511 = vst [vmem:[#allocation258_spill] sm:$0xff] %v12188_v21  ;;  %v15512_v57 = vld [vmem:[#allocation222_spill] sm:$0xff]  ;;  %v4606_v2 = vadd.f32 0.2548296, %v12044_v8  ;;  %v4607_v43 = vadd.f32 0.2548296, %v12047_v46 }
 0x5d3   : > { %v12194_v34 = vmul.f32 %v15512_v57, %v4577_v58  ;;  %v4608_v32 = vadd.f32 0.2548296, %v12050_v4  ;;  %v15514_v54 = vld [vmem:[#allocation223_spill] sm:$0xff]  ;;  %v4609_v17 = vadd.f32 0.2548296, %v12053_v20  ;;  %v15516_v40 = vld [vmem:[#allocation224_spill] sm:$0xff] }
 0x5d4   : > { %v12200_v26 = vmul.f32 %v15514_v54, %v4578_v36  ;;  %v4610_v22 = vadd.f32 0.2548296, %v12056_v5  ;;  %v4611_v38 = vadd.f32 0.2548296, %v12059_v23  ;;  %v12206_v44 = vmul.f32 %v15516_v40, %v4579_v39  ;;  %v15518_v57 = vld [vmem:[#allocation225_spill] sm:$0xff]  ;;  %v15520_v54 = vld [vmem:[#allocation226_spill] sm:$0xff] }
 0x5d5   : > { %15513 = vst [vmem:[#allocation260_spill] sm:$0xff] %v12194_v34  ;;  %v4612_v58 = vadd.f32 0.2548296, %v12062_v28  ;;  %v4613_v8 = vadd.f32 0.2548296, %v12065_v27  ;;  %v12212_v4 = vmul.f32 %v15518_v57, %v4580_v6  ;;  %v12218_v23 = vmul.f32 %v15520_v54, %v4581_v37  ;;  %v15522_v40 = vld [vmem:[#allocation209_spill] sm:$0xff] }
 0x5d6   : > { %15515 = vst [vmem:[#allocation262_spill] sm:$0xff] %v12200_v26  ;;  %15517 = vst [vmem:[#allocation213_spill] sm:$0xff] %v12206_v44  ;;  %v4614_v46 = vadd.f32 0.2548296, %v12068_v29  ;;  %v4615_v36 = vadd.f32 0.2548296, %v12071_v45 }
 0x5d7   : > { %15519 = vst [vmem:[#allocation151_spill] sm:$0xff] %v12212_v4  ;;  %v4616_v20 = vadd.f32 0.2548296, %v12074_v14  ;;  %v4617_v5 = vadd.f32 0.2548296, %v12077_v12  ;;  %15521 = vst [vmem:[#allocation207_spill] sm:$0xff] %v12218_v23 }
 0x5d8   : > { %v4618_v39 = vadd.f32 0.2548296, %v12080_v7  ;;  %v4619_v28 = vadd.f32 0.2548296, %v12083_v41  ;;  %v4620_v27 = vadd.f32 0.2548296, %v15522_v40 }
 0x5d9   : > { %v15523_v44 = vld [vmem:[#allocation227_spill] sm:$0xff]  ;;  %v15525_v6 = vld [vmem:[#allocation210_spill] sm:$0xff]  ;;  %v15526_v4 = vld [vmem:[#allocation268_spill] sm:$0xff] }
 0x5da   : > { %v12224_v29 = vmul.f32 %v15523_v44, %v4582_v31  ;;  %v4621_v57 = vadd.f32 0.2548296, %v15525_v6  ;;  %v4622_v45 = vadd.f32 0.2548296, %v15526_v4  ;;  %v15527_v26 = vld [vmem:[#allocation270_spill] sm:$0xff]  ;;  %v15528_v34 = vld [vmem:[#allocation228_spill] sm:$0xff] }
 0x5db   : > { %v4623_v14 = vadd.f32 0.2548296, %v15527_v26  ;;  %v12230_v12 = vmul.f32 %v15528_v34, %v4583_v60  ;;  %v15530_v37 = vld [vmem:[#allocation272_spill] sm:$0xff]  ;;  %v15531_v23 = vld [vmem:[#allocation274_spill] sm:$0xff]  ;;  %v15533_v3 = vld [vmem:[#allocation229_spill] sm:$0xff] }
 0x5dc   : > { %15524 = vst [vmem:[#allocation208_spill] sm:$0xff] %v12224_v29  ;;  %v4624_v54 = vadd.f32 0.2548296, %v15530_v37  ;;  %v4625_v7 = vadd.f32 0.2548296, %v15531_v23  ;;  %v15532_v21 = vld [vmem:[#allocation276_spill] sm:$0xff]  ;;  %v12236_v40 = vmul.f32 %v15533_v3, %v4584_v48 }
 0x5dd   : > { %15529 = vst [vmem:[#allocation214_spill] sm:$0xff] %v12230_v12  ;;  %v4626_v41 = vadd.f32 0.2548296, %v15532_v21  ;;  %v15535_v31 = vld [vmem:[#allocation278_spill] sm:$0xff]  ;;  %v15536_v29 = vld [vmem:[#allocation280_spill] sm:$0xff]  ;;  %v15541_v12 = vld [vmem:[#allocation231_spill] sm:$0xff] }
 0x5de   : > { %15534 = vst [vmem:[#allocation216_spill] sm:$0xff] %v12236_v40  ;;  %v4627_v44 = vadd.f32 0.2548296, %v15535_v31  ;;  %v4628_v6 = vadd.f32 0.2548296, %v15536_v29  ;;  %v15537_v35 = vld [vmem:[#allocation282_spill] sm:$0xff]  ;;  %v12246_v37 = vmul.f32 %v15541_v12, %v4586_v55 }
 0x5df   : > { %v4629_v4 = vadd.f32 0.2548296, %v15537_v35  ;;  %v15538_v49 = vld [vmem:[#allocation230_spill] sm:$0xff]  ;;  %v15540_v60 = vld [vmem:[#allocation284_spill] sm:$0xff]  ;;  %v15545_v21 = vld [vmem:[#allocation233_spill] sm:$0xff] }
 0x5e0   : > { %v12242_v26 = vmul.f32 %v15538_v49, %v4585_v30  ;;  %v4631_v34 = vadd.f32 0.2548296, %v15540_v60  ;;  %15542 = vst [vmem:[#allocation218_spill] sm:$0xff] %v12246_v37  ;;  %v15543_v23 = vld [vmem:[#allocation232_spill] sm:$0xff]  ;;  %v12252_v48 = vmul.f32 %v15545_v21, %v4588_v50  ;;  %v15547_v3 = vld [vmem:[#allocation234_spill] sm:$0xff]  ;;  %v15549_v29 = vld [vmem:[#allocation235_spill] sm:$0xff] }
 0x5e1   : > { %v12249_v9 = vmul.f32 %v15543_v23, %v4587_v51  ;;  %v12255_v31 = vmul.f32 %v15547_v3, %v4589_v59  ;;  %v12258_v40 = vmul.f32 %v15549_v29, %v4590_v47  ;;  %v15551_v35 = vld [vmem:[#allocation236_spill] sm:$0xff]  ;;  %v15553_v49 = vld [vmem:[#allocation237_spill] sm:$0xff]  ;;  %v15555_v55 = vld [vmem:[#allocation238_spill] sm:$0xff] }
 0x5e2   : > { %15539 = vst [vmem:[#allocation217_spill] sm:$0xff] %v12242_v26  ;;  %15546 = vst [vmem:[#allocation220_spill] sm:$0xff] %v12252_v48  ;;  %v12261_v30 = vmul.f32 %v15551_v35, %v4591_v11  ;;  %v12264_v60 = vmul.f32 %v15553_v49, %v4592_v42  ;;  %v12267_v12 = vmul.f32 %v15555_v55, %v4593_v19  ;;  %v15557_v51 = vld [vmem:[#allocation239_spill] sm:$0xff]  ;;  %v15559_v50 = vld [vmem:[#allocation240_spill] sm:$0xff] }
 0x5e3   : > { %15544 = vst [vmem:[#allocation219_spill] sm:$0xff] %v12249_v9  ;;  %15548 = vst [vmem:[#allocation221_spill] sm:$0xff] %v12255_v31  ;;  %v12270_v23 = vmul.f32 %v15557_v51, %v4594_v15  ;;  %v12273_v21 = vmul.f32 %v15559_v50, %v4595_v61  ;;  %v15561_v59 = vld [vmem:[#allocation241_spill] sm:$0xff]  ;;  %v15563_v47 = vld [vmem:[#allocation242_spill] sm:$0xff] }
 0x5e4   : > { %15550 = vst [vmem:[#allocation222_spill] sm:$0xff] %v12258_v40  ;;  %15552 = vst [vmem:[#allocation223_spill] sm:$0xff] %v12261_v30  ;;  %v12276_v3 = vmul.f32 %v15561_v59, %v4596_v1  ;;  %v12279_v29 = vmul.f32 %v15563_v47, %v4597_v25  ;;  %v15565_v11 = vld [vmem:[#allocation243_spill] sm:$0xff]  ;;  %v15567_v42 = vld [vmem:[#allocation244_spill] sm:$0xff] }
 0x5e5   : > { %15554 = vst [vmem:[#allocation224_spill] sm:$0xff] %v12264_v60  ;;  %15556 = vst [vmem:[#allocation225_spill] sm:$0xff] %v12267_v12  ;;  %v12282_v35 = vmul.f32 %v15565_v11, %v4598_v53  ;;  %v12285_v49 = vmul.f32 %v15567_v42, %v4599_v10  ;;  %v15569_v19 = vld [vmem:[#allocation206_spill] sm:$0xff]  ;;  %v15571_v15 = vld [vmem:[#allocation245_spill] sm:$0xff] }
 0x5e6   : > { %15558 = vst [vmem:[#allocation226_spill] sm:$0xff] %v12270_v23  ;;  %15560 = vst [vmem:[#allocation209_spill] sm:$0xff] %v12273_v21  ;;  %v12288_v55 = vmul.f32 %v15569_v19, %v4600_v56  ;;  %v12291_v51 = vmul.f32 %v15571_v15, %v4601_v63  ;;  %v15573_v61 = vld [vmem:[#allocation246_spill] sm:$0xff]  ;;  %v15575_v1 = vld [vmem:[#allocation247_spill] sm:$0xff] }
 0x5e7   : > { %15562 = vst [vmem:[#allocation227_spill] sm:$0xff] %v12276_v3  ;;  %15564 = vst [vmem:[#allocation210_spill] sm:$0xff] %v12279_v29  ;;  %v12294_v50 = vmul.f32 %v15573_v61, %v4602_v24  ;;  %v12297_v59 = vmul.f32 %v15575_v1, %v4603_v16  ;;  %v15577_v25 = vld [vmem:[#allocation248_spill] sm:$0xff]  ;;  %v15579_v53 = vld [vmem:[#allocation249_spill] sm:$0xff] }
 0x5e8   : > { %15566 = vst [vmem:[#allocation268_spill] sm:$0xff] %v12282_v35  ;;  %15568 = vst [vmem:[#allocation270_spill] sm:$0xff] %v12285_v49  ;;  %v12300_v47 = vmul.f32 %v15577_v25, %v4604_v62  ;;  %v12303_v11 = vmul.f32 %v15579_v53, %v4605_v18  ;;  %v15581_v10 = vld [vmem:[#allocation250_spill] sm:$0xff]  ;;  %v15583_v56 = vld [vmem:[#allocation251_spill] sm:$0xff] }
 0x5e9   : > { %15570 = vst [vmem:[#allocation228_spill] sm:$0xff] %v12288_v55  ;;  %15572 = vst [vmem:[#allocation272_spill] sm:$0xff] %v12291_v51  ;;  %v12306_v42 = vmul.f32 %v15581_v10, %v4606_v2  ;;  %v12309_v19 = vmul.f32 %v15583_v56, %v4607_v43  ;;  %v15585_v63 = vld [vmem:[#allocation252_spill] sm:$0xff]  ;;  %v15587_v24 = vld [vmem:[#allocation253_spill] sm:$0xff] }
 0x5ea   : > { %15574 = vst [vmem:[#allocation274_spill] sm:$0xff] %v12294_v50  ;;  %15576 = vst [vmem:[#allocation276_spill] sm:$0xff] %v12297_v59  ;;  %v12312_v15 = vmul.f32 %v15585_v63, %v4608_v32  ;;  %v12315_v61 = vmul.f32 %v15587_v24, %v4609_v17  ;;  %v15589_v16 = vld [vmem:[#allocation254_spill] sm:$0xff]  ;;  %v15591_v62 = vld [vmem:[#allocation255_spill] sm:$0xff] }
 0x5eb   : > { %15578 = vst [vmem:[#allocation229_spill] sm:$0xff] %v12300_v47  ;;  %15580 = vst [vmem:[#allocation278_spill] sm:$0xff] %v12303_v11  ;;  %v12318_v1 = vmul.f32 %v15589_v16, %v4610_v22  ;;  %v12321_v25 = vmul.f32 %v15591_v62, %v4611_v38  ;;  %v15593_v18 = vld [vmem:[#allocation256_spill] sm:$0xff]  ;;  %v15595_v2 = vld [vmem:[#allocation257_spill] sm:$0xff] }
 0x5ec   : > { %15582 = vst [vmem:[#allocation280_spill] sm:$0xff] %v12306_v42  ;;  %15584 = vst [vmem:[#allocation282_spill] sm:$0xff] %v12309_v19  ;;  %v12324_v53 = vmul.f32 %v15593_v18, %v4612_v58  ;;  %v12327_v10 = vmul.f32 %v15595_v2, %v4613_v8  ;;  %v15597_v43 = vld [vmem:[#allocation259_spill] sm:$0xff]  ;;  %v15599_v32 = vld [vmem:[#allocation261_spill] sm:$0xff] }
 0x5ed   : > { %15586 = vst [vmem:[#allocation230_spill] sm:$0xff] %v12312_v15  ;;  %15588 = vst [vmem:[#allocation284_spill] sm:$0xff] %v12315_v61  ;;  %v12330_v56 = vmul.f32 %v15597_v43, %v4614_v46  ;;  %v12333_v63 = vmul.f32 %v15599_v32, %v4615_v36  ;;  %v15601_v17 = vld [vmem:[#allocation263_spill] sm:$0xff]  ;;  %v15603_v22 = vld [vmem:[#allocation264_spill] sm:$0xff] }
 0x5ee   : > { %15590 = vst [vmem:[#allocation231_spill] sm:$0xff] %v12318_v1  ;;  %15592 = vst [vmem:[#allocation232_spill] sm:$0xff] %v12321_v25  ;;  %v12336_v24 = vmul.f32 %v15601_v17, %v4616_v20  ;;  %v12339_v16 = vmul.f32 %v15603_v22, %v4617_v5  ;;  %v15605_v38 = vld [vmem:[#allocation265_spill] sm:$0xff]  ;;  %v15607_v58 = vld [vmem:[#allocation266_spill] sm:$0xff] }
 0x5ef   : > { %15594 = vst [vmem:[#allocation233_spill] sm:$0xff] %v12324_v53  ;;  %15596 = vst [vmem:[#allocation234_spill] sm:$0xff] %v12327_v10  ;;  %v12342_v62 = vmul.f32 %v15605_v38, %v4618_v39  ;;  %v12345_v18 = vmul.f32 %v15607_v58, %v4619_v28  ;;  %v15609_v8 = vld [vmem:[#allocation267_spill] sm:$0xff]  ;;  %v15613_v36 = vld [vmem:[#allocation269_spill] sm:$0xff] }
 0x5f0   : > { %15598 = vst [vmem:[#allocation235_spill] sm:$0xff] %v12330_v56  ;;  %15600 = vst [vmem:[#allocation236_spill] sm:$0xff] %v12333_v63  ;;  %v12348_v2 = vmul.f32 %v15609_v8, %v4620_v27  ;;  %v15611_v46 = vld [vmem:[#allocation211_spill] sm:$0xff]  ;;  %v12354_v32 = vmul.f32 %v15613_v36, %v4622_v45  ;;  %v15617_v5 = vld [vmem:[#allocation273_spill] sm:$0xff] }
 0x5f1   : > { %15602 = vst [vmem:[#allocation237_spill] sm:$0xff] %v12336_v24  ;;  %15604 = vst [vmem:[#allocation238_spill] sm:$0xff] %v12339_v16  ;;  %v12351_v43 = vmul.f32 %v15611_v46, %v4621_v57  ;;  %v15615_v20 = vld [vmem:[#allocation271_spill] sm:$0xff]  ;;  %v12360_v22 = vmul.f32 %v15617_v5, %v4624_v54  ;;  %v15621_v28 = vld [vmem:[#allocation277_spill] sm:$0xff] }
 0x5f2   : > { %15606 = vst [vmem:[#allocation239_spill] sm:$0xff] %v12342_v62  ;;  %15608 = vst [vmem:[#allocation240_spill] sm:$0xff] %v12345_v18  ;;  %v12357_v17 = vmul.f32 %v15615_v20, %v4623_v14  ;;  %v15619_v39 = vld [vmem:[#allocation275_spill] sm:$0xff]  ;;  %v12366_v58 = vmul.f32 %v15621_v28, %v4626_v41  ;;  %v15625_v57 = vld [vmem:[#allocation281_spill] sm:$0xff] }
 0x5f3   : > { %15610 = vst [vmem:[#allocation241_spill] sm:$0xff] %v12348_v2  ;;  %15612 = vst [vmem:[#allocation242_spill] sm:$0xff] %v12351_v43  ;;  %v12363_v38 = vmul.f32 %v15619_v39, %v4625_v7  ;;  %v15623_v27 = vld [vmem:[#allocation279_spill] sm:$0xff]  ;;  %v12372_v46 = vmul.f32 %v15625_v57, %v4628_v6  ;;  %v15629_v14 = vld [vmem:[#allocation285_spill] sm:$0xff] }
 0x5f4   : > { %15614 = vst [vmem:[#allocation243_spill] sm:$0xff] %v12354_v32  ;;  %15616 = vst [vmem:[#allocation244_spill] sm:$0xff] %v12357_v17  ;;  %v12369_v8 = vmul.f32 %v15623_v27, %v4627_v44  ;;  %v15627_v45 = vld [vmem:[#allocation283_spill] sm:$0xff]  ;;  %v12378_v20 = vmul.f32 %v15629_v14, %v4631_v34  ;;  %v15631_v54 = vld [vmem:[#allocation66_spill] sm:$0xff] }
 0x5f5   : > { %15618 = vst [vmem:[#allocation206_spill] sm:$0xff] %v12360_v22  ;;  %15620 = vst [vmem:[#allocation245_spill] sm:$0xff] %v12363_v38  ;;  %v12375_v36 = vmul.f32 %v15627_v45, %v4629_v4  ;;  %v4711_v5 = vsub.f32 0.0, %v15631_v54  ;;  %v15632_v22 = vld [vmem:[#allocation165_spill] sm:$0xff]  ;;  %v15633_v39 = vld [vmem:[#allocation166_spill] sm:$0xff] }
 0x5f6   : > { %15622 = vst [vmem:[#allocation246_spill] sm:$0xff] %v12366_v58  ;;  %15624 = vst [vmem:[#allocation247_spill] sm:$0xff] %v12369_v8  ;;  %v4712_v7 = vsub.f32 0.0, %v15632_v22  ;;  %v4713_v38 = vsub.f32 0.0, %v15633_v39  ;;  %v15634_v41 = vld [vmem:[#allocation167_spill] sm:$0xff]  ;;  %v15635_v58 = vld [vmem:[#allocation168_spill] sm:$0xff] }
 0x5f7   : > { %15626 = vst [vmem:[#allocation248_spill] sm:$0xff] %v12372_v46  ;;  %15628 = vst [vmem:[#allocation249_spill] sm:$0xff] %v12375_v36  ;;  %v4714_v28 = vsub.f32 0.0, %v15634_v41  ;;  %v4715_v44 = vsub.f32 0.0, %v15635_v58  ;;  %v15636_v27 = vld [vmem:[#allocation169_spill] sm:$0xff]  ;;  %v15637_v6 = vld [vmem:[#allocation170_spill] sm:$0xff] }
 0x5f8   : > { %15630 = vst [vmem:[#allocation250_spill] sm:$0xff] %v12378_v20  ;;  %v4716_v8 = vsub.f32 0.0, %v15636_v27  ;;  %v4717_v57 = vsub.f32 0.0, %v15637_v6  ;;  %v15638_v46 = vld [vmem:[#allocation171_spill] sm:$0xff]  ;;  %v15639_v45 = vld [vmem:[#allocation172_spill] sm:$0xff]  ;;  %v15640_v34 = vld [vmem:[#allocation173_spill] sm:$0xff] }
 0x5f9   : > { %v4718_v4 = vsub.f32 0.0, %v15638_v46  ;;  %v4719_v36 = vsub.f32 0.0, %v15639_v45  ;;  %v4720_v14 = vsub.f32 0.0, %v15640_v34  ;;  %v15641_v20 = vld [vmem:[#allocation174_spill] sm:$0xff]  ;;  %v15642_v32 = vld [vmem:[#allocation175_spill] sm:$0xff]  ;;  %v15643_v2 = vld [vmem:[#allocation176_spill] sm:$0xff] }
 0x5fa   : > { %v4721_v17 = vsub.f32 0.0, %v15641_v20  ;;  %v4722_v43 = vsub.f32 0.0, %v15642_v32  ;;  %v4723_v18 = vsub.f32 0.0, %v15643_v2  ;;  %v15644_v62 = vld [vmem:[#allocation177_spill] sm:$0xff]  ;;  %v15645_v24 = vld [vmem:[#allocation178_spill] sm:$0xff]  ;;  %v15646_v56 = vld [vmem:[#allocation179_spill] sm:$0xff] }
 0x5fb   : > { %v4724_v16 = vsub.f32 0.0, %v15644_v62  ;;  %v4725_v63 = vsub.f32 0.0, %v15645_v24  ;;  %v4726_v10 = vsub.f32 0.0, %v15646_v56  ;;  %v15647_v53 = vld [vmem:[#allocation180_spill] sm:$0xff]  ;;  %v15648_v1 = vld [vmem:[#allocation181_spill] sm:$0xff]  ;;  %v15649_v15 = vld [vmem:[#allocation182_spill] sm:$0xff] }
 0x5fc   : > { %v4727_v25 = vsub.f32 0.0, %v15647_v53  ;;  %v4728_v61 = vsub.f32 0.0, %v15648_v1  ;;  %v4729_v19 = vsub.f32 0.0, %v15649_v15  ;;  %v15650_v42 = vld [vmem:[#allocation183_spill] sm:$0xff]  ;;  %v15651_v47 = vld [vmem:[#allocation184_spill] sm:$0xff]  ;;  %v15652_v50 = vld [vmem:[#allocation74_spill] sm:$0xff] }
 0x5fd   : > { %v4730_v11 = vsub.f32 0.0, %v15650_v42  ;;  %v4731_v59 = vsub.f32 0.0, %v15651_v47  ;;  %v4732_v51 = vsub.f32 0.0, %v15652_v50  ;;  %v15653_v55 = vld [vmem:[#allocation185_spill] sm:$0xff]  ;;  %v15654_v35 = vld [vmem:[#allocation186_spill] sm:$0xff]  ;;  %v15655_v3 = vld [vmem:[#allocation72_spill] sm:$0xff] }
 0x5fe   : > { %v4733_v49 = vsub.f32 0.0, %v15653_v55  ;;  %v4734_v29 = vsub.f32 0.0, %v15654_v35  ;;  %v4735_v21 = vsub.f32 0.0, %v15655_v3  ;;  %v15656_v23 = vld [vmem:[#allocation187_spill] sm:$0xff]  ;;  %v15657_v60 = vld [vmem:[#allocation188_spill] sm:$0xff]  ;;  %v15658_v40 = vld [vmem:[#allocation189_spill] sm:$0xff] }
 0x5ff   : > { %v4736_v12 = vsub.f32 0.0, %v15656_v23  ;;  %v4737_v30 = vsub.f32 0.0, %v15657_v60  ;;  %v4738_v31 = vsub.f32 0.0, %v15658_v40  ;;  %v15659_v48 = vld [vmem:[#allocation190_spill] sm:$0xff]  ;;  %v15660_v37 = vld [vmem:[#allocation191_spill] sm:$0xff]  ;;  %v15661_v33 = vld [vmem:[#allocation192_spill] sm:$0xff] }
 0x600   : > { %v4739_v9 = vsub.f32 0.0, %v15659_v48  ;;  %v4740_v26 = vsub.f32 0.0, %v15660_v37  ;;  %v4741_v13 = vsub.f32 0.0, %v15661_v33  ;;  %v15662_v52 = vld [vmem:[#allocation193_spill] sm:$0xff]  ;;  %v15663_v50 = vld [vmem:[#allocation194_spill] sm:$0xff]  ;;  %v15664_v47 = vld [vmem:[#allocation195_spill] sm:$0xff] }
 0x601   : > { %v4742_v0 = vsub.f32 0.0, %v15662_v52  ;;  %v4743_v55 = vsub.f32 0.0, %v15663_v50  ;;  %v4744_v35 = vsub.f32 0.0, %v15664_v47  ;;  %v15665_v42 = vld [vmem:[#allocation196_spill] sm:$0xff]  ;;  %v15666_v15 = vld [vmem:[#allocation197_spill] sm:$0xff]  ;;  %v15667_v1 = vld [vmem:[#allocation198_spill] sm:$0xff] }
 0x602   : > { %v4745_v3 = vsub.f32 0.0, %v15665_v42  ;;  %v4746_v23 = vsub.f32 0.0, %v15666_v15  ;;  %v4747_v60 = vsub.f32 0.0, %v15667_v1  ;;  %v15668_v53 = vld [vmem:[#allocation199_spill] sm:$0xff]  ;;  %v15669_v56 = vld [vmem:[#allocation200_spill] sm:$0xff]  ;;  %v15670_v24 = vld [vmem:[#allocation201_spill] sm:$0xff] }
 0x603   : > { %v4748_v40 = vsub.f32 0.0, %v15668_v53  ;;  %v4749_v48 = vsub.f32 0.0, %v15669_v56  ;;  %v4750_v37 = vsub.f32 0.0, %v15670_v24  ;;  %v15671_v62 = vld [vmem:[#allocation202_spill] sm:$0xff]  ;;  %v15672_v2 = vld [vmem:[#allocation203_spill] sm:$0xff]  ;;  %v15673_v32 = vld [vmem:[#allocation204_spill] sm:$0xff] }
 0x604   : > { %v4751_v33 = vsub.f32 0.0, %v15671_v62  ;;  %v4752_v52 = vsub.f32 0.0, %v15672_v2  ;;  %v4753_v50 = vsub.f32 0.0, %v15673_v32  ;;  %v15674_v20 = vld [vmem:[#allocation109_spill] sm:$0xff]  ;;  %v15676_v45 = vld [vmem:[#allocation106_spill] sm:$0xff]  ;;  %v15684_v32 = vld [vmem:[#allocation155_spill] sm:$0xff] }
 0x605   : > { %v4754_v47 = vsub.f32 0.0, %v15674_v20  ;;  %v15675_v34 = vld [vmem:[#allocation105_spill] sm:$0xff]  ;;  %v4756_v15 = vsub.f32 0.0, %v15676_v45  ;;  %v15682_v62 = vld [vmem:[#allocation154_spill] sm:$0xff]  ;;  %v15685_v20 = vsub.f32 0.0, %v15684_v32 }
 0x606   : > { %v4755_v42 = vsub.f32 0.0, %v15675_v34  ;;  %v15677_v46 = vld [vmem:[#allocation205_spill] sm:$0xff]  ;;  %v15683_v2 = vsub.f32 0.0, %v15682_v62  ;;  %v15686_v34 = vld [vmem:[#allocation156_spill] sm:$0xff] }
 0x607   : > { %v4757_v1 = vsub.f32 0.0, %v15677_v46  ;;  %v15679_v27 = vld [vmem:[#allocation153_spill] sm:$0xff]  ;;  %v4765_v41 = vmul.f32 %v15685_v20, %v15684_v32  ;;  %v15687_v45 = vsub.f32 0.0, %v15686_v34  ;;  %v15698_v32 = vld [vmem:[#allocation160_spill] sm:$0xff] }
 0x608   : > { %v15680_v56 = vsub.f32 0.0, %v15679_v27  ;;  %v4764_v58 = vmul.f32 %v15683_v2, %v15682_v62  ;;  %v15689_v46 = vld [vmem:[#allocation157_spill] sm:$0xff]  ;;  %v15695_v62 = vld [vmem:[#allocation159_spill] sm:$0xff]  ;;  %v15699_v20 = vsub.f32 0.0, %v15698_v32 }
 0x609   : > { %v12442_v39 = vmul.f32 %v15687_v45, %v15686_v34  ;;  %v15690_v53 = vsub.f32 0.0, %v15689_v46  ;;  %v15696_v2 = vsub.f32 0.0, %v15695_v62  ;;  %v15701_v34 = vld [vmem:[#allocation161_spill] sm:$0xff] }
 0x60a   : > { %v12431_v24 = vmul.f32 %v15680_v56, %v15679_v27  ;;  %v15692_v56 = vld [vmem:[#allocation158_spill] sm:$0xff]  ;;  %v12462_v45 = vmul.f32 %v15699_v20, %v15698_v32  ;;  %v12485_v20 = vmul.f32 %v4711_v5, %v15631_v54  ;;  %v15718_v54 = vld [vmem:[#allocation171_spill] sm:$0xff] }
 0x60b   : > { %15688 = vst [vmem:[#allocation252_spill] sm:$0xff] %v12442_v39  ;;  %v12447_v6 = vmul.f32 %v15690_v53, %v15689_v46  ;;  %v15693_v27 = vsub.f32 0.0, %v15692_v56  ;;  %v12457_v22 = vmul.f32 %v15696_v2, %v15695_v62  ;;  %v15702_v39 = vsub.f32 0.0, %v15701_v34  ;;  %v15704_v46 = vld [vmem:[#allocation162_spill] sm:$0xff]  ;;  %v15710_v2 = vld [vmem:[#allocation164_spill] sm:$0xff] }
 0x60c   : > { %15681 = vst [vmem:[#allocation251_spill] sm:$0xff] %v12431_v24  ;;  %15700 = vst [vmem:[#allocation256_spill] sm:$0xff] %v12462_v45  ;;  %v12506_v5 = vmul.f32 %v4718_v4, %v15718_v54  ;;  %v15725_v4 = vld [vmem:[#allocation178_spill] sm:$0xff] }
 0x60d   : > { %15691 = vst [vmem:[#allocation253_spill] sm:$0xff] %v12447_v6  ;;  %v12452_v24 = vmul.f32 %v15693_v27, %v15692_v56  ;;  %15697 = vst [vmem:[#allocation255_spill] sm:$0xff] %v12457_v22  ;;  %v12467_v53 = vmul.f32 %v15702_v39, %v15701_v34  ;;  %v15705_v6 = vsub.f32 0.0, %v15704_v46  ;;  %v15707_v27 = vld [vmem:[#allocation163_spill] sm:$0xff]  ;;  %v15711_v22 = vsub.f32 0.0, %v15710_v2  ;;  %v15712_v39 = vld [vmem:[#allocation165_spill] sm:$0xff] }
 0x60e   : > { %v12488_v34 = vmul.f32 %v4712_v7, %v15712_v39  ;;  %v15719_v7 = vld [vmem:[#allocation172_spill] sm:$0xff]  ;;  %v12527_v54 = vmul.f32 %v4725_v63, %v15725_v4  ;;  %v15732_v63 = vld [vmem:[#allocation74_spill] sm:$0xff] }
 0x60f   : > { %15694 = vst [vmem:[#allocation254_spill] sm:$0xff] %v12452_v24  ;;  %15703 = vst [vmem:[#allocation257_spill] sm:$0xff] %v12467_v53  ;;  %v12472_v56 = vmul.f32 %v15705_v6, %v15704_v46  ;;  %v15708_v24 = vsub.f32 0.0, %v15707_v27  ;;  %v12482_v32 = vmul.f32 %v15711_v22, %v15710_v2  ;;  %v15713_v53 = vld [vmem:[#allocation166_spill] sm:$0xff]  ;;  %v15714_v6 = vld [vmem:[#allocation167_spill] sm:$0xff]  ;;  %v12509_v39 = vmul.f32 %v4719_v36, %v15719_v7 }
 0x610   : > { %v12491_v45 = vmul.f32 %v4713_v38, %v15713_v53  ;;  %v12494_v46 = vmul.f32 %v4714_v28, %v15714_v6  ;;  %v15717_v22 = vld [vmem:[#allocation170_spill] sm:$0xff]  ;;  %v15720_v38 = vld [vmem:[#allocation173_spill] sm:$0xff]  ;;  %v15726_v36 = vld [vmem:[#allocation179_spill] sm:$0xff]  ;;  %v12548_v4 = vmul.f32 %v4732_v51, %v15732_v63 }
 0x611   : > { %15706 = vst [vmem:[#allocation259_spill] sm:$0xff] %v12472_v56  ;;  %v12477_v62 = vmul.f32 %v15708_v24, %v15707_v27  ;;  %v15715_v56 = vld [vmem:[#allocation168_spill] sm:$0xff]  ;;  %v15716_v27 = vld [vmem:[#allocation169_spill] sm:$0xff]  ;;  %v12503_v2 = vmul.f32 %v4717_v57, %v15717_v22  ;;  %v12512_v53 = vmul.f32 %v4720_v14, %v15720_v38  ;;  %v15721_v28 = vld [vmem:[#allocation174_spill] sm:$0xff]  ;;  %v12530_v7 = vmul.f32 %v4726_v10, %v15726_v36 }
 0x612   : > { %v12497_v24 = vmul.f32 %v4715_v44, %v15715_v56  ;;  %v12515_v6 = vmul.f32 %v4721_v17, %v15721_v28  ;;  %v15722_v44 = vld [vmem:[#allocation175_spill] sm:$0xff]  ;;  %v15724_v57 = vld [vmem:[#allocation177_spill] sm:$0xff]  ;;  %v15727_v14 = vld [vmem:[#allocation180_spill] sm:$0xff] }
 0x613   : > { %15709 = vst [vmem:[#allocation261_spill] sm:$0xff] %v12477_v62  ;;  %v12500_v62 = vmul.f32 %v4716_v8, %v15716_v27  ;;  %v12518_v56 = vmul.f32 %v4722_v43, %v15722_v44  ;;  %v15723_v8 = vld [vmem:[#allocation176_spill] sm:$0xff]  ;;  %v12524_v22 = vmul.f32 %v4724_v16, %v15724_v57  ;;  %v12533_v38 = vmul.f32 %v4727_v25, %v15727_v14  ;;  %v15728_v17 = vld [vmem:[#allocation181_spill] sm:$0xff]  ;;  %v15729_v43 = vld [vmem:[#allocation182_spill] sm:$0xff] }
 0x614   : > { %v12521_v27 = vmul.f32 %v4723_v18, %v15723_v8  ;;  %v12536_v28 = vmul.f32 %v4728_v61, %v15728_v17  ;;  %v12539_v44 = vmul.f32 %v4729_v19, %v15729_v43  ;;  %v15730_v18 = vld [vmem:[#allocation183_spill] sm:$0xff]  ;;  %v15731_v16 = vld [vmem:[#allocation184_spill] sm:$0xff]  ;;  %v15733_v10 = vld [vmem:[#allocation185_spill] sm:$0xff] }
 0x615   : > { %v12542_v8 = vmul.f32 %v4730_v11, %v15730_v18  ;;  %v12545_v57 = vmul.f32 %v4731_v59, %v15731_v16  ;;  %v12551_v36 = vmul.f32 %v4733_v49, %v15733_v10  ;;  %v15734_v25 = vld [vmem:[#allocation186_spill] sm:$0xff]  ;;  %v15735_v61 = vld [vmem:[#allocation72_spill] sm:$0xff]  ;;  %v15736_v19 = vld [vmem:[#allocation187_spill] sm:$0xff] }
 0x616   : > { %v12554_v14 = vmul.f32 %v4734_v29, %v15734_v25  ;;  %v12557_v17 = vmul.f32 %v4735_v21, %v15735_v61  ;;  %v12560_v43 = vmul.f32 %v4736_v12, %v15736_v19  ;;  %v15737_v11 = vld [vmem:[#allocation188_spill] sm:$0xff]  ;;  %v15738_v59 = vld [vmem:[#allocation189_spill] sm:$0xff]  ;;  %v15739_v51 = vld [vmem:[#allocation190_spill] sm:$0xff] }
 0x617   : > { %v12563_v18 = vmul.f32 %v4737_v30, %v15737_v11  ;;  %v12566_v16 = vmul.f32 %v4738_v31, %v15738_v59  ;;  %v12569_v63 = vmul.f32 %v4739_v9, %v15739_v51  ;;  %v15740_v49 = vld [vmem:[#allocation191_spill] sm:$0xff]  ;;  %v15741_v29 = vld [vmem:[#allocation192_spill] sm:$0xff]  ;;  %v15742_v21 = vld [vmem:[#allocation193_spill] sm:$0xff] }
 0x618   : > { %v12572_v10 = vmul.f32 %v4740_v26, %v15740_v49  ;;  %v12575_v25 = vmul.f32 %v4741_v13, %v15741_v29  ;;  %v12578_v61 = vmul.f32 %v4742_v0, %v15742_v21  ;;  %v15743_v12 = vld [vmem:[#allocation194_spill] sm:$0xff]  ;;  %v15744_v30 = vld [vmem:[#allocation195_spill] sm:$0xff]  ;;  %v15745_v31 = vld [vmem:[#allocation196_spill] sm:$0xff] }
 0x619   : > { %v12581_v19 = vmul.f32 %v4743_v55, %v15743_v12  ;;  %v12584_v11 = vmul.f32 %v4744_v35, %v15744_v30  ;;  %v12587_v59 = vmul.f32 %v4745_v3, %v15745_v31  ;;  %v15746_v9 = vld [vmem:[#allocation197_spill] sm:$0xff]  ;;  %v15747_v26 = vld [vmem:[#allocation198_spill] sm:$0xff]  ;;  %v15748_v13 = vld [vmem:[#allocation199_spill] sm:$0xff] }
 0x61a   : > { %v12590_v51 = vmul.f32 %v4746_v23, %v15746_v9  ;;  %v12593_v49 = vmul.f32 %v4747_v60, %v15747_v26  ;;  %v12596_v29 = vmul.f32 %v4748_v40, %v15748_v13  ;;  %v15749_v0 = vld [vmem:[#allocation200_spill] sm:$0xff]  ;;  %v15750_v55 = vld [vmem:[#allocation201_spill] sm:$0xff]  ;;  %v15752_v35 = vld [vmem:[#allocation202_spill] sm:$0xff] }
 0x61b   : > { %v12599_v21 = vmul.f32 %v4749_v48, %v15749_v0  ;;  %v12602_v12 = vmul.f32 %v4750_v37, %v15750_v55  ;;  %v12605_v30 = vmul.f32 %v4751_v33, %v15752_v35  ;;  %v15754_v3 = vld [vmem:[#allocation203_spill] sm:$0xff]  ;;  %v15756_v23 = vld [vmem:[#allocation204_spill] sm:$0xff]  ;;  %v15758_v60 = vld [vmem:[#allocation109_spill] sm:$0xff] }
 0x61c   : > { %v12608_v31 = vmul.f32 %v4752_v52, %v15754_v3  ;;  %v12611_v9 = vmul.f32 %v4753_v50, %v15756_v23  ;;  %v12614_v26 = vmul.f32 %v4754_v47, %v15758_v60  ;;  %v15760_v40 = vld [vmem:[#allocation105_spill] sm:$0xff]  ;;  %v15762_v48 = vld [vmem:[#allocation106_spill] sm:$0xff]  ;;  %v15768_v3 = vld [vmem:[#allocation288_spill] sm:$0xff] }
 0x61d   : > { %15751 = vst [vmem:[#allocation263_spill] sm:$0xff] %v12602_v12  ;;  %15753 = vst [vmem:[#allocation264_spill] sm:$0xff] %v12605_v30  ;;  %v12617_v13 = vmul.f32 %v4755_v42, %v15760_v40  ;;  %v12620_v0 = vmul.f32 %v4756_v15, %v15762_v48  ;;  %v15764_v37 = vld [vmem:[#allocation205_spill] sm:$0xff]  ;;  %v15766_v33 = vld [vmem:[#allocation286_spill] sm:$0xff]  ;;  %v4832_v40 = vmul.f32 1.442695, %v4764_v58 }
 0x61e   : > { %15755 = vst [vmem:[#allocation265_spill] sm:$0xff] %v12608_v31  ;;  %15757 = vst [vmem:[#allocation266_spill] sm:$0xff] %v12611_v9  ;;  %v12623_v55 = vmul.f32 %v4757_v1, %v15764_v37  ;;  %v4824_v35 = vmul.f32 1.442695, %v15766_v33  ;;  %v15767_v30 = vld [vmem:[#allocation287_spill] sm:$0xff]  ;;  %v15769_v50 = vld [vmem:[#allocation110_spill] sm:$0xff] }
 0x61f   : > { %15759 = vst [vmem:[#allocation267_spill] sm:$0xff] %v12614_v26  ;;  %15761 = vst [vmem:[#allocation211_spill] sm:$0xff] %v12617_v13  ;;  %v4826_v52 = vmul.f32 1.442695, %v15767_v30  ;;  %v4828_v31 = vmul.f32 1.442695, %v15768_v3 }
 0x620   : > { %15763 = vst [vmem:[#allocation269_spill] sm:$0xff] %v12620_v0  ;;  %15765 = vst [vmem:[#allocation271_spill] sm:$0xff] %v12623_v55  ;;  %v15770_v23 = vsub.f32 0.0, %v15769_v50  ;;  %v15771_v60 = vld [vmem:[#allocation251_spill] sm:$0xff]  ;;  %v4834_v13 = vmul.f32 1.442695, %v4765_v41  ;;  %6476 = vpow2.f32 %v4824_v35 }
 0x621   : > { %v4830_v42 = vmul.f32 1.442695, %v15771_v60  ;;  %v15772_v15 = vld [vmem:[#allocation252_spill] sm:$0xff]  ;;  %v15773_v1 = vld [vmem:[#allocation253_spill] sm:$0xff]  ;;  %v15774_v55 = vld [vmem:[#allocation254_spill] sm:$0xff]  ;;  %6478 = vpow2.f32 %v4826_v52 }
 0x622   : > { %v12631_v47 = vmul.f32 %v15770_v23, %v15769_v50  ;;  %v4836_v48 = vmul.f32 1.442695, %v15772_v15  ;;  %v4838_v37 = vmul.f32 1.442695, %v15773_v1  ;;  %v4840_v33 = vmul.f32 1.442695, %v15774_v55 }
 0x623   : > { %v15775_v30 = vld [vmem:[#allocation255_spill] sm:$0xff]  ;;  %v15776_v3 = vld [vmem:[#allocation256_spill] sm:$0xff]  ;;  %v15777_v9 = vld [vmem:[#allocation257_spill] sm:$0xff]  ;;  %6480 = vpow2.f32 %v4828_v31  ;;  %v4852_v41 = vmul.f32 1.442695, %v12482_v32 }
 0x624   : > { %v4842_v0 = vmul.f32 1.442695, %v15775_v30  ;;  %v4844_v26 = vmul.f32 1.442695, %v15776_v3  ;;  %v4846_v12 = vmul.f32 1.442695, %v15777_v9  ;;  %6482 = vpow2.f32 %v4830_v42 }
 0x625   : > { %v15778_v50 = vld [vmem:[#allocation259_spill] sm:$0xff]  ;;  %v15779_v60 = vld [vmem:[#allocation261_spill] sm:$0xff]  ;;  %v4854_v35 = vmul.f32 1.442695, %v12485_v20  ;;  %v4856_v15 = vmul.f32 1.442695, %v12488_v34  ;;  %6484 = vpow2.f32 %v4832_v40 }
 0x626   : > { %v4848_v23 = vmul.f32 1.442695, %v15778_v50  ;;  %v4850_v58 = vmul.f32 1.442695, %v15779_v60  ;;  %v4858_v55 = vmul.f32 1.442695, %v12491_v45  ;;  %6486 = vpow2.f32 %v4834_v13 }
 0x627   : > { %v12647_v52 = vmul.f32 1.442695, %v12494_v46  ;;  %v12650_v9 = vmul.f32 1.442695, %v12497_v24  ;;  %v12653_v31 = vmul.f32 1.442695, %v12500_v62  ;;  %6488 = vpow2.f32 %v4836_v48 }
 0x628   : > { %v12656_v32 = vmul.f32 1.442695, %v12503_v2  ;;  %v12659_v20 = vmul.f32 1.442695, %v12506_v5  ;;  %v12662_v34 = vmul.f32 1.442695, %v12509_v39  ;;  %6490 = vpow2.f32 %v4838_v37 }
 0x629   : > { %v12665_v45 = vmul.f32 1.442695, %v12512_v53  ;;  %v12668_v46 = vmul.f32 1.442695, %v12515_v6  ;;  %v12671_v62 = vmul.f32 1.442695, %v12518_v56  ;;  %6492 = vpow2.f32 %v4840_v33 }
 0x62a   : > { %v12674_v24 = vmul.f32 1.442695, %v12521_v27  ;;  %v12677_v2 = vmul.f32 1.442695, %v12524_v22  ;;  %v12680_v5 = vmul.f32 1.442695, %v12527_v54  ;;  %6494 = vpow2.f32 %v4842_v0  ;;  %v6477_v54 = vpop.eup %6476 }
 0x62b   : > { %v12683_v39 = vmul.f32 1.442695, %v12530_v7  ;;  %v12686_v53 = vmul.f32 1.442695, %v12533_v38  ;;  %v12689_v6 = vmul.f32 1.442695, %v12536_v28  ;;  %6496 = vpow2.f32 %v4844_v26  ;;  %v6479_v13 = vpop.eup %6478 }
 0x62c   : > { %v12692_v56 = vmul.f32 1.442695, %v12539_v44  ;;  %v12695_v27 = vmul.f32 1.442695, %v12542_v8  ;;  %v12698_v22 = vmul.f32 1.442695, %v12545_v57  ;;  %6498 = vpow2.f32 %v4846_v12 }
 0x62d   : > { %v12701_v7 = vmul.f32 1.442695, %v12548_v4  ;;  %v12704_v38 = vmul.f32 1.442695, %v12551_v36  ;;  %v12707_v28 = vmul.f32 1.442695, %v12554_v14  ;;  %v6481_v26 = vpop.eup %6480  ;;  %6500 = vpow2.f32 %v4848_v23 }
 0x62e   : > { %v12710_v44 = vmul.f32 1.442695, %v12557_v17  ;;  %v12713_v8 = vmul.f32 1.442695, %v12560_v43  ;;  %v12716_v57 = vmul.f32 1.442695, %v12563_v18  ;;  %v6483_v12 = vpop.eup %6482  ;;  %6502 = vpow2.f32 %v4850_v58 }
 0x62f   : > { %v12719_v4 = vmul.f32 1.442695, %v12566_v16  ;;  %v12722_v36 = vmul.f32 1.442695, %v12569_v63  ;;  %v12725_v14 = vmul.f32 1.442695, %v12572_v10  ;;  %v6485_v0 = vpop.eup %6484  ;;  %6504 = vpow2.f32 %v4852_v41 }
 0x630   : > { %v12728_v17 = vmul.f32 1.442695, %v12575_v25  ;;  %v12731_v43 = vmul.f32 1.442695, %v12578_v61  ;;  %v12734_v18 = vmul.f32 1.442695, %v12581_v19  ;;  %v6487_v42 = vpop.eup %6486  ;;  %6506 = vpow2.f32 %v4854_v35 }
 0x631   : > { %v12737_v16 = vmul.f32 1.442695, %v12584_v11  ;;  %v12740_v63 = vmul.f32 1.442695, %v12587_v59  ;;  %v12743_v10 = vmul.f32 1.442695, %v12590_v51  ;;  %v6489_v40 = vpop.eup %6488  ;;  %6508 = vpow2.f32 %v4856_v15 }
 0x632   : > { %v12746_v25 = vmul.f32 1.442695, %v12593_v49  ;;  %v12749_v61 = vmul.f32 1.442695, %v12596_v29  ;;  %v12752_v19 = vmul.f32 1.442695, %v12599_v21  ;;  %v6491_v33 = vpop.eup %6490  ;;  %6510 = vpow2.f32 %v4858_v55 }
 0x633   : > { %v15780_v11 = vld [vmem:[#allocation263_spill] sm:$0xff]  ;;  %v15781_v59 = vld [vmem:[#allocation264_spill] sm:$0xff]  ;;  %v15782_v51 = vld [vmem:[#allocation265_spill] sm:$0xff]  ;;  %v6493_v23 = vpop.eup %6492  ;;  %6512 = vpow2.f32 %v12647_v52  ;;  %v12780_v15 = vmul.f32 1.442695, %v12631_v47 }
 0x634   : > { %v12755_v48 = vmul.f32 1.442695, %v15780_v11  ;;  %v12758_v1 = vmul.f32 1.442695, %v15781_v59  ;;  %v12761_v37 = vmul.f32 1.442695, %v15782_v51  ;;  %v6495_v55 = vpop.eup %6494  ;;  %6514 = vpow2.f32 %v12650_v9 }
 0x635   : > { %v15783_v49 = vld [vmem:[#allocation266_spill] sm:$0xff]  ;;  %v15784_v29 = vld [vmem:[#allocation267_spill] sm:$0xff]  ;;  %v15786_v60 = vld [vmem:[#allocation269_spill] sm:$0xff]  ;;  %15789 = vst [vmem:[#allocation275_spill] sm:$0xff] %v12780_v15  ;;  %6516 = vpow2.f32 %v12653_v31 }
 0x636   : > { %v12764_v30 = vmul.f32 1.442695, %v15783_v49  ;;  %v12767_v3 = vmul.f32 1.442695, %v15784_v29  ;;  %v15785_v21 = vld [vmem:[#allocation211_spill] sm:$0xff]  ;;  %v15790_v11 = vld [vmem:[#allocation289_spill] sm:$0xff]  ;;  %6518 = vpow2.f32 %v12656_v32 }
 0x637   : > { %v12770_v50 = vmul.f32 1.442695, %v15785_v21  ;;  %v12774_v58 = vmul.f32 1.442695, %v15786_v60  ;;  %v15787_v41 = vld [vmem:[#allocation271_spill] sm:$0xff]  ;;  %v12784_v59 = vmul.f32 %v6477_v54, %v15790_v11  ;;  %v15791_v51 = vld [vmem:[#allocation152_spill] sm:$0xff]  ;;  %v6497_v21 = vpop.eup %6496  ;;  %6520 = vpow2.f32 %v12659_v20 }
 0x638   : > { %v12777_v35 = vmul.f32 1.442695, %v15787_v41  ;;  %v12787_v49 = vmul.f32 %v6479_v13, %v15791_v51  ;;  %v15792_v29 = vld [vmem:[#allocation290_spill] sm:$0xff]  ;;  %v15793_v60 = vld [vmem:[#allocation55_spill] sm:$0xff]  ;;  %v6499_v54 = vpop.eup %6498  ;;  %v15796_v13 = vld [vmem:[#allocation293_spill] sm:$0xff]  ;;  %6522 = vpow2.f32 %v12662_v34 }
 0x639   : > { %v12790_v52 = vmul.f32 %v6481_v26, %v15792_v29  ;;  %v12794_v41 = vmul.f32 %v6483_v12, %v15793_v60  ;;  %v15794_v47 = vld [vmem:[#allocation291_spill] sm:$0xff]  ;;  %v12804_v11 = vmul.f32 %v6489_v40, %v15796_v13  ;;  %v15797_v26 = vld [vmem:[#allocation212_spill] sm:$0xff]  ;;  %v15798_v29 = vld [vmem:[#allocation258_spill] sm:$0xff]  ;;  %v6501_v12 = vpop.eup %6500  ;;  %6524 = vpow2.f32 %v12665_v45 }
 0x63a   : > { %15788 = vst [vmem:[#allocation273_spill] sm:$0xff] %v12777_v35  ;;  %v12797_v15 = vmul.f32 %v6485_v0, %v15794_v47  ;;  %v15795_v35 = vld [vmem:[#allocation292_spill] sm:$0xff]  ;;  %v12807_v51 = vmul.f32 %v6491_v33, %v15797_v26  ;;  %v12810_v31 = vmul.f32 %v6493_v23, %v15798_v29  ;;  %v15801_v47 = vld [vmem:[#allocation213_spill] sm:$0xff]  ;;  %v6503_v40 = vpop.eup %6502  ;;  %v15802_v33 = vld [vmem:[#allocation151_spill] sm:$0xff]  ;;  %v5016_v23 = vsub.f32 1.0, %v12784_v59 }
 0x63b   : > { %v12800_v9 = vmul.f32 %v6487_v42, %v15795_v35  ;;  %v15799_v0 = vld [vmem:[#allocation260_spill] sm:$0xff]  ;;  %v15800_v42 = vld [vmem:[#allocation262_spill] sm:$0xff]  ;;  %v12820_v32 = vmul.f32 %v6499_v54, %v15801_v47  ;;  %v12824_v13 = vmul.f32 %v6501_v12, %v15802_v33  ;;  %v5017_v26 = vsub.f32 1.0, %v12787_v49  ;;  %v6505_v20 = vpop.eup %6504 }
 0x63c   : > { %v12814_v60 = vmul.f32 %v6495_v55, %v15799_v0  ;;  %v12817_v35 = vmul.f32 %v6497_v21, %v15800_v42  ;;  %v15803_v55 = vld [vmem:[#allocation207_spill] sm:$0xff]  ;;  %v5018_v21 = vsub.f32 1.0, %v12790_v52  ;;  %v5019_v54 = vsub.f32 1.0, %v12794_v41  ;;  %v6507_v0 = vpop.eup %6506  ;;  %v15804_v34 = vld [vmem:[#allocation208_spill] sm:$0xff]  ;;  %v15805_v45 = vld [vmem:[#allocation214_spill] sm:$0xff] }
 0x63d   : > { %v12830_v29 = vmul.f32 %v6503_v40, %v15803_v55  ;;  %6526 = vpow2.f32 %v12668_v46  ;;  %v12836_v12 = vmul.f32 %v6505_v20, %v15804_v34  ;;  %v5020_v59 = vsub.f32 1.0, %v12797_v15  ;;  %v6509_v42 = vpop.eup %6508  ;;  %v15806_v46 = vld [vmem:[#allocation216_spill] sm:$0xff] }
 0x63e   : > { %v5021_v49 = vsub.f32 1.0, %v12800_v9  ;;  %6528 = vpow2.f32 %v12671_v62  ;;  %v12842_v47 = vmul.f32 %v6507_v0, %v15805_v45  ;;  %v6511_v40 = vpop.eup %6510  ;;  %v12848_v33 = vmul.f32 %v6509_v42, %v15806_v46  ;;  %v15807_v62 = vld [vmem:[#allocation217_spill] sm:$0xff]  ;;  %v15815_v45 = vld [vmem:[#allocation80_spill] sm:$0xff] }
 0x63f   : > { %6530 = vpow2.f32 %v12674_v24  ;;  %v6513_v55 = vpop.eup %6512  ;;  %v12854_v0 = vmul.f32 %v6511_v40, %v15807_v62  ;;  %v15808_v24 = vld [vmem:[#allocation218_spill] sm:$0xff] }
 0x640   : > { %6532 = vpow2.f32 %v12677_v2  ;;  %v6515_v41 = vpop.eup %6514  ;;  %v12860_v42 = vmul.f32 %v6513_v55, %v15808_v24  ;;  %v15809_v2 = vld [vmem:[#allocation219_spill] sm:$0xff] }
 0x641   : > { %6534 = vpow2.f32 %v12680_v5  ;;  %v6517_v15 = vpop.eup %6516  ;;  %v12866_v40 = vmul.f32 %v6515_v41, %v15809_v2  ;;  %v15810_v5 = vld [vmem:[#allocation220_spill] sm:$0xff]  ;;  %v15813_v24 = vld [vmem:[#allocation111_spill] sm:$0xff]  ;;  %v12896_v2 = vmul.f32 %v5017_v26, %v15815_v45 }
 0x642   : > { %6536 = vpow2.f32 %v12683_v39  ;;  %v6519_v34 = vpop.eup %6518  ;;  %v12872_v55 = vmul.f32 %v6517_v15, %v15810_v5  ;;  %v15811_v39 = vld [vmem:[#allocation221_spill] sm:$0xff]  ;;  %v12888_v20 = vmul.f32 %v5016_v23, %v15813_v24  ;;  %v15817_v24 = vld [vmem:[#allocation36_spill] sm:$0xff] }
 0x643   : > { %6538 = vpow2.f32 %v12686_v53  ;;  %v6521_v46 = vpop.eup %6520  ;;  %v12878_v41 = vmul.f32 %v6519_v34, %v15811_v39  ;;  %v15812_v53 = vld [vmem:[#allocation222_spill] sm:$0xff]  ;;  %v12904_v5 = vmul.f32 %v5018_v21, %v15817_v24  ;;  %v15819_v45 = vld [vmem:[#allocation100_spill] sm:$0xff] }
 0x644   : > { %6540 = vpow2.f32 %v12689_v6  ;;  %v6523_v62 = vpop.eup %6522  ;;  %v12884_v15 = vmul.f32 %v6521_v46, %v15812_v53  ;;  %v15814_v6 = vld [vmem:[#allocation223_spill] sm:$0xff]  ;;  %v15816_v46 = vld [vmem:[#allocation224_spill] sm:$0xff]  ;;  %v12912_v39 = vmul.f32 %v5019_v54, %v15819_v45  ;;  %v15823_v45 = vld [vmem:[#allocation37_spill] sm:$0xff] }
 0x645   : > { %6542 = vpow2.f32 %v12692_v56  ;;  %v6525_v52 = vpop.eup %6524  ;;  %v12892_v34 = vmul.f32 %v6523_v62, %v15814_v6  ;;  %v15818_v62 = vld [vmem:[#allocation225_spill] sm:$0xff]  ;;  %v15821_v24 = vld [vmem:[#allocation40_spill] sm:$0xff]  ;;  %v15827_v54 = vld [vmem:[#allocation210_spill] sm:$0xff] }
 0x646   : > { %6544 = vpow2.f32 %v12695_v27  ;;  %v12900_v53 = vmul.f32 %v6525_v52, %v15816_v46  ;;  %v15820_v52 = vld [vmem:[#allocation226_spill] sm:$0xff]  ;;  %v12920_v23 = vmul.f32 %v5020_v59, %v15821_v24  ;;  %v15830_v59 = vld [vmem:[#allocation268_spill] sm:$0xff] }
 0x647   : > { %v6527_v56 = vpop.eup %6526  ;;  %6546 = vpow2.f32 %v12698_v22  ;;  %v5039_v26 = vsub.f32 1.0, %v12892_v34  ;;  %v15825_v24 = vld [vmem:[#allocation102_spill] sm:$0xff] }
 0x648   : > { %v6529_v27 = vpop.eup %6528  ;;  %6548 = vpow2.f32 %v12701_v7  ;;  %v12908_v6 = vmul.f32 %v6527_v56, %v15818_v62  ;;  %v15822_v56 = vld [vmem:[#allocation209_spill] sm:$0xff] }
 0x649   : > { %v6531_v22 = vpop.eup %6530  ;;  %6550 = vpow2.f32 %v12704_v38  ;;  %v12916_v46 = vmul.f32 %v6529_v27, %v15820_v52  ;;  %v12930_v38 = vmul.f32 %v5021_v49, %v15823_v45  ;;  %v15824_v52 = vld [vmem:[#allocation227_spill] sm:$0xff]  ;;  %v15828_v45 = vld [vmem:[#allocation38_spill] sm:$0xff] }
 0x64a   : > { %v6533_v7 = vpop.eup %6532  ;;  %6552 = vpow2.f32 %v12707_v28  ;;  %v12924_v62 = vmul.f32 %v6531_v22, %v15822_v56  ;;  %v15826_v28 = vsub.f32 1.0, %v12804_v11  ;;  %v15833_v49 = vld [vmem:[#allocation270_spill] sm:$0xff] }
 0x64b   : > { %v6535_v27 = vpop.eup %6534  ;;  %6554 = vpow2.f32 %v12710_v44  ;;  %v12934_v21 = vmul.f32 %v6533_v7, %v15824_v52  ;;  %v15829_v44 = vsub.f32 1.0, %v12807_v51 }
 0x64c   : > { %v12940_v22 = vmul.f32 %v15826_v28, %v15825_v24  ;;  %v6537_v56 = vpop.eup %6536  ;;  %6556 = vpow2.f32 %v12713_v8  ;;  %v12944_v9 = vmul.f32 %v6535_v27, %v15827_v54  ;;  %v15831_v28 = vld [vmem:[#allocation103_spill] sm:$0xff]  ;;  %v15832_v8 = vsub.f32 1.0, %v12810_v31  ;;  %v15836_v24 = vld [vmem:[#allocation228_spill] sm:$0xff] }
 0x64d   : > { %v12950_v7 = vmul.f32 %v15829_v44, %v15828_v45  ;;  %v6539_v52 = vpop.eup %6538  ;;  %6558 = vpow2.f32 %v12716_v57  ;;  %v12954_v11 = vmul.f32 %v6537_v56, %v15830_v59  ;;  %v15834_v44 = vld [vmem:[#allocation83_spill] sm:$0xff]  ;;  %v15835_v57 = vsub.f32 1.0, %v12814_v60  ;;  %v15839_v45 = vld [vmem:[#allocation272_spill] sm:$0xff] }
 0x64e   : > { %v12960_v54 = vmul.f32 %v15832_v8, %v15831_v28  ;;  %v6541_v27 = vpop.eup %6540  ;;  %6560 = vpow2.f32 %v12719_v4  ;;  %v12964_v51 = vmul.f32 %v6539_v52, %v15833_v49  ;;  %v15837_v8 = vld [vmem:[#allocation41_spill] sm:$0xff]  ;;  %v15838_v4 = vsub.f32 1.0, %v12817_v35  ;;  %v15842_v28 = vld [vmem:[#allocation274_spill] sm:$0xff] }
 0x64f   : > { %v12970_v59 = vmul.f32 %v15835_v57, %v15834_v44  ;;  %v6543_v56 = vpop.eup %6542  ;;  %6562 = vpow2.f32 %v12722_v36  ;;  %v12974_v31 = vmul.f32 %v6541_v27, %v15836_v24  ;;  %v15840_v57 = vld [vmem:[#allocation42_spill] sm:$0xff]  ;;  %v15841_v36 = vsub.f32 1.0, %v12820_v32  ;;  %v15845_v44 = vld [vmem:[#allocation276_spill] sm:$0xff] }
 0x650   : > { %v12980_v49 = vmul.f32 %v15838_v4, %v15837_v8  ;;  %v6545_v52 = vpop.eup %6544  ;;  %6564 = vpow2.f32 %v12725_v14  ;;  %v12984_v60 = vmul.f32 %v6543_v56, %v15839_v45  ;;  %v15843_v4 = vld [vmem:[#allocation43_spill] sm:$0xff]  ;;  %v15844_v14 = vsub.f32 1.0, %v12824_v13  ;;  %v15848_v8 = vld [vmem:[#allocation229_spill] sm:$0xff] }
 0x651   : > { %v12990_v24 = vmul.f32 %v15841_v36, %v15840_v57  ;;  %v6547_v27 = vpop.eup %6546  ;;  %6566 = vpow2.f32 %v12728_v17  ;;  %v12994_v35 = vmul.f32 %v6545_v52, %v15842_v28  ;;  %v15846_v36 = vld [vmem:[#allocation104_spill] sm:$0xff]  ;;  %v15847_v17 = vsub.f32 1.0, %v12830_v29  ;;  %v15851_v57 = vld [vmem:[#allocation278_spill] sm:$0xff] }
 0x652   : > { %v13000_v45 = vmul.f32 %v15844_v14, %v15843_v4  ;;  %v6549_v56 = vpop.eup %6548  ;;  %6568 = vpow2.f32 %v12731_v43  ;;  %v13004_v32 = vmul.f32 %v6547_v27, %v15845_v44  ;;  %v15849_v14 = vld [vmem:[#allocation44_spill] sm:$0xff]  ;;  %v15850_v43 = vsub.f32 1.0, %v12836_v12 }
 0x653   : > { %v13010_v28 = vmul.f32 %v15847_v17, %v15846_v36  ;;  %v6551_v52 = vpop.eup %6550  ;;  %6570 = vpow2.f32 %v12734_v18  ;;  %v13014_v13 = vmul.f32 %v6549_v56, %v15848_v8  ;;  %v15852_v17 = vld [vmem:[#allocation88_spill] sm:$0xff]  ;;  %v15853_v18 = vsub.f32 1.0, %v12842_v47  ;;  %v15857_v36 = vld [vmem:[#allocation282_spill] sm:$0xff] }
 0x654   : > { %v13020_v44 = vmul.f32 %v15850_v43, %v15849_v14  ;;  %v6553_v27 = vpop.eup %6552  ;;  %6572 = vpow2.f32 %v12737_v16  ;;  %v13024_v29 = vmul.f32 %v6551_v52, %v15851_v57  ;;  %v15854_v4 = vld [vmem:[#allocation280_spill] sm:$0xff]  ;;  %v15855_v43 = vld [vmem:[#allocation63_spill] sm:$0xff]  ;;  %v15856_v16 = vsub.f32 1.0, %v12848_v33  ;;  %v15860_v14 = vld [vmem:[#allocation230_spill] sm:$0xff] }
 0x655   : > { %v13030_v8 = vmul.f32 %v15853_v18, %v15852_v17  ;;  %v6555_v56 = vpop.eup %6554  ;;  %6574 = vpow2.f32 %v12740_v63  ;;  %v13034_v12 = vmul.f32 %v6553_v27, %v15854_v4  ;;  %v15858_v18 = vld [vmem:[#allocation60_spill] sm:$0xff]  ;;  %v15859_v63 = vsub.f32 1.0, %v12854_v0 }
 0x656   : > { %v13040_v57 = vmul.f32 %v15856_v16, %v15855_v43  ;;  %v6557_v52 = vpop.eup %6556  ;;  %6576 = vpow2.f32 %v12743_v10  ;;  %v13044_v47 = vmul.f32 %v6555_v56, %v15857_v36  ;;  %v15861_v16 = vld [vmem:[#allocation116_spill] sm:$0xff]  ;;  %v15862_v10 = vsub.f32 1.0, %v12860_v42  ;;  %v15866_v43 = vld [vmem:[#allocation231_spill] sm:$0xff] }
 0x657   : > { %v13050_v4 = vmul.f32 %v15859_v63, %v15858_v18  ;;  %v6559_v27 = vpop.eup %6558  ;;  %6578 = vpow2.f32 %v12746_v25  ;;  %v13054_v33 = vmul.f32 %v6557_v52, %v15860_v14  ;;  %v15863_v17 = vld [vmem:[#allocation284_spill] sm:$0xff]  ;;  %v15864_v63 = vld [vmem:[#allocation117_spill] sm:$0xff]  ;;  %v15865_v25 = vsub.f32 1.0, %v12866_v40 }
 0x658   : > { %v13060_v36 = vmul.f32 %v15862_v10, %v15861_v16  ;;  %v6561_v56 = vpop.eup %6560  ;;  %6580 = vpow2.f32 %v12749_v61  ;;  %v13064_v0 = vmul.f32 %v6559_v27, %v15863_v17  ;;  %v15867_v10 = vld [vmem:[#allocation118_spill] sm:$0xff]  ;;  %v15868_v61 = vsub.f32 1.0, %v12872_v55  ;;  %v15869_v18 = vld [vmem:[#allocation232_spill] sm:$0xff]  ;;  %v15872_v16 = vld [vmem:[#allocation233_spill] sm:$0xff] }
 0x659   : > { %v13070_v14 = vmul.f32 %v15865_v25, %v15864_v63  ;;  %v6563_v52 = vpop.eup %6562  ;;  %6582 = vpow2.f32 %v12752_v19  ;;  %v13074_v42 = vmul.f32 %v6561_v56, %v15866_v43  ;;  %v15870_v25 = vld [vmem:[#allocation119_spill] sm:$0xff]  ;;  %v15871_v19 = vsub.f32 1.0, %v12878_v41  ;;  %v15875_v63 = vld [vmem:[#allocation234_spill] sm:$0xff] }
 0x65a   : > { %v13080_v17 = vmul.f32 %v15868_v61, %v15867_v10  ;;  %v6565_v27 = vpop.eup %6564  ;;  %6584 = vpow2.f32 %v12755_v48  ;;  %v13084_v40 = vmul.f32 %v6563_v52, %v15869_v18  ;;  %v15873_v61 = vld [vmem:[#allocation112_spill] sm:$0xff]  ;;  %v15874_v48 = vsub.f32 1.0, %v12884_v15  ;;  %v15894_v10 = vld [vmem:[#allocation239_spill] sm:$0xff] }
 0x65b   : > { %v13090_v43 = vmul.f32 %v15871_v19, %v15870_v25  ;;  %v6567_v56 = vpop.eup %6566  ;;  %6586 = vpow2.f32 %v12758_v1  ;;  %v13094_v55 = vmul.f32 %v6565_v27, %v15872_v16  ;;  %v15876_v19 = vld [vmem:[#allocation120_spill] sm:$0xff]  ;;  %v15877_v27 = vld [vmem:[#allocation235_spill] sm:$0xff] }
 0x65c   : > { %v13100_v18 = vmul.f32 %v15874_v48, %v15873_v61  ;;  %v6569_v52 = vpop.eup %6568  ;;  %6588 = vpow2.f32 %v12761_v37  ;;  %v13104_v41 = vmul.f32 %v6567_v56, %v15875_v63  ;;  %v13110_v1 = vmul.f32 %v5039_v26, %v15876_v19  ;;  %v15878_v48 = vld [vmem:[#allocation121_spill] sm:$0xff]  ;;  %v15881_v25 = vld [vmem:[#allocation236_spill] sm:$0xff]  ;;  %v15882_v19 = vld [vmem:[#allocation122_spill] sm:$0xff] }
 0x65d   : > { %v6571_v16 = vpop.eup %6570  ;;  %6590 = vpow2.f32 %v12764_v30  ;;  %v13114_v15 = vmul.f32 %v6569_v52, %v15877_v27  ;;  %v15879_v37 = vsub.f32 1.0, %v12900_v53  ;;  %v15883_v30 = vsub.f32 1.0, %v12908_v6  ;;  %v15885_v61 = vld [vmem:[#allocation237_spill] sm:$0xff] }
 0x65e   : > { %v6573_v56 = vpop.eup %6572  ;;  %6592 = vpow2.f32 %v12767_v3  ;;  %v13124_v34 = vmul.f32 %v6571_v16, %v15881_v25  ;;  %v5061_v26 = vsub.f32 1.0, %v13104_v41  ;;  %v15887_v3 = vsub.f32 1.0, %v12916_v46  ;;  %v15889_v41 = vld [vmem:[#allocation238_spill] sm:$0xff] }
 0x65f   : > { %v13120_v63 = vmul.f32 %v15879_v37, %v15878_v48  ;;  %v13130_v52 = vmul.f32 %v15883_v30, %v15882_v19  ;;  %v6575_v27 = vpop.eup %6574  ;;  %6594 = vpow2.f32 %v12770_v50  ;;  %v13134_v53 = vmul.f32 %v6573_v56, %v15885_v61  ;;  %v15886_v37 = vld [vmem:[#allocation123_spill] sm:$0xff]  ;;  %v15890_v30 = vld [vmem:[#allocation124_spill] sm:$0xff] }
 0x660   : > { %v5062_v48 = vsub.f32 1.0, %v13114_v15  ;;  %v13140_v25 = vmul.f32 %v15887_v3, %v15886_v37  ;;  %v6577_v16 = vpop.eup %6576  ;;  %6596 = vpow2.f32 %v12774_v58  ;;  %v13144_v6 = vmul.f32 %v6575_v27, %v15889_v41  ;;  %v15893_v15 = vld [vmem:[#allocation273_spill] sm:$0xff]  ;;  %v15898_v41 = vld [vmem:[#allocation275_spill] sm:$0xff] }
 0x661   : > { %15880 = vst [vmem:[#allocation277_spill] sm:$0xff] %v13120_v63  ;;  %15884 = vst [vmem:[#allocation279_spill] sm:$0xff] %v13130_v52  ;;  %v5063_v19 = vsub.f32 1.0, %v13124_v34  ;;  %v15891_v50 = vsub.f32 1.0, %v12924_v62  ;;  %v6579_v56 = vpop.eup %6578  ;;  %6598 = vpow2.f32 %v15893_v15  ;;  %v5002_v46 = vmul.f32 %v6577_v16, %v15894_v10  ;;  %v15895_v3 = vld [vmem:[#allocation125_spill] sm:$0xff]  ;;  %v15899_v34 = vld [vmem:[#allocation240_spill] sm:$0xff] }
 0x662   : > { %15888 = vst [vmem:[#allocation281_spill] sm:$0xff] %v13140_v25  ;;  %v5064_v37 = vsub.f32 1.0, %v13134_v53  ;;  %v15896_v58 = vsub.f32 1.0, %v12934_v21  ;;  %v6581_v27 = vpop.eup %6580  ;;  %6600 = vpow2.f32 %v15898_v41  ;;  %v5003_v52 = vmul.f32 %v6579_v56, %v15899_v34  ;;  %v15903_v16 = vld [vmem:[#allocation241_spill] sm:$0xff]  ;;  %v15904_v63 = vld [vmem:[#allocation126_spill] sm:$0xff] }
 0x663   : > { %v13150_v61 = vmul.f32 %v15891_v50, %v15890_v30  ;;  %v5065_v62 = vsub.f32 1.0, %v13144_v6  ;;  %v15900_v30 = vld [vmem:[#allocation45_spill] sm:$0xff]  ;;  %v15901_v50 = vsub.f32 1.0, %v12944_v9  ;;  %v6583_v10 = vpop.eup %6582  ;;  %v5004_v53 = vmul.f32 %v6581_v27, %v15903_v16  ;;  %v15909_v34 = vld [vmem:[#allocation242_spill] sm:$0xff]  ;;  %v15915_v16 = vld [vmem:[#allocation243_spill] sm:$0xff] }
 0x664   : > { %v13158_v25 = vmul.f32 %v15896_v58, %v15895_v3  ;;  %v15905_v21 = vsub.f32 1.0, %v12954_v11  ;;  %v15906_v58 = vld [vmem:[#allocation127_spill] sm:$0xff]  ;;  %v15907_v41 = vsub.f32 1.0, %v12964_v51  ;;  %v6585_v6 = vpop.eup %6584  ;;  %v5067_v9 = vsub.f32 1.0, %v5003_v52  ;;  %v15918_v52 = vld [vmem:[#allocation20_spill] sm:$0xff] }
 0x665   : > { %15892 = vst [vmem:[#allocation283_spill] sm:$0xff] %v13150_v61  ;;  %v13166_v15 = vmul.f32 %v15901_v50, %v15900_v30  ;;  %v5066_v61 = vsub.f32 1.0, %v5002_v46  ;;  %v15910_v30 = vld [vmem:[#allocation128_spill] sm:$0xff]  ;;  %v15911_v50 = vsub.f32 1.0, %v12974_v31  ;;  %v15912_v46 = vld [vmem:[#allocation130_spill] sm:$0xff]  ;;  %v15913_v27 = vsub.f32 1.0, %v12984_v60 }
 0x666   : > { %15897 = vst [vmem:[#allocation285_spill] sm:$0xff] %v13158_v25  ;;  %v13172_v3 = vmul.f32 %v15905_v21, %v15904_v63  ;;  %v13177_v56 = vmul.f32 %v15907_v41, %v15906_v58  ;;  %v5005_v25 = vmul.f32 %v6583_v10, %v15909_v34  ;;  %v6587_v63 = vpop.eup %6586  ;;  %v5006_v21 = vmul.f32 %v6585_v6, %v15915_v16  ;;  %v15916_v58 = vld [vmem:[#allocation131_spill] sm:$0xff] }
 0x667   : > { %15902 = vst [vmem:[#allocation66_spill] sm:$0xff] %v13166_v15  ;;  %v13183_v15 = vmul.f32 %v15911_v50, %v15910_v30  ;;  %v13188_v11 = vmul.f32 %v15913_v27, %v15912_v46  ;;  %v5068_v51 = vsub.f32 1.0, %v5004_v53  ;;  %v15917_v41 = vsub.f32 1.0, %v12994_v35  ;;  %v6589_v34 = vpop.eup %6588  ;;  %v15921_v30 = vld [vmem:[#allocation244_spill] sm:$0xff]  ;;  %v15922_v46 = vld [vmem:[#allocation137_spill] sm:$0xff] }
 0x668   : > { %15908 = vst [vmem:[#allocation153_spill] sm:$0xff] %v13177_v56  ;;  %v15919_v10 = vsub.f32 1.0, %v13004_v32  ;;  %v5007_v50 = vmul.f32 %v6587_v63, %v15921_v30  ;;  %v5069_v60 = vsub.f32 1.0, %v5005_v25  ;;  %v15923_v27 = vsub.f32 1.0, %v13014_v13  ;;  %v15924_v53 = vld [vmem:[#allocation21_spill] sm:$0xff]  ;;  %v6591_v16 = vpop.eup %6590  ;;  %v15930_v25 = vld [vmem:[#allocation139_spill] sm:$0xff] }
 0x669   : > { %15914 = vst [vmem:[#allocation154_spill] sm:$0xff] %v13188_v11  ;;  %v13194_v56 = vmul.f32 %v15917_v41, %v15916_v58  ;;  %v15925_v6 = vsub.f32 1.0, %v13024_v29  ;;  %v15927_v58 = vld [vmem:[#allocation206_spill] sm:$0xff]  ;;  %v5070_v32 = vsub.f32 1.0, %v5006_v21  ;;  %v15931_v63 = vsub.f32 1.0, %v13044_v47  ;;  %v6593_v30 = vpop.eup %6592  ;;  %v15936_v21 = vld [vmem:[#allocation132_spill] sm:$0xff] }
 0x66a   : > { %v13199_v31 = vmul.f32 %v15919_v10, %v15918_v52  ;;  %v13205_v11 = vmul.f32 %v15923_v27, %v15922_v46  ;;  %v5008_v41 = vmul.f32 %v6589_v34, %v15927_v58  ;;  %v15928_v52 = vld [vmem:[#allocation138_spill] sm:$0xff]  ;;  %v15929_v10 = vsub.f32 1.0, %v13034_v12  ;;  %v15933_v46 = vld [vmem:[#allocation245_spill] sm:$0xff]  ;;  %v6595_v58 = vpop.eup %6594 }
 0x66b   : > { %v13210_v35 = vmul.f32 %v15925_v6, %v15924_v53  ;;  %v13221_v13 = vmul.f32 %v15931_v63, %v15930_v25  ;;  %v5009_v27 = vmul.f32 %v6591_v16, %v15933_v46  ;;  %v5071_v29 = vsub.f32 1.0, %v5007_v50  ;;  %v15934_v53 = vld [vmem:[#allocation129_spill] sm:$0xff]  ;;  %v15943_v50 = vld [vmem:[#allocation134_spill] sm:$0xff]  ;;  %v6597_v46 = vpop.eup %6596 }
 0x66c   : > { %15920 = vst [vmem:[#allocation155_spill] sm:$0xff] %v13199_v31  ;;  %v13216_v31 = vmul.f32 %v15929_v10, %v15928_v52  ;;  %v15935_v6 = vsub.f32 1.0, %v13054_v33  ;;  %v15937_v34 = vsub.f32 1.0, %v13064_v0  ;;  %v15939_v52 = vld [vmem:[#allocation246_spill] sm:$0xff]  ;;  %v5072_v47 = vsub.f32 1.0, %v5008_v41  ;;  %v15940_v25 = vld [vmem:[#allocation133_spill] sm:$0xff] }
 0x66d   : > { %15926 = vst [vmem:[#allocation156_spill] sm:$0xff] %v13210_v35  ;;  %15932 = vst [vmem:[#allocation157_spill] sm:$0xff] %v13221_v13  ;;  %v5010_v10 = vmul.f32 %v6593_v30, %v15939_v52  ;;  %v15941_v63 = vsub.f32 1.0, %v13074_v42  ;;  %v15944_v16 = vsub.f32 1.0, %v13084_v40  ;;  %v5073_v0 = vsub.f32 1.0, %v5009_v27  ;;  %v15949_v41 = vld [vmem:[#allocation136_spill] sm:$0xff]  ;;  %v6599_v42 = vpop.eup %6598 }
 0x66e   : > { %v13227_v35 = vmul.f32 %v15935_v6, %v15934_v53  ;;  %v13232_v12 = vmul.f32 %v15937_v34, %v15936_v21  ;;  %v15946_v53 = vld [vmem:[#allocation247_spill] sm:$0xff]  ;;  %v15948_v34 = vsub.f32 1.0, %v13094_v55  ;;  %v13252_v30 = vmul.f32 %v5061_v26, %v15949_v41  ;;  %v15951_v52 = vld [vmem:[#allocation248_spill] sm:$0xff]  ;;  %v15955_v27 = vld [vmem:[#allocation249_spill] sm:$0xff] }
 0x66f   : > { %v13238_v13 = vmul.f32 %v15941_v63, %v15940_v25  ;;  %v13243_v33 = vmul.f32 %v15944_v16, %v15943_v50  ;;  %v5011_v6 = vmul.f32 %v6595_v58, %v15946_v53  ;;  %v15947_v21 = vld [vmem:[#allocation135_spill] sm:$0xff]  ;;  %v5012_v25 = vmul.f32 %v6597_v46, %v15951_v52  ;;  %v15953_v50 = vld [vmem:[#allocation25_spill] sm:$0xff]  ;;  %v6601_v58 = vpop.eup %6600  ;;  %v15956_v55 = vld [vmem:[#allocation58_spill] sm:$0xff] }
 0x670   : > { %15938 = vst [vmem:[#allocation158_spill] sm:$0xff] %v13232_v12  ;;  %v13249_v12 = vmul.f32 %v15948_v34, %v15947_v21  ;;  %15950 = vst [vmem:[#allocation161_spill] sm:$0xff] %v13252_v30  ;;  %v5074_v63 = vsub.f32 1.0, %v5010_v10  ;;  %v13259_v16 = vmul.f32 %v5063_v19, %v15953_v50  ;;  %v5013_v53 = vmul.f32 %v6599_v42, %v15955_v27  ;;  %v15957_v34 = vld [vmem:[#allocation27_spill] sm:$0xff]  ;;  %v15958_v41 = vld [vmem:[#allocation250_spill] sm:$0xff] }
 0x671   : > { %15942 = vst [vmem:[#allocation159_spill] sm:$0xff] %v13238_v13  ;;  %15945 = vst [vmem:[#allocation160_spill] sm:$0xff] %v13243_v33  ;;  %v15952_v13 = vld [vmem:[#allocation56_spill] sm:$0xff]  ;;  %v5075_v33 = vsub.f32 1.0, %v5011_v6  ;;  %v13263_v21 = vmul.f32 %v5064_v37, %v15956_v55  ;;  %v13266_v26 = vmul.f32 %v5065_v62, %v15957_v34  ;;  %v5015_v30 = vmul.f32 %v6601_v58, %v15958_v41  ;;  %v15959_v10 = vld [vmem:[#allocation69_spill] sm:$0xff] }
 0x672   : > { %v13256_v40 = vmul.f32 %v5062_v48, %v15952_v13  ;;  %15954 = vst [vmem:[#allocation162_spill] sm:$0xff] %v13259_v16  ;;  %v5076_v46 = vsub.f32 1.0, %v5012_v25  ;;  %v13270_v52 = vmul.f32 %v5066_v61, %v15959_v10  ;;  %v15960_v48 = vld [vmem:[#allocation107_spill] sm:$0xff]  ;;  %v5077_v19 = vsub.f32 1.0, %v5013_v53  ;;  %v15962_v50 = vld [vmem:[#allocation108_spill] sm:$0xff]  ;;  %v15964_v6 = vld [vmem:[#allocation77_spill] sm:$0xff] }
 0x673   : > { %v13273_v13 = vmul.f32 %v5067_v9, %v15960_v48  ;;  %v13276_v16 = vmul.f32 %v5068_v51, %v15962_v50  ;;  %v13279_v42 = vmul.f32 %v5069_v60, %v15964_v6  ;;  %v15965_v37 = vld [vmem:[#allocation143_spill] sm:$0xff]  ;;  %v5079_v62 = vsub.f32 1.0, %v5015_v30  ;;  %v15966_v55 = vld [vmem:[#allocation144_spill] sm:$0xff]  ;;  %v15967_v25 = vld [vmem:[#allocation145_spill] sm:$0xff] }
 0x674   : > { %v13282_v27 = vmul.f32 %v5070_v32, %v15965_v37  ;;  %v5135_v58 = vmul.f32 %v5071_v29, %v15966_v55  ;;  %v5136_v34 = vmul.f32 %v5072_v47, %v15967_v25  ;;  %v15968_v61 = vld [vmem:[#allocation146_spill] sm:$0xff]  ;;  %v15969_v10 = vld [vmem:[#allocation147_spill] sm:$0xff]  ;;  %v15970_v48 = vld [vmem:[#allocation148_spill] sm:$0xff]  ;;  %v13293_v32 = vadd.f32 1.0, %v12888_v20 }
 0x675   : > { %15961 = vst [vmem:[#allocation163_spill] sm:$0xff] %v13273_v13  ;;  %15963 = vst [vmem:[#allocation164_spill] sm:$0xff] %v13276_v16  ;;  %v5137_v41 = vmul.f32 %v5073_v0, %v15968_v61  ;;  %v5138_v9 = vmul.f32 %v5074_v63, %v15969_v10  ;;  %v5139_v53 = vmul.f32 %v5075_v33, %v15970_v48  ;;  %v15971_v13 = vld [vmem:[#allocation149_spill] sm:$0xff]  ;;  %v15972_v50 = vld [vmem:[#allocation150_spill] sm:$0xff]  ;;  %v13296_v30 = vadd.f32 1.0, %v12896_v2 }
 0x676   : > { %v5140_v51 = vmul.f32 %v5076_v46, %v15971_v13  ;;  %v5141_v16 = vmul.f32 %v5077_v19, %v15972_v50  ;;  %v15973_v60 = vld [vmem:[#allocation215_spill] sm:$0xff]  ;;  %v13299_v29 = vadd.f32 1.0, %v12904_v5  ;;  %v13302_v47 = vadd.f32 1.0, %v12912_v39  ;;  %v15980_v25 = vld [vmem:[#allocation153_spill] sm:$0xff]  ;;  %v15981_v48 = vld [vmem:[#allocation154_spill] sm:$0xff] }
 0x677   : > { %v5143_v6 = vmul.f32 %v5079_v62, %v15973_v60  ;;  %v13305_v33 = vadd.f32 1.0, %v12920_v23  ;;  %v13308_v0 = vadd.f32 1.0, %v12930_v38  ;;  %v13311_v63 = vadd.f32 1.0, %v12940_v22 }
 0x678   : > { %v13314_v20 = vadd.f32 1.0, %v12950_v7  ;;  %v13317_v2 = vadd.f32 1.0, %v12960_v54  ;;  %v13320_v5 = vadd.f32 1.0, %v12970_v59  ;;  %v13323_v39 = vadd.f32 1.0, %v12980_v49 }
 0x679   : > { %v13326_v23 = vadd.f32 1.0, %v12990_v24  ;;  %v13329_v38 = vadd.f32 1.0, %v13000_v45  ;;  %v13332_v22 = vadd.f32 1.0, %v13010_v28  ;;  %v13335_v7 = vadd.f32 1.0, %v13020_v44 }
 0x67a   : > { %v13338_v54 = vadd.f32 1.0, %v13030_v8  ;;  %v13341_v59 = vadd.f32 1.0, %v13040_v57  ;;  %v13344_v49 = vadd.f32 1.0, %v13050_v4  ;;  %v13347_v24 = vadd.f32 1.0, %v13060_v36  ;;  %v15974_v4 = vld [vmem:[#allocation277_spill] sm:$0xff]  ;;  %v15975_v36 = vld [vmem:[#allocation279_spill] sm:$0xff] }
 0x67b   : > { %v13350_v45 = vadd.f32 1.0, %v13070_v14  ;;  %v13353_v28 = vadd.f32 1.0, %v13080_v17  ;;  %v13356_v44 = vadd.f32 1.0, %v13090_v43  ;;  %v13359_v8 = vadd.f32 1.0, %v13100_v18  ;;  %v15976_v14 = vld [vmem:[#allocation281_spill] sm:$0xff]  ;;  %v15977_v17 = vld [vmem:[#allocation283_spill] sm:$0xff] }
 0x67c   : > { %v13362_v57 = vadd.f32 1.0, %v13110_v1  ;;  %v13365_v46 = vadd.f32 1.0, %v15974_v4  ;;  %v13368_v13 = vadd.f32 1.0, %v15975_v36  ;;  %v13371_v19 = vadd.f32 1.0, %v15976_v14  ;;  %v15978_v43 = vld [vmem:[#allocation285_spill] sm:$0xff]  ;;  %v15979_v18 = vld [vmem:[#allocation66_spill] sm:$0xff] }
 0x67d   : > { %v13374_v37 = vadd.f32 1.0, %v15977_v17  ;;  %v13377_v62 = vadd.f32 1.0, %v15978_v43  ;;  %v13380_v55 = vadd.f32 1.0, %v15979_v18  ;;  %v13383_v1 = vadd.f32 1.0, %v13172_v3  ;;  %v15982_v4 = vld [vmem:[#allocation155_spill] sm:$0xff]  ;;  %v15985_v3 = vld [vmem:[#allocation156_spill] sm:$0xff] }
 0x67e   : > { %v13386_v61 = vadd.f32 1.0, %v15980_v25  ;;  %v13389_v10 = vadd.f32 1.0, %v13183_v15  ;;  %v13392_v50 = vadd.f32 1.0, %v15981_v48  ;;  %v13395_v60 = vadd.f32 1.0, %v13194_v56  ;;  %v15987_v15 = vld [vmem:[#allocation157_spill] sm:$0xff]  ;;  %v15989_v56 = vld [vmem:[#allocation158_spill] sm:$0xff] }
 0x67f   : > { %v13398_v36 = vadd.f32 1.0, %v15982_v4  ;;  %v13401_v14 = vadd.f32 1.0, %v13205_v11  ;;  %v13404_v17 = vadd.f32 1.0, %v15985_v3  ;;  %v13407_v43 = vadd.f32 1.0, %v13216_v31  ;;  %v15990_v4 = vld [vmem:[#allocation159_spill] sm:$0xff]  ;;  %v15991_v11 = vld [vmem:[#allocation160_spill] sm:$0xff] }
 0x680   : > { %v13410_v18 = vadd.f32 1.0, %v15987_v15  ;;  %v13413_v25 = vadd.f32 1.0, %v13227_v35  ;;  %v13416_v48 = vadd.f32 1.0, %v15989_v56  ;;  %v13425_v3 = vadd.f32 1.0, %v13249_v12  ;;  %v15993_v31 = vld [vmem:[#allocation161_spill] sm:$0xff]  ;;  %v15995_v35 = vld [vmem:[#allocation162_spill] sm:$0xff] }
 0x681   : > { %15983 = vst [vmem:[#allocation165_spill] sm:$0xff] %v13398_v36  ;;  %15984 = vst [vmem:[#allocation166_spill] sm:$0xff] %v13401_v14  ;;  %v13419_v36 = vadd.f32 1.0, %v15990_v4  ;;  %v13422_v14 = vadd.f32 1.0, %v15991_v11  ;;  %v13431_v15 = vadd.f32 1.0, %v13256_v40  ;;  %v13437_v56 = vadd.f32 1.0, %v13263_v21 }
 0x682   : > { %15986 = vst [vmem:[#allocation167_spill] sm:$0xff] %v13407_v43  ;;  %15988 = vst [vmem:[#allocation168_spill] sm:$0xff] %v13413_v25  ;;  %v13428_v43 = vadd.f32 1.0, %v15993_v31  ;;  %v13434_v25 = vadd.f32 1.0, %v15995_v35  ;;  %v13440_v4 = vadd.f32 1.0, %v13266_v26  ;;  %v13443_v11 = vadd.f32 1.0, %v13270_v52 }
 0x683   : > { %15992 = vst [vmem:[#allocation169_spill] sm:$0xff] %v13425_v3  ;;  %15996 = vst [vmem:[#allocation171_spill] sm:$0xff] %v13437_v56  ;;  %v15998_v12 = vld [vmem:[#allocation163_spill] sm:$0xff]  ;;  %v15999_v31 = vld [vmem:[#allocation164_spill] sm:$0xff]  ;;  %v13452_v40 = vadd.f32 1.0, %v13279_v42  ;;  %v13455_v35 = vadd.f32 1.0, %v13282_v27 }
 0x684   : > { %15994 = vst [vmem:[#allocation170_spill] sm:$0xff] %v13428_v43  ;;  %15997 = vst [vmem:[#allocation172_spill] sm:$0xff] %v13443_v11  ;;  %v13446_v3 = vadd.f32 1.0, %v15998_v12  ;;  %v13449_v43 = vadd.f32 1.0, %v15999_v31  ;;  %v13457_v21 = vadd.f32 1.0, %v5135_v58  ;;  %v13459_v56 = vadd.f32 1.0, %v5136_v34 }
 0x685   : > { %v13461_v26 = vadd.f32 1.0, %v5137_v41  ;;  %v13463_v52 = vadd.f32 1.0, %v5138_v9  ;;  %v13465_v11 = vadd.f32 1.0, %v5139_v53  ;;  %v13467_v12 = vadd.f32 1.0, %v5140_v51  ;;  %v16004_v27 = vld [vmem:[#allocation140_spill] sm:$0xff]  ;;  %v16005_v34 = vld [vmem:[#allocation23_spill] sm:$0xff] }
 0x686   : > { %v13469_v31 = vadd.f32 1.0, %v5141_v16  ;;  %v13471_v42 = vadd.f32 1.0, %v5143_v6  ;;  %v5208_v58 = vmul.f32 %v13293_v32, %v16004_v27  ;;  %v5209_v41 = vmul.f32 %v13296_v30, %v16005_v34  ;;  %v16006_v9 = vld [vmem:[#allocation141_spill] sm:$0xff]  ;;  %v16011_v27 = vld [vmem:[#allocation28_spill] sm:$0xff]  ;;  %v16012_v34 = vld [vmem:[#allocation71_spill] sm:$0xff] }
 0x687   : > { %16000 = vst [vmem:[#allocation173_spill] sm:$0xff] %v13465_v11  ;;  %16001 = vst [vmem:[#allocation174_spill] sm:$0xff] %v13467_v12  ;;  %v5210_v53 = vmul.f32 %v13299_v29, %v16006_v9  ;;  %v16007_v11 = vld [vmem:[#allocation64_spill] sm:$0xff]  ;;  %v5215_v30 = vmul.f32 %v13314_v20, %v16011_v27  ;;  %v5216_v29 = vmul.f32 %v13317_v2, %v16012_v34  ;;  %v16015_v9 = vld [vmem:[#allocation30_spill] sm:$0xff] }
 0x688   : > { %16002 = vst [vmem:[#allocation175_spill] sm:$0xff] %v13469_v31  ;;  %16003 = vst [vmem:[#allocation176_spill] sm:$0xff] %v13471_v42  ;;  %v5211_v51 = vmul.f32 %v13302_v47, %v16007_v11  ;;  %v16008_v12 = vld [vmem:[#allocation24_spill] sm:$0xff]  ;;  %v16009_v31 = vld [vmem:[#allocation67_spill] sm:$0xff] }
 0x689   : > { %v5212_v16 = vmul.f32 %v13305_v33, %v16008_v12  ;;  %v5213_v6 = vmul.f32 %v13308_v0, %v16009_v31  ;;  %v16010_v42 = vld [vmem:[#allocation26_spill] sm:$0xff]  ;;  %v16013_v47 = vld [vmem:[#allocation29_spill] sm:$0xff]  ;;  %v16014_v33 = vld [vmem:[#allocation96_spill] sm:$0xff]  ;;  %v5219_v0 = vmul.f32 %v13326_v23, %v16015_v9  ;;  %5272 = vst [vmem:[%s9776_s17] sm:$0xff] %v5208_v58 }
 0x68a   : > { %v5214_v32 = vmul.f32 %v13311_v63, %v16010_v42  ;;  %v5217_v11 = vmul.f32 %v13320_v5, %v16013_v47  ;;  %v5218_v12 = vmul.f32 %v13323_v39, %v16014_v33  ;;  %5273 = vst [vmem:[%s9776_s17 + $0x8] sm:$0xff] %v5209_v41  ;;  %5274 = vst [vmem:[%s9776_s17 + $0x10] sm:$0xff] %v5210_v53  ;;  %v16016_v63 = vld [vmem:[#allocation97_spill] sm:$0xff]  ;;  %v16017_v2 = vld [vmem:[#allocation31_spill] sm:$0xff] }
 0x68b   : > { %5275 = vst [vmem:[%s9776_s17 + $0x18] sm:$0xff] %v5211_v51  ;;  %v5220_v20 = vmul.f32 %v13329_v38, %v16016_v63  ;;  %v5221_v5 = vmul.f32 %v13332_v22, %v16017_v2  ;;  %v16018_v31 = vld [vmem:[#allocation98_spill] sm:$0xff]  ;;  %v16019_v42 = vld [vmem:[#allocation32_spill] sm:$0xff]  ;;  %5276 = vst [vmem:[%s9776_s17 + $0x20] sm:$0xff] %v5212_v16 }
 0x68c   : > { %v5222_v39 = vmul.f32 %v13335_v7, %v16018_v31  ;;  %v5223_v23 = vmul.f32 %v13338_v54, %v16019_v42  ;;  %5277 = vst [vmem:[%s9776_s17 + $0x28] sm:$0xff] %v5213_v6  ;;  %5278 = vst [vmem:[%s9776_s17 + $0x30] sm:$0xff] %v5214_v32  ;;  %v16020_v58 = vld [vmem:[#allocation99_spill] sm:$0xff]  ;;  %v16021_v41 = vld [vmem:[#allocation33_spill] sm:$0xff] }
 0x68d   : > { %5279 = vst [vmem:[%s9776_s17 + $0x38] sm:$0xff] %v5215_v30  ;;  %v5224_v38 = vmul.f32 %v13341_v59, %v16020_v58  ;;  %v5225_v22 = vmul.f32 %v13344_v49, %v16021_v41  ;;  %v16022_v53 = vld [vmem:[#allocation75_spill] sm:$0xff]  ;;  %v16023_v51 = vld [vmem:[#allocation34_spill] sm:$0xff]  ;;  %5280 = vst [vmem:[%s9776_s17 + $0x40] sm:$0xff] %v5216_v29 }
 0x68e   : > { %v5226_v7 = vmul.f32 %v13347_v24, %v16022_v53  ;;  %v5227_v54 = vmul.f32 %v13350_v45, %v16023_v51  ;;  %5281 = vst [vmem:[%s9776_s17 + $0x48] sm:$0xff] %v5217_v11  ;;  %5282 = vst [vmem:[%s9776_s17 + $0x50] sm:$0xff] %v5218_v12  ;;  %v16024_v16 = vld [vmem:[#allocation35_spill] sm:$0xff]  ;;  %v16025_v6 = vld [vmem:[#allocation78_spill] sm:$0xff] }
 0x68f   : > { %5283 = vst [vmem:[%s9776_s17 + $0x58] sm:$0xff] %v5219_v0  ;;  %v5228_v59 = vmul.f32 %v13353_v28, %v16024_v16  ;;  %v5229_v49 = vmul.f32 %v13356_v44, %v16025_v6  ;;  %v16026_v32 = vld [vmem:[#allocation81_spill] sm:$0xff]  ;;  %5284 = vst [vmem:[%s9776_s17 + $0x60] sm:$0xff] %v5220_v20  ;;  %v16028_v30 = vld [vmem:[#allocation39_spill] sm:$0xff] }
 0x690   : > { %v5230_v24 = vmul.f32 %v13359_v8, %v16026_v32  ;;  %v16027_v27 = vld [vmem:[#allocation101_spill] sm:$0xff]  ;;  %5285 = vst [vmem:[%s9776_s17 + $0x68] sm:$0xff] %v5221_v5  ;;  %5286 = vst [vmem:[%s9776_s17 + $0x70] sm:$0xff] %v5222_v39  ;;  %v5232_v28 = vmul.f32 %v13365_v46, %v16028_v30  ;;  %v16029_v34 = vld [vmem:[#allocation142_spill] sm:$0xff] }
 0x691   : > { %v5231_v45 = vmul.f32 %v13362_v57, %v16027_v27  ;;  %5287 = vst [vmem:[%s9776_s17 + $0x78] sm:$0xff] %v5223_v23  ;;  %v5233_v44 = vmul.f32 %v13368_v13, %v16029_v34  ;;  %v16030_v29 = vld [vmem:[#allocation65_spill] sm:$0xff]  ;;  %v16031_v47 = vld [vmem:[#allocation68_spill] sm:$0xff]  ;;  %5288 = vst [vmem:[%s9776_s17 + $0x80] sm:$0xff] %v5224_v38 }
 0x692   : > { %v5234_v8 = vmul.f32 %v13371_v19, %v16030_v29  ;;  %v5235_v57 = vmul.f32 %v13374_v37, %v16031_v47  ;;  %5289 = vst [vmem:[%s9776_s17 + $0x88] sm:$0xff] %v5225_v22  ;;  %5290 = vst [vmem:[%s9776_s17 + $0x90] sm:$0xff] %v5226_v7  ;;  %v16032_v11 = vld [vmem:[#allocation70_spill] sm:$0xff]  ;;  %v16033_v33 = vld [vmem:[#allocation73_spill] sm:$0xff] }
 0x693   : > { %5291 = vst [vmem:[%s9776_s17 + $0x98] sm:$0xff] %v5227_v54  ;;  %v5236_v46 = vmul.f32 %v13377_v62, %v16032_v11  ;;  %v5237_v13 = vmul.f32 %v13380_v55, %v16033_v33  ;;  %v16034_v12 = vld [vmem:[#allocation76_spill] sm:$0xff]  ;;  %v16035_v9 = vld [vmem:[#allocation79_spill] sm:$0xff]  ;;  %5292 = vst [vmem:[%s9776_s17 + $0xa0] sm:$0xff] %v5228_v59 }
 0x694   : > { %v5238_v19 = vmul.f32 %v13383_v1, %v16034_v12  ;;  %v5239_v37 = vmul.f32 %v13386_v61, %v16035_v9  ;;  %5293 = vst [vmem:[%s9776_s17 + $0xa8] sm:$0xff] %v5229_v49  ;;  %5294 = vst [vmem:[%s9776_s17 + $0xb0] sm:$0xff] %v5230_v24  ;;  %v16036_v0 = vld [vmem:[#allocation82_spill] sm:$0xff]  ;;  %v16037_v63 = vld [vmem:[#allocation84_spill] sm:$0xff] }
 0x695   : > { %5295 = vst [vmem:[%s9776_s17 + $0xb8] sm:$0xff] %v5231_v45  ;;  %v5240_v62 = vmul.f32 %v13389_v10, %v16036_v0  ;;  %v5241_v55 = vmul.f32 %v13392_v50, %v16037_v63  ;;  %v16038_v20 = vld [vmem:[#allocation85_spill] sm:$0xff]  ;;  %v16039_v2 = vld [vmem:[#allocation86_spill] sm:$0xff]  ;;  %5296 = vst [vmem:[%s9776_s17 + $0xc0] sm:$0xff] %v5232_v28 }
 0x696   : > { %v5242_v1 = vmul.f32 %v13395_v60, %v16038_v20  ;;  %v16040_v5 = vld [vmem:[#allocation165_spill] sm:$0xff]  ;;  %5297 = vst [vmem:[%s9776_s17 + $0xc8] sm:$0xff] %v5233_v44  ;;  %5298 = vst [vmem:[%s9776_s17 + $0xd0] sm:$0xff] %v5234_v8  ;;  %v16041_v31 = vld [vmem:[#allocation87_spill] sm:$0xff] }
 0x697   : > { %v5243_v61 = vmul.f32 %v16040_v5, %v16039_v2  ;;  %5299 = vst [vmem:[%s9776_s17 + $0xd8] sm:$0xff] %v5235_v57  ;;  %v16042_v39 = vld [vmem:[#allocation166_spill] sm:$0xff]  ;;  %v16044_v23 = vld [vmem:[#allocation89_spill] sm:$0xff]  ;;  %v16045_v60 = vld [vmem:[#allocation167_spill] sm:$0xff] }
 0x698   : > { %v5244_v10 = vmul.f32 %v16042_v39, %v16041_v31  ;;  %v16043_v42 = vld [vmem:[#allocation46_spill] sm:$0xff]  ;;  %v5246_v58 = vmul.f32 %v16045_v60, %v16044_v23  ;;  %v16046_v38 = vld [vmem:[#allocation47_spill] sm:$0xff]  ;;  %5300 = vst [vmem:[%s9776_s17 + $0xe0] sm:$0xff] %v5236_v46  ;;  %5301 = vst [vmem:[%s9776_s17 + $0xe8] sm:$0xff] %v5237_v13 }
 0x699   : > { %v5245_v50 = vmul.f32 %v13404_v17, %v16043_v42  ;;  %v5247_v41 = vmul.f32 %v13410_v18, %v16046_v38  ;;  %5302 = vst [vmem:[%s9776_s17 + $0xf0] sm:$0xff] %v5238_v19  ;;  %5303 = vst [vmem:[%s9776_s17 + $0xf8] sm:$0xff] %v5239_v37  ;;  %v16047_v22 = vld [vmem:[#allocation90_spill] sm:$0xff]  ;;  %v16048_v53 = vld [vmem:[#allocation168_spill] sm:$0xff] }
 0x69a   : > { %v5248_v7 = vmul.f32 %v16048_v53, %v16047_v22  ;;  %v16049_v51 = vld [vmem:[#allocation48_spill] sm:$0xff]  ;;  %v16050_v54 = vld [vmem:[#allocation91_spill] sm:$0xff]  ;;  %v16051_v59 = vld [vmem:[#allocation49_spill] sm:$0xff]  ;;  %5304 = vst [vmem:[%s9776_s17 + $0x100] sm:$0xff] %v5240_v62 }
 0x69b   : > { %v5249_v17 = vmul.f32 %v13416_v48, %v16049_v51  ;;  %v5250_v16 = vmul.f32 %v13419_v36, %v16050_v54  ;;  %v5251_v18 = vmul.f32 %v13422_v14, %v16051_v59  ;;  %5305 = vst [vmem:[%s9776_s17 + $0x108] sm:$0xff] %v5241_v55  ;;  %5306 = vst [vmem:[%s9776_s17 + $0x110] sm:$0xff] %v5242_v1  ;;  %v16052_v6 = vld [vmem:[#allocation92_spill] sm:$0xff]  ;;  %v16053_v49 = vld [vmem:[#allocation169_spill] sm:$0xff] }
 0x69c   : > { %5307 = vst [vmem:[%s9776_s17 + $0x118] sm:$0xff] %v5243_v61  ;;  %v5252_v32 = vmul.f32 %v16053_v49, %v16052_v6  ;;  %v16054_v24 = vld [vmem:[#allocation113_spill] sm:$0xff]  ;;  %v16055_v48 = vld [vmem:[#allocation170_spill] sm:$0xff]  ;;  %5308 = vst [vmem:[%s9776_s17 + $0x120] sm:$0xff] %v5244_v10 }
 0x69d   : > { %v5253_v27 = vmul.f32 %v16055_v48, %v16054_v24  ;;  %v16056_v45 = vld [vmem:[#allocation93_spill] sm:$0xff]  ;;  %v16057_v30 = vld [vmem:[#allocation114_spill] sm:$0xff]  ;;  %5309 = vst [vmem:[%s9776_s17 + $0x128] sm:$0xff] %v5245_v50  ;;  %5310 = vst [vmem:[%s9776_s17 + $0x130] sm:$0xff] %v5246_v58 }
 0x69e   : > { %v5254_v36 = vmul.f32 %v13431_v15, %v16056_v45  ;;  %v5255_v14 = vmul.f32 %v13434_v25, %v16057_v30  ;;  %5311 = vst [vmem:[%s9776_s17 + $0x138] sm:$0xff] %v5247_v41  ;;  %v16058_v28 = vld [vmem:[#allocation94_spill] sm:$0xff]  ;;  %v16059_v34 = vld [vmem:[#allocation171_spill] sm:$0xff]  ;;  %v16062_v15 = vld [vmem:[#allocation172_spill] sm:$0xff] }
 0x69f   : > { %v5256_v44 = vmul.f32 %v16059_v34, %v16058_v28  ;;  %v16060_v29 = vld [vmem:[#allocation115_spill] sm:$0xff]  ;;  %v16063_v11 = vld [vmem:[#allocation50_spill] sm:$0xff]  ;;  %5312 = vst [vmem:[%s9776_s17 + $0x140] sm:$0xff] %v5248_v7  ;;  %5313 = vst [vmem:[%s9776_s17 + $0x148] sm:$0xff] %v5249_v17 }
 0x6a0   : > { %v5257_v8 = vmul.f32 %v13440_v4, %v16060_v29  ;;  %v16061_v47 = vld [vmem:[#allocation95_spill] sm:$0xff]  ;;  %v5259_v25 = vmul.f32 %v13446_v3, %v16063_v11  ;;  %5314 = vst [vmem:[%s9776_s17 + $0x150] sm:$0xff] %v5250_v16  ;;  %5315 = vst [vmem:[%s9776_s17 + $0x158] sm:$0xff] %v5251_v18  ;;  %v16064_v46 = vld [vmem:[#allocation18_spill] sm:$0xff] }
 0x6a1   : > { %v5258_v57 = vmul.f32 %v16062_v15, %v16061_v47  ;;  %v5260_v33 = vmul.f32 %v13449_v43, %v16064_v46  ;;  %v16065_v13 = vld [vmem:[#allocation51_spill] sm:$0xff]  ;;  %v16066_v12 = vld [vmem:[#allocation57_spill] sm:$0xff]  ;;  %v16067_v9 = vld [vmem:[#allocation52_spill] sm:$0xff]  ;;  %5316 = vst [vmem:[%s9776_s17 + $0x160] sm:$0xff] %v5252_v32 }
 0x6a2   : > { %v5261_v4 = vmul.f32 %v13452_v40, %v16065_v13  ;;  %v5262_v19 = vmul.f32 %v13455_v35, %v16066_v12  ;;  %v5263_v3 = vmul.f32 %v13457_v21, %v16067_v9  ;;  %5317 = vst [vmem:[%s9776_s17 + $0x168] sm:$0xff] %v5253_v27  ;;  %5318 = vst [vmem:[%s9776_s17 + $0x170] sm:$0xff] %v5254_v36  ;;  %v16068_v43 = vld [vmem:[#allocation19_spill] sm:$0xff]  ;;  %v16069_v35 = vld [vmem:[#allocation53_spill] sm:$0xff] }
 0x6a3   : > { %5319 = vst [vmem:[%s9776_s17 + $0x178] sm:$0xff] %v5255_v14  ;;  %v5264_v40 = vmul.f32 %v13459_v56, %v16068_v43  ;;  %v5265_v21 = vmul.f32 %v13461_v26, %v16069_v35  ;;  %v16070_v37 = vld [vmem:[#allocation61_spill] sm:$0xff]  ;;  %v16071_v62 = vld [vmem:[#allocation59_spill] sm:$0xff]  ;;  %5320 = vst [vmem:[%s9776_s17 + $0x180] sm:$0xff] %v5256_v44 }
 0x6a4   : > { %v5266_v0 = vmul.f32 %v13463_v52, %v16070_v37  ;;  %v16072_v63 = vld [vmem:[#allocation173_spill] sm:$0xff]  ;;  %5321 = vst [vmem:[%s9776_s17 + $0x188] sm:$0xff] %v5257_v8  ;;  %5322 = vst [vmem:[%s9776_s17 + $0x190] sm:$0xff] %v5258_v57  ;;  %v16073_v56 = vld [vmem:[#allocation22_spill] sm:$0xff] }
 0x6a5   : > { %v5267_v55 = vmul.f32 %v16072_v63, %v16071_v62  ;;  %5323 = vst [vmem:[%s9776_s17 + $0x198] sm:$0xff] %v5259_v25  ;;  %v16074_v26 = vld [vmem:[#allocation174_spill] sm:$0xff]  ;;  %v16076_v1 = vld [vmem:[#allocation175_spill] sm:$0xff]  ;;  %v16078_v61 = vld [vmem:[#allocation176_spill] sm:$0xff] }
 0x6a6   : > { %v5268_v20 = vmul.f32 %v16074_v26, %v16073_v56  ;;  %v16075_v52 = vld [vmem:[#allocation54_spill] sm:$0xff]  ;;  %5324 = vst [vmem:[%s9776_s17 + $0x1a0] sm:$0xff] %v5260_v33  ;;  %5325 = vst [vmem:[%s9776_s17 + $0x1a8] sm:$0xff] %v5261_v4 }
 0x6a7   : > { %v5269_v2 = vmul.f32 %v16076_v1, %v16075_v52  ;;  %v16077_v5 = vld [vmem:[#allocation62_spill] sm:$0xff]  ;;  %5326 = vst [vmem:[%s9776_s17 + $0x1b0] sm:$0xff] %v5262_v19  ;;  %5327 = vst [vmem:[%s9776_s17 + $0x1b8] sm:$0xff] %v5263_v3 }
 0x6a8   : > { %v5271_v31 = vmul.f32 %v16078_v61, %v16077_v5  ;;  %5328 = vst [vmem:[%s9776_s17 + $0x1c0] sm:$0xff] %v5264_v40  ;;  %5329 = vst [vmem:[%s9776_s17 + $0x1c8] sm:$0xff] %v5265_v21 }
 0x6a9   : > { %5330 = vst [vmem:[%s9776_s17 + $0x1d0] sm:$0xff] %v5266_v0  ;;  %5331 = vst [vmem:[%s9776_s17 + $0x1d8] sm:$0xff] %v5267_v55 }
 0x6aa   : > { %5332 = vst [vmem:[%s9776_s17 + $0x1e0] sm:$0xff] %v5268_v20  ;;  %5333 = vst [vmem:[%s9776_s17 + $0x1e8] sm:$0xff] %v5269_v2 }
 0x6ab   : > { %5335 = vst [vmem:[%s9776_s17 + $0x1f8] sm:$0xff] %v5271_v31 }
 0x6ac   : > { %6761 = shalt.err (!%p6758_p5)
}
 0x6ad   : > { %s6762_s13 = scalar_lea.hbm %s13638_s8, 8192  ;;  %s6766_s7 = scalar_lea.hbm %s13718_s5, 16384 }
 0x6ae   : > { %p6763_p0 = scmp.ne.s32.totalorder %s13638_s8, %s6762_s13  ;;  %p6767_p13 = scmp.lt.u32.totalorder %s13638_s8, %s13718_s5 }
 0x6af   : > { %p6768_p7 = scmp.lt.u32.totalorder %s6766_s7, %s6762_s13  ;;  %p6770_p8 = scmp.lt.u32.totalorder %s6762_s13, %s13638_s8 }
 0x6b0   : > { %p6764_p11 = pnand %p6763_p0, %p16079_p9 }
 0x6b1   : > { %p6769_p2 = por %p6768_p7, %p6767_p13 }
 0x6b2   : > { %p6765_p6 = pneg %p6764_p11 }
 0x6b3   : > { %p6771_p10 = por %p6770_p8, %p6769_p2 }
 0x6b5   : > { %p6772_p4 = pnand %p6771_p10, %p6765_p6 }
 0x6b7   : > { %6775 = shalt.err (!%p6772_p4)
}
 0x6b8   : > { %s6837_s29 = smov 128   ;;  %s6838_s14 = smov 256  }
 0x6b9   : > { %s6839_s11 = smov 8  }
 0x6ba   : > { %6269 = dma.vmem_to_hbm [thread:$0]  (%p16079_p9), %s13652_s22, 8192, %s13638_s8, %s5337_s9, %s6837_s29, %s6838_s14, %s6839_s11  }
 0x6bb PF: > { %s5364_s23 = sand.u32 1, %s6810_s18   ;;  %p16080_p3 = scmp.ne.s32.totalorder %s14196_s6, 0 }
 0x6bc   : > { %p16081_p12 = scmp.ge.s32.totalorder %s6822_s21, 2  ;;  %s5365_s20 = scalar_lea.sflag [#allocation4], %s5364_s23 }
 0x6be   : > { %p6289_p1 = pnand %p16081_p12, %p16080_p3 }
 0x6c0   : > { %6805 = dma.done.wait (!%p6289_p1), %s5365_s20, 8192  }
 0x6c1   : > { %6807 = vsyncadd (!%p6289_p1), %s5365_s20, 4294959104  ;;  %s16082_s21 = sld [smem:[#allocation16_spill]]  ;;  %s16083_s17 = sld [smem:[#allocation15_spill]] }
 0x6c2   : > { %s16084_s20 = sld [smem:[#allocation17_spill]]  ;;  %s16085_s18 = smov %s6814_s19 }
 0x6c7   : > { %p17_p5 = scmp.ge.s32.totalorder %s16082_s21, 4   ;;  %s16086_s19 = smov %s16083_s17 }
 0x6c9   :  { %19 = sbr.rel (!%p17_p5) target bundleno = 9 (0x9), region = 114 }
 0x6d0   :  { %5370 = vsyncpa [#allocation3], 1 }
 0x6d1   :  { %5372 = vsyncpa [#allocation3 + $0x1], 1 }
 0x6d2   :  { %5373 = vsyncpa [#allocation6], 1 }
 0x6d3   :  { %5374 = vsyncpa [#allocation4], 1 }
 0x6d4   :  { %5376 = vsyncpa [#allocation4 + $0x1], 1 }

</bundles_post_ra>
